<compile_context>
chip_gen: v7x
topology: tpu7x:2x2x1
jax: 0.10.0
libtpu: 0.0.40
codegen_flags: <defaults>
</compile_context>

<pallas_src>
import math

import jax
import jax.numpy as jnp
from jax.experimental import pallas as pl
from jax.experimental.pallas import tpu as pltpu

# Logical feature sizes (in, h1, h2, h3, out) and their packed (lane) sizes.
DIMS = [28 * 28, 56 * 56, 28 * 28, 14 * 14, 10]   # 784, 3136, 784, 196, 10
DIMS_PAD = [784, 3200, 784, 256, 128]              # only out-dims padded to 128x


# --------------------------- Pallas kernel ----------------------------------

def mlp_kernel(x_ref, w1_ref, b1_ref, w2_ref, b2_ref, w3_ref, b3_ref,
               wc_ref, bc_ref, o_ref):
    # x_ref: (TM, 784) bf16 batch tile;  w*_ref: (in, out) bf16 whole-array
    # VMEM-resident;  b*_ref: (1, out) f32.  All matmuls run on the MXU with
    # f32 accumulation; bias + ReLU epilogues stay in f32 on the VPU.
    h = jnp.dot(x_ref[...], w1_ref[...], preferred_element_type=jnp.float32)
    h = jnp.maximum(h + b1_ref[...], 0.0).astype(jnp.bfloat16)      # fc1+ReLU

    h = jnp.dot(h, w2_ref[...], preferred_element_type=jnp.float32)
    h = jnp.maximum(h + b2_ref[...], 0.0).astype(jnp.bfloat16)      # fc2+ReLU

    h = jnp.dot(h, w3_ref[...], preferred_element_type=jnp.float32)
    h = jnp.maximum(h + b3_ref[...], 0.0).astype(jnp.bfloat16)      # fc3+ReLU

    o_ref[...] = jnp.dot(h, wc_ref[...],                            # classifier
                         preferred_element_type=jnp.float32) + bc_ref[...]


# --------------------------- params & packing --------------------------------

def init_params(key):
    """PyTorch-default Linear init; weights kept in PyTorch (out, in) layout."""
    params = []
    for i in range(4):
        fin, fout = DIMS[i], DIMS[i + 1]
        key, kw, kb = jax.random.split(key, 3)
        bound = 1.0 / math.sqrt(fin)
        w = jax.random.uniform(kw, (fout, fin), jnp.float32, -bound, bound)
        b = jax.random.uniform(kb, (fout,), jnp.float32, -bound, bound)
        params.append((w, b))
    return params


def pack_params(params):
    """One-time layout transform: transpose to (in, out), zero-pad only the
    dims listed in DIMS_PAD, cast weights to bf16 (biases stay f32).

    Padding is exact: padded output units have zero weight+bias, ReLU(0)=0,
    and the next layer's rows for those units are also zero; padded classifier
    columns are sliced off in the wrapper."""
    packed = []
    for i, (w, b) in enumerate(params):
        in_p, out_p = DIMS_PAD[i], DIMS_PAD[i + 1]
        wt = jnp.zeros((in_p, out_p), jnp.float32)
        wt = wt.at[: w.shape[1], : w.shape[0]].set(w.T)
        bp = jnp.zeros((1, out_p), jnp.float32)
        bp = bp.at[0, : b.shape[0]].set(b)
        packed.append((wt.astype(jnp.bfloat16), bp))
    return packed


# --------------------------- forward wrapper ---------------------------------

def _batch_tile(n):
    """Rows per grid step: 256 fills the v6e/v7x MXU when batched; small
    batches run as a single full-extent step (rounded up to a sublane of 8)."""
    if n > 256:
        return 256
    return ((n + 7) // 8) * 8


def mnist_forward(x, packed):
    """x: (N, 1, 28, 28) f32; returns (N, 10) f32 logits."""
    N = x.shape[0]
    xf = x.reshape(N, DIMS[0]).astype(jnp.bfloat16)       # Flatten + cast, no lane pad
    tm = _batch_tile(N)
    n_pad = ((N + tm - 1) // tm) * tm
    if n_pad != N:
        xf = jnp.pad(xf, ((0, n_pad - N), (0, 0)))

    (w1, b1), (w2, b2), (w3, b3), (wc, bc) = packed
    # Whole-array VMEM residency: weights/biases DMA'd once, single-buffered,
    # shared by every batch-tile grid step.
    resident = pl.BlockSpec(memory_space=pltpu.MemorySpace.VMEM)

    flops = 2 * n_pad * sum(DIMS_PAD[i] * DIMS_PAD[i + 1] for i in range(4))
    bytes_accessed = (xf.size * 2
                      + sum(w.size * 2 + b.size * 4 for w, b in packed)
                      + n_pad * DIMS_PAD[4] * 4)

    out = pl.pallas_call(
        mlp_kernel,
        out_shape=jax.ShapeDtypeStruct((n_pad, DIMS_PAD[4]), jnp.float32),
        grid=(n_pad // tm,),
        in_specs=[pl.BlockSpec((tm, DIMS_PAD[0]), lambda i: (i, 0))]  # x tiles
                 + [resident] * 8,                                    # weights/biases
        out_specs=pl.BlockSpec((tm, DIMS_PAD[4]), lambda i: (i, 0)),
        compiler_params=pltpu.CompilerParams(
            # Batch axis kept "arbitrary": the kernel is weight-DMA bound at
            # small batch; flip to "parallel" on v7x only once compute-bound
            # (each TC would then hold its own weight copy).
            dimension_semantics=("arbitrary",),
            # 64 MiB-aware (v7x) plan: ~10.6 MB resident weights + pipelined
            # activation tiles + f32 intermediates stay well under this.
            vmem_limit_bytes=40 * 1024 * 1024),
        cost_estimate=pl.CostEstimate(flops=flops, transcendentals=0,
                                      bytes_accessed=bytes_accessed),
    )(xf, w1, b1, w2, b2, w3, b3, wc, bc)
    return out[:N, : DIMS[4]]                              # drop batch/lane padding


# --------------------------- pure-JAX f32 reference --------------------------

def reference_forward(x, params):
    h = x.reshape(x.shape[0], -1).astype(jnp.float32)
    for i, (w, b) in enumerate(params):
        h = h @ w.T + b
        if i < 3:
            h = jnp.maximum(h, 0.0)
    return h


# --------------------------- main ---------------------------------------------

if __name__ == "__main__":
    key = jax.random.PRNGKey(0)
    key, kx, kp = jax.random.split(key, 3)

    # Batch of 8 MNIST-shaped inputs.
    x = jax.random.normal(kx, (8, 1, 28, 28), jnp.float32)
    params = init_params(kp)
    packed = pack_params(params)       # layout transform done once, outside forward

    forward = jax.jit(mnist_forward)
    out = jax.block_until_ready(forward(x, packed))
    assert out.shape == (8, 10)
    assert bool(jnp.all(jnp.isfinite(out)))

    ref = reference_forward(x, params)
    if not jnp.allclose(out, ref, rtol=2e-2, atol=2e-2):
        max_err = float(jnp.max(jnp.abs(out - ref)))
        raise AssertionError(
            f"Pallas output mismatch vs JAX reference, max |err| = {max_err}")

    print("KERNEL_OK")
</pallas_src>

<mosaic_0001>
module attributes {stable_mosaic.version = 11 : i64} {
  func.func @mlp_kernel(%arg0: i32, %arg1: memref<8x784xbf16, #tpu.memory_space<vmem>>, %arg2: memref<784x3200xbf16, #tpu.memory_space<vmem>>, %arg3: memref<1x3200xf32, #tpu.memory_space<vmem>>, %arg4: memref<3200x784xbf16, #tpu.memory_space<vmem>>, %arg5: memref<1x784xf32, #tpu.memory_space<vmem>>, %arg6: memref<784x256xbf16, #tpu.memory_space<vmem>>, %arg7: memref<1x256xf32, #tpu.memory_space<vmem>>, %arg8: memref<256x128xbf16, #tpu.memory_space<vmem>>, %arg9: memref<1x128xf32, #tpu.memory_space<vmem>>, %arg10: memref<8x128xf32, #tpu.memory_space<vmem>>) attributes {dimension_semantics = [#tpu.dimension_semantics<arbitrary>], iteration_bounds = array<i64: 1>, scalar_prefetch = 0 : i64, scratch_operands = 0 : i64, tpu.core_type = #tpu.core_type<tc>, window_params = [{transform_indices = @transform_0, window_bounds = array<i64: 8, 784>}, {pipeline_mode = #tpu.pipeline_mode<synchronous>, transform_indices = @transform_1, window_bounds = array<i64: 784, 3200>}, {pipeline_mode = #tpu.pipeline_mode<synchronous>, transform_indices = @transform_2, window_bounds = array<i64: 1, 3200>}, {pipeline_mode = #tpu.pipeline_mode<synchronous>, transform_indices = @transform_3, window_bounds = array<i64: 3200, 784>}, {pipeline_mode = #tpu.pipeline_mode<synchronous>, transform_indices = @transform_4, window_bounds = array<i64: 1, 784>}, {pipeline_mode = #tpu.pipeline_mode<synchronous>, transform_indices = @transform_5, window_bounds = array<i64: 784, 256>}, {pipeline_mode = #tpu.pipeline_mode<synchronous>, transform_indices = @transform_6, window_bounds = array<i64: 1, 256>}, {pipeline_mode = #tpu.pipeline_mode<synchronous>, transform_indices = @transform_7, window_bounds = array<i64: 256, 128>}, {pipeline_mode = #tpu.pipeline_mode<synchronous>, transform_indices = @transform_8, window_bounds = array<i64: 1, 128>}, {transform_indices = @transform_9, window_bounds = array<i64: 8, 128>}]} {
    %c0 = arith.constant 0 : index
    %c0_0 = arith.constant 0 : index
    %0 = vector.load %arg1[%c0, %c0_0] : memref<8x784xbf16, #tpu.memory_space<vmem>>, vector<8x784xbf16>
    %c0_1 = arith.constant 0 : index
    %c0_2 = arith.constant 0 : index
    %1 = vector.load %arg2[%c0_1, %c0_2] : memref<784x3200xbf16, #tpu.memory_space<vmem>>, vector<784x3200xbf16>
    %cst = arith.constant dense<0.000000e+00> : vector<8x3200xf32>
    %2 = tpu.matmul %0, %1, %cst {dimension_numbers = #tpu.dot_dimension_numbers<[1], [0], [0], [1], [0, 0, 1, 1], [], []>} : vector<8x784xbf16>, vector<784x3200xbf16>, vector<8x3200xf32> -> vector<8x3200xf32>
    %c0_3 = arith.constant 0 : index
    %c0_4 = arith.constant 0 : index
    %3 = vector.load %arg3[%c0_3, %c0_4] : memref<1x3200xf32, #tpu.memory_space<vmem>>, vector<1x3200xf32>
    %4 = vector.broadcast %3 : vector<1x3200xf32> to vector<8x3200xf32>
    %5 = arith.addf %2, %4 : vector<8x3200xf32>
    %cst_5 = arith.constant 0.000000e+00 : f32
    %6 = vector.broadcast %cst_5 : f32 to vector<8x3200xf32>
    %7 = arith.maximumf %5, %6 : vector<8x3200xf32>
    %8 = arith.truncf %7 : vector<8x3200xf32> to vector<8x3200xbf16>
    %c0_6 = arith.constant 0 : index
    %c0_7 = arith.constant 0 : index
    %9 = vector.load %arg4[%c0_6, %c0_7] : memref<3200x784xbf16, #tpu.memory_space<vmem>>, vector<3200x784xbf16>
    %cst_8 = arith.constant dense<0.000000e+00> : vector<8x784xf32>
    %10 = tpu.matmul %8, %9, %cst_8 {dimension_numbers = #tpu.dot_dimension_numbers<[1], [0], [0], [1], [0, 0, 1, 1], [], []>} : vector<8x3200xbf16>, vector<3200x784xbf16>, vector<8x784xf32> -> vector<8x784xf32>
    %c0_9 = arith.constant 0 : index
    %c0_10 = arith.constant 0 : index
    %11 = vector.load %arg5[%c0_9, %c0_10] : memref<1x784xf32, #tpu.memory_space<vmem>>, vector<1x784xf32>
    %12 = vector.broadcast %11 : vector<1x784xf32> to vector<8x784xf32>
    %13 = arith.addf %10, %12 : vector<8x784xf32>
    %cst_11 = arith.constant 0.000000e+00 : f32
    %14 = vector.broadcast %cst_11 : f32 to vector<8x784xf32>
    %15 = arith.maximumf %13, %14 : vector<8x784xf32>
    %16 = arith.truncf %15 : vector<8x784xf32> to vector<8x784xbf16>
    %c0_12 = arith.constant 0 : index
    %c0_13 = arith.constant 0 : index
    %17 = vector.load %arg6[%c0_12, %c0_13] : memref<784x256xbf16, #tpu.memory_space<vmem>>, vector<784x256xbf16>
    %cst_14 = arith.constant dense<0.000000e+00> : vector<8x256xf32>
    %18 = tpu.matmul %16, %17, %cst_14 {dimension_numbers = #tpu.dot_dimension_numbers<[1], [0], [0], [1], [0, 0, 1, 1], [], []>} : vector<8x784xbf16>, vector<784x256xbf16>, vector<8x256xf32> -> vector<8x256xf32>
    %c0_15 = arith.constant 0 : index
    %c0_16 = arith.constant 0 : index
    %19 = vector.load %arg7[%c0_15, %c0_16] : memref<1x256xf32, #tpu.memory_space<vmem>>, vector<1x256xf32>
    %20 = vector.broadcast %19 : vector<1x256xf32> to vector<8x256xf32>
    %21 = arith.addf %18, %20 : vector<8x256xf32>
    %cst_17 = arith.constant 0.000000e+00 : f32
    %22 = vector.broadcast %cst_17 : f32 to vector<8x256xf32>
    %23 = arith.maximumf %21, %22 : vector<8x256xf32>
    %24 = arith.truncf %23 : vector<8x256xf32> to vector<8x256xbf16>
    %c0_18 = arith.constant 0 : index
    %c0_19 = arith.constant 0 : index
    %25 = vector.load %arg8[%c0_18, %c0_19] : memref<256x128xbf16, #tpu.memory_space<vmem>>, vector<256x128xbf16>
    %cst_20 = arith.constant dense<0.000000e+00> : vector<8x128xf32>
    %26 = tpu.matmul %24, %25, %cst_20 {dimension_numbers = #tpu.dot_dimension_numbers<[1], [0], [0], [1], [0, 0, 1, 1], [], []>} : vector<8x256xbf16>, vector<256x128xbf16>, vector<8x128xf32> -> vector<8x128xf32>
    %c0_21 = arith.constant 0 : index
    %c0_22 = arith.constant 0 : index
    %27 = vector.load %arg9[%c0_21, %c0_22] : memref<1x128xf32, #tpu.memory_space<vmem>>, vector<1x128xf32>
    %28 = vector.broadcast %27 : vector<1x128xf32> to vector<8x128xf32>
    %29 = arith.addf %26, %28 : vector<8x128xf32>
    %c0_23 = arith.constant 0 : index
    %c0_24 = arith.constant 0 : index
    %30 = vector.load %arg10[%c0_23, %c0_24] : memref<8x128xf32, #tpu.memory_space<vmem>>, vector<8x128xf32>
    tpu.vector_store %arg10[%c0_23, %c0_24], %29 {strides = array<i32>} : memref<8x128xf32, #tpu.memory_space<vmem>>, vector<8x128xf32>,
    return
  }
  func.func @transform_0(%arg0: i32) -> (i32, i32) {
    %c0_i32 = arith.constant 0 : i32
    %c0_i32_0 = arith.constant 0 : i32
    return %arg0, %c0_i32 : i32, i32
  }
  func.func @transform_1(%arg0: i32) -> (i32, i32) {
    %c0_i32 = arith.constant 0 : i32
    %c0_i32_0 = arith.constant 0 : i32
    %c0_i32_1 = arith.constant 0 : i32
    return %c0_i32, %c0_i32_0 : i32, i32
  }
  func.func @transform_2(%arg0: i32) -> (i32, i32) {
    %c0_i32 = arith.constant 0 : i32
    %c0_i32_0 = arith.constant 0 : i32
    %c0_i32_1 = arith.constant 0 : i32
    return %c0_i32, %c0_i32_0 : i32, i32
  }
  func.func @transform_3(%arg0: i32) -> (i32, i32) {
    %c0_i32 = arith.constant 0 : i32
    %c0_i32_0 = arith.constant 0 : i32
    %c0_i32_1 = arith.constant 0 : i32
    return %c0_i32, %c0_i32_0 : i32, i32
  }
  func.func @transform_4(%arg0: i32) -> (i32, i32) {
    %c0_i32 = arith.constant 0 : i32
    %c0_i32_0 = arith.constant 0 : i32
    %c0_i32_1 = arith.constant 0 : i32
    return %c0_i32, %c0_i32_0 : i32, i32
  }
  func.func @transform_5(%arg0: i32) -> (i32, i32) {
    %c0_i32 = arith.constant 0 : i32
    %c0_i32_0 = arith.constant 0 : i32
    %c0_i32_1 = arith.constant 0 : i32
    return %c0_i32, %c0_i32_0 : i32, i32
  }
  func.func @transform_6(%arg0: i32) -> (i32, i32) {
    %c0_i32 = arith.constant 0 : i32
    %c0_i32_0 = arith.constant 0 : i32
    %c0_i32_1 = arith.constant 0 : i32
    return %c0_i32, %c0_i32_0 : i32, i32
  }
  func.func @transform_7(%arg0: i32) -> (i32, i32) {
    %c0_i32 = arith.constant 0 : i32
    %c0_i32_0 = arith.constant 0 : i32
    %c0_i32_1 = arith.constant 0 : i32
    return %c0_i32, %c0_i32_0 : i32, i32
  }
  func.func @transform_8(%arg0: i32) -> (i32, i32) {
    %c0_i32 = arith.constant 0 : i32
    %c0_i32_0 = arith.constant 0 : i32
    %c0_i32_1 = arith.constant 0 : i32
    return %c0_i32, %c0_i32_0 : i32, i32
  }
  func.func @transform_9(%arg0: i32) -> (i32, i32) {
    %c0_i32 = arith.constant 0 : i32
    %c0_i32_0 = arith.constant 0 : i32
    return %arg0, %c0_i32 : i32, i32
  }
}

</mosaic_0001>

<bundles_post_ra>
// kernel: mnist_forward.1
= control target key start
LH: loop header
LB: loop body
LE: loop exit
PB: predicated region body
PF: predicated region fallthrough
CT: control target
= control target key end

     0   :  { %vm7643_vm0 = vcmask 130048   ;;  %vm29262_vm1 = vmmov 0   ;;  %s38157_s0 = inlined_call_operand.vmem [shape: bf16[8,784], index: 0, kind: input, shape index: {}]   ;;  %s38158_s1 = inlined_call_operand.vmem [shape: bf16[784,3200], index: 1, kind: input, shape index: {}]   ;;  %s38159_s2 = inlined_call_operand.vmem [shape: f32[1,3200], index: 2, kind: input, shape index: {}]   ;;  %s38160_s3 = inlined_call_operand.vmem [shape: bf16[3200,784], index: 3, kind: input, shape index: {}]   ;;  %s38161_s4 = inlined_call_operand.vmem [shape: f32[1,784], index: 4, kind: input, shape index: {}]   ;;  %s38162_s5 = inlined_call_operand.vmem [shape: bf16[784,256], index: 5, kind: input, shape index: {}]   ;;  %s38163_s6 = inlined_call_operand.vmem [shape: f32[1,256], index: 6, kind: input, shape index: {}]   ;;  %s38164_s7 = inlined_call_operand.vmem [shape: bf16[256,128], index: 7, kind: input, shape index: {}]   ;;  %s38165_s8 = inlined_call_operand.vmem [shape: f32[1,128], index: 8, kind: input, shape index: {}]   ;;  %s38166_s9 = inlined_call_operand.hbm [shape: f32[8,128], index: 9, kind: output, shape index: {}]  }
   0x1   :  { %v25241_v0 = vld [vmem:[%s38158_s1 + $0x4] ss:$100 sps:$4 sm:$0xff]   ;;  %v25243_v1 = vld [vmem:[%s38158_s1 + $0xc8c] ss:$100 sps:$4 sm:$0xff]   ;;  %v25249_v5 = vld [vmem:[%s38158_s1 + $0xd54] ss:$100 sps:$4 sm:$0xff]  }
   0x2   :  { %7647 = vmatprep.subr.bf16.mxu0 %v25241_v0  ;;  %v25245_v2 = vld [vmem:[%s38158_s1] ss:$100 sps:$4 sm:$0xff]   ;;  %v25246_v3 = vld [vmem:[%s38158_s1 + $0xc88] ss:$100 sps:$4 sm:$0xff]   ;;  %7852 = vmatprep.subr.bf16.mxu1 %v25243_v1  ;;  %v25252_v7 = vld [vmem:[%s38158_s1 + $0xd50] ss:$100 sps:$4 sm:$0xff]  }
   0x3   :  { %v25247_v4 = vld [vmem:[%s38158_s1 + $0xcc] ss:$100 sps:$4 sm:$0xff]   ;;  %7648 = vmatpush1.bf16.msra.mxu0 %v25245_v2  ;;  %7853 = vmatpush1.bf16.msra.mxu1 %v25246_v3  ;;  %v25253_v8 = vld [vmem:[%s38158_s1 + $0x194] ss:$100 sps:$4 sm:$0xff]   ;;  %v25255_v9 = vld [vmem:[%s38158_s1 + $0xe1c] ss:$100 sps:$4 sm:$0xff]  }
   0x4   :  { %v25251_v6 = vld [vmem:[%s38158_s1 + $0xc8] ss:$100 sps:$4 sm:$0xff]   ;;  %7649 = vmatprep.subr.bf16.mxu0 %v25247_v4  ;;  %7854 = vmatprep.subr.bf16.mxu1 %v25249_v5  ;;  %v25257_v10 = vld [vmem:[%s38158_s1 + $0x190] ss:$100 sps:$4 sm:$0xff]   ;;  %v25258_v11 = vld [vmem:[%s38158_s1 + $0xe18] ss:$100 sps:$4 sm:$0xff]  }
   0x5   :  { %v25259_v12 = vld [vmem:[%s38158_s1 + $0x25c] ss:$100 sps:$4 sm:$0xff]   ;;  %v25261_v13 = vld [vmem:[%s38158_s1 + $0xee4] ss:$100 sps:$4 sm:$0xff]   ;;  %v25267_v17 = vld [vmem:[%s38158_s1 + $0xfac] ss:$100 sps:$4 sm:$0xff]  }
   0x6   :  { %v25263_v14 = vld [vmem:[%s38158_s1 + $0x258] ss:$100 sps:$4 sm:$0xff]   ;;  %v25264_v15 = vld [vmem:[%s38158_s1 + $0xee0] ss:$100 sps:$4 sm:$0xff]   ;;  %v25270_v19 = vld [vmem:[%s38158_s1 + $0xfa8] ss:$100 sps:$4 sm:$0xff]  }
   0x7   :  { %7650 = vmatpush1.bf16.msra.mxu0 %v25251_v6  ;;  %7855 = vmatpush1.bf16.msra.mxu1 %v25252_v7  ;;  %v25265_v16 = vld [vmem:[%s38158_s1 + $0x324] ss:$100 sps:$4 sm:$0xff]   ;;  %v25271_v20 = vld [vmem:[%s38158_s1 + $0x3ec] ss:$100 sps:$4 sm:$0xff]   ;;  %v25273_v21 = vld [vmem:[%s38158_s1 + $0x1074] ss:$100 sps:$4 sm:$0xff]  }
   0x8   :  { %7651 = vmatprep.subr.bf16.mxu0 %v25253_v8  ;;  %7856 = vmatprep.subr.bf16.mxu1 %v25255_v9  ;;  %v25269_v18 = vld [vmem:[%s38158_s1 + $0x320] ss:$100 sps:$4 sm:$0xff]   ;;  %v25275_v22 = vld [vmem:[%s38158_s1 + $0x3e8] ss:$100 sps:$4 sm:$0xff]   ;;  %v25276_v23 = vld [vmem:[%s38158_s1 + $0x1070] ss:$100 sps:$4 sm:$0xff]  }
   0x9   :  { %v25277_v24 = vld [vmem:[%s38158_s1 + $0x4b4] ss:$100 sps:$4 sm:$0xff]   ;;  %v25279_v25 = vld [vmem:[%s38158_s1 + $0x113c] ss:$100 sps:$4 sm:$0xff]   ;;  %v25285_v29 = vld [vmem:[%s38158_s1 + $0x1204] ss:$100 sps:$4 sm:$0xff]  }
   0xa   :  { %v25281_v26 = vld [vmem:[%s38158_s1 + $0x4b0] ss:$100 sps:$4 sm:$0xff]   ;;  %v25282_v27 = vld [vmem:[%s38158_s1 + $0x1138] ss:$100 sps:$4 sm:$0xff]   ;;  %v25288_v31 = vld [vmem:[%s38158_s1 + $0x1200] ss:$100 sps:$4 sm:$0xff]  }
   0xb   :  { %7652 = vmatpush1.bf16.msra.mxu0 %v25257_v10  ;;  %7857 = vmatpush1.bf16.msra.mxu1 %v25258_v11  ;;  %v25283_v28 = vld [vmem:[%s38158_s1 + $0x57c] ss:$100 sps:$4 sm:$0xff]   ;;  %v25289_v32 = vld [vmem:[%s38158_s1 + $0x644] ss:$100 sps:$4 sm:$0xff]   ;;  %v25291_v33 = vld [vmem:[%s38158_s1 + $0x12cc] ss:$100 sps:$4 sm:$0xff]  }
   0xc   :  { %7653 = vmatprep.subr.bf16.mxu0 %v25259_v12  ;;  %7858 = vmatprep.subr.bf16.mxu1 %v25261_v13  ;;  %v25287_v30 = vld [vmem:[%s38158_s1 + $0x578] ss:$100 sps:$4 sm:$0xff]   ;;  %v25293_v34 = vld [vmem:[%s38158_s1 + $0x640] ss:$100 sps:$4 sm:$0xff]   ;;  %v25294_v35 = vld [vmem:[%s38158_s1 + $0x12c8] ss:$100 sps:$4 sm:$0xff]  }
   0xd   :  { %v25295_v36 = vld [vmem:[%s38158_s1 + $0x70c] ss:$100 sps:$4 sm:$0xff]   ;;  %v25297_v37 = vld [vmem:[%s38158_s1 + $0x1394] ss:$100 sps:$4 sm:$0xff]   ;;  %v25303_v41 = vld [vmem:[%s38158_s1 + $0x145c] ss:$100 sps:$4 sm:$0xff]  }
   0xe   :  { %v25299_v38 = vld [vmem:[%s38158_s1 + $0x708] ss:$100 sps:$4 sm:$0xff]   ;;  %v25300_v39 = vld [vmem:[%s38158_s1 + $0x1390] ss:$100 sps:$4 sm:$0xff]   ;;  %v25306_v43 = vld [vmem:[%s38158_s1 + $0x1458] ss:$100 sps:$4 sm:$0xff]  }
   0xf   :  { %7654 = vmatpush1.bf16.msra.mxu0 %v25263_v14  ;;  %7859 = vmatpush1.bf16.msra.mxu1 %v25264_v15  ;;  %v25301_v40 = vld [vmem:[%s38158_s1 + $0x7d4] ss:$100 sps:$4 sm:$0xff]   ;;  %v25307_v44 = vld [vmem:[%s38158_s1 + $0x89c] ss:$100 sps:$4 sm:$0xff]   ;;  %v25309_v45 = vld [vmem:[%s38158_s1 + $0x1524] ss:$100 sps:$4 sm:$0xff]  }
  0x10   :  { %7655 = vmatprep.subr.bf16.mxu0 %v25265_v16  ;;  %7860 = vmatprep.subr.bf16.mxu1 %v25267_v17  ;;  %v25305_v42 = vld [vmem:[%s38158_s1 + $0x7d0] ss:$100 sps:$4 sm:$0xff]   ;;  %v34_v46 = vld [vmem:[%s38157_s0] sm:$0xff]  ;;  %v25311_v47 = vld [vmem:[%s38158_s1 + $0x898] ss:$100 sps:$4 sm:$0xff]  }
  0x11   :  { %v29458_v48 = vcombine.high %v34_v46, %v34_v46  ;;  %v25312_v49 = vld [vmem:[%s38158_s1 + $0x1520] ss:$100 sps:$4 sm:$0xff]   ;;  %v35_v50 = vld [vmem:[%s38157_s0 + $0x8] sm:$0xff]  ;;  %v25321_v57 = vld [vmem:[%s38158_s1 + $0x16b4] ss:$100 sps:$4 sm:$0xff]   ;;  %v29524_v6 = vcombine.low %v34_v46, %v34_v46 }
  0x12   :  { %v25313_v51 = vld [vmem:[%s38158_s1 + $0x964] ss:$100 sps:$4 sm:$0xff]   ;;  %v25315_v52 = vld [vmem:[%s38158_s1 + $0x15ec] ss:$100 sps:$4 sm:$0xff]   ;;  %v29472_v53 = vcombine.high %v35_v50, %v35_v50  ;;  %v25325_v60 = vld [vmem:[%s38158_s1 + $0xaf4] ss:$100 sps:$4 sm:$0xff]   ;;  %v29526_v7 = vcombine.low %v35_v50, %v35_v50 }
  0x13   :  { %7656 = vmatpush1.bf16.msra.mxu0 %v25269_v18  ;;  %7861 = vmatpush1.bf16.msra.mxu1 %v25270_v19  ;;  %v25317_v54 = vld [vmem:[%s38158_s1 + $0x960] ss:$100 sps:$4 sm:$0xff]   ;;  %v25318_v55 = vld [vmem:[%s38158_s1 + $0x15e8] ss:$100 sps:$4 sm:$0xff]   ;;  %v25324_v59 = vld [vmem:[%s38158_s1 + $0x16b0] ss:$100 sps:$4 sm:$0xff]  }
  0x14   :  { %7657 = vmatprep.subr.bf16.mxu0 %v25271_v20  ;;  %7862 = vmatprep.subr.bf16.mxu1 %v25273_v21  ;;  %v25319_v56 = vld [vmem:[%s38158_s1 + $0xa2c] ss:$100 sps:$4 sm:$0xff]   ;;  %v25327_v61 = vld [vmem:[%s38158_s1 + $0x177c] ss:$100 sps:$4 sm:$0xff]   ;;  %v25333_v1 = vld [vmem:[%s38158_s1 + $0x1844] ss:$100 sps:$4 sm:$0xff]  }
  0x15   :  { %7679 = vmatprep.mubr.bf16.mxu0 %v29458_v48  ;;  %7884 = vmatprep.mubr.bf16.mxu1 %v29472_v53  ;;  %v25323_v58 = vld [vmem:[%s38158_s1 + $0xa28] ss:$100 sps:$4 sm:$0xff]   ;;  %v25329_v62 = vld [vmem:[%s38158_s1 + $0xaf0] ss:$100 sps:$4 sm:$0xff]   ;;  %v25330_v63 = vld [vmem:[%s38158_s1 + $0x1778] ss:$100 sps:$4 sm:$0xff]  }
  0x16   :  { %v25331_v0 = vld [vmem:[%s38158_s1 + $0xbbc] ss:$100 sps:$4 sm:$0xff]   ;;  %v25340_v4 = vld [vmem:[%s38158_s1 + $0xc84] ss:$100 sps:$4 sm:$0xff]   ;;  %v25344_v5 = vld [vmem:[%s38158_s1 + $0x190c] ss:$100 sps:$4 sm:$0xff]  }
  0x17   :  { %7658 = vmatpush1.bf16.msra.mxu0 %v25275_v22  ;;  %7863 = vmatpush1.bf16.msra.mxu1 %v25276_v23  ;;  %v25335_v2 = vld [vmem:[%s38158_s1 + $0xbb8] ss:$100 sps:$4 sm:$0xff]   ;;  %v25336_v3 = vld [vmem:[%s38158_s1 + $0x1840] ss:$100 sps:$4 sm:$0xff]   ;;  %v25342_v9 = vld [vmem:[%s38158_s1 + $0x1908] ss:$100 sps:$4 sm:$0xff]  }
  0x18   :  { %7659 = vmatprep.subr.bf16.mxu0 %v25277_v24  ;;  %7864 = vmatprep.subr.bf16.mxu1 %v25279_v25  ;;  %v25338_v8 = vld [vmem:[%s38158_s1 + $0xc80] ss:$100 sps:$4 sm:$0xff]   ;;  %v25349_v10 = vld [vmem:[%s38158_s1 + $0xd4c] ss:$100 sps:$4 sm:$0xff]   ;;  %v25352_v11 = vld [vmem:[%s38158_s1 + $0x19d4] ss:$100 sps:$4 sm:$0xff]  }
  0x19   :  { %v25347_v12 = vld [vmem:[%s38158_s1 + $0xd48] ss:$100 sps:$4 sm:$0xff]   ;;  %v25350_v13 = vld [vmem:[%s38158_s1 + $0x19d0] ss:$100 sps:$4 sm:$0xff]   ;;  %v25358_v15 = vld [vmem:[%s38158_s1 + $0x1a9c] ss:$100 sps:$4 sm:$0xff]  }
  0x1a   :  { %v25355_v14 = vld [vmem:[%s38158_s1 + $0xe14] ss:$100 sps:$4 sm:$0xff]   ;;  %v25361_v18 = vld [vmem:[%s38158_s1 + $0xedc] ss:$100 sps:$4 sm:$0xff]   ;;  %v25364_v19 = vld [vmem:[%s38158_s1 + $0x1b64] ss:$100 sps:$4 sm:$0xff]  }
  0x1b   :  { %7660 = vmatpush1.bf16.msra.mxu0 %v25281_v26  ;;  %7865 = vmatpush1.bf16.msra.mxu1 %v25282_v27  ;;  %v25353_v16 = vld [vmem:[%s38158_s1 + $0xe10] ss:$100 sps:$4 sm:$0xff]   ;;  %v25356_v17 = vld [vmem:[%s38158_s1 + $0x1a98] ss:$100 sps:$4 sm:$0xff]   ;;  %v25362_v21 = vld [vmem:[%s38158_s1 + $0x1b60] ss:$100 sps:$4 sm:$0xff]  }
  0x1c   :  { %7661 = vmatprep.subr.bf16.mxu0 %v25283_v28  ;;  %7866 = vmatprep.subr.bf16.mxu1 %v25285_v29  ;;  %v25359_v20 = vld [vmem:[%s38158_s1 + $0xed8] ss:$100 sps:$4 sm:$0xff]   ;;  %v25367_v22 = vld [vmem:[%s38158_s1 + $0xfa4] ss:$100 sps:$4 sm:$0xff]   ;;  %v25370_v23 = vld [vmem:[%s38158_s1 + $0x1c2c] ss:$100 sps:$4 sm:$0xff]  }
  0x1d   :  { %v25365_v24 = vld [vmem:[%s38158_s1 + $0xfa0] ss:$100 sps:$4 sm:$0xff]   ;;  %v25368_v25 = vld [vmem:[%s38158_s1 + $0x1c28] ss:$100 sps:$4 sm:$0xff]   ;;  %v25376_v27 = vld [vmem:[%s38158_s1 + $0x1cf4] ss:$100 sps:$4 sm:$0xff]  }
  0x1e   :  { %v25373_v26 = vld [vmem:[%s38158_s1 + $0x106c] ss:$100 sps:$4 sm:$0xff]   ;;  %v25406_v50 = vld [vmem:[%s38158_s1 + $0x20dc] ss:$100 sps:$4 sm:$0xff]  }
  0x1f   :  { %7662 = vmatpush1.bf16.msra.mxu0 %v25287_v30  ;;  %7867 = vmatpush1.bf16.msra.mxu1 %v25288_v31  ;;  %v25371_v28 = vld [vmem:[%s38158_s1 + $0x1068] ss:$100 sps:$4 sm:$0xff]   ;;  %v25374_v29 = vld [vmem:[%s38158_s1 + $0x1cf0] ss:$100 sps:$4 sm:$0xff]   ;;  %v25382_v31 = vld [vmem:[%s38158_s1 + $0x1dbc] ss:$100 sps:$4 sm:$0xff]  }
  0x20   :  { %7663 = vmatprep.subr.bf16.mxu0 %v25289_v32  ;;  %7868 = vmatprep.subr.bf16.mxu1 %v25291_v33  ;;  %v25379_v30 = vld [vmem:[%s38158_s1 + $0x1134] ss:$100 sps:$4 sm:$0xff]   ;;  %v25395_v46 = vld [vmem:[%s38158_s1 + $0x1388] ss:$100 sps:$4 sm:$0xff]  }
  0x21   :  { %v29606_v32 = vld [vmem:[%s38157_s0 + $0x10] sm:$0xff] }
  0x22   :  { %v25377_v33 = vld [vmem:[%s38158_s1 + $0x1130] ss:$100 sps:$4 sm:$0xff]  }
  0x23   :  { %7664 = vmatpush1.bf16.msra.mxu0 %v25293_v34  ;;  %7869 = vmatpush1.bf16.msra.mxu1 %v25294_v35  ;;  %v29613_v34 = vcombine.high %v29606_v32, %v29606_v32  ;;  %v25380_v35 = vld [vmem:[%s38158_s1 + $0x1db8] ss:$100 sps:$4 sm:$0xff]  }
  0x24   :  { %7665 = vmatprep.subr.bf16.mxu0 %v25295_v36  ;;  %7870 = vmatprep.subr.bf16.mxu1 %v25297_v37  ;;  %v25385_v36 = vld [vmem:[%s38158_s1 + $0x11fc] ss:$100 sps:$4 sm:$0xff]   ;;  %v25388_v37 = vld [vmem:[%s38158_s1 + $0x1e84] ss:$100 sps:$4 sm:$0xff]  }
  0x27   :  { %7666 = vmatpush1.bf16.msra.mxu0 %v25299_v38  ;;  %7871 = vmatpush1.bf16.msra.mxu1 %v25300_v39  ;;  %v25383_v38 = vld [vmem:[%s38158_s1 + $0x11f8] ss:$100 sps:$4 sm:$0xff]   ;;  %v25386_v39 = vld [vmem:[%s38158_s1 + $0x1e80] ss:$100 sps:$4 sm:$0xff]  }
  0x28   :  { %7667 = vmatprep.subr.bf16.mxu0 %v25301_v40  ;;  %7872 = vmatprep.subr.bf16.mxu1 %v25303_v41  ;;  %v25391_v40 = vld [vmem:[%s38158_s1 + $0x12c4] ss:$100 sps:$4 sm:$0xff]   ;;  %v25394_v41 = vld [vmem:[%s38158_s1 + $0x1f4c] ss:$100 sps:$4 sm:$0xff]  }
  0x2b   :  { %7668 = vmatpush1.bf16.msra.mxu0 %v25305_v42  ;;  %7873 = vmatpush1.bf16.msra.mxu1 %v25306_v43  ;;  %v25389_v42 = vld [vmem:[%s38158_s1 + $0x12c0] ss:$100 sps:$4 sm:$0xff]   ;;  %v25392_v43 = vld [vmem:[%s38158_s1 + $0x1f48] ss:$100 sps:$4 sm:$0xff]  }
  0x2c   :  { %7669 = vmatprep.subr.bf16.mxu0 %v25307_v44  ;;  %7874 = vmatprep.subr.bf16.mxu1 %v25309_v45  ;;  %v25397_v44 = vld [vmem:[%s38158_s1 + $0x138c] ss:$100 sps:$4 sm:$0xff]   ;;  %v25400_v45 = vld [vmem:[%s38158_s1 + $0x2014] ss:$100 sps:$4 sm:$0xff]  }
  0x2f   :  { %7670 = vmatpush1.bf16.msra.mxu0 %v25311_v47  ;;  %7875 = vmatpush1.bf16.msra.mxu1 %v25312_v49  ;;  %v25398_v47 = vld [vmem:[%s38158_s1 + $0x2010] ss:$100 sps:$4 sm:$0xff]  }
  0x30   :  { %7671 = vmatprep.subr.bf16.mxu0 %v25313_v51  ;;  %7876 = vmatprep.subr.bf16.mxu1 %v25315_v52  ;;  %v25403_v49 = vld [vmem:[%s38158_s1 + $0x1454] ss:$100 sps:$4 sm:$0xff]  }
  0x31   :  { %v25401_v51 = vld [vmem:[%s38158_s1 + $0x1450] ss:$100 sps:$4 sm:$0xff]   ;;  %v25404_v52 = vld [vmem:[%s38158_s1 + $0x20d8] ss:$100 sps:$4 sm:$0xff]  }
  0x33   :  { %7672 = vmatpush1.bf16.msra.mxu0 %v25317_v54  ;;  %7877 = vmatpush1.bf16.msra.mxu1 %v25318_v55  ;;  %v25409_v54 = vld [vmem:[%s38158_s1 + $0x151c] ss:$100 sps:$4 sm:$0xff]   ;;  %v25412_v55 = vld [vmem:[%s38158_s1 + $0x21a4] ss:$100 sps:$4 sm:$0xff]  }
  0x34   :  { %7673 = vmatprep.subr.bf16.mxu0 %v25319_v56  ;;  %7878 = vmatprep.subr.bf16.mxu1 %v25321_v57  ;;  %v25407_v56 = vld [vmem:[%s38158_s1 + $0x1518] ss:$100 sps:$4 sm:$0xff]   ;;  %v25410_v57 = vld [vmem:[%s38158_s1 + $0x21a0] ss:$100 sps:$4 sm:$0xff]  }
  0x37   :  { %7674 = vmatpush1.bf16.msra.mxu0 %v25323_v58  ;;  %7879 = vmatpush1.bf16.msra.mxu1 %v25324_v59  ;;  %v25415_v58 = vld [vmem:[%s38158_s1 + $0x15e4] ss:$100 sps:$4 sm:$0xff]   ;;  %v25418_v59 = vld [vmem:[%s38158_s1 + $0x226c] ss:$100 sps:$4 sm:$0xff]  }
  0x38   :  { %7675 = vmatprep.subr.bf16.mxu0 %v25325_v60  ;;  %7880 = vmatprep.subr.bf16.mxu1 %v25327_v61  ;;  %v25413_v60 = vld [vmem:[%s38158_s1 + $0x15e0] ss:$100 sps:$4 sm:$0xff]   ;;  %v25416_v61 = vld [vmem:[%s38158_s1 + $0x2268] ss:$100 sps:$4 sm:$0xff]  }
  0x3b   :  { %7676 = vmatpush1.bf16.msra.mxu0 %v25329_v62  ;;  %7881 = vmatpush1.bf16.msra.mxu1 %v25330_v63  ;;  %v25421_v62 = vld [vmem:[%s38158_s1 + $0x16ac] ss:$100 sps:$4 sm:$0xff]   ;;  %v25424_v63 = vld [vmem:[%s38158_s1 + $0x2334] ss:$100 sps:$4 sm:$0xff]  }
  0x3c   :  { %7677 = vmatprep.subr.bf16.mxu0 %v25331_v0  ;;  %7882 = vmatprep.subr.bf16.mxu1 %v25333_v1  ;;  %v25419_v0 = vld [vmem:[%s38158_s1 + $0x16a8] ss:$100 sps:$4 sm:$0xff]   ;;  %v25422_v1 = vld [vmem:[%s38158_s1 + $0x2330] ss:$100 sps:$4 sm:$0xff]  }
  0x3f   :  { %7678 = vmatpush1.bf16.msra.mxu0 %v25335_v2  ;;  %7883 = vmatpush1.bf16.msra.mxu1 %v25336_v3  ;;  %v25427_v2 = vld [vmem:[%s38158_s1 + $0x1774] ss:$100 sps:$4 sm:$0xff]   ;;  %v25430_v3 = vld [vmem:[%s38158_s1 + $0x23fc] ss:$100 sps:$4 sm:$0xff]  }
  0x40   :  { %7688 = vmatprep.subr.bf16.mxu0 %v25340_v4  ;;  %7893 = vmatprep.subr.bf16.mxu1 %v25344_v5  ;;  %v25425_v4 = vld [vmem:[%s38158_s1 + $0x1770] ss:$100 sps:$4 sm:$0xff]   ;;  %v25428_v5 = vld [vmem:[%s38158_s1 + $0x23f8] ss:$100 sps:$4 sm:$0xff]  }
  0x42   :  { %7680 = vmatmul.mubr.bf16.vlgmr.msra.gmra.mrb[0].mxu0 %v29524_v6  ;;  %7885 = vmatmul.mubr.bf16.vlgmr.msra.gmra.mrb[0].mxu1 %v29526_v7 }
  0x43   :  { %7689 = vmatpush1.bf16.msra.mxu0 %v25338_v8  ;;  %7894 = vmatpush1.bf16.msra.mxu1 %v25342_v9  ;;  %v25433_v8 = vld [vmem:[%s38158_s1 + $0x183c] ss:$100 sps:$4 sm:$0xff]   ;;  %v25436_v9 = vld [vmem:[%s38158_s1 + $0x24c4] ss:$100 sps:$4 sm:$0xff]  }
  0x44   :  { %7690 = vmatprep.subr.bf16.mxu0 %v25349_v10  ;;  %7895 = vmatprep.subr.bf16.mxu1 %v25352_v11  ;;  %v25431_v10 = vld [vmem:[%s38158_s1 + $0x1838] ss:$100 sps:$4 sm:$0xff]   ;;  %v25434_v11 = vld [vmem:[%s38158_s1 + $0x24c0] ss:$100 sps:$4 sm:$0xff]  }
  0x45   :  { %7720 = vmatprep.mubr.bf16.mxu0 %v29472_v53  ;;  %7925 = vmatprep.mubr.bf16.mxu1 %v29613_v34 }
  0x47   :  { %7691 = vmatpush1.bf16.msra.mxu0 %v25347_v12  ;;  %7896 = vmatpush1.bf16.msra.mxu1 %v25350_v13  ;;  %v25440_v12 = vld [vmem:[%s38158_s1 + $0x1904] ss:$100 sps:$4 sm:$0xff]   ;;  %v25444_v13 = vld [vmem:[%s38158_s1 + $0x258c] ss:$100 sps:$4 sm:$0xff]  }
  0x48   :  { %7692 = vmatprep.subr.bf16.mxu0 %v25355_v14  ;;  %7897 = vmatprep.subr.bf16.mxu1 %v25358_v15  ;;  %v25438_v14 = vld [vmem:[%s38158_s1 + $0x1900] ss:$100 sps:$4 sm:$0xff]   ;;  %v29738_v15 = vcombine.low %v29606_v32, %v29606_v32  ;;  %v25469_v32 = vld [vmem:[%s38158_s1 + $0x1cec] ss:$100 sps:$4 sm:$0xff]  }
  0x4b   :  { %7693 = vmatpush1.bf16.msra.mxu0 %v25353_v16  ;;  %7898 = vmatpush1.bf16.msra.mxu1 %v25356_v17  ;;  %v25442_v16 = vld [vmem:[%s38158_s1 + $0x2588] ss:$100 sps:$4 sm:$0xff]  }
  0x4c   :  { %7694 = vmatprep.subr.bf16.mxu0 %v25361_v18  ;;  %7899 = vmatprep.subr.bf16.mxu1 %v25364_v19  ;;  %v25447_v17 = vld [vmem:[%s38158_s1 + $0x19cc] ss:$100 sps:$4 sm:$0xff]   ;;  %v25453_v18 = vld [vmem:[%s38158_s1 + $0x1c] ss:$100 sps:$4 sm:$0xff]  }
  0x4d   :  { %v25445_v19 = vld [vmem:[%s38158_s1 + $0x19c8] ss:$100 sps:$4 sm:$0xff]  }
  0x4f   :  { %7695 = vmatpush1.bf16.msra.mxu0 %v25359_v20  ;;  %7900 = vmatpush1.bf16.msra.mxu1 %v25362_v21  ;;  %v25450_v20 = vld [vmem:[%s38158_s1 + $0x1a94] ss:$100 sps:$4 sm:$0xff]   ;;  %v29260_v21 = vmov 0  }
  0x50   :  { %7696 = vmatprep.subr.bf16.mxu0 %v25367_v22  ;;  %7901 = vmatprep.subr.bf16.mxu1 %v25370_v23  ;;  %v25448_v22 = vld [vmem:[%s38158_s1 + $0x1a90] ss:$100 sps:$4 sm:$0xff]   ;;  %v25456_v23 = vld [vmem:[%s38158_s1 + $0x1b5c] ss:$100 sps:$4 sm:$0xff]  }
  0x53   :  { %7697 = vmatpush1.bf16.msra.mxu0 %v25365_v24  ;;  %7902 = vmatpush1.bf16.msra.mxu1 %v25368_v25  ;;  %v25451_v24 = vld [vmem:[%s38158_s1 + $0x18] ss:$100 sps:$4 sm:$0xff]  }
  0x54   :  { %7698 = vmatprep.subr.bf16.mxu0 %v25373_v26  ;;  %7903 = vmatprep.subr.bf16.mxu1 %v25376_v27  ;;  %v29771_v25 = vld [vmem:[%s38157_s0 + $0x18] ss:$0 sps:$4 sm:$0xff]   ;;  %v25460_v27 = vld [vmem:[%s38158_s1 + $0xe4] ss:$100 sps:$4 sm:$0xff]  }
  0x55   :  { %v25454_v26 = vld [vmem:[%s38158_s1 + $0x1b58] ss:$100 sps:$4 sm:$0xff]  }
  0x57   :  { %7699 = vmatpush1.bf16.msra.mxu0 %v25371_v28  ;;  %7904 = vmatpush1.bf16.msra.mxu1 %v25374_v29  ;;  %v25463_v28 = vld [vmem:[%s38158_s1 + $0x1c24] ss:$100 sps:$4 sm:$0xff]  }
  0x58   :  { %7700 = vmatprep.subr.bf16.mxu0 %v25379_v30  ;;  %7905 = vmatprep.subr.bf16.mxu1 %v25382_v31  ;;  %v25458_v29 = vld [vmem:[%s38158_s1 + $0xe0] ss:$100 sps:$4 sm:$0xff]   ;;  %v25466_v31 = vld [vmem:[%s38158_s1 + $0x1ac] ss:$100 sps:$4 sm:$0xff]  }
  0x59   :  { %v25461_v30 = vld [vmem:[%s38158_s1 + $0x1c20] ss:$100 sps:$4 sm:$0xff]  }
  0x5b   :  { %7701 = vmatpush1.bf16.msra.mxu0 %v25377_v33  ;;  %7906 = vmatpush1.bf16.msra.mxu1 %v25380_v35  ;;  %v25464_v33 = vld [vmem:[%s38158_s1 + $0x1a8] ss:$100 sps:$4 sm:$0xff]  }
  0x5c   :  { %7702 = vmatprep.subr.bf16.mxu0 %v25385_v36  ;;  %7907 = vmatprep.subr.bf16.mxu1 %v25388_v37  ;;  %v25467_v35 = vld [vmem:[%s38158_s1 + $0x1ce8] ss:$100 sps:$4 sm:$0xff]   ;;  %v25472_v36 = vld [vmem:[%s38158_s1 + $0x274] ss:$100 sps:$4 sm:$0xff]  }
  0x5d   :  { %v25475_v37 = vld [vmem:[%s38158_s1 + $0x1db4] ss:$100 sps:$4 sm:$0xff]  }
  0x5f   :  { %7703 = vmatpush1.bf16.msra.mxu0 %v25383_v38  ;;  %7908 = vmatpush1.bf16.msra.mxu1 %v25386_v39  ;;  %v25470_v38 = vld [vmem:[%s38158_s1 + $0x270] ss:$100 sps:$4 sm:$0xff]  }
  0x60   :  { %7704 = vmatprep.subr.bf16.mxu0 %v25391_v40  ;;  %7909 = vmatprep.subr.bf16.mxu1 %v25394_v41  ;;  %v25473_v39 = vld [vmem:[%s38158_s1 + $0x1db0] ss:$100 sps:$4 sm:$0xff]   ;;  %v25478_v40 = vld [vmem:[%s38158_s1 + $0x33c] ss:$100 sps:$4 sm:$0xff]  }
  0x61   :  { %v25481_v41 = vld [vmem:[%s38158_s1 + $0x1e7c] ss:$100 sps:$4 sm:$0xff]  }
  0x63   :  { %7705 = vmatpush1.bf16.msra.mxu0 %v25389_v42  ;;  %7910 = vmatpush1.bf16.msra.mxu1 %v25392_v43  ;;  %v25476_v42 = vld [vmem:[%s38158_s1 + $0x338] ss:$100 sps:$4 sm:$0xff]  }
  0x64   :  { %7706 = vmatprep.subr.bf16.mxu0 %v25397_v44  ;;  %7911 = vmatprep.subr.bf16.mxu1 %v25400_v45  ;;  %v25479_v43 = vld [vmem:[%s38158_s1 + $0x1e78] ss:$100 sps:$4 sm:$0xff]   ;;  %v25484_v44 = vld [vmem:[%s38158_s1 + $0x404] ss:$100 sps:$4 sm:$0xff]  }
  0x65   :  { %v25487_v45 = vld [vmem:[%s38158_s1 + $0x1f44] ss:$100 sps:$4 sm:$0xff]  }
  0x67   :  { %7707 = vmatpush1.bf16.msra.mxu0 %v25395_v46  ;;  %7912 = vmatpush1.bf16.msra.mxu1 %v25398_v47  ;;  %v25482_v46 = vld [vmem:[%s38158_s1 + $0x400] ss:$100 sps:$4 sm:$0xff]  }
  0x68   :  { %7708 = vmatprep.subr.bf16.mxu0 %v25403_v49  ;;  %7913 = vmatprep.subr.bf16.mxu1 %v25406_v50  ;;  %v25485_v47 = vld [vmem:[%s38158_s1 + $0x1f40] ss:$100 sps:$4 sm:$0xff]   ;;  %v25490_v49 = vld [vmem:[%s38158_s1 + $0x4cc] ss:$100 sps:$4 sm:$0xff]  }
  0x69   :  { %v25493_v50 = vld [vmem:[%s38158_s1 + $0x200c] ss:$100 sps:$4 sm:$0xff]  }
  0x6b   :  { %7709 = vmatpush1.bf16.msra.mxu0 %v25401_v51  ;;  %7914 = vmatpush1.bf16.msra.mxu1 %v25404_v52  ;;  %v25488_v51 = vld [vmem:[%s38158_s1 + $0x4c8] ss:$100 sps:$4 sm:$0xff]  }
  0x6c   :  { %7710 = vmatprep.subr.bf16.mxu0 %v25409_v54  ;;  %7915 = vmatprep.subr.bf16.mxu1 %v25412_v55  ;;  %v25491_v52 = vld [vmem:[%s38158_s1 + $0x2008] ss:$100 sps:$4 sm:$0xff]   ;;  %v25496_v54 = vld [vmem:[%s38158_s1 + $0x594] ss:$100 sps:$4 sm:$0xff]  }
  0x6d   :  { %v25499_v55 = vld [vmem:[%s38158_s1 + $0x20d4] ss:$100 sps:$4 sm:$0xff]  }
  0x6f   :  { %7711 = vmatpush1.bf16.msra.mxu0 %v25407_v56  ;;  %7916 = vmatpush1.bf16.msra.mxu1 %v25410_v57  ;;  %v25494_v56 = vld [vmem:[%s38158_s1 + $0x590] ss:$100 sps:$4 sm:$0xff]  }
  0x70   :  { %7712 = vmatprep.subr.bf16.mxu0 %v25415_v58  ;;  %7917 = vmatprep.subr.bf16.mxu1 %v25418_v59  ;;  %v25497_v57 = vld [vmem:[%s38158_s1 + $0x20d0] ss:$100 sps:$4 sm:$0xff]   ;;  %v25502_v58 = vld [vmem:[%s38158_s1 + $0x65c] ss:$100 sps:$4 sm:$0xff]  }
  0x71   :  { %v25505_v59 = vld [vmem:[%s38158_s1 + $0x219c] ss:$100 sps:$4 sm:$0xff]  }
  0x73   :  { %7713 = vmatpush1.bf16.msra.mxu0 %v25413_v60  ;;  %7918 = vmatpush1.bf16.msra.mxu1 %v25416_v61  ;;  %v25500_v60 = vld [vmem:[%s38158_s1 + $0x658] ss:$100 sps:$4 sm:$0xff]  }
  0x74   :  { %7714 = vmatprep.subr.bf16.mxu0 %v25421_v62  ;;  %7919 = vmatprep.subr.bf16.mxu1 %v25424_v63  ;;  %v25503_v61 = vld [vmem:[%s38158_s1 + $0x2198] ss:$100 sps:$4 sm:$0xff]   ;;  %v25508_v62 = vld [vmem:[%s38158_s1 + $0x724] ss:$100 sps:$4 sm:$0xff]  }
  0x75   :  { %v25511_v63 = vld [vmem:[%s38158_s1 + $0x2264] ss:$100 sps:$4 sm:$0xff]  }
  0x77   :  { %7715 = vmatpush1.bf16.msra.mxu0 %v25419_v0  ;;  %7920 = vmatpush1.bf16.msra.mxu1 %v25422_v1  ;;  %v25506_v0 = vld [vmem:[%s38158_s1 + $0x720] ss:$100 sps:$4 sm:$0xff]  }
  0x78   :  { %7716 = vmatprep.subr.bf16.mxu0 %v25427_v2  ;;  %7921 = vmatprep.subr.bf16.mxu1 %v25430_v3  ;;  %v25509_v1 = vld [vmem:[%s38158_s1 + $0x2260] ss:$100 sps:$4 sm:$0xff]   ;;  %v25514_v2 = vld [vmem:[%s38158_s1 + $0x7ec] ss:$100 sps:$4 sm:$0xff]  }
  0x79   :  { %v25517_v3 = vld [vmem:[%s38158_s1 + $0x232c] ss:$100 sps:$4 sm:$0xff]  }
  0x7b   :  { %7717 = vmatpush1.bf16.msra.mxu0 %v25425_v4  ;;  %7922 = vmatpush1.bf16.msra.mxu1 %v25428_v5  ;;  %v25512_v4 = vld [vmem:[%s38158_s1 + $0x7e8] ss:$100 sps:$4 sm:$0xff]  }
  0x7c   :  { %7718 = vmatprep.subr.bf16.mxu0 %v25433_v8  ;;  %7923 = vmatprep.subr.bf16.mxu1 %v25436_v9  ;;  %v25515_v5 = vld [vmem:[%s38158_s1 + $0x2328] ss:$100 sps:$4 sm:$0xff]   ;;  %v25520_v8 = vld [vmem:[%s38158_s1 + $0x8b4] ss:$100 sps:$4 sm:$0xff]  }
  0x7d   :  { %v25523_v9 = vld [vmem:[%s38158_s1 + $0x23f4] ss:$100 sps:$4 sm:$0xff]  }
  0x7f   :  { %7719 = vmatpush1.bf16.msra.mxu0 %v25431_v10  ;;  %7924 = vmatpush1.bf16.msra.mxu1 %v25434_v11  ;;  %v25518_v10 = vld [vmem:[%s38158_s1 + $0x8b0] ss:$100 sps:$4 sm:$0xff]  }
  0x80   :  { %7729 = vmatprep.subr.bf16.mxu0 %v25440_v12  ;;  %7934 = vmatprep.subr.bf16.mxu1 %v25444_v13  ;;  %v25521_v11 = vld [vmem:[%s38158_s1 + $0x23f0] ss:$100 sps:$4 sm:$0xff]   ;;  %v25526_v12 = vld [vmem:[%s38158_s1 + $0x97c] ss:$100 sps:$4 sm:$0xff]  }
  0x81   :  { %v25529_v13 = vld [vmem:[%s38158_s1 + $0x24bc] ss:$100 sps:$4 sm:$0xff]  }
  0x82   :  { %7926 = vmatmul.mubr.bf16.vlgmr.msra.gmra.mrb[0].mxu1 %v29738_v15  ;;  %7721 = vmatmul.mubr.bf16.vlgmr.msra.gmra.mrb[0].mxu0 %v29526_v7 }
  0x83   :  { %7730 = vmatpush1.bf16.msra.mxu0 %v25438_v14  ;;  %7935 = vmatpush1.bf16.msra.mxu1 %v25442_v16  ;;  %v25524_v14 = vld [vmem:[%s38158_s1 + $0x978] ss:$100 sps:$4 sm:$0xff]  }
  0x84   :  { %7731 = vmatprep.subr.bf16.mxu0 %v25447_v17  ;;  %7966 = vmatprep.mubr.bf16.mxu1 %v29260_v21  ;;  %v25527_v16 = vld [vmem:[%s38158_s1 + $0x24b8] ss:$100 sps:$4 sm:$0xff]   ;;  %v25532_v17 = vld [vmem:[%s38158_s1 + $0xa44] ss:$100 sps:$4 sm:$0xff]  }
  0x85   :  { %8139 = vmatprep.subr.bf16.mxu1 %v25453_v18  ;;  %7761 = vmatprep.mubr.bf16.mxu0 %v29613_v34  ;;  %v25538_v18 = vld [vmem:[%s38158_s1 + $0x2584] ss:$100 sps:$4 sm:$0xff]  }
  0x87   :  { %7732 = vmatpush1.bf16.msra.mxu0 %v25445_v19  ;;  %v25530_v19 = vld [vmem:[%s38158_s1 + $0xa40] ss:$100 sps:$4 sm:$0xff]  }
  0x88   :  { %7733 = vmatprep.subr.bf16.mxu0 %v25450_v20  ;;  %v25536_v20 = vld [vmem:[%s38158_s1 + $0x2580] ss:$100 sps:$4 sm:$0xff]  }
  0x8b   :  { %7734 = vmatpush1.bf16.msra.mxu0 %v25448_v22  ;;  %v25535_v22 = vld [vmem:[%s38158_s1 + $0xb0c] ss:$100 sps:$4 sm:$0xff]  }
  0x8c   :  { %7735 = vmatprep.subr.bf16.mxu0 %v25456_v23  ;;  %v25544_v23 = vld [vmem:[%s38158_s1 + $0xc] ss:$100 sps:$4 sm:$0xff]  }
  0x8e   :  { %22990 = vmatmul.mubr.msk.bf16.vlgmr.msra.gmra.mrb[0].mxu1 %vm7643_vm0, %v29771_v25 }
  0x8f   :  { %8140 = vmatpush1.bf16.msra.mxu1 %v25451_v24  ;;  %7736 = vmatpush1.bf16.msra.mxu0 %v25454_v26  ;;  %v25533_v24 = vld [vmem:[%s38158_s1 + $0xb08] ss:$100 sps:$4 sm:$0xff]   ;;  %v25541_v26 = vld [vmem:[%s38158_s1 + $0xbd4] ss:$100 sps:$4 sm:$0xff]  }
  0x90   :  { %8141 = vmatprep.subr.bf16.mxu1 %v25460_v27  ;;  %7737 = vmatprep.subr.bf16.mxu0 %v25463_v28  ;;  %v25539_v27 = vld [vmem:[%s38158_s1 + $0xbd0] ss:$100 sps:$4 sm:$0xff]   ;;  %v25547_v28 = vld [vmem:[%s38158_s1 + $0xc9c] ss:$100 sps:$4 sm:$0xff]  }
  0x91   :  { %8171 = vmatprep.mubr.bf16.mxu1 %v29458_v48 }
  0x93   :  { %8142 = vmatpush1.bf16.msra.mxu1 %v25458_v29  ;;  %7738 = vmatpush1.bf16.msra.mxu0 %v25461_v30  ;;  %v25542_v29 = vld [vmem:[%s38158_s1 + $0x8] ss:$100 sps:$4 sm:$0xff]   ;;  %v25545_v30 = vld [vmem:[%s38158_s1 + $0xc98] ss:$100 sps:$4 sm:$0xff]  }
  0x94   :  { %8143 = vmatprep.subr.bf16.mxu1 %v25466_v31  ;;  %7739 = vmatprep.subr.bf16.mxu0 %v25469_v32  ;;  %v25550_v31 = vld [vmem:[%s38158_s1 + $0xd4] ss:$100 sps:$4 sm:$0xff]   ;;  %v25553_v32 = vld [vmem:[%s38158_s1 + $0xd64] ss:$100 sps:$4 sm:$0xff]  }
  0x97   :  { %8144 = vmatpush1.bf16.msra.mxu1 %v25464_v33  ;;  %7740 = vmatpush1.bf16.msra.mxu0 %v25467_v35  ;;  %v25548_v33 = vld [vmem:[%s38158_s1 + $0xd0] ss:$100 sps:$4 sm:$0xff]   ;;  %v25551_v35 = vld [vmem:[%s38158_s1 + $0xd60] ss:$100 sps:$4 sm:$0xff]  }
  0x98   :  { %8145 = vmatprep.subr.bf16.mxu1 %v25472_v36  ;;  %7741 = vmatprep.subr.bf16.mxu0 %v25475_v37  ;;  %v25556_v36 = vld [vmem:[%s38158_s1 + $0x19c] ss:$100 sps:$4 sm:$0xff]  }
  0x99   :  { %v25554_v37 = vld [vmem:[%s38158_s1 + $0x198] ss:$100 sps:$4 sm:$0xff]  }
  0x9b   :  { %8146 = vmatpush1.bf16.msra.mxu1 %v25470_v38  ;;  %7742 = vmatpush1.bf16.msra.mxu0 %v25473_v39  ;;  %v25557_v38 = vld [vmem:[%s38158_s1 + $0xe28] ss:$100 sps:$4 sm:$0xff]  }
  0x9c   :  { %8147 = vmatprep.subr.bf16.mxu1 %v25478_v40  ;;  %7743 = vmatprep.subr.bf16.mxu0 %v25481_v41  ;;  %v25562_v39 = vld [vmem:[%s38158_s1 + $0x264] ss:$100 sps:$4 sm:$0xff]   ;;  %v25565_v40 = vld [vmem:[%s38158_s1 + $0xef4] ss:$100 sps:$4 sm:$0xff]  }
  0x9d   :  { %v25560_v41 = vld [vmem:[%s38158_s1 + $0x260] ss:$100 sps:$4 sm:$0xff]  }
  0x9f   :  { %8148 = vmatpush1.bf16.msra.mxu1 %v25476_v42  ;;  %7744 = vmatpush1.bf16.msra.mxu0 %v25479_v43  ;;  %v25563_v42 = vld [vmem:[%s38158_s1 + $0xef0] ss:$100 sps:$4 sm:$0xff]  }
  0xa0   :  { %8149 = vmatprep.subr.bf16.mxu1 %v25484_v44  ;;  %7745 = vmatprep.subr.bf16.mxu0 %v25487_v45  ;;  %v25568_v43 = vld [vmem:[%s38158_s1 + $0x32c] ss:$100 sps:$4 sm:$0xff]   ;;  %v25571_v44 = vld [vmem:[%s38158_s1 + $0xfbc] ss:$100 sps:$4 sm:$0xff]  }
  0xa1   :  { %v25566_v45 = vld [vmem:[%s38158_s1 + $0x328] ss:$100 sps:$4 sm:$0xff]  }
  0xa3   :  { %8150 = vmatpush1.bf16.msra.mxu1 %v25482_v46  ;;  %7746 = vmatpush1.bf16.msra.mxu0 %v25485_v47  ;;  %v25569_v46 = vld [vmem:[%s38158_s1 + $0xfb8] ss:$100 sps:$4 sm:$0xff]  }
  0xa4   :  { %8151 = vmatprep.subr.bf16.mxu1 %v25490_v49  ;;  %7747 = vmatprep.subr.bf16.mxu0 %v25493_v50  ;;  %v25574_v47 = vld [vmem:[%s38158_s1 + $0x3f4] ss:$100 sps:$4 sm:$0xff]   ;;  %v25577_v49 = vld [vmem:[%s38158_s1 + $0x1084] ss:$100 sps:$4 sm:$0xff]  }
  0xa5   :  { %v25572_v50 = vld [vmem:[%s38158_s1 + $0x3f0] ss:$100 sps:$4 sm:$0xff]  }
  0xa7   :  { %8152 = vmatpush1.bf16.msra.mxu1 %v25488_v51  ;;  %7748 = vmatpush1.bf16.msra.mxu0 %v25491_v52  ;;  %v25575_v51 = vld [vmem:[%s38158_s1 + $0x1080] ss:$100 sps:$4 sm:$0xff]  }
  0xa8   :  { %8153 = vmatprep.subr.bf16.mxu1 %v25496_v54  ;;  %7749 = vmatprep.subr.bf16.mxu0 %v25499_v55  ;;  %v25580_v52 = vld [vmem:[%s38158_s1 + $0x4bc] ss:$100 sps:$4 sm:$0xff]   ;;  %v25583_v54 = vld [vmem:[%s38158_s1 + $0x114c] ss:$100 sps:$4 sm:$0xff]  }
  0xa9   :  { %v25578_v55 = vld [vmem:[%s38158_s1 + $0x4b8] ss:$100 sps:$4 sm:$0xff]  }
  0xab   :  { %8154 = vmatpush1.bf16.msra.mxu1 %v25494_v56  ;;  %7750 = vmatpush1.bf16.msra.mxu0 %v25497_v57  ;;  %v25581_v56 = vld [vmem:[%s38158_s1 + $0x1148] ss:$100 sps:$4 sm:$0xff]  }
  0xac   :  { %8155 = vmatprep.subr.bf16.mxu1 %v25502_v58  ;;  %7751 = vmatprep.subr.bf16.mxu0 %v25505_v59  ;;  %v25586_v57 = vld [vmem:[%s38158_s1 + $0x584] ss:$100 sps:$4 sm:$0xff]   ;;  %v25589_v58 = vld [vmem:[%s38158_s1 + $0x1214] ss:$100 sps:$4 sm:$0xff]  }
  0xad   :  { %v25584_v59 = vld [vmem:[%s38158_s1 + $0x580] ss:$100 sps:$4 sm:$0xff]  }
  0xaf   :  { %8156 = vmatpush1.bf16.msra.mxu1 %v25500_v60  ;;  %7752 = vmatpush1.bf16.msra.mxu0 %v25503_v61  ;;  %v25587_v60 = vld [vmem:[%s38158_s1 + $0x1210] ss:$100 sps:$4 sm:$0xff]  }
  0xb0   :  { %8157 = vmatprep.subr.bf16.mxu1 %v25508_v62  ;;  %7753 = vmatprep.subr.bf16.mxu0 %v25511_v63  ;;  %v25592_v61 = vld [vmem:[%s38158_s1 + $0x64c] ss:$100 sps:$4 sm:$0xff]   ;;  %v25595_v62 = vld [vmem:[%s38158_s1 + $0x12dc] ss:$100 sps:$4 sm:$0xff]  }
  0xb1   :  { %v25590_v63 = vld [vmem:[%s38158_s1 + $0x648] ss:$100 sps:$4 sm:$0xff]  }
  0xb3   :  { %8158 = vmatpush1.bf16.msra.mxu1 %v25506_v0  ;;  %7754 = vmatpush1.bf16.msra.mxu0 %v25509_v1  ;;  %v25593_v0 = vld [vmem:[%s38158_s1 + $0x12d8] ss:$100 sps:$4 sm:$0xff]  }
  0xb4   :  { %8159 = vmatprep.subr.bf16.mxu1 %v25514_v2  ;;  %7755 = vmatprep.subr.bf16.mxu0 %v25517_v3  ;;  %v25598_v1 = vld [vmem:[%s38158_s1 + $0x714] ss:$100 sps:$4 sm:$0xff]   ;;  %v25601_v2 = vld [vmem:[%s38158_s1 + $0x13a4] ss:$100 sps:$4 sm:$0xff]  }
  0xb5   :  { %v25596_v3 = vld [vmem:[%s38158_s1 + $0x710] ss:$100 sps:$4 sm:$0xff]  }
  0xb7   :  { %8160 = vmatpush1.bf16.msra.mxu1 %v25512_v4  ;;  %7756 = vmatpush1.bf16.msra.mxu0 %v25515_v5  ;;  %v25599_v4 = vld [vmem:[%s38158_s1 + $0x13a0] ss:$100 sps:$4 sm:$0xff]  }
  0xb8   :  { %8161 = vmatprep.subr.bf16.mxu1 %v25520_v8  ;;  %7757 = vmatprep.subr.bf16.mxu0 %v25523_v9  ;;  %v25604_v5 = vld [vmem:[%s38158_s1 + $0x7dc] ss:$100 sps:$4 sm:$0xff]   ;;  %v25607_v8 = vld [vmem:[%s38158_s1 + $0x146c] ss:$100 sps:$4 sm:$0xff]  }
  0xb9   :  { %v25602_v9 = vld [vmem:[%s38158_s1 + $0x7d8] ss:$100 sps:$4 sm:$0xff]  }
  0xbb   :  { %8162 = vmatpush1.bf16.msra.mxu1 %v25518_v10  ;;  %7758 = vmatpush1.bf16.msra.mxu0 %v25521_v11  ;;  %v25605_v10 = vld [vmem:[%s38158_s1 + $0x1468] ss:$100 sps:$4 sm:$0xff]  }
  0xbc   :  { %8163 = vmatprep.subr.bf16.mxu1 %v25526_v12  ;;  %7759 = vmatprep.subr.bf16.mxu0 %v25529_v13  ;;  %v25610_v11 = vld [vmem:[%s38158_s1 + $0x8a4] ss:$100 sps:$4 sm:$0xff]   ;;  %v25613_v12 = vld [vmem:[%s38158_s1 + $0x1534] ss:$100 sps:$4 sm:$0xff]  }
  0xbd   :  { %v25608_v13 = vld [vmem:[%s38158_s1 + $0x8a0] ss:$100 sps:$4 sm:$0xff]  }
  0xbf   :  { %8164 = vmatpush1.bf16.msra.mxu1 %v25524_v14  ;;  %7760 = vmatpush1.bf16.msra.mxu0 %v25527_v16  ;;  %v25611_v14 = vld [vmem:[%s38158_s1 + $0x1530] ss:$100 sps:$4 sm:$0xff]  }
  0xc0   :  { %8165 = vmatprep.subr.bf16.mxu1 %v25532_v17  ;;  %7770 = vmatprep.subr.bf16.mxu0 %v25538_v18  ;;  %v25616_v16 = vld [vmem:[%s38158_s1 + $0x96c] ss:$100 sps:$4 sm:$0xff]   ;;  %v25619_v17 = vld [vmem:[%s38158_s1 + $0x15fc] ss:$100 sps:$4 sm:$0xff]  }
  0xc1   :  { %v25614_v18 = vld [vmem:[%s38158_s1 + $0x968] ss:$100 sps:$4 sm:$0xff]  }
  0xc2   :  { %7762 = vmatmul.mubr.bf16.vlgmr.msra.gmra.mrb[0].mxu0 %v29738_v15 }
  0xc3   :  { %8166 = vmatpush1.bf16.msra.mxu1 %v25530_v19  ;;  %7771 = vmatpush1.bf16.msra.mxu0 %v25536_v20  ;;  %v25617_v19 = vld [vmem:[%s38158_s1 + $0x15f8] ss:$100 sps:$4 sm:$0xff]  }
  0xc4   :  { %8167 = vmatprep.subr.bf16.mxu1 %v25535_v22  ;;  %7802 = vmatprep.mubr.bf16.mxu0 %v29260_v21  ;;  %v25622_v20 = vld [vmem:[%s38158_s1 + $0xa34] ss:$100 sps:$4 sm:$0xff]   ;;  %v25625_v22 = vld [vmem:[%s38158_s1 + $0x16c4] ss:$100 sps:$4 sm:$0xff]  }
  0xc5   :  { %7811 = vmatprep.subr.bf16.mxu0 %v25544_v23  ;;  %v25620_v23 = vld [vmem:[%s38158_s1 + $0xa30] ss:$100 sps:$4 sm:$0xff]  }
  0xc7   :  { %8168 = vmatpush1.bf16.msra.mxu1 %v25533_v24  ;;  %v25623_v24 = vld [vmem:[%s38158_s1 + $0x16c0] ss:$100 sps:$4 sm:$0xff]  }
  0xc8   :  { %8169 = vmatprep.subr.bf16.mxu1 %v25541_v26  ;;  %v25628_v26 = vld [vmem:[%s38158_s1 + $0xafc] ss:$100 sps:$4 sm:$0xff]  }
  0xcb   :  { %8170 = vmatpush1.bf16.msra.mxu1 %v25539_v27  ;;  %v25631_v27 = vld [vmem:[%s38158_s1 + $0x178c] ss:$100 sps:$4 sm:$0xff]  }
  0xcc   :  { %8180 = vmatprep.subr.bf16.mxu1 %v25547_v28  ;;  %v25626_v28 = vld [vmem:[%s38158_s1 + $0xaf8] ss:$100 sps:$4 sm:$0xff]  }
  0xce   :  { %22989 = vmatmul.mubr.msk.bf16.vlgmr.msra.gmra.mrb[0].mxu0 %vm7643_vm0, %v29771_v25  ;;  %8172 = vmatmul.mubr.bf16.vlgmr.msra.gmra.mrb[4].mxu1 %v29524_v6  ;;  %v25559_v25 = vld [vmem:[%s38158_s1 + $0xe2c] ss:$100 sps:$4 sm:$0xff]  }
  0xcf   :  { %7812 = vmatpush1.bf16.msra.mxu0 %v25542_v29  ;;  %8181 = vmatpush1.bf16.msra.mxu1 %v25545_v30  ;;  %v25629_v29 = vld [vmem:[%s38158_s1 + $0x1788] ss:$100 sps:$4 sm:$0xff]  }
  0xd0   :  { %7813 = vmatprep.subr.bf16.mxu0 %v25550_v31  ;;  %8182 = vmatprep.subr.bf16.mxu1 %v25553_v32  ;;  %v25634_v30 = vld [vmem:[%s38158_s1 + $0xbc4] ss:$100 sps:$4 sm:$0xff]   ;;  %v25637_v31 = vld [vmem:[%s38158_s1 + $0x1854] ss:$100 sps:$4 sm:$0xff]  }
  0xd1   :  { %7843 = vmatprep.mubr.bf16.mxu0 %v29458_v48  ;;  %8212 = vmatprep.mubr.bf16.mxu1 %v29472_v53  ;;  %v25632_v32 = vld [vmem:[%s38158_s1 + $0xbc0] ss:$100 sps:$4 sm:$0xff]  }
  0xd3   :  { %7814 = vmatpush1.bf16.msra.mxu0 %v25548_v33  ;;  %8183 = vmatpush1.bf16.msra.mxu1 %v25551_v35  ;;  %v25635_v33 = vld [vmem:[%s38158_s1 + $0x1850] ss:$100 sps:$4 sm:$0xff]  }
  0xd4   :  { %7815 = vmatprep.subr.bf16.mxu0 %v25556_v36  ;;  %8184 = vmatprep.subr.bf16.mxu1 %v25559_v25  ;;  %v25640_v35 = vld [vmem:[%s38158_s1 + $0x14] ss:$100 sps:$4 sm:$0xff]   ;;  %v25643_v36 = vld [vmem:[%s38158_s1 + $0x191c] ss:$100 sps:$4 sm:$0xff]  }
  0xd5   :  { %v25638_v25 = vld [vmem:[%s38158_s1 + $0x10] ss:$100 sps:$4 sm:$0xff]  }
  0xd7   :  { %7816 = vmatpush1.bf16.msra.mxu0 %v25554_v37  ;;  %8185 = vmatpush1.bf16.msra.mxu1 %v25557_v38  ;;  %v25641_v37 = vld [vmem:[%s38158_s1 + $0x1918] ss:$100 sps:$4 sm:$0xff]  }
  0xd8   :  { %7817 = vmatprep.subr.bf16.mxu0 %v25562_v39  ;;  %8186 = vmatprep.subr.bf16.mxu1 %v25565_v40  ;;  %v25646_v38 = vld [vmem:[%s38158_s1 + $0xdc] ss:$100 sps:$4 sm:$0xff]   ;;  %v25649_v39 = vld [vmem:[%s38158_s1 + $0x19e4] ss:$100 sps:$4 sm:$0xff]  }
  0xd9   :  { %v25644_v40 = vld [vmem:[%s38158_s1 + $0xd8] ss:$100 sps:$4 sm:$0xff]  }
  0xdb   :  { %7818 = vmatpush1.bf16.msra.mxu0 %v25560_v41  ;;  %8187 = vmatpush1.bf16.msra.mxu1 %v25563_v42  ;;  %v25647_v41 = vld [vmem:[%s38158_s1 + $0x19e0] ss:$100 sps:$4 sm:$0xff]  }
  0xdc   :  { %7819 = vmatprep.subr.bf16.mxu0 %v25568_v43  ;;  %8188 = vmatprep.subr.bf16.mxu1 %v25571_v44  ;;  %v25652_v42 = vld [vmem:[%s38158_s1 + $0x1a4] ss:$100 sps:$4 sm:$0xff]   ;;  %v25655_v43 = vld [vmem:[%s38158_s1 + $0x1aac] ss:$100 sps:$4 sm:$0xff]  }
  0xdd   :  { %v25650_v44 = vld [vmem:[%s38158_s1 + $0x1a0] ss:$100 sps:$4 sm:$0xff]  }
  0xdf   :  { %7820 = vmatpush1.bf16.msra.mxu0 %v25566_v45  ;;  %8189 = vmatpush1.bf16.msra.mxu1 %v25569_v46  ;;  %v25653_v45 = vld [vmem:[%s38158_s1 + $0x1aa8] ss:$100 sps:$4 sm:$0xff]  }
  0xe0   :  { %7821 = vmatprep.subr.bf16.mxu0 %v25574_v47  ;;  %8190 = vmatprep.subr.bf16.mxu1 %v25577_v49  ;;  %v25658_v46 = vld [vmem:[%s38158_s1 + $0x26c] ss:$100 sps:$4 sm:$0xff]   ;;  %v25661_v47 = vld [vmem:[%s38158_s1 + $0x1b74] ss:$100 sps:$4 sm:$0xff]  }
  0xe1   :  { %v25656_v49 = vld [vmem:[%s38158_s1 + $0x268] ss:$100 sps:$4 sm:$0xff]  }
  0xe3   :  { %7822 = vmatpush1.bf16.msra.mxu0 %v25572_v50  ;;  %8191 = vmatpush1.bf16.msra.mxu1 %v25575_v51  ;;  %v25659_v50 = vld [vmem:[%s38158_s1 + $0x1b70] ss:$100 sps:$4 sm:$0xff]  }
  0xe4   :  { %7823 = vmatprep.subr.bf16.mxu0 %v25580_v52  ;;  %8192 = vmatprep.subr.bf16.mxu1 %v25583_v54  ;;  %v25664_v51 = vld [vmem:[%s38158_s1 + $0x334] ss:$100 sps:$4 sm:$0xff]   ;;  %v25667_v52 = vld [vmem:[%s38158_s1 + $0x1c3c] ss:$100 sps:$4 sm:$0xff]  }
  0xe5   :  { %v25662_v54 = vld [vmem:[%s38158_s1 + $0x330] ss:$100 sps:$4 sm:$0xff]  }
  0xe7   :  { %7824 = vmatpush1.bf16.msra.mxu0 %v25578_v55  ;;  %8193 = vmatpush1.bf16.msra.mxu1 %v25581_v56  ;;  %v25665_v55 = vld [vmem:[%s38158_s1 + $0x1c38] ss:$100 sps:$4 sm:$0xff]  }
  0xe8   :  { %7825 = vmatprep.subr.bf16.mxu0 %v25586_v57  ;;  %8194 = vmatprep.subr.bf16.mxu1 %v25589_v58  ;;  %v25670_v56 = vld [vmem:[%s38158_s1 + $0x3fc] ss:$100 sps:$4 sm:$0xff]   ;;  %v25673_v57 = vld [vmem:[%s38158_s1 + $0x1d04] ss:$100 sps:$4 sm:$0xff]  }
  0xe9   :  { %v25668_v58 = vld [vmem:[%s38158_s1 + $0x3f8] ss:$100 sps:$4 sm:$0xff]  }
  0xeb   :  { %7826 = vmatpush1.bf16.msra.mxu0 %v25584_v59  ;;  %8195 = vmatpush1.bf16.msra.mxu1 %v25587_v60  ;;  %v25671_v59 = vld [vmem:[%s38158_s1 + $0x1d00] ss:$100 sps:$4 sm:$0xff]  }
  0xec   :  { %7827 = vmatprep.subr.bf16.mxu0 %v25592_v61  ;;  %8196 = vmatprep.subr.bf16.mxu1 %v25595_v62  ;;  %v25676_v60 = vld [vmem:[%s38158_s1 + $0x4c4] ss:$100 sps:$4 sm:$0xff]   ;;  %v25679_v61 = vld [vmem:[%s38158_s1 + $0x1dcc] ss:$100 sps:$4 sm:$0xff]  }
  0xed   :  { %v25674_v62 = vld [vmem:[%s38158_s1 + $0x4c0] ss:$100 sps:$4 sm:$0xff]  }
  0xef   :  { %7828 = vmatpush1.bf16.msra.mxu0 %v25590_v63  ;;  %8197 = vmatpush1.bf16.msra.mxu1 %v25593_v0  ;;  %v25677_v63 = vld [vmem:[%s38158_s1 + $0x1dc8] ss:$100 sps:$4 sm:$0xff]  }
  0xf0   :  { %7829 = vmatprep.subr.bf16.mxu0 %v25598_v1  ;;  %8198 = vmatprep.subr.bf16.mxu1 %v25601_v2  ;;  %v25682_v0 = vld [vmem:[%s38158_s1 + $0x58c] ss:$100 sps:$4 sm:$0xff]   ;;  %v25685_v1 = vld [vmem:[%s38158_s1 + $0x1e94] ss:$100 sps:$4 sm:$0xff]  }
  0xf1   :  { %v25680_v2 = vld [vmem:[%s38158_s1 + $0x588] ss:$100 sps:$4 sm:$0xff]  }
  0xf3   :  { %7830 = vmatpush1.bf16.msra.mxu0 %v25596_v3  ;;  %8199 = vmatpush1.bf16.msra.mxu1 %v25599_v4  ;;  %v25683_v3 = vld [vmem:[%s38158_s1 + $0x1e90] ss:$100 sps:$4 sm:$0xff]  }
  0xf4   :  { %7831 = vmatprep.subr.bf16.mxu0 %v25604_v5  ;;  %8200 = vmatprep.subr.bf16.mxu1 %v25607_v8  ;;  %v25688_v4 = vld [vmem:[%s38158_s1 + $0x654] ss:$100 sps:$4 sm:$0xff]   ;;  %v25691_v5 = vld [vmem:[%s38158_s1 + $0x1f5c] ss:$100 sps:$4 sm:$0xff]  }
  0xf5   :  { %v25686_v8 = vld [vmem:[%s38158_s1 + $0x650] ss:$100 sps:$4 sm:$0xff]  }
  0xf7   :  { %7832 = vmatpush1.bf16.msra.mxu0 %v25602_v9  ;;  %8201 = vmatpush1.bf16.msra.mxu1 %v25605_v10  ;;  %v25689_v9 = vld [vmem:[%s38158_s1 + $0x1f58] ss:$100 sps:$4 sm:$0xff]  }
  0xf8   :  { %7833 = vmatprep.subr.bf16.mxu0 %v25610_v11  ;;  %8202 = vmatprep.subr.bf16.mxu1 %v25613_v12  ;;  %v25694_v10 = vld [vmem:[%s38158_s1 + $0x71c] ss:$100 sps:$4 sm:$0xff]   ;;  %v25697_v11 = vld [vmem:[%s38158_s1 + $0x2024] ss:$100 sps:$4 sm:$0xff]  }
  0xf9   :  { %v25692_v12 = vld [vmem:[%s38158_s1 + $0x718] ss:$100 sps:$4 sm:$0xff]  }
  0xfb   :  { %7834 = vmatpush1.bf16.msra.mxu0 %v25608_v13  ;;  %8203 = vmatpush1.bf16.msra.mxu1 %v25611_v14  ;;  %v25695_v13 = vld [vmem:[%s38158_s1 + $0x2020] ss:$100 sps:$4 sm:$0xff]  }
  0xfc   :  { %7835 = vmatprep.subr.bf16.mxu0 %v25616_v16  ;;  %8204 = vmatprep.subr.bf16.mxu1 %v25619_v17  ;;  %v25700_v14 = vld [vmem:[%s38158_s1 + $0x7e4] ss:$100 sps:$4 sm:$0xff]   ;;  %v25703_v16 = vld [vmem:[%s38158_s1 + $0x20ec] ss:$100 sps:$4 sm:$0xff]  }
  0xfd   :  { %v25698_v17 = vld [vmem:[%s38158_s1 + $0x7e0] ss:$100 sps:$4 sm:$0xff]  }
  0xff   :  { %7836 = vmatpush1.bf16.msra.mxu0 %v25614_v18  ;;  %8205 = vmatpush1.bf16.msra.mxu1 %v25617_v19  ;;  %v25701_v18 = vld [vmem:[%s38158_s1 + $0x20e8] ss:$100 sps:$4 sm:$0xff]  }
 0x100   :  { %7837 = vmatprep.subr.bf16.mxu0 %v25622_v20  ;;  %8206 = vmatprep.subr.bf16.mxu1 %v25625_v22  ;;  %v25706_v19 = vld [vmem:[%s38158_s1 + $0x8ac] ss:$100 sps:$4 sm:$0xff]   ;;  %v25709_v20 = vld [vmem:[%s38158_s1 + $0x21b4] ss:$100 sps:$4 sm:$0xff]  }
 0x101   :  { %v25704_v22 = vld [vmem:[%s38158_s1 + $0x8a8] ss:$100 sps:$4 sm:$0xff]  }
 0x103   :  { %7838 = vmatpush1.bf16.msra.mxu0 %v25620_v23  ;;  %8207 = vmatpush1.bf16.msra.mxu1 %v25623_v24  ;;  %v25707_v23 = vld [vmem:[%s38158_s1 + $0x21b0] ss:$100 sps:$4 sm:$0xff]  }
 0x104   :  { %7839 = vmatprep.subr.bf16.mxu0 %v25628_v26  ;;  %8208 = vmatprep.subr.bf16.mxu1 %v25631_v27  ;;  %v25712_v24 = vld [vmem:[%s38158_s1 + $0x974] ss:$100 sps:$4 sm:$0xff]   ;;  %v25715_v26 = vld [vmem:[%s38158_s1 + $0x227c] ss:$100 sps:$4 sm:$0xff]  }
 0x105   :  { %v25710_v27 = vld [vmem:[%s38158_s1 + $0x970] ss:$100 sps:$4 sm:$0xff]  }
 0x107   :  { %7840 = vmatpush1.bf16.msra.mxu0 %v25626_v28  ;;  %8209 = vmatpush1.bf16.msra.mxu1 %v25629_v29  ;;  %v25713_v28 = vld [vmem:[%s38158_s1 + $0x2278] ss:$100 sps:$4 sm:$0xff]  }
 0x108   :  { %7841 = vmatprep.subr.bf16.mxu0 %v25634_v30  ;;  %8210 = vmatprep.subr.bf16.mxu1 %v25637_v31  ;;  %v25718_v29 = vld [vmem:[%s38158_s1 + $0xa3c] ss:$100 sps:$4 sm:$0xff]   ;;  %v25721_v30 = vld [vmem:[%s38158_s1 + $0x2344] ss:$100 sps:$4 sm:$0xff]  }
 0x109   :  { %v25716_v31 = vld [vmem:[%s38158_s1 + $0xa38] ss:$100 sps:$4 sm:$0xff]  }
 0x10b   :  { %7842 = vmatpush1.bf16.msra.mxu0 %v25632_v32  ;;  %8211 = vmatpush1.bf16.msra.mxu1 %v25635_v33  ;;  %v25719_v32 = vld [vmem:[%s38158_s1 + $0x2340] ss:$100 sps:$4 sm:$0xff]  }
 0x10c   :  { %7975 = vmatprep.subr.bf16.mxu0 %v25640_v35  ;;  %8221 = vmatprep.subr.bf16.mxu1 %v25643_v36  ;;  %v25724_v33 = vld [vmem:[%s38158_s1 + $0xb04] ss:$100 sps:$4 sm:$0xff]   ;;  %v25727_v35 = vld [vmem:[%s38158_s1 + $0x240c] ss:$100 sps:$4 sm:$0xff]  }
 0x10d   :  { %v25722_v36 = vld [vmem:[%s38158_s1 + $0xb00] ss:$100 sps:$4 sm:$0xff]  }
 0x10e   :  { %7844 = vmatmul.mubr.bf16.vlgmr.msra.gmra.mrb[4].mxu0 %v29524_v6  ;;  %8213 = vmatmul.mubr.bf16.vlgmr.msra.gmra.mrb[4].mxu1 %v29526_v7 }
 0x10f   :  { %7976 = vmatpush1.bf16.msra.mxu0 %v25638_v25  ;;  %8222 = vmatpush1.bf16.msra.mxu1 %v25641_v37  ;;  %v25725_v25 = vld [vmem:[%s38158_s1 + $0x2408] ss:$100 sps:$4 sm:$0xff]  }
 0x110   :  { %7977 = vmatprep.subr.bf16.mxu0 %v25646_v38  ;;  %8223 = vmatprep.subr.bf16.mxu1 %v25649_v39  ;;  %v25730_v37 = vld [vmem:[%s38158_s1 + $0xbcc] ss:$100 sps:$4 sm:$0xff]   ;;  %v25733_v38 = vld [vmem:[%s38158_s1 + $0x24d4] ss:$100 sps:$4 sm:$0xff]  }
 0x111   :  { %8253 = vmatprep.mubr.bf16.mxu1 %v29613_v34  ;;  %8007 = vmatprep.mubr.bf16.mxu0 %v29458_v48  ;;  %v25728_v39 = vld [vmem:[%s38158_s1 + $0xbc8] ss:$100 sps:$4 sm:$0xff]  }
 0x113   :  { %7978 = vmatpush1.bf16.msra.mxu0 %v25644_v40  ;;  %8224 = vmatpush1.bf16.msra.mxu1 %v25647_v41  ;;  %v25731_v40 = vld [vmem:[%s38158_s1 + $0x24d0] ss:$100 sps:$4 sm:$0xff]  }
 0x114   :  { %7979 = vmatprep.subr.bf16.mxu0 %v25652_v42  ;;  %8225 = vmatprep.subr.bf16.mxu1 %v25655_v43  ;;  %v25736_v41 = vld [vmem:[%s38158_s1 + $0xc94] ss:$100 sps:$4 sm:$0xff]   ;;  %v25739_v42 = vld [vmem:[%s38158_s1 + $0x259c] ss:$100 sps:$4 sm:$0xff]  }
 0x115   :  { %v25734_v43 = vld [vmem:[%s38158_s1 + $0xc90] ss:$100 sps:$4 sm:$0xff]  }
 0x117   :  { %7980 = vmatpush1.bf16.msra.mxu0 %v25650_v44  ;;  %8226 = vmatpush1.bf16.msra.mxu1 %v25653_v45  ;;  %v25737_v44 = vld [vmem:[%s38158_s1 + $0x2598] ss:$100 sps:$4 sm:$0xff]  }
 0x118   :  { %7981 = vmatprep.subr.bf16.mxu0 %v25658_v46  ;;  %8227 = vmatprep.subr.bf16.mxu1 %v25661_v47  ;;  %v25742_v45 = vld [vmem:[%s38158_s1 + $0xd5c] ss:$100 sps:$4 sm:$0xff]   ;;  %v25748_v46 = vld [vmem:[%s38158_s1 + $0x2c] ss:$100 sps:$4 sm:$0xff]  }
 0x119   :  { %v25740_v47 = vld [vmem:[%s38158_s1 + $0xd58] ss:$100 sps:$4 sm:$0xff]  }
 0x11b   :  { %7982 = vmatpush1.bf16.msra.mxu0 %v25656_v49  ;;  %8228 = vmatpush1.bf16.msra.mxu1 %v25659_v50  ;;  %v25745_v49 = vld [vmem:[%s38158_s1 + $0xe24] ss:$100 sps:$4 sm:$0xff]  }
 0x11c   :  { %7983 = vmatprep.subr.bf16.mxu0 %v25664_v51  ;;  %8229 = vmatprep.subr.bf16.mxu1 %v25667_v52  ;;  %v25743_v50 = vld [vmem:[%s38158_s1 + $0xe20] ss:$100 sps:$4 sm:$0xff]   ;;  %v25751_v51 = vld [vmem:[%s38158_s1 + $0xeec] ss:$100 sps:$4 sm:$0xff]  }
 0x11d   :  { %v25746_v52 = vld [vmem:[%s38158_s1 + $0x28] ss:$100 sps:$4 sm:$0xff]  }
 0x11f   :  { %7984 = vmatpush1.bf16.msra.mxu0 %v25662_v54  ;;  %8230 = vmatpush1.bf16.msra.mxu1 %v25665_v55  ;;  %v25749_v54 = vld [vmem:[%s38158_s1 + $0xee8] ss:$100 sps:$4 sm:$0xff]   ;;  %v25754_v55 = vld [vmem:[%s38158_s1 + $0xf4] ss:$100 sps:$4 sm:$0xff]  }
 0x120   :  { %7985 = vmatprep.subr.bf16.mxu0 %v25670_v56  ;;  %8231 = vmatprep.subr.bf16.mxu1 %v25673_v57  ;;  %v25757_v56 = vld [vmem:[%s38158_s1 + $0xfb4] ss:$100 sps:$4 sm:$0xff]  }
 0x121   :  { %v29224_v57 = vld [vmem:[%s38157_s0 + $0x18] ss:$0 sps:$4 sm:$0xff]  }
 0x123   :  { %7986 = vmatpush1.bf16.msra.mxu0 %v25668_v58  ;;  %8232 = vmatpush1.bf16.msra.mxu1 %v25671_v59  ;;  %v25752_v58 = vld [vmem:[%s38158_s1 + $0xf0] ss:$100 sps:$4 sm:$0xff]  }
 0x124   :  { %7987 = vmatprep.subr.bf16.mxu0 %v25676_v60  ;;  %8233 = vmatprep.subr.bf16.mxu1 %v25679_v61  ;;  %v25755_v59 = vld [vmem:[%s38158_s1 + $0xfb0] ss:$100 sps:$4 sm:$0xff]   ;;  %v25760_v60 = vld [vmem:[%s38158_s1 + $0x1bc] ss:$100 sps:$4 sm:$0xff]  }
 0x125   :  { %v25763_v61 = vld [vmem:[%s38158_s1 + $0x107c] ss:$100 sps:$4 sm:$0xff]  }
 0x127   :  { %7988 = vmatpush1.bf16.msra.mxu0 %v25674_v62  ;;  %8234 = vmatpush1.bf16.msra.mxu1 %v25677_v63  ;;  %v25758_v62 = vld [vmem:[%s38158_s1 + $0x1b8] ss:$100 sps:$4 sm:$0xff]  }
 0x128   :  { %7989 = vmatprep.subr.bf16.mxu0 %v25682_v0  ;;  %8235 = vmatprep.subr.bf16.mxu1 %v25685_v1  ;;  %v25761_v63 = vld [vmem:[%s38158_s1 + $0x1078] ss:$100 sps:$4 sm:$0xff]   ;;  %v25766_v0 = vld [vmem:[%s38158_s1 + $0x284] ss:$100 sps:$4 sm:$0xff]  }
 0x129   :  { %v25769_v1 = vld [vmem:[%s38158_s1 + $0x1144] ss:$100 sps:$4 sm:$0xff]  }
 0x12b   :  { %7990 = vmatpush1.bf16.msra.mxu0 %v25680_v2  ;;  %8236 = vmatpush1.bf16.msra.mxu1 %v25683_v3  ;;  %v25764_v3 = vld [vmem:[%s38158_s1 + $0x280] ss:$100 sps:$4 sm:$0xff]  }
 0x12c   :  { %7991 = vmatprep.subr.bf16.mxu0 %v25688_v4  ;;  %8237 = vmatprep.subr.bf16.mxu1 %v25691_v5  ;;  %v25767_v4 = vld [vmem:[%s38158_s1 + $0x1140] ss:$100 sps:$4 sm:$0xff]  }
 0x12f   :  { %7992 = vmatpush1.bf16.msra.mxu0 %v25686_v8  ;;  %8238 = vmatpush1.bf16.msra.mxu1 %v25689_v9 }
 0x130   :  { %7993 = vmatprep.subr.bf16.mxu0 %v25694_v10  ;;  %8239 = vmatprep.subr.bf16.mxu1 %v25697_v11  ;;  %v25772_v10 = vld [vmem:[%s38158_s1 + $0x34c] ss:$100 sps:$4 sm:$0xff]  }
 0x131   :  { %v25775_v11 = vld [vmem:[%s38158_s1 + $0x120c] ss:$100 sps:$4 sm:$0xff]  }
 0x133   :  { %7994 = vmatpush1.bf16.msra.mxu0 %v25692_v12  ;;  %8240 = vmatpush1.bf16.msra.mxu1 %v25695_v13  ;;  %v25770_v12 = vld [vmem:[%s38158_s1 + $0x348] ss:$100 sps:$4 sm:$0xff]  }
 0x134   :  { %7995 = vmatprep.subr.bf16.mxu0 %v25700_v14  ;;  %8241 = vmatprep.subr.bf16.mxu1 %v25703_v16  ;;  %v25773_v13 = vld [vmem:[%s38158_s1 + $0x1208] ss:$100 sps:$4 sm:$0xff]   ;;  %v25778_v14 = vld [vmem:[%s38158_s1 + $0x414] ss:$100 sps:$4 sm:$0xff]  }
 0x135   :  { %v25781_v16 = vld [vmem:[%s38158_s1 + $0x12d4] ss:$100 sps:$4 sm:$0xff]  }
 0x137   :  { %7996 = vmatpush1.bf16.msra.mxu0 %v25698_v17  ;;  %8242 = vmatpush1.bf16.msra.mxu1 %v25701_v18  ;;  %v25776_v17 = vld [vmem:[%s38158_s1 + $0x410] ss:$100 sps:$4 sm:$0xff]  }
 0x138   :  { %7997 = vmatprep.subr.bf16.mxu0 %v25706_v19  ;;  %8243 = vmatprep.subr.bf16.mxu1 %v25709_v20  ;;  %v25779_v18 = vld [vmem:[%s38158_s1 + $0x12d0] ss:$100 sps:$4 sm:$0xff]   ;;  %v25784_v19 = vld [vmem:[%s38158_s1 + $0x4dc] ss:$100 sps:$4 sm:$0xff]  }
 0x139   :  { %v25787_v20 = vld [vmem:[%s38158_s1 + $0x139c] ss:$100 sps:$4 sm:$0xff]  }
 0x13b   :  { %7998 = vmatpush1.bf16.msra.mxu0 %v25704_v22  ;;  %8244 = vmatpush1.bf16.msra.mxu1 %v25707_v23  ;;  %v25782_v22 = vld [vmem:[%s38158_s1 + $0x4d8] ss:$100 sps:$4 sm:$0xff]  }
 0x13c   :  { %7999 = vmatprep.subr.bf16.mxu0 %v25712_v24  ;;  %8245 = vmatprep.subr.bf16.mxu1 %v25715_v26  ;;  %v25785_v23 = vld [vmem:[%s38158_s1 + $0x1398] ss:$100 sps:$4 sm:$0xff]   ;;  %v25790_v24 = vld [vmem:[%s38158_s1 + $0x5a4] ss:$100 sps:$4 sm:$0xff]  }
 0x13d   :  { %v25793_v26 = vld [vmem:[%s38158_s1 + $0x1464] ss:$100 sps:$4 sm:$0xff]  }
 0x13f   :  { %8000 = vmatpush1.bf16.msra.mxu0 %v25710_v27  ;;  %8246 = vmatpush1.bf16.msra.mxu1 %v25713_v28  ;;  %v25788_v27 = vld [vmem:[%s38158_s1 + $0x5a0] ss:$100 sps:$4 sm:$0xff]  }
 0x140   :  { %8001 = vmatprep.subr.bf16.mxu0 %v25718_v29  ;;  %8247 = vmatprep.subr.bf16.mxu1 %v25721_v30  ;;  %v25791_v28 = vld [vmem:[%s38158_s1 + $0x1460] ss:$100 sps:$4 sm:$0xff]   ;;  %v25796_v29 = vld [vmem:[%s38158_s1 + $0x66c] ss:$100 sps:$4 sm:$0xff]  }
 0x141   :  { %v25799_v30 = vld [vmem:[%s38158_s1 + $0x152c] ss:$100 sps:$4 sm:$0xff]  }
 0x143   :  { %8002 = vmatpush1.bf16.msra.mxu0 %v25716_v31  ;;  %8248 = vmatpush1.bf16.msra.mxu1 %v25719_v32  ;;  %v25794_v31 = vld [vmem:[%s38158_s1 + $0x668] ss:$100 sps:$4 sm:$0xff]  }
 0x144   :  { %8003 = vmatprep.subr.bf16.mxu0 %v25724_v33  ;;  %8249 = vmatprep.subr.bf16.mxu1 %v25727_v35  ;;  %v25797_v32 = vld [vmem:[%s38158_s1 + $0x1528] ss:$100 sps:$4 sm:$0xff]   ;;  %v25802_v33 = vld [vmem:[%s38158_s1 + $0x734] ss:$100 sps:$4 sm:$0xff]  }
 0x145   :  { %v25805_v35 = vld [vmem:[%s38158_s1 + $0x15f4] ss:$100 sps:$4 sm:$0xff]  }
 0x147   :  { %8004 = vmatpush1.bf16.msra.mxu0 %v25722_v36  ;;  %8250 = vmatpush1.bf16.msra.mxu1 %v25725_v25  ;;  %v25800_v36 = vld [vmem:[%s38158_s1 + $0x730] ss:$100 sps:$4 sm:$0xff]  }
 0x148   :  { %8005 = vmatprep.subr.bf16.mxu0 %v25730_v37  ;;  %8251 = vmatprep.subr.bf16.mxu1 %v25733_v38  ;;  %v25803_v25 = vld [vmem:[%s38158_s1 + $0x15f0] ss:$100 sps:$4 sm:$0xff]   ;;  %v25808_v37 = vld [vmem:[%s38158_s1 + $0x7fc] ss:$100 sps:$4 sm:$0xff]  }
 0x149   :  { %v25811_v38 = vld [vmem:[%s38158_s1 + $0x16bc] ss:$100 sps:$4 sm:$0xff]  }
 0x14b   :  { %8006 = vmatpush1.bf16.msra.mxu0 %v25728_v39  ;;  %8252 = vmatpush1.bf16.msra.mxu1 %v25731_v40  ;;  %v25806_v39 = vld [vmem:[%s38158_s1 + $0x7f8] ss:$100 sps:$4 sm:$0xff]  }
 0x14c   :  { %8016 = vmatprep.subr.bf16.mxu0 %v25736_v41  ;;  %8262 = vmatprep.subr.bf16.mxu1 %v25739_v42  ;;  %v25809_v40 = vld [vmem:[%s38158_s1 + $0x16b8] ss:$100 sps:$4 sm:$0xff]   ;;  %v25814_v41 = vld [vmem:[%s38158_s1 + $0x8c4] ss:$100 sps:$4 sm:$0xff]  }
 0x14d   :  { %v25817_v42 = vld [vmem:[%s38158_s1 + $0x1784] ss:$100 sps:$4 sm:$0xff]  }
 0x14e   :  { %8254 = vmatmul.mubr.bf16.vlgmr.msra.gmra.mrb[4].mxu1 %v29738_v15  ;;  %8008 = vmatmul.mubr.bf16.vlgmr.msra.gmra.mrb[8].mxu0 %v29524_v6 }
 0x14f   :  { %8017 = vmatpush1.bf16.msra.mxu0 %v25734_v43  ;;  %8263 = vmatpush1.bf16.msra.mxu1 %v25737_v44  ;;  %v25812_v43 = vld [vmem:[%s38158_s1 + $0x8c0] ss:$100 sps:$4 sm:$0xff]  }
 0x150   :  { %8018 = vmatprep.subr.bf16.mxu0 %v25742_v45  ;;  %8294 = vmatprep.mubr.bf16.mxu1 %v29260_v21  ;;  %v25815_v44 = vld [vmem:[%s38158_s1 + $0x1780] ss:$100 sps:$4 sm:$0xff]   ;;  %v25820_v45 = vld [vmem:[%s38158_s1 + $0x98c] ss:$100 sps:$4 sm:$0xff]  }
 0x151   :  { %8467 = vmatprep.subr.bf16.mxu1 %v25748_v46  ;;  %8048 = vmatprep.mubr.bf16.mxu0 %v29472_v53  ;;  %v25823_v46 = vld [vmem:[%s38158_s1 + $0x184c] ss:$100 sps:$4 sm:$0xff]  }
 0x153   :  { %8019 = vmatpush1.bf16.msra.mxu0 %v25740_v47  ;;  %v25818_v47 = vld [vmem:[%s38158_s1 + $0x988] ss:$100 sps:$4 sm:$0xff]  }
 0x154   :  { %8020 = vmatprep.subr.bf16.mxu0 %v25745_v49  ;;  %v25821_v49 = vld [vmem:[%s38158_s1 + $0x1848] ss:$100 sps:$4 sm:$0xff]  }
 0x157   :  { %8021 = vmatpush1.bf16.msra.mxu0 %v25743_v50  ;;  %v25826_v50 = vld [vmem:[%s38158_s1 + $0xa54] ss:$100 sps:$4 sm:$0xff]  }
 0x158   :  { %8022 = vmatprep.subr.bf16.mxu0 %v25751_v51  ;;  %v25829_v51 = vld [vmem:[%s38158_s1 + $0x1914] ss:$100 sps:$4 sm:$0xff]  }
 0x15a   :  { %22992 = vmatmul.mubr.msk.bf16.vlgmr.msra.gmra.mrb[4].mxu1 %vm7643_vm0, %v29224_v57  ;;  %v25830_v57 = vld [vmem:[%s38158_s1 + $0xb18] ss:$100 sps:$4 sm:$0xff]  }
 0x15b   :  { %8468 = vmatpush1.bf16.msra.mxu1 %v25746_v52  ;;  %8023 = vmatpush1.bf16.msra.mxu0 %v25749_v54  ;;  %v25824_v52 = vld [vmem:[%s38158_s1 + $0xa50] ss:$100 sps:$4 sm:$0xff]  }
 0x15c   :  { %8469 = vmatprep.subr.bf16.mxu1 %v25754_v55  ;;  %8024 = vmatprep.subr.bf16.mxu0 %v25757_v56  ;;  %v25827_v54 = vld [vmem:[%s38158_s1 + $0x1910] ss:$100 sps:$4 sm:$0xff]   ;;  %v25832_v55 = vld [vmem:[%s38158_s1 + $0xb1c] ss:$100 sps:$4 sm:$0xff]  }
 0x15d   :  { %8499 = vmatprep.mubr.bf16.mxu1 %v29458_v48  ;;  %v25835_v56 = vld [vmem:[%s38158_s1 + $0x19dc] ss:$100 sps:$4 sm:$0xff]  }
 0x15f   :  { %8470 = vmatpush1.bf16.msra.mxu1 %v25752_v58  ;;  %8025 = vmatpush1.bf16.msra.mxu0 %v25755_v59  ;;  %v25833_v58 = vld [vmem:[%s38158_s1 + $0x19d8] ss:$100 sps:$4 sm:$0xff]   ;;  %v25838_v59 = vld [vmem:[%s38158_s1 + $0xbe4] ss:$100 sps:$4 sm:$0xff]  }
 0x160   :  { %8471 = vmatprep.subr.bf16.mxu1 %v25760_v60  ;;  %8026 = vmatprep.subr.bf16.mxu0 %v25763_v61  ;;  %v25841_v60 = vld [vmem:[%s38158_s1 + $0x1aa4] ss:$100 sps:$4 sm:$0xff]  }
 0x161   :  { %v30417_v2 = vpop.f32.mrb[0].mxu1  ;;  %v25836_v61 = vld [vmem:[%s38158_s1 + $0xbe0] ss:$100 sps:$4 sm:$0xff]  }
 0x162   :  { %v30425_v5 = vpop.f32.mrb[1].mxu1 }
 0x163   :  { %8472 = vmatpush1.bf16.msra.mxu1 %v25758_v62  ;;  %8027 = vmatpush1.bf16.msra.mxu0 %v25761_v63  ;;  %v7972_v8 = vpop.f32.mrb[2].mxu1  ;;  %v25839_v62 = vld [vmem:[%s38158_s1 + $0x1aa0] ss:$100 sps:$4 sm:$0xff]   ;;  %v25844_v63 = vld [vmem:[%s38158_s1 + $0xcac] ss:$100 sps:$4 sm:$0xff]  }
 0x164   :  { %v7973_v9 = vpop.f32.mrb[3].mxu1  ;;  %8473 = vmatprep.subr.bf16.mxu1 %v25766_v0  ;;  %8028 = vmatprep.subr.bf16.mxu0 %v25769_v1  ;;  %v25847_v0 = vld [vmem:[%s38158_s1 + $0x1b6c] ss:$100 sps:$4 sm:$0xff]   ;;  %v25853_v8 = vld [vmem:[%s38158_s1 + $0x1c34] ss:$100 sps:$4 sm:$0xff]  }
 0x165   :  { %v25842_v1 = vld [vmem:[%s38158_s1 + $0xca8] ss:$100 sps:$4 sm:$0xff]   ;;  %v25848_v9 = vld [vmem:[%s38158_s1 + $0xd70] ss:$100 sps:$4 sm:$0xff]  }
 0x167   :  { %8474 = vmatpush1.bf16.msra.mxu1 %v25764_v3  ;;  %8029 = vmatpush1.bf16.msra.mxu0 %v25767_v4  ;;  %v25845_v3 = vld [vmem:[%s38158_s1 + $0x1b68] ss:$100 sps:$4 sm:$0xff]   ;;  %v25850_v4 = vld [vmem:[%s38158_s1 + $0xd74] ss:$100 sps:$4 sm:$0xff]  }
 0x168   :  { %8475 = vmatprep.subr.bf16.mxu1 %v25772_v10  ;;  %8030 = vmatprep.subr.bf16.mxu0 %v25775_v11  ;;  %v25851_v10 = vld [vmem:[%s38158_s1 + $0x1c30] ss:$100 sps:$4 sm:$0xff]   ;;  %v25856_v11 = vld [vmem:[%s38158_s1 + $0xe3c] ss:$100 sps:$4 sm:$0xff]  }
 0x16b   :  { %8476 = vmatpush1.bf16.msra.mxu1 %v25770_v12  ;;  %8031 = vmatpush1.bf16.msra.mxu0 %v25773_v13  ;;  %v25859_v12 = vld [vmem:[%s38158_s1 + $0x1cfc] ss:$100 sps:$4 sm:$0xff]  }
 0x16c   :  { %8477 = vmatprep.subr.bf16.mxu1 %v25778_v14  ;;  %8032 = vmatprep.subr.bf16.mxu0 %v25781_v16  ;;  %v25854_v13 = vld [vmem:[%s38158_s1 + $0xe38] ss:$100 sps:$4 sm:$0xff]   ;;  %v25862_v16 = vld [vmem:[%s38158_s1 + $0xf04] ss:$100 sps:$4 sm:$0xff]  }
 0x16d   :  { %v25857_v14 = vld [vmem:[%s38158_s1 + $0x1cf8] ss:$100 sps:$4 sm:$0xff]  }
 0x16f   :  { %8478 = vmatpush1.bf16.msra.mxu1 %v25776_v17  ;;  %8033 = vmatpush1.bf16.msra.mxu0 %v25779_v18  ;;  %v25865_v17 = vld [vmem:[%s38158_s1 + $0x1dc4] ss:$100 sps:$4 sm:$0xff]  }
 0x170   :  { %8479 = vmatprep.subr.bf16.mxu1 %v25784_v19  ;;  %8034 = vmatprep.subr.bf16.mxu0 %v25787_v20  ;;  %v25860_v20 = vld [vmem:[%s38158_s1 + $0xf00] ss:$100 sps:$4 sm:$0xff]  }
 0x173   :  { %8480 = vmatpush1.bf16.msra.mxu1 %v25782_v22  ;;  %8035 = vmatpush1.bf16.msra.mxu0 %v25785_v23  ;;  %v25863_v22 = vld [vmem:[%s38158_s1 + $0x1dc0] ss:$100 sps:$4 sm:$0xff]  }
 0x174   :  { %8481 = vmatprep.subr.bf16.mxu1 %v25790_v24  ;;  %8036 = vmatprep.subr.bf16.mxu0 %v25793_v26  ;;  %v25868_v24 = vld [vmem:[%s38158_s1 + $0xfcc] ss:$100 sps:$4 sm:$0xff]  }
 0x175   :  { %v25871_v26 = vld [vmem:[%s38158_s1 + $0x1e8c] ss:$100 sps:$4 sm:$0xff]  }
 0x177   :  { %8482 = vmatpush1.bf16.msra.mxu1 %v25788_v27  ;;  %8037 = vmatpush1.bf16.msra.mxu0 %v25791_v28  ;;  %v25866_v28 = vld [vmem:[%s38158_s1 + $0xfc8] ss:$100 sps:$4 sm:$0xff]  }
 0x178   :  { %8483 = vmatprep.subr.bf16.mxu1 %v25796_v29  ;;  %8038 = vmatprep.subr.bf16.mxu0 %v25799_v30  ;;  %v25869_v29 = vld [vmem:[%s38158_s1 + $0x1e88] ss:$100 sps:$4 sm:$0xff]   ;;  %v25874_v30 = vld [vmem:[%s38158_s1 + $0x1094] ss:$100 sps:$4 sm:$0xff]  }
 0x17b   :  { %8484 = vmatpush1.bf16.msra.mxu1 %v25794_v31  ;;  %8039 = vmatpush1.bf16.msra.mxu0 %v25797_v32  ;;  %v25877_v31 = vld [vmem:[%s38158_s1 + $0x1f54] ss:$100 sps:$4 sm:$0xff]  }
 0x17c   :  { %8485 = vmatprep.subr.bf16.mxu1 %v25802_v33  ;;  %8040 = vmatprep.subr.bf16.mxu0 %v25805_v35  ;;  %v25872_v32 = vld [vmem:[%s38158_s1 + $0x1090] ss:$100 sps:$4 sm:$0xff]   ;;  %v25880_v35 = vld [vmem:[%s38158_s1 + $0x115c] ss:$100 sps:$4 sm:$0xff]  }
 0x17d   :  { %v25875_v33 = vld [vmem:[%s38158_s1 + $0x1f50] ss:$100 sps:$4 sm:$0xff]  }
 0x17f   :  { %8486 = vmatpush1.bf16.msra.mxu1 %v25800_v36  ;;  %8041 = vmatpush1.bf16.msra.mxu0 %v25803_v25  ;;  %v25883_v36 = vld [vmem:[%s38158_s1 + $0x201c] ss:$100 sps:$4 sm:$0xff]  }
 0x180   :  { %8487 = vmatprep.subr.bf16.mxu1 %v25808_v37  ;;  %8042 = vmatprep.subr.bf16.mxu0 %v25811_v38  ;;  %v25878_v25 = vld [vmem:[%s38158_s1 + $0x1158] ss:$100 sps:$4 sm:$0xff]   ;;  %v25886_v38 = vld [vmem:[%s38158_s1 + $0x1224] ss:$100 sps:$4 sm:$0xff]  }
 0x181   :  { %v25881_v37 = vld [vmem:[%s38158_s1 + $0x2018] ss:$100 sps:$4 sm:$0xff]  }
 0x183   :  { %8488 = vmatpush1.bf16.msra.mxu1 %v25806_v39  ;;  %8043 = vmatpush1.bf16.msra.mxu0 %v25809_v40  ;;  %v25889_v39 = vld [vmem:[%s38158_s1 + $0x20e4] ss:$100 sps:$4 sm:$0xff]  }
 0x184   :  { %8489 = vmatprep.subr.bf16.mxu1 %v25814_v41  ;;  %8044 = vmatprep.subr.bf16.mxu0 %v25817_v42  ;;  %v25884_v40 = vld [vmem:[%s38158_s1 + $0x1220] ss:$100 sps:$4 sm:$0xff]   ;;  %v25892_v42 = vld [vmem:[%s38158_s1 + $0x12ec] ss:$100 sps:$4 sm:$0xff]  }
 0x185   :  { %v25887_v41 = vld [vmem:[%s38158_s1 + $0x20e0] ss:$100 sps:$4 sm:$0xff]  }
 0x187   :  { %8490 = vmatpush1.bf16.msra.mxu1 %v25812_v43  ;;  %8045 = vmatpush1.bf16.msra.mxu0 %v25815_v44  ;;  %v25895_v43 = vld [vmem:[%s38158_s1 + $0x21ac] ss:$100 sps:$4 sm:$0xff]  }
 0x188   :  { %8491 = vmatprep.subr.bf16.mxu1 %v25820_v45  ;;  %8046 = vmatprep.subr.bf16.mxu0 %v25823_v46  ;;  %v25890_v44 = vld [vmem:[%s38158_s1 + $0x12e8] ss:$100 sps:$4 sm:$0xff]   ;;  %v25898_v46 = vld [vmem:[%s38158_s1 + $0x13b4] ss:$100 sps:$4 sm:$0xff]  }
 0x189   :  { %v25893_v45 = vld [vmem:[%s38158_s1 + $0x21a8] ss:$100 sps:$4 sm:$0xff]  }
 0x18b   :  { %8492 = vmatpush1.bf16.msra.mxu1 %v25818_v47  ;;  %8047 = vmatpush1.bf16.msra.mxu0 %v25821_v49  ;;  %v25901_v47 = vld [vmem:[%s38158_s1 + $0x2274] ss:$100 sps:$4 sm:$0xff]  }
 0x18c   :  { %8493 = vmatprep.subr.bf16.mxu1 %v25826_v50  ;;  %8057 = vmatprep.subr.bf16.mxu0 %v25829_v51  ;;  %v25896_v49 = vld [vmem:[%s38158_s1 + $0x13b0] ss:$100 sps:$4 sm:$0xff]   ;;  %v25904_v51 = vld [vmem:[%s38158_s1 + $0x147c] ss:$100 sps:$4 sm:$0xff]  }
 0x18d   :  { %v25899_v50 = vld [vmem:[%s38158_s1 + $0x2270] ss:$100 sps:$4 sm:$0xff]  }
 0x18e   :  { %8049 = vmatmul.mubr.bf16.vlgmr.msra.gmra.mrb[8].mxu0 %v29526_v7 }
 0x18f   :  { %8494 = vmatpush1.bf16.msra.mxu1 %v25824_v52  ;;  %8058 = vmatpush1.bf16.msra.mxu0 %v25827_v54  ;;  %v25907_v52 = vld [vmem:[%s38158_s1 + $0x233c] ss:$100 sps:$4 sm:$0xff]  }
 0x190   :  { %8495 = vmatprep.subr.bf16.mxu1 %v25832_v55  ;;  %8059 = vmatprep.subr.bf16.mxu0 %v25835_v56  ;;  %v25902_v54 = vld [vmem:[%s38158_s1 + $0x1478] ss:$100 sps:$4 sm:$0xff]   ;;  %v25910_v56 = vld [vmem:[%s38158_s1 + $0x1544] ss:$100 sps:$4 sm:$0xff]  }
 0x191   :  { %8089 = vmatprep.mubr.bf16.mxu0 %v29613_v34  ;;  %v25905_v55 = vld [vmem:[%s38158_s1 + $0x2338] ss:$100 sps:$4 sm:$0xff]  }
 0x193   :  { %8496 = vmatpush1.bf16.msra.mxu1 %v25830_v57  ;;  %8060 = vmatpush1.bf16.msra.mxu0 %v25833_v58  ;;  %v25913_v57 = vld [vmem:[%s38158_s1 + $0x2404] ss:$100 sps:$4 sm:$0xff]  }
 0x194   :  { %8497 = vmatprep.subr.bf16.mxu1 %v25838_v59  ;;  %8061 = vmatprep.subr.bf16.mxu0 %v25841_v60  ;;  %v25908_v58 = vld [vmem:[%s38158_s1 + $0x1540] ss:$100 sps:$4 sm:$0xff]   ;;  %v25916_v60 = vld [vmem:[%s38158_s1 + $0x160c] ss:$100 sps:$4 sm:$0xff]  }
 0x195   :  { %v25911_v59 = vld [vmem:[%s38158_s1 + $0x2400] ss:$100 sps:$4 sm:$0xff]  }
 0x197   :  { %8498 = vmatpush1.bf16.msra.mxu1 %v25836_v61  ;;  %8062 = vmatpush1.bf16.msra.mxu0 %v25839_v62  ;;  %v25919_v61 = vld [vmem:[%s38158_s1 + $0x24cc] ss:$100 sps:$4 sm:$0xff]  }
 0x198   :  { %8508 = vmatprep.subr.bf16.mxu1 %v25844_v63  ;;  %8063 = vmatprep.subr.bf16.mxu0 %v25847_v0  ;;  %v25914_v62 = vld [vmem:[%s38158_s1 + $0x1608] ss:$100 sps:$4 sm:$0xff]   ;;  %v25922_v0 = vld [vmem:[%s38158_s1 + $0x16d4] ss:$100 sps:$4 sm:$0xff]  }
 0x199   :  { %v25917_v63 = vld [vmem:[%s38158_s1 + $0x24c8] ss:$100 sps:$4 sm:$0xff]  }
 0x19a   :  { %8500 = vmatmul.mubr.bf16.vlgmr.msra.gmra.mrb[8].mxu1 %v29524_v6 }
 0x19b   :  { %8509 = vmatpush1.bf16.msra.mxu1 %v25842_v1  ;;  %8064 = vmatpush1.bf16.msra.mxu0 %v25845_v3  ;;  %v25928_v1 = vld [vmem:[%s38158_s1 + $0x2594] ss:$100 sps:$4 sm:$0xff]  }
 0x19c   :  { %8510 = vmatprep.subr.bf16.mxu1 %v25850_v4  ;;  %8065 = vmatprep.subr.bf16.mxu0 %v25853_v8  ;;  %v25920_v3 = vld [vmem:[%s38158_s1 + $0x16d0] ss:$100 sps:$4 sm:$0xff]   ;;  %v25925_v8 = vld [vmem:[%s38158_s1 + $0x179c] ss:$100 sps:$4 sm:$0xff]  }
 0x19d   :  { %8540 = vmatprep.mubr.bf16.mxu1 %v29472_v53  ;;  %v25926_v4 = vld [vmem:[%s38158_s1 + $0x2590] ss:$100 sps:$4 sm:$0xff]  }
 0x19f   :  { %8511 = vmatpush1.bf16.msra.mxu1 %v25848_v9  ;;  %8066 = vmatpush1.bf16.msra.mxu0 %v25851_v10  ;;  %v25934_v9 = vld [vmem:[%s38158_s1 + $0x24] ss:$100 sps:$4 sm:$0xff]   ;;  %v25923_v10 = vld [vmem:[%s38158_s1 + $0x1798] ss:$100 sps:$4 sm:$0xff]  }
 0x1a0   :  { %8512 = vmatprep.subr.bf16.mxu1 %v25856_v11  ;;  %8067 = vmatprep.subr.bf16.mxu0 %v25859_v12  ;;  %v25931_v11 = vld [vmem:[%s38158_s1 + $0x1864] ss:$100 sps:$4 sm:$0xff]   ;;  %v1320_v12 = vlaneseq }
 0x1a1   :  { %v30617_v18 = vpop.f32.mrb[0].mxu0 }
 0x1a2   :  { %v30619_v19 = vpop.f32.mrb[1].mxu0 }
 0x1a3   :  { %8513 = vmatpush1.bf16.msra.mxu1 %v25854_v13  ;;  %8068 = vmatpush1.bf16.msra.mxu0 %v25857_v14  ;;  %v7808_v23 = vpop.f32.mrb[2].mxu0  ;;  %v25929_v13 = vld [vmem:[%s38158_s1 + $0x1860] ss:$100 sps:$4 sm:$0xff]   ;;  %v25937_v14 = vld [vmem:[%s38158_s1 + $0x192c] ss:$100 sps:$4 sm:$0xff]  }
 0x1a4   :  { %8514 = vmatprep.subr.bf16.mxu1 %v25862_v16  ;;  %8069 = vmatprep.subr.bf16.mxu0 %v25865_v17  ;;  %v7809_v27 = vpop.f32.mrb[3].mxu0  ;;  %v30767_v16 = vshrl.u32 %v1320_v12, 7  ;;  %v25932_v17 = vld [vmem:[%s38158_s1 + $0x20] ss:$100 sps:$4 sm:$0xff]   ;;  %v25943_v23 = vld [vmem:[%s38158_s1 + $0x19f4] ss:$100 sps:$4 sm:$0xff]  }
 0x1a5   :  { %v25989_v12 = vld [vmem:[%s38158_s1 + $0x2030] ss:$100 sps:$4 sm:$0xff]  }
 0x1a6   :  { %v30793_v27 = vsub.s32 2, %v30767_v16 }
 0x1a7   :  { %8515 = vmatpush1.bf16.msra.mxu1 %v25860_v20  ;;  %8070 = vmatpush1.bf16.msra.mxu0 %v25863_v22  ;;  %v25935_v20 = vld [vmem:[%s38158_s1 + $0x1928] ss:$100 sps:$4 sm:$0xff]  }
 0x1a8   :  { %8516 = vmatprep.subr.bf16.mxu1 %v25868_v24  ;;  %8071 = vmatprep.subr.bf16.mxu0 %v25871_v26  ;;  %v25940_v22 = vld [vmem:[%s38158_s1 + $0xec] ss:$100 sps:$4 sm:$0xff]   ;;  %v1312_v24 = vld [vmem:[%s38159_s2] sm:$0xff]  ;;  %v30787_v26 = vld [vmem:[%s38157_s0 + $0x18] ss:$0 sps:$4 sm:$0xff]  }
 0x1ab   :  { %8517 = vmatpush1.bf16.msra.mxu1 %v25866_v28  ;;  %8072 = vmatpush1.bf16.msra.mxu0 %v25869_v29  ;;  %v25938_v28 = vld [vmem:[%s38158_s1 + $0xe8] ss:$100 sps:$4 sm:$0xff]   ;;  %v25941_v29 = vld [vmem:[%s38158_s1 + $0x19f0] ss:$100 sps:$4 sm:$0xff]  }
 0x1ac   :  { %8518 = vmatprep.subr.bf16.mxu1 %v25874_v30  ;;  %8073 = vmatprep.subr.bf16.mxu0 %v25877_v31  ;;  %v30802_v30 = vsub.s32 3, %v30767_v16  ;;  %v25946_v31 = vld [vmem:[%s38158_s1 + $0x1b4] ss:$100 sps:$4 sm:$0xff]  }
 0x1af   :  { %8519 = vmatpush1.bf16.msra.mxu1 %v25872_v32  ;;  %8074 = vmatpush1.bf16.msra.mxu0 %v25875_v33  ;;  %v25949_v32 = vld [vmem:[%s38158_s1 + $0x1abc] ss:$100 sps:$4 sm:$0xff]   ;;  %v1331_v33 = vrot.slane %v1312_v24, %v30793_v27 }
 0x1b0   :  { %8520 = vmatprep.subr.bf16.mxu1 %v25880_v35  ;;  %8075 = vmatprep.subr.bf16.mxu0 %v25883_v36  ;;  %v25944_v35 = vld [vmem:[%s38158_s1 + $0x1b0] ss:$100 sps:$4 sm:$0xff]   ;;  %v25947_v36 = vld [vmem:[%s38158_s1 + $0x1ab8] ss:$100 sps:$4 sm:$0xff]  }
 0x1b3   :  { %8521 = vmatpush1.bf16.msra.mxu1 %v25878_v25  ;;  %8076 = vmatpush1.bf16.msra.mxu0 %v25881_v37  ;;  %v1335_v25 = vrot.slane %v1312_v24, %v30802_v30  ;;  %v25952_v37 = vld [vmem:[%s38158_s1 + $0x27c] ss:$100 sps:$4 sm:$0xff]  }
 0x1b4   :  { %8522 = vmatprep.subr.bf16.mxu1 %v25886_v38  ;;  %8077 = vmatprep.subr.bf16.mxu0 %v25889_v39  ;;  %v25955_v38 = vld [vmem:[%s38158_s1 + $0x1b84] ss:$100 sps:$4 sm:$0xff]   ;;  %v25998_v24 = vld [vmem:[%s38158_s1 + $0x8b8] ss:$100 sps:$4 sm:$0xff]  }
 0x1b7   :  { %8523 = vmatpush1.bf16.msra.mxu1 %v25884_v40  ;;  %8078 = vmatpush1.bf16.msra.mxu0 %v25887_v41 }
 0x1b8   :  { %8524 = vmatprep.subr.bf16.mxu1 %v25892_v42  ;;  %8079 = vmatprep.subr.bf16.mxu0 %v25895_v43  ;;  %v25950_v43 = vld [vmem:[%s38158_s1 + $0x278] ss:$100 sps:$4 sm:$0xff]  }
 0x1bb   :  { %8525 = vmatpush1.bf16.msra.mxu1 %v25890_v44  ;;  %8080 = vmatpush1.bf16.msra.mxu0 %v25893_v45  ;;  %v25953_v44 = vld [vmem:[%s38158_s1 + $0x1b80] ss:$100 sps:$4 sm:$0xff]  }
 0x1bc   :  { %8526 = vmatprep.subr.bf16.mxu1 %v25898_v46  ;;  %8081 = vmatprep.subr.bf16.mxu0 %v25901_v47  ;;  %v25958_v47 = vld [vmem:[%s38158_s1 + $0x344] ss:$100 sps:$4 sm:$0xff]  }
 0x1bf   :  { %8527 = vmatpush1.bf16.msra.mxu1 %v25896_v49  ;;  %8082 = vmatpush1.bf16.msra.mxu0 %v25899_v50  ;;  %v25961_v49 = vld [vmem:[%s38158_s1 + $0x1c4c] ss:$100 sps:$4 sm:$0xff]  }
 0x1c0   :  { %8528 = vmatprep.subr.bf16.mxu1 %v25904_v51  ;;  %8083 = vmatprep.subr.bf16.mxu0 %v25907_v52  ;;  %v25959_v52 = vld [vmem:[%s38158_s1 + $0x1c48] ss:$100 sps:$4 sm:$0xff]  }
 0x1c3   :  { %8529 = vmatpush1.bf16.msra.mxu1 %v25902_v54  ;;  %8084 = vmatpush1.bf16.msra.mxu0 %v25905_v55  ;;  %v25964_v54 = vld [vmem:[%s38158_s1 + $0x40c] ss:$100 sps:$4 sm:$0xff]  }
 0x1c4   :  { %8530 = vmatprep.subr.bf16.mxu1 %v25910_v56  ;;  %8085 = vmatprep.subr.bf16.mxu0 %v25913_v57  ;;  %v25962_v55 = vld [vmem:[%s38158_s1 + $0x408] ss:$100 sps:$4 sm:$0xff]   ;;  %v25965_v56 = vld [vmem:[%s38158_s1 + $0x1d10] ss:$100 sps:$4 sm:$0xff]  }
 0x1c5   :  { %v25970_v57 = vld [vmem:[%s38158_s1 + $0x4d4] ss:$100 sps:$4 sm:$0xff]  }
 0x1c7   :  { %8531 = vmatpush1.bf16.msra.mxu1 %v25908_v58  ;;  %8086 = vmatpush1.bf16.msra.mxu0 %v25911_v59  ;;  %v25973_v58 = vld [vmem:[%s38158_s1 + $0x1ddc] ss:$100 sps:$4 sm:$0xff]   ;;  %v25968_v59 = vld [vmem:[%s38158_s1 + $0x4d0] ss:$100 sps:$4 sm:$0xff]  }
 0x1c8   :  { %8532 = vmatprep.subr.bf16.mxu1 %v25916_v60  ;;  %8087 = vmatprep.subr.bf16.mxu0 %v25919_v61  ;;  %v25971_v60 = vld [vmem:[%s38158_s1 + $0x1dd8] ss:$100 sps:$4 sm:$0xff]  }
 0x1c9   :  { %v25976_v61 = vld [vmem:[%s38158_s1 + $0x59c] ss:$100 sps:$4 sm:$0xff]  }
 0x1cb   :  { %8533 = vmatpush1.bf16.msra.mxu1 %v25914_v62  ;;  %8088 = vmatpush1.bf16.msra.mxu0 %v25917_v63  ;;  %v25979_v62 = vld [vmem:[%s38158_s1 + $0x1ea4] ss:$100 sps:$4 sm:$0xff]   ;;  %v25974_v63 = vld [vmem:[%s38158_s1 + $0x598] ss:$100 sps:$4 sm:$0xff]  }
 0x1cc   :  { %8534 = vmatprep.subr.bf16.mxu1 %v25922_v0  ;;  %8098 = vmatprep.subr.bf16.mxu0 %v25928_v1  ;;  %v25977_v0 = vld [vmem:[%s38158_s1 + $0x1ea0] ss:$100 sps:$4 sm:$0xff]  }
 0x1cd   :  { %v25982_v1 = vld [vmem:[%s38158_s1 + $0x664] ss:$100 sps:$4 sm:$0xff]  }
 0x1ce   :  { %8090 = vmatmul.mubr.bf16.vlgmr.msra.gmra.mrb[8].mxu0 %v29738_v15 }
 0x1cf   :  { %8535 = vmatpush1.bf16.msra.mxu1 %v25920_v3  ;;  %8099 = vmatpush1.bf16.msra.mxu0 %v25926_v4  ;;  %v25985_v3 = vld [vmem:[%s38158_s1 + $0x1f6c] ss:$100 sps:$4 sm:$0xff]   ;;  %v25980_v4 = vld [vmem:[%s38158_s1 + $0x660] ss:$100 sps:$4 sm:$0xff]  }
 0x1d0   :  { %8536 = vmatprep.subr.bf16.mxu1 %v25925_v8  ;;  %8130 = vmatprep.mubr.bf16.mxu0 %v29260_v21  ;;  %v25983_v8 = vld [vmem:[%s38158_s1 + $0x1f68] ss:$100 sps:$4 sm:$0xff]  }
 0x1d1   :  { %8303 = vmatprep.subr.bf16.mxu0 %v25934_v9  ;;  %v25988_v9 = vld [vmem:[%s38158_s1 + $0x72c] ss:$100 sps:$4 sm:$0xff]  }
 0x1d3   :  { %8537 = vmatpush1.bf16.msra.mxu1 %v25923_v10  ;;  %v25991_v10 = vld [vmem:[%s38158_s1 + $0x2034] ss:$100 sps:$4 sm:$0xff]  }
 0x1d4   :  { %8538 = vmatprep.subr.bf16.mxu1 %v25931_v11  ;;  %v25986_v11 = vld [vmem:[%s38158_s1 + $0x728] ss:$100 sps:$4 sm:$0xff]  }
 0x1d7   :  { %8539 = vmatpush1.bf16.msra.mxu1 %v25929_v13  ;;  %v25994_v13 = vld [vmem:[%s38158_s1 + $0x7f4] ss:$100 sps:$4 sm:$0xff]  }
 0x1d8   :  { %8549 = vmatprep.subr.bf16.mxu1 %v25937_v14  ;;  %v25997_v14 = vld [vmem:[%s38158_s1 + $0x20fc] ss:$100 sps:$4 sm:$0xff]  }
 0x1da   :  { %22991 = vmatmul.mubr.msk.bf16.vlgmr.msra.gmra.mrb[8].mxu0 %vm7643_vm0, %v30787_v26  ;;  %8541 = vmatmul.mubr.bf16.vlgmr.msra.gmra.mrb[8].mxu1 %v29526_v7 }
 0x1db   :  { %8304 = vmatpush1.bf16.msra.mxu0 %v25932_v17  ;;  %8550 = vmatpush1.bf16.msra.mxu1 %v25935_v20  ;;  %v25992_v17 = vld [vmem:[%s38158_s1 + $0x7f0] ss:$100 sps:$4 sm:$0xff]   ;;  %v25995_v20 = vld [vmem:[%s38158_s1 + $0x20f8] ss:$100 sps:$4 sm:$0xff]  }
 0x1dc   :  { %8305 = vmatprep.subr.bf16.mxu0 %v25940_v22  ;;  %8551 = vmatprep.subr.bf16.mxu1 %v25943_v23  ;;  %v26000_v22 = vld [vmem:[%s38158_s1 + $0x8bc] ss:$100 sps:$4 sm:$0xff]   ;;  %v26003_v23 = vld [vmem:[%s38158_s1 + $0x21c4] ss:$100 sps:$4 sm:$0xff]  }
 0x1dd   :  { %8581 = vmatprep.mubr.bf16.mxu1 %v29613_v34  ;;  %8335 = vmatprep.mubr.bf16.mxu0 %v29458_v48 }
 0x1df   :  { %8306 = vmatpush1.bf16.msra.mxu0 %v25938_v28  ;;  %8552 = vmatpush1.bf16.msra.mxu1 %v25941_v29  ;;  %v26001_v28 = vld [vmem:[%s38158_s1 + $0x21c0] ss:$100 sps:$4 sm:$0xff]  }
 0x1e0   :  { %8307 = vmatprep.subr.bf16.mxu0 %v25946_v31  ;;  %8553 = vmatprep.subr.bf16.mxu1 %v25949_v32  ;;  %v26006_v29 = vld [vmem:[%s38158_s1 + $0x984] ss:$100 sps:$4 sm:$0xff]   ;;  %v26009_v31 = vld [vmem:[%s38158_s1 + $0x228c] ss:$100 sps:$4 sm:$0xff]  }
 0x1e1   :  { %v7845_v39 = vpop.f32.mrb[4].mxu0  ;;  %v26004_v32 = vld [vmem:[%s38158_s1 + $0x980] ss:$100 sps:$4 sm:$0xff]  }
 0x1e2   :  { %v7846_v40 = vadd.f32 %v7845_v39, %v1331_v33  ;;  %v7847_v41 = vpop.f32.mrb[5].mxu0  ;;  %v26007_v33 = vld [vmem:[%s38158_s1 + $0x2288] ss:$100 sps:$4 sm:$0xff]   ;;  %v26021_v39 = vld [vmem:[%s38158_s1 + $0x241c] ss:$100 sps:$4 sm:$0xff]  }
 0x1e3   :  { %v7848_v42 = vadd.f32 %v7847_v41, %v1335_v25  ;;  %8308 = vmatpush1.bf16.msra.mxu0 %v25944_v35  ;;  %8554 = vmatpush1.bf16.msra.mxu1 %v25947_v36  ;;  %v7849_v45 = vpop.f32.mrb[6].mxu0  ;;  %v26012_v35 = vld [vmem:[%s38158_s1 + $0xa4c] ss:$100 sps:$4 sm:$0xff]   ;;  %v26015_v36 = vld [vmem:[%s38158_s1 + $0x2354] ss:$100 sps:$4 sm:$0xff]  }
 0x1e4   :  { %v30833_v46 = vadd.f32 %v30417_v2, %v7846_v40  ;;  %8309 = vmatprep.subr.bf16.mxu0 %v25952_v37  ;;  %8555 = vmatprep.subr.bf16.mxu1 %v25955_v38  ;;  %v7850_v50 = vpop.f32.mrb[7].mxu0  ;;  %v25956_v2 = vld [vmem:[%s38158_s1 + $0x340] ss:$100 sps:$4 sm:$0xff]   ;;  %v26010_v25 = vld [vmem:[%s38158_s1 + $0xa48] ss:$100 sps:$4 sm:$0xff]  }
 0x1e5   :  { %v30842_v51 = vadd.f32 %v30425_v5, %v7848_v42  ;;  %v25967_v5 = vld [vmem:[%s38158_s1 + $0x1d14] ss:$100 sps:$4 sm:$0xff]   ;;  %v26024_v42 = vld [vmem:[%s38158_s1 + $0xbdc] ss:$100 sps:$4 sm:$0xff]  }
 0x1e6   :  { %v26013_v37 = vld [vmem:[%s38158_s1 + $0x2350] ss:$100 sps:$4 sm:$0xff]   ;;  %v26019_v41 = vld [vmem:[%s38158_s1 + $0x2418] ss:$100 sps:$4 sm:$0xff]   ;;  %v26025_v45 = vld [vmem:[%s38158_s1 + $0x24e0] ss:$100 sps:$4 sm:$0xff]  }
 0x1e7   :  { %8310 = vmatpush1.bf16.msra.mxu0 %v25950_v43  ;;  %8556 = vmatpush1.bf16.msra.mxu1 %v25953_v44  ;;  %v26018_v38 = vld [vmem:[%s38158_s1 + $0xb14] ss:$100 sps:$4 sm:$0xff]   ;;  %v26027_v43 = vld [vmem:[%s38158_s1 + $0x24e4] ss:$100 sps:$4 sm:$0xff]  }
 0x1e8   :  { %8311 = vmatprep.subr.bf16.mxu0 %v25958_v47  ;;  %8557 = vmatprep.subr.bf16.mxu1 %v25961_v49  ;;  %v26016_v40 = vld [vmem:[%s38158_s1 + $0xb10] ss:$100 sps:$4 sm:$0xff]   ;;  %v26022_v44 = vld [vmem:[%s38158_s1 + $0xbd8] ss:$100 sps:$4 sm:$0xff]   ;;  %v26030_v47 = vld [vmem:[%s38158_s1 + $0xca4] ss:$100 sps:$4 sm:$0xff]  }
 0x1e9   :  { %v26033_v49 = vld [vmem:[%s38158_s1 + $0x25ac] ss:$100 sps:$4 sm:$0xff]   ;;  %v26028_v50 = vld [vmem:[%s38158_s1 + $0xca0] ss:$100 sps:$4 sm:$0xff]  }
 0x1eb   :  { %8312 = vmatpush1.bf16.msra.mxu0 %v25956_v2  ;;  %8558 = vmatpush1.bf16.msra.mxu1 %v25959_v52  ;;  %v26031_v2 = vld [vmem:[%s38158_s1 + $0x25a8] ss:$100 sps:$4 sm:$0xff]  }
 0x1ec   :  { %8313 = vmatprep.subr.bf16.mxu0 %v25964_v54  ;;  %8559 = vmatprep.subr.bf16.mxu1 %v25967_v5  ;;  %v26036_v52 = vld [vmem:[%s38158_s1 + $0xd6c] ss:$100 sps:$4 sm:$0xff]   ;;  %v26042_v54 = vld [vmem:[%s38158_s1 + $0x3c] ss:$100 sps:$4 sm:$0xff]  }
 0x1ed   :  { %v26034_v5 = vld [vmem:[%s38158_s1 + $0xd68] ss:$100 sps:$4 sm:$0xff]  }
 0x1ef   :  { %8314 = vmatpush1.bf16.msra.mxu0 %v25962_v55  ;;  %8560 = vmatpush1.bf16.msra.mxu1 %v25965_v56  ;;  %v26039_v55 = vld [vmem:[%s38158_s1 + $0xe34] ss:$100 sps:$4 sm:$0xff]  }
 0x1f0   :  { %8315 = vmatprep.subr.bf16.mxu0 %v25970_v57  ;;  %8561 = vmatprep.subr.bf16.mxu1 %v25973_v58  ;;  %v26037_v56 = vld [vmem:[%s38158_s1 + $0xe30] ss:$100 sps:$4 sm:$0xff]   ;;  %v26045_v57 = vld [vmem:[%s38158_s1 + $0xefc] ss:$100 sps:$4 sm:$0xff]  }
 0x1f1   :  { %v26040_v58 = vld [vmem:[%s38158_s1 + $0x38] ss:$100 sps:$4 sm:$0xff]  }
 0x1f3   :  { %8316 = vmatpush1.bf16.msra.mxu0 %v25968_v59  ;;  %8562 = vmatpush1.bf16.msra.mxu1 %v25971_v60  ;;  %v26043_v59 = vld [vmem:[%s38158_s1 + $0xef8] ss:$100 sps:$4 sm:$0xff]   ;;  %v26048_v60 = vld [vmem:[%s38158_s1 + $0x104] ss:$100 sps:$4 sm:$0xff]  }
 0x1f4   :  { %8317 = vmatprep.subr.bf16.mxu0 %v25976_v61  ;;  %8563 = vmatprep.subr.bf16.mxu1 %v25979_v62  ;;  %v26051_v61 = vld [vmem:[%s38158_s1 + $0xfc4] ss:$100 sps:$4 sm:$0xff]  }
 0x1f5   :  { %v26046_v62 = vld [vmem:[%s38158_s1 + $0x100] ss:$100 sps:$4 sm:$0xff]  }
 0x1f7   :  { %8318 = vmatpush1.bf16.msra.mxu0 %v25974_v63  ;;  %8564 = vmatpush1.bf16.msra.mxu1 %v25977_v0  ;;  %v26049_v63 = vld [vmem:[%s38158_s1 + $0xfc0] ss:$100 sps:$4 sm:$0xff]   ;;  %v26054_v0 = vld [vmem:[%s38158_s1 + $0x1cc] ss:$100 sps:$4 sm:$0xff]  }
 0x1f8   :  { %8319 = vmatprep.subr.bf16.mxu0 %v25982_v1  ;;  %8565 = vmatprep.subr.bf16.mxu1 %v25985_v3  ;;  %v26052_v1 = vld [vmem:[%s38158_s1 + $0x1c8] ss:$100 sps:$4 sm:$0xff]  }
 0x1f9   :  { %v26055_v3 = vld [vmem:[%s38158_s1 + $0x1088] ss:$100 sps:$4 sm:$0xff]  }
 0x1fb   :  { %8320 = vmatpush1.bf16.msra.mxu0 %v25980_v4  ;;  %8566 = vmatpush1.bf16.msra.mxu1 %v25983_v8  ;;  %v26060_v4 = vld [vmem:[%s38158_s1 + $0x294] ss:$100 sps:$4 sm:$0xff]  }
 0x1fc   :  { %8321 = vmatprep.subr.bf16.mxu0 %v25988_v9  ;;  %8567 = vmatprep.subr.bf16.mxu1 %v25991_v10  ;;  %v26063_v8 = vld [vmem:[%s38158_s1 + $0x1154] ss:$100 sps:$4 sm:$0xff]  }
 0x1ff   :  { %8322 = vmatpush1.bf16.msra.mxu0 %v25986_v11  ;;  %8568 = vmatpush1.bf16.msra.mxu1 %v25989_v12  ;;  %v26058_v12 = vld [vmem:[%s38158_s1 + $0x290] ss:$100 sps:$4 sm:$0xff]  }
 0x200   :  { %8323 = vmatprep.subr.bf16.mxu0 %v25994_v13  ;;  %8569 = vmatprep.subr.bf16.mxu1 %v25997_v14  ;;  %v26061_v13 = vld [vmem:[%s38158_s1 + $0x1150] ss:$100 sps:$4 sm:$0xff]  }
 0x203   :  { %8324 = vmatpush1.bf16.msra.mxu0 %v25992_v17  ;;  %8570 = vmatpush1.bf16.msra.mxu1 %v25995_v20  ;;  %v26066_v17 = vld [vmem:[%s38158_s1 + $0x35c] ss:$100 sps:$4 sm:$0xff]  }
 0x204   :  { %8325 = vmatprep.subr.bf16.mxu0 %v26000_v22  ;;  %8571 = vmatprep.subr.bf16.mxu1 %v26003_v23  ;;  %v26069_v20 = vld [vmem:[%s38158_s1 + $0x121c] ss:$100 sps:$4 sm:$0xff]  }
 0x205   :  { %v26064_v22 = vld [vmem:[%s38158_s1 + $0x358] ss:$100 sps:$4 sm:$0xff]  }
 0x206   :  { %v26067_v23 = vld [vmem:[%s38158_s1 + $0x1218] ss:$100 sps:$4 sm:$0xff]  }
 0x207   :  { %8326 = vmatpush1.bf16.msra.mxu0 %v25998_v24  ;;  %8572 = vmatpush1.bf16.msra.mxu1 %v26001_v28  ;;  %v26072_v24 = vld [vmem:[%s38158_s1 + $0x424] ss:$100 sps:$4 sm:$0xff]  }
 0x208   :  { %8327 = vmatprep.subr.bf16.mxu0 %v26006_v29  ;;  %8573 = vmatprep.subr.bf16.mxu1 %v26009_v31  ;;  %v26075_v28 = vld [vmem:[%s38158_s1 + $0x12e4] ss:$100 sps:$4 sm:$0xff]  }
 0x209   :  { %v26070_v29 = vld [vmem:[%s38158_s1 + $0x420] ss:$100 sps:$4 sm:$0xff]  }
 0x20a   :  { %v26073_v31 = vld [vmem:[%s38158_s1 + $0x12e0] ss:$100 sps:$4 sm:$0xff]  }
 0x20b   :  { %8328 = vmatpush1.bf16.msra.mxu0 %v26004_v32  ;;  %8574 = vmatpush1.bf16.msra.mxu1 %v26007_v33  ;;  %v26078_v32 = vld [vmem:[%s38158_s1 + $0x4ec] ss:$100 sps:$4 sm:$0xff]  }
 0x20c   :  { %8329 = vmatprep.subr.bf16.mxu0 %v26012_v35  ;;  %8575 = vmatprep.subr.bf16.mxu1 %v26015_v36  ;;  %v26081_v33 = vld [vmem:[%s38158_s1 + $0x13ac] ss:$100 sps:$4 sm:$0xff]  }
 0x20d   :  { %v26076_v35 = vld [vmem:[%s38158_s1 + $0x4e8] ss:$100 sps:$4 sm:$0xff]  }
 0x20e   :  { %v26079_v36 = vld [vmem:[%s38158_s1 + $0x13a8] ss:$100 sps:$4 sm:$0xff]  }
 0x20f   :  { %8330 = vmatpush1.bf16.msra.mxu0 %v26010_v25  ;;  %8576 = vmatpush1.bf16.msra.mxu1 %v26013_v37  ;;  %v26084_v25 = vld [vmem:[%s38158_s1 + $0x5b4] ss:$100 sps:$4 sm:$0xff]  }
 0x210   :  { %8331 = vmatprep.subr.bf16.mxu0 %v26018_v38  ;;  %8577 = vmatprep.subr.bf16.mxu1 %v26021_v39  ;;  %v26087_v37 = vld [vmem:[%s38158_s1 + $0x1474] ss:$100 sps:$4 sm:$0xff]  }
 0x211   :  { %v26082_v38 = vld [vmem:[%s38158_s1 + $0x5b0] ss:$100 sps:$4 sm:$0xff]  }
 0x212   :  { %v26085_v39 = vld [vmem:[%s38158_s1 + $0x1470] ss:$100 sps:$4 sm:$0xff]  }
 0x213   :  { %8332 = vmatpush1.bf16.msra.mxu0 %v26016_v40  ;;  %8578 = vmatpush1.bf16.msra.mxu1 %v26019_v41  ;;  %v26090_v40 = vld [vmem:[%s38158_s1 + $0x67c] ss:$100 sps:$4 sm:$0xff]  }
 0x214   :  { %8333 = vmatprep.subr.bf16.mxu0 %v26024_v42  ;;  %8579 = vmatprep.subr.bf16.mxu1 %v26027_v43  ;;  %v26093_v41 = vld [vmem:[%s38158_s1 + $0x153c] ss:$100 sps:$4 sm:$0xff]  }
 0x215   :  { %v26088_v42 = vld [vmem:[%s38158_s1 + $0x678] ss:$100 sps:$4 sm:$0xff]  }
 0x216   :  { %v26091_v43 = vld [vmem:[%s38158_s1 + $0x1538] ss:$100 sps:$4 sm:$0xff]  }
 0x217   :  { %8334 = vmatpush1.bf16.msra.mxu0 %v26022_v44  ;;  %8580 = vmatpush1.bf16.msra.mxu1 %v26025_v45  ;;  %v26096_v44 = vld [vmem:[%s38158_s1 + $0x744] ss:$100 sps:$4 sm:$0xff]  }
 0x218   :  { %8344 = vmatprep.subr.bf16.mxu0 %v26030_v47  ;;  %8590 = vmatprep.subr.bf16.mxu1 %v26033_v49  ;;  %v26099_v45 = vld [vmem:[%s38158_s1 + $0x1604] ss:$100 sps:$4 sm:$0xff]  }
 0x219   :  { %v26094_v47 = vld [vmem:[%s38158_s1 + $0x740] ss:$100 sps:$4 sm:$0xff]  }
 0x21a   :  { %8582 = vmatmul.mubr.bf16.vlgmr.msra.gmra.mrb[8].mxu1 %v29738_v15  ;;  %8336 = vmatmul.mubr.bf16.vlgmr.msra.gmra.mrb[12].mxu0 %v29524_v6  ;;  %v26097_v49 = vld [vmem:[%s38158_s1 + $0x1600] ss:$100 sps:$4 sm:$0xff]  }
 0x21b   :  { %8345 = vmatpush1.bf16.msra.mxu0 %v26028_v50  ;;  %8591 = vmatpush1.bf16.msra.mxu1 %v26031_v2  ;;  %v26102_v50 = vld [vmem:[%s38158_s1 + $0x80c] ss:$100 sps:$4 sm:$0xff]  }
 0x21c   :  { %8346 = vmatprep.subr.bf16.mxu0 %v26036_v52  ;;  %8622 = vmatprep.mubr.bf16.mxu1 %v29260_v21  ;;  %v26105_v2 = vld [vmem:[%s38158_s1 + $0x16cc] ss:$100 sps:$4 sm:$0xff]  }
 0x21d   :  { %8795 = vmatprep.subr.bf16.mxu1 %v26042_v54  ;;  %8376 = vmatprep.mubr.bf16.mxu0 %v29472_v53  ;;  %v26100_v52 = vld [vmem:[%s38158_s1 + $0x808] ss:$100 sps:$4 sm:$0xff]  }
 0x21e   :  { %v26103_v54 = vld [vmem:[%s38158_s1 + $0x16c8] ss:$100 sps:$4 sm:$0xff]  }
 0x21f   :  { %8347 = vmatpush1.bf16.msra.mxu0 %v26034_v5  ;;  %v26108_v5 = vld [vmem:[%s38158_s1 + $0x8d4] ss:$100 sps:$4 sm:$0xff]  }
 0x220   :  { %8348 = vmatprep.subr.bf16.mxu0 %v26039_v55  ;;  %v26111_v55 = vld [vmem:[%s38158_s1 + $0x1794] ss:$100 sps:$4 sm:$0xff]  }
 0x223   :  { %8349 = vmatpush1.bf16.msra.mxu0 %v26037_v56  ;;  %v26106_v56 = vld [vmem:[%s38158_s1 + $0x8d0] ss:$100 sps:$4 sm:$0xff]  }
 0x224   :  { %8350 = vmatprep.subr.bf16.mxu0 %v26045_v57  ;;  %v26109_v57 = vld [vmem:[%s38158_s1 + $0x1790] ss:$100 sps:$4 sm:$0xff]  }
 0x226   :  { %22994 = vmatmul.mubr.msk.bf16.vlgmr.msra.gmra.mrb[8].mxu1 %vm7643_vm0, %v30787_v26  ;;  %v26057_v26 = vld [vmem:[%s38158_s1 + $0x108c] ss:$100 sps:$4 sm:$0xff]  }
 0x227   :  { %8796 = vmatpush1.bf16.msra.mxu1 %v26040_v58  ;;  %8351 = vmatpush1.bf16.msra.mxu0 %v26043_v59  ;;  %v26114_v58 = vld [vmem:[%s38158_s1 + $0x99c] ss:$100 sps:$4 sm:$0xff]  }
 0x228   :  { %8797 = vmatprep.subr.bf16.mxu1 %v26048_v60  ;;  %8352 = vmatprep.subr.bf16.mxu0 %v26051_v61  ;;  %v26117_v59 = vld [vmem:[%s38158_s1 + $0x185c] ss:$100 sps:$4 sm:$0xff]  }
 0x229   :  { %8827 = vmatprep.mubr.bf16.mxu1 %v29458_v48  ;;  %v26112_v60 = vld [vmem:[%s38158_s1 + $0x998] ss:$100 sps:$4 sm:$0xff]  }
 0x22a   :  { %v26115_v61 = vld [vmem:[%s38158_s1 + $0x1858] ss:$100 sps:$4 sm:$0xff]  }
 0x22b   :  { %8798 = vmatpush1.bf16.msra.mxu1 %v26046_v62  ;;  %8353 = vmatpush1.bf16.msra.mxu0 %v26049_v63  ;;  %v26120_v62 = vld [vmem:[%s38158_s1 + $0xa64] ss:$100 sps:$4 sm:$0xff]  }
 0x22c   :  { %8799 = vmatprep.subr.bf16.mxu1 %v26054_v0  ;;  %8354 = vmatprep.subr.bf16.mxu0 %v26057_v26  ;;  %v26123_v63 = vld [vmem:[%s38158_s1 + $0x1924] ss:$100 sps:$4 sm:$0xff]  }
 0x22d   :  { %v31055_v9 = vpop.f32.mrb[4].mxu1  ;;  %v26118_v0 = vld [vmem:[%s38158_s1 + $0xa60] ss:$100 sps:$4 sm:$0xff]  }
 0x22e   :  { %v31057_v10 = vpop.f32.mrb[5].mxu1  ;;  %v26121_v26 = vld [vmem:[%s38158_s1 + $0x1920] ss:$100 sps:$4 sm:$0xff]  }
 0x22f   :  { %8800 = vmatpush1.bf16.msra.mxu1 %v26052_v1  ;;  %8355 = vmatpush1.bf16.msra.mxu0 %v26055_v3  ;;  %v8300_v11 = vpop.f32.mrb[6].mxu1  ;;  %v26126_v1 = vld [vmem:[%s38158_s1 + $0xb2c] ss:$100 sps:$4 sm:$0xff]  }
 0x230   :  { %v8301_v14 = vpop.f32.mrb[7].mxu1  ;;  %8801 = vmatprep.subr.bf16.mxu1 %v26060_v4  ;;  %8356 = vmatprep.subr.bf16.mxu0 %v26063_v8  ;;  %v26129_v3 = vld [vmem:[%s38158_s1 + $0x19ec] ss:$100 sps:$4 sm:$0xff]   ;;  %v26132_v11 = vld [vmem:[%s38158_s1 + $0xbf4] ss:$100 sps:$4 sm:$0xff]  }
 0x231   :  { %v26124_v4 = vld [vmem:[%s38158_s1 + $0xb28] ss:$100 sps:$4 sm:$0xff]   ;;  %v26133_v14 = vld [vmem:[%s38158_s1 + $0x1ab0] ss:$100 sps:$4 sm:$0xff]  }
 0x232   :  { %v26127_v8 = vld [vmem:[%s38158_s1 + $0x19e8] ss:$100 sps:$4 sm:$0xff]  }
 0x233   :  { %8802 = vmatpush1.bf16.msra.mxu1 %v26058_v12  ;;  %8357 = vmatpush1.bf16.msra.mxu0 %v26061_v13  ;;  %v26135_v12 = vld [vmem:[%s38158_s1 + $0x1ab4] ss:$100 sps:$4 sm:$0xff]  }
 0x234   :  { %8803 = vmatprep.subr.bf16.mxu1 %v26066_v17  ;;  %8358 = vmatprep.subr.bf16.mxu0 %v26069_v20  ;;  %v26130_v13 = vld [vmem:[%s38158_s1 + $0xbf0] ss:$100 sps:$4 sm:$0xff]   ;;  %v26138_v17 = vld [vmem:[%s38158_s1 + $0xcbc] ss:$100 sps:$4 sm:$0xff]  }
 0x235   :  { %v26141_v20 = vld [vmem:[%s38158_s1 + $0x1b7c] ss:$100 sps:$4 sm:$0xff]  }
 0x237   :  { %8804 = vmatpush1.bf16.msra.mxu1 %v26064_v22  ;;  %8359 = vmatpush1.bf16.msra.mxu0 %v26067_v23  ;;  %v26136_v22 = vld [vmem:[%s38158_s1 + $0xcb8] ss:$100 sps:$4 sm:$0xff]  }
 0x238   :  { %8805 = vmatprep.subr.bf16.mxu1 %v26072_v24  ;;  %8360 = vmatprep.subr.bf16.mxu0 %v26075_v28  ;;  %v26139_v23 = vld [vmem:[%s38158_s1 + $0x1b78] ss:$100 sps:$4 sm:$0xff]   ;;  %v26144_v24 = vld [vmem:[%s38158_s1 + $0xd84] ss:$100 sps:$4 sm:$0xff]  }
 0x239   :  { %v26147_v28 = vld [vmem:[%s38158_s1 + $0x1c44] ss:$100 sps:$4 sm:$0xff]  }
 0x23b   :  { %8806 = vmatpush1.bf16.msra.mxu1 %v26070_v29  ;;  %8361 = vmatpush1.bf16.msra.mxu0 %v26073_v31  ;;  %v26142_v29 = vld [vmem:[%s38158_s1 + $0xd80] ss:$100 sps:$4 sm:$0xff]  }
 0x23c   :  { %8807 = vmatprep.subr.bf16.mxu1 %v26078_v32  ;;  %8362 = vmatprep.subr.bf16.mxu0 %v26081_v33  ;;  %v26145_v31 = vld [vmem:[%s38158_s1 + $0x1c40] ss:$100 sps:$4 sm:$0xff]   ;;  %v26150_v32 = vld [vmem:[%s38158_s1 + $0xe4c] ss:$100 sps:$4 sm:$0xff]  }
 0x23d   :  { %v26153_v33 = vld [vmem:[%s38158_s1 + $0x1d0c] ss:$100 sps:$4 sm:$0xff]  }
 0x23f   :  { %8808 = vmatpush1.bf16.msra.mxu1 %v26076_v35  ;;  %8363 = vmatpush1.bf16.msra.mxu0 %v26079_v36  ;;  %v26148_v35 = vld [vmem:[%s38158_s1 + $0xe48] ss:$100 sps:$4 sm:$0xff]  }
 0x240   :  { %8809 = vmatprep.subr.bf16.mxu1 %v26084_v25  ;;  %8364 = vmatprep.subr.bf16.mxu0 %v26087_v37  ;;  %v26151_v36 = vld [vmem:[%s38158_s1 + $0x1d08] ss:$100 sps:$4 sm:$0xff]   ;;  %v26156_v25 = vld [vmem:[%s38158_s1 + $0xf14] ss:$100 sps:$4 sm:$0xff]  }
 0x241   :  { %v26159_v37 = vld [vmem:[%s38158_s1 + $0x1dd4] ss:$100 sps:$4 sm:$0xff]  }
 0x243   :  { %8810 = vmatpush1.bf16.msra.mxu1 %v26082_v38  ;;  %8365 = vmatpush1.bf16.msra.mxu0 %v26085_v39  ;;  %v26154_v38 = vld [vmem:[%s38158_s1 + $0xf10] ss:$100 sps:$4 sm:$0xff]  }
 0x244   :  { %8811 = vmatprep.subr.bf16.mxu1 %v26090_v40  ;;  %8366 = vmatprep.subr.bf16.mxu0 %v26093_v41  ;;  %v26157_v39 = vld [vmem:[%s38158_s1 + $0x1dd0] ss:$100 sps:$4 sm:$0xff]   ;;  %v26162_v40 = vld [vmem:[%s38158_s1 + $0xfdc] ss:$100 sps:$4 sm:$0xff]  }
 0x245   :  { %v26165_v41 = vld [vmem:[%s38158_s1 + $0x1e9c] ss:$100 sps:$4 sm:$0xff]  }
 0x247   :  { %8812 = vmatpush1.bf16.msra.mxu1 %v26088_v42  ;;  %8367 = vmatpush1.bf16.msra.mxu0 %v26091_v43  ;;  %v26160_v42 = vld [vmem:[%s38158_s1 + $0xfd8] ss:$100 sps:$4 sm:$0xff]  }
 0x248   :  { %8813 = vmatprep.subr.bf16.mxu1 %v26096_v44  ;;  %8368 = vmatprep.subr.bf16.mxu0 %v26099_v45  ;;  %v26163_v43 = vld [vmem:[%s38158_s1 + $0x1e98] ss:$100 sps:$4 sm:$0xff]   ;;  %v26168_v44 = vld [vmem:[%s38158_s1 + $0x10a4] ss:$100 sps:$4 sm:$0xff]  }
 0x249   :  { %v26171_v45 = vld [vmem:[%s38158_s1 + $0x1f64] ss:$100 sps:$4 sm:$0xff]  }
 0x24b   :  { %8814 = vmatpush1.bf16.msra.mxu1 %v26094_v47  ;;  %8369 = vmatpush1.bf16.msra.mxu0 %v26097_v49  ;;  %v26166_v47 = vld [vmem:[%s38158_s1 + $0x10a0] ss:$100 sps:$4 sm:$0xff]  }
 0x24c   :  { %8815 = vmatprep.subr.bf16.mxu1 %v26102_v50  ;;  %8370 = vmatprep.subr.bf16.mxu0 %v26105_v2  ;;  %v26169_v49 = vld [vmem:[%s38158_s1 + $0x1f60] ss:$100 sps:$4 sm:$0xff]   ;;  %v26174_v50 = vld [vmem:[%s38158_s1 + $0x116c] ss:$100 sps:$4 sm:$0xff]  }
 0x24d   :  { %v26177_v2 = vld [vmem:[%s38158_s1 + $0x202c] ss:$100 sps:$4 sm:$0xff]  }
 0x24f   :  { %8816 = vmatpush1.bf16.msra.mxu1 %v26100_v52  ;;  %8371 = vmatpush1.bf16.msra.mxu0 %v26103_v54  ;;  %v26172_v52 = vld [vmem:[%s38158_s1 + $0x1168] ss:$100 sps:$4 sm:$0xff]  }
 0x250   :  { %8817 = vmatprep.subr.bf16.mxu1 %v26108_v5  ;;  %8372 = vmatprep.subr.bf16.mxu0 %v26111_v55  ;;  %v26175_v54 = vld [vmem:[%s38158_s1 + $0x2028] ss:$100 sps:$4 sm:$0xff]   ;;  %v26180_v5 = vld [vmem:[%s38158_s1 + $0x1234] ss:$100 sps:$4 sm:$0xff]  }
 0x251   :  { %v26183_v55 = vld [vmem:[%s38158_s1 + $0x20f4] ss:$100 sps:$4 sm:$0xff]  }
 0x253   :  { %8818 = vmatpush1.bf16.msra.mxu1 %v26106_v56  ;;  %8373 = vmatpush1.bf16.msra.mxu0 %v26109_v57  ;;  %v26178_v56 = vld [vmem:[%s38158_s1 + $0x1230] ss:$100 sps:$4 sm:$0xff]  }
 0x254   :  { %8819 = vmatprep.subr.bf16.mxu1 %v26114_v58  ;;  %8374 = vmatprep.subr.bf16.mxu0 %v26117_v59  ;;  %v26181_v57 = vld [vmem:[%s38158_s1 + $0x20f0] ss:$100 sps:$4 sm:$0xff]   ;;  %v26186_v58 = vld [vmem:[%s38158_s1 + $0x12fc] ss:$100 sps:$4 sm:$0xff]  }
 0x255   :  { %v26189_v59 = vld [vmem:[%s38158_s1 + $0x21bc] ss:$100 sps:$4 sm:$0xff]  }
 0x257   :  { %8820 = vmatpush1.bf16.msra.mxu1 %v26112_v60  ;;  %8375 = vmatpush1.bf16.msra.mxu0 %v26115_v61  ;;  %v26184_v60 = vld [vmem:[%s38158_s1 + $0x12f8] ss:$100 sps:$4 sm:$0xff]  }
 0x258   :  { %8821 = vmatprep.subr.bf16.mxu1 %v26120_v62  ;;  %8385 = vmatprep.subr.bf16.mxu0 %v26123_v63  ;;  %v26187_v61 = vld [vmem:[%s38158_s1 + $0x21b8] ss:$100 sps:$4 sm:$0xff]   ;;  %v26192_v62 = vld [vmem:[%s38158_s1 + $0x13c4] ss:$100 sps:$4 sm:$0xff]  }
 0x259   :  { %v26195_v63 = vld [vmem:[%s38158_s1 + $0x2284] ss:$100 sps:$4 sm:$0xff]  }
 0x25a   :  { %8377 = vmatmul.mubr.bf16.vlgmr.msra.gmra.mrb[12].mxu0 %v29526_v7 }
 0x25b   :  { %8822 = vmatpush1.bf16.msra.mxu1 %v26118_v0  ;;  %8386 = vmatpush1.bf16.msra.mxu0 %v26121_v26  ;;  %v26190_v0 = vld [vmem:[%s38158_s1 + $0x13c0] ss:$100 sps:$4 sm:$0xff]  }
 0x25c   :  { %8823 = vmatprep.subr.bf16.mxu1 %v26126_v1  ;;  %8387 = vmatprep.subr.bf16.mxu0 %v26129_v3  ;;  %v26193_v26 = vld [vmem:[%s38158_s1 + $0x2280] ss:$100 sps:$4 sm:$0xff]   ;;  %v26198_v1 = vld [vmem:[%s38158_s1 + $0x148c] ss:$100 sps:$4 sm:$0xff]  }
 0x25d   :  { %8417 = vmatprep.mubr.bf16.mxu0 %v29613_v34  ;;  %v26201_v3 = vld [vmem:[%s38158_s1 + $0x234c] ss:$100 sps:$4 sm:$0xff]  }
 0x25f   :  { %8824 = vmatpush1.bf16.msra.mxu1 %v26124_v4  ;;  %8388 = vmatpush1.bf16.msra.mxu0 %v26127_v8  ;;  %v26196_v4 = vld [vmem:[%s38158_s1 + $0x1488] ss:$100 sps:$4 sm:$0xff]  }
 0x260   :  { %8825 = vmatprep.subr.bf16.mxu1 %v26132_v11  ;;  %8389 = vmatprep.subr.bf16.mxu0 %v26135_v12  ;;  %v26199_v8 = vld [vmem:[%s38158_s1 + $0x2348] ss:$100 sps:$4 sm:$0xff]   ;;  %v26204_v11 = vld [vmem:[%s38158_s1 + $0x1554] ss:$100 sps:$4 sm:$0xff]  }
 0x261   :  { %v26207_v12 = vld [vmem:[%s38158_s1 + $0x2414] ss:$100 sps:$4 sm:$0xff]  }
 0x263   :  { %8826 = vmatpush1.bf16.msra.mxu1 %v26130_v13  ;;  %8390 = vmatpush1.bf16.msra.mxu0 %v26133_v14  ;;  %v26202_v13 = vld [vmem:[%s38158_s1 + $0x1550] ss:$100 sps:$4 sm:$0xff]  }
 0x264   :  { %8836 = vmatprep.subr.bf16.mxu1 %v26138_v17  ;;  %8391 = vmatprep.subr.bf16.mxu0 %v26141_v20  ;;  %v26205_v14 = vld [vmem:[%s38158_s1 + $0x2410] ss:$100 sps:$4 sm:$0xff]   ;;  %v26210_v17 = vld [vmem:[%s38158_s1 + $0x161c] ss:$100 sps:$4 sm:$0xff]  }
 0x265   :  { %v26213_v20 = vld [vmem:[%s38158_s1 + $0x24dc] ss:$100 sps:$4 sm:$0xff]  }
 0x266   :  { %8828 = vmatmul.mubr.bf16.vlgmr.msra.gmra.mrb[12].mxu1 %v29524_v6 }
 0x267   :  { %8837 = vmatpush1.bf16.msra.mxu1 %v26136_v22  ;;  %8392 = vmatpush1.bf16.msra.mxu0 %v26139_v23  ;;  %v26208_v22 = vld [vmem:[%s38158_s1 + $0x1618] ss:$100 sps:$4 sm:$0xff]  }
 0x268   :  { %8838 = vmatprep.subr.bf16.mxu1 %v26144_v24  ;;  %8393 = vmatprep.subr.bf16.mxu0 %v26147_v28  ;;  %v26211_v23 = vld [vmem:[%s38158_s1 + $0x24d8] ss:$100 sps:$4 sm:$0xff]   ;;  %v26216_v24 = vld [vmem:[%s38158_s1 + $0x16e4] ss:$100 sps:$4 sm:$0xff]  }
 0x269   :  { %8868 = vmatprep.mubr.bf16.mxu1 %v29472_v53  ;;  %v26222_v28 = vld [vmem:[%s38158_s1 + $0x25a4] ss:$100 sps:$4 sm:$0xff]  }
 0x26b   :  { %8839 = vmatpush1.bf16.msra.mxu1 %v26142_v29  ;;  %8394 = vmatpush1.bf16.msra.mxu0 %v26145_v31  ;;  %v26214_v29 = vld [vmem:[%s38158_s1 + $0x16e0] ss:$100 sps:$4 sm:$0xff]  }
 0x26c   :  { %8840 = vmatprep.subr.bf16.mxu1 %v26150_v32  ;;  %8395 = vmatprep.subr.bf16.mxu0 %v26153_v33  ;;  %v26220_v31 = vld [vmem:[%s38158_s1 + $0x25a0] ss:$100 sps:$4 sm:$0xff]   ;;  %v26219_v32 = vld [vmem:[%s38158_s1 + $0x17ac] ss:$100 sps:$4 sm:$0xff]   ;;  %v26228_v33 = vld [vmem:[%s38158_s1 + $0x34] ss:$100 sps:$4 sm:$0xff]  }
 0x26f   :  { %8841 = vmatpush1.bf16.msra.mxu1 %v26148_v35  ;;  %8396 = vmatpush1.bf16.msra.mxu0 %v26151_v36  ;;  %v26217_v35 = vld [vmem:[%s38158_s1 + $0x17a8] ss:$100 sps:$4 sm:$0xff]   ;;  %v26225_v36 = vld [vmem:[%s38158_s1 + $0x1874] ss:$100 sps:$4 sm:$0xff]  }
 0x270   :  { %8842 = vmatprep.subr.bf16.mxu1 %v26156_v25  ;;  %8397 = vmatprep.subr.bf16.mxu0 %v26159_v37  ;;  %v26223_v25 = vld [vmem:[%s38158_s1 + $0x1870] ss:$100 sps:$4 sm:$0xff]   ;;  %v26231_v37 = vld [vmem:[%s38158_s1 + $0x193c] ss:$100 sps:$4 sm:$0xff]  }
 0x273   :  { %8843 = vmatpush1.bf16.msra.mxu1 %v26154_v38  ;;  %8398 = vmatpush1.bf16.msra.mxu0 %v26157_v39  ;;  %v26226_v38 = vld [vmem:[%s38158_s1 + $0x30] ss:$100 sps:$4 sm:$0xff]   ;;  %v26229_v39 = vld [vmem:[%s38158_s1 + $0x1938] ss:$100 sps:$4 sm:$0xff]  }
 0x274   :  { %8844 = vmatprep.subr.bf16.mxu1 %v26162_v40  ;;  %8399 = vmatprep.subr.bf16.mxu0 %v26165_v41  ;;  %v26234_v40 = vld [vmem:[%s38158_s1 + $0xfc] ss:$100 sps:$4 sm:$0xff]   ;;  %v26237_v41 = vld [vmem:[%s38158_s1 + $0x1a04] ss:$100 sps:$4 sm:$0xff]  }
 0x277   :  { %8845 = vmatpush1.bf16.msra.mxu1 %v26160_v42  ;;  %8400 = vmatpush1.bf16.msra.mxu0 %v26163_v43  ;;  %v31416_v42 = vld [vmem:[%s38157_s0 + $0x18] ss:$0 sps:$4 sm:$0xff]  }
 0x278   :  { %8846 = vmatprep.subr.bf16.mxu1 %v26168_v44  ;;  %8401 = vmatprep.subr.bf16.mxu0 %v26171_v45  ;;  %v26232_v43 = vld [vmem:[%s38158_s1 + $0xf8] ss:$100 sps:$4 sm:$0xff]   ;;  %v26235_v44 = vld [vmem:[%s38158_s1 + $0x1a00] ss:$100 sps:$4 sm:$0xff]  }
 0x279   :  { %v26240_v45 = vld [vmem:[%s38158_s1 + $0x1c4] ss:$100 sps:$4 sm:$0xff]  }
 0x27b   :  { %8847 = vmatpush1.bf16.msra.mxu1 %v26166_v47  ;;  %8402 = vmatpush1.bf16.msra.mxu0 %v26169_v49  ;;  %v26243_v47 = vld [vmem:[%s38158_s1 + $0x1acc] ss:$100 sps:$4 sm:$0xff]   ;;  %v26238_v49 = vld [vmem:[%s38158_s1 + $0x1c0] ss:$100 sps:$4 sm:$0xff]  }
 0x27c   :  { %8848 = vmatprep.subr.bf16.mxu1 %v26174_v50  ;;  %8403 = vmatprep.subr.bf16.mxu0 %v26177_v2  ;;  %v26241_v50 = vld [vmem:[%s38158_s1 + $0x1ac8] ss:$100 sps:$4 sm:$0xff]  }
 0x27d   :  { %v26246_v2 = vld [vmem:[%s38158_s1 + $0x28c] ss:$100 sps:$4 sm:$0xff]  }
 0x27f   :  { %8849 = vmatpush1.bf16.msra.mxu1 %v26172_v52  ;;  %8404 = vmatpush1.bf16.msra.mxu0 %v26175_v54  ;;  %v26249_v52 = vld [vmem:[%s38158_s1 + $0x1b94] ss:$100 sps:$4 sm:$0xff]  }
 0x280   :  { %8850 = vmatprep.subr.bf16.mxu1 %v26180_v5  ;;  %8405 = vmatprep.subr.bf16.mxu0 %v26183_v55  ;;  %v26244_v55 = vld [vmem:[%s38158_s1 + $0x288] ss:$100 sps:$4 sm:$0xff]  }
 0x283   :  { %8851 = vmatpush1.bf16.msra.mxu1 %v26178_v56  ;;  %8406 = vmatpush1.bf16.msra.mxu0 %v26181_v57  ;;  %v26247_v56 = vld [vmem:[%s38158_s1 + $0x1b90] ss:$100 sps:$4 sm:$0xff]  }
 0x284   :  { %8852 = vmatprep.subr.bf16.mxu1 %v26186_v58  ;;  %8407 = vmatprep.subr.bf16.mxu0 %v26189_v59  ;;  %v26252_v58 = vld [vmem:[%s38158_s1 + $0x354] ss:$100 sps:$4 sm:$0xff]   ;;  %v26255_v59 = vld [vmem:[%s38158_s1 + $0x1c5c] ss:$100 sps:$4 sm:$0xff]  }
 0x287   :  { %8853 = vmatpush1.bf16.msra.mxu1 %v26184_v60  ;;  %8408 = vmatpush1.bf16.msra.mxu0 %v26187_v61  ;;  %v26250_v61 = vld [vmem:[%s38158_s1 + $0x350] ss:$100 sps:$4 sm:$0xff]  }
 0x288   :  { %8854 = vmatprep.subr.bf16.mxu1 %v26192_v62  ;;  %8409 = vmatprep.subr.bf16.mxu0 %v26195_v63  ;;  %v26253_v62 = vld [vmem:[%s38158_s1 + $0x1c58] ss:$100 sps:$4 sm:$0xff]  }
 0x289   :  { %v26258_v63 = vld [vmem:[%s38158_s1 + $0x41c] ss:$100 sps:$4 sm:$0xff]  }
 0x28b   :  { %8855 = vmatpush1.bf16.msra.mxu1 %v26190_v0  ;;  %8410 = vmatpush1.bf16.msra.mxu0 %v26193_v26  ;;  %v26261_v0 = vld [vmem:[%s38158_s1 + $0x1d24] ss:$100 sps:$4 sm:$0xff]   ;;  %v26256_v26 = vld [vmem:[%s38158_s1 + $0x418] ss:$100 sps:$4 sm:$0xff]  }
 0x28c   :  { %8856 = vmatprep.subr.bf16.mxu1 %v26198_v1  ;;  %8411 = vmatprep.subr.bf16.mxu0 %v26201_v3  ;;  %v26259_v1 = vld [vmem:[%s38158_s1 + $0x1d20] ss:$100 sps:$4 sm:$0xff]  }
 0x28d   :  { %v26264_v3 = vld [vmem:[%s38158_s1 + $0x4e4] ss:$100 sps:$4 sm:$0xff]  }
 0x28f   :  { %8857 = vmatpush1.bf16.msra.mxu1 %v26196_v4  ;;  %8412 = vmatpush1.bf16.msra.mxu0 %v26199_v8  ;;  %v26267_v4 = vld [vmem:[%s38158_s1 + $0x1dec] ss:$100 sps:$4 sm:$0xff]   ;;  %v26262_v8 = vld [vmem:[%s38158_s1 + $0x4e0] ss:$100 sps:$4 sm:$0xff]  }
 0x290   :  { %8858 = vmatprep.subr.bf16.mxu1 %v26204_v11  ;;  %8413 = vmatprep.subr.bf16.mxu0 %v26207_v12  ;;  %v26265_v11 = vld [vmem:[%s38158_s1 + $0x1de8] ss:$100 sps:$4 sm:$0xff]  }
 0x291   :  { %v26270_v12 = vld [vmem:[%s38158_s1 + $0x5ac] ss:$100 sps:$4 sm:$0xff]  }
 0x293   :  { %8859 = vmatpush1.bf16.msra.mxu1 %v26202_v13  ;;  %8414 = vmatpush1.bf16.msra.mxu0 %v26205_v14  ;;  %v26273_v13 = vld [vmem:[%s38158_s1 + $0x1eb4] ss:$100 sps:$4 sm:$0xff]   ;;  %v26268_v14 = vld [vmem:[%s38158_s1 + $0x5a8] ss:$100 sps:$4 sm:$0xff]  }
 0x294   :  { %8860 = vmatprep.subr.bf16.mxu1 %v26210_v17  ;;  %8415 = vmatprep.subr.bf16.mxu0 %v26213_v20  ;;  %v26271_v17 = vld [vmem:[%s38158_s1 + $0x1eb0] ss:$100 sps:$4 sm:$0xff]  }
 0x295   :  { %v26276_v20 = vld [vmem:[%s38158_s1 + $0x674] ss:$100 sps:$4 sm:$0xff]  }
 0x297   :  { %8861 = vmatpush1.bf16.msra.mxu1 %v26208_v22  ;;  %8416 = vmatpush1.bf16.msra.mxu0 %v26211_v23  ;;  %v26279_v22 = vld [vmem:[%s38158_s1 + $0x1f7c] ss:$100 sps:$4 sm:$0xff]   ;;  %v26274_v23 = vld [vmem:[%s38158_s1 + $0x670] ss:$100 sps:$4 sm:$0xff]  }
 0x298   :  { %8862 = vmatprep.subr.bf16.mxu1 %v26216_v24  ;;  %8426 = vmatprep.subr.bf16.mxu0 %v26222_v28  ;;  %v26277_v24 = vld [vmem:[%s38158_s1 + $0x1f78] ss:$100 sps:$4 sm:$0xff]  }
 0x299   :  { %v26282_v28 = vld [vmem:[%s38158_s1 + $0x73c] ss:$100 sps:$4 sm:$0xff]  }
 0x29a   :  { %8418 = vmatmul.mubr.bf16.vlgmr.msra.gmra.mrb[12].mxu0 %v29738_v15 }
 0x29b   :  { %8863 = vmatpush1.bf16.msra.mxu1 %v26214_v29  ;;  %8427 = vmatpush1.bf16.msra.mxu0 %v26220_v31  ;;  %v26285_v29 = vld [vmem:[%s38158_s1 + $0x2044] ss:$100 sps:$4 sm:$0xff]   ;;  %v26280_v31 = vld [vmem:[%s38158_s1 + $0x738] ss:$100 sps:$4 sm:$0xff]  }
 0x29c   :  { %8864 = vmatprep.subr.bf16.mxu1 %v26219_v32  ;;  %8458 = vmatprep.mubr.bf16.mxu0 %v29260_v21  ;;  %v26283_v32 = vld [vmem:[%s38158_s1 + $0x2040] ss:$100 sps:$4 sm:$0xff]  }
 0x29d   :  { %8631 = vmatprep.subr.bf16.mxu0 %v26228_v33  ;;  %v26288_v33 = vld [vmem:[%s38158_s1 + $0x804] ss:$100 sps:$4 sm:$0xff]  }
 0x29f   :  { %8865 = vmatpush1.bf16.msra.mxu1 %v26217_v35  ;;  %v26291_v35 = vld [vmem:[%s38158_s1 + $0x210c] ss:$100 sps:$4 sm:$0xff]  }
 0x2a0   :  { %8866 = vmatprep.subr.bf16.mxu1 %v26225_v36  ;;  %v26286_v36 = vld [vmem:[%s38158_s1 + $0x800] ss:$100 sps:$4 sm:$0xff]  }
 0x2a3   :  { %8867 = vmatpush1.bf16.msra.mxu1 %v26223_v25  ;;  %v26289_v25 = vld [vmem:[%s38158_s1 + $0x2108] ss:$100 sps:$4 sm:$0xff]  }
 0x2a4   :  { %8877 = vmatprep.subr.bf16.mxu1 %v26231_v37  ;;  %v26294_v37 = vld [vmem:[%s38158_s1 + $0x8cc] ss:$100 sps:$4 sm:$0xff]  }
 0x2a6   :  { %22993 = vmatmul.mubr.msk.bf16.vlgmr.msra.gmra.mrb[12].mxu0 %vm7643_vm0, %v31416_v42  ;;  %8869 = vmatmul.mubr.bf16.vlgmr.msra.gmra.mrb[12].mxu1 %v29526_v7 }
 0x2a7   :  { %8632 = vmatpush1.bf16.msra.mxu0 %v26226_v38  ;;  %8878 = vmatpush1.bf16.msra.mxu1 %v26229_v39  ;;  %v26297_v38 = vld [vmem:[%s38158_s1 + $0x21d4] ss:$100 sps:$4 sm:$0xff]   ;;  %v26292_v39 = vld [vmem:[%s38158_s1 + $0x8c8] ss:$100 sps:$4 sm:$0xff]  }
 0x2a8   :  { %8633 = vmatprep.subr.bf16.mxu0 %v26234_v40  ;;  %8879 = vmatprep.subr.bf16.mxu1 %v26237_v41  ;;  %v26295_v40 = vld [vmem:[%s38158_s1 + $0x21d0] ss:$100 sps:$4 sm:$0xff]  }
 0x2a9   :  { %8909 = vmatprep.mubr.bf16.mxu1 %v29613_v34  ;;  %8663 = vmatprep.mubr.bf16.mxu0 %v29458_v48  ;;  %v26300_v41 = vld [vmem:[%s38158_s1 + $0x994] ss:$100 sps:$4 sm:$0xff]  }
 0x2ab   :  { %8634 = vmatpush1.bf16.msra.mxu0 %v26232_v43  ;;  %8880 = vmatpush1.bf16.msra.mxu1 %v26235_v44  ;;  %v26303_v43 = vld [vmem:[%s38158_s1 + $0x229c] ss:$100 sps:$4 sm:$0xff]   ;;  %v26298_v44 = vld [vmem:[%s38158_s1 + $0x990] ss:$100 sps:$4 sm:$0xff]  }
 0x2ac   :  { %8635 = vmatprep.subr.bf16.mxu0 %v26240_v45  ;;  %8881 = vmatprep.subr.bf16.mxu1 %v26243_v47  ;;  %v26301_v45 = vld [vmem:[%s38158_s1 + $0x2298] ss:$100 sps:$4 sm:$0xff]  }
 0x2ad   :  { %v31447_v54 = vpop.f32.mrb[8].mxu0  ;;  %v26306_v47 = vld [vmem:[%s38158_s1 + $0xa5c] ss:$100 sps:$4 sm:$0xff]  }
 0x2ae   :  { %v31449_v5 = vpop.f32.mrb[9].mxu0 }
 0x2af   :  { %8636 = vmatpush1.bf16.msra.mxu0 %v26238_v49  ;;  %8882 = vmatpush1.bf16.msra.mxu1 %v26241_v50  ;;  %v8136_v57 = vpop.f32.mrb[10].mxu0  ;;  %v26309_v49 = vld [vmem:[%s38158_s1 + $0x2364] ss:$100 sps:$4 sm:$0xff]   ;;  %v26304_v50 = vld [vmem:[%s38158_s1 + $0xa58] ss:$100 sps:$4 sm:$0xff]  }
 0x2b0   :  { %8637 = vmatprep.subr.bf16.mxu0 %v26246_v2  ;;  %8883 = vmatprep.subr.bf16.mxu1 %v26249_v52  ;;  %v8137_v60 = vpop.f32.mrb[11].mxu0  ;;  %v26307_v2 = vld [vmem:[%s38158_s1 + $0x2360] ss:$100 sps:$4 sm:$0xff]   ;;  %v26313_v57 = vld [vmem:[%s38158_s1 + $0x2428] ss:$100 sps:$4 sm:$0xff]  }
 0x2b1   :  { %v26312_v52 = vld [vmem:[%s38158_s1 + $0xb24] ss:$100 sps:$4 sm:$0xff]  }
 0x2b2   :  { %v26316_v60 = vld [vmem:[%s38158_s1 + $0xbe8] ss:$100 sps:$4 sm:$0xff]  }
 0x2b3   :  { %8638 = vmatpush1.bf16.msra.mxu0 %v26244_v55  ;;  %8884 = vmatpush1.bf16.msra.mxu1 %v26247_v56  ;;  %v26315_v55 = vld [vmem:[%s38158_s1 + $0x242c] ss:$100 sps:$4 sm:$0xff]   ;;  %v26310_v56 = vld [vmem:[%s38158_s1 + $0xb20] ss:$100 sps:$4 sm:$0xff]  }
 0x2b4   :  { %8639 = vmatprep.subr.bf16.mxu0 %v26252_v58  ;;  %8885 = vmatprep.subr.bf16.mxu1 %v26255_v59  ;;  %v26318_v58 = vld [vmem:[%s38158_s1 + $0xbec] ss:$100 sps:$4 sm:$0xff]   ;;  %v26321_v59 = vld [vmem:[%s38158_s1 + $0x24f4] ss:$100 sps:$4 sm:$0xff]  }
 0x2b7   :  { %8640 = vmatpush1.bf16.msra.mxu0 %v26250_v61  ;;  %8886 = vmatpush1.bf16.msra.mxu1 %v26253_v62  ;;  %v26319_v61 = vld [vmem:[%s38158_s1 + $0x24f0] ss:$100 sps:$4 sm:$0xff]  }
 0x2b8   :  { %8641 = vmatprep.subr.bf16.mxu0 %v26258_v63  ;;  %8887 = vmatprep.subr.bf16.mxu1 %v26261_v0  ;;  %v26324_v62 = vld [vmem:[%s38158_s1 + $0xcb4] ss:$100 sps:$4 sm:$0xff]   ;;  %v26327_v63 = vld [vmem:[%s38158_s1 + $0x25bc] ss:$100 sps:$4 sm:$0xff]  }
 0x2b9   :  { %v26322_v0 = vld [vmem:[%s38158_s1 + $0xcb0] ss:$100 sps:$4 sm:$0xff]  }
 0x2bb   :  { %8642 = vmatpush1.bf16.msra.mxu0 %v26256_v26  ;;  %8888 = vmatpush1.bf16.msra.mxu1 %v26259_v1  ;;  %v26325_v26 = vld [vmem:[%s38158_s1 + $0x25b8] ss:$100 sps:$4 sm:$0xff]  }
 0x2bc   :  { %8643 = vmatprep.subr.bf16.mxu0 %v26264_v3  ;;  %8889 = vmatprep.subr.bf16.mxu1 %v26267_v4  ;;  %v26330_v1 = vld [vmem:[%s38158_s1 + $0xd7c] ss:$100 sps:$4 sm:$0xff]   ;;  %v26336_v3 = vld [vmem:[%s38158_s1 + $0x4c] ss:$100 sps:$4 sm:$0xff]  }
 0x2bd   :  { %v26328_v4 = vld [vmem:[%s38158_s1 + $0xd78] ss:$100 sps:$4 sm:$0xff]  }
 0x2bf   :  { %8644 = vmatpush1.bf16.msra.mxu0 %v26262_v8  ;;  %8890 = vmatpush1.bf16.msra.mxu1 %v26265_v11  ;;  %v26333_v8 = vld [vmem:[%s38158_s1 + $0xe44] ss:$100 sps:$4 sm:$0xff]  }
 0x2c0   :  { %8645 = vmatprep.subr.bf16.mxu0 %v26270_v12  ;;  %8891 = vmatprep.subr.bf16.mxu1 %v26273_v13  ;;  %v26331_v11 = vld [vmem:[%s38158_s1 + $0xe40] ss:$100 sps:$4 sm:$0xff]   ;;  %v26339_v12 = vld [vmem:[%s38158_s1 + $0xf0c] ss:$100 sps:$4 sm:$0xff]  }
 0x2c1   :  { %v26334_v13 = vld [vmem:[%s38158_s1 + $0x48] ss:$100 sps:$4 sm:$0xff]  }
 0x2c3   :  { %8646 = vmatpush1.bf16.msra.mxu0 %v26268_v14  ;;  %8892 = vmatpush1.bf16.msra.mxu1 %v26271_v17  ;;  %v26337_v14 = vld [vmem:[%s38158_s1 + $0xf08] ss:$100 sps:$4 sm:$0xff]   ;;  %v26342_v17 = vld [vmem:[%s38158_s1 + $0x114] ss:$100 sps:$4 sm:$0xff]  }
 0x2c4   :  { %8647 = vmatprep.subr.bf16.mxu0 %v26276_v20  ;;  %8893 = vmatprep.subr.bf16.mxu1 %v26279_v22  ;;  %v26345_v20 = vld [vmem:[%s38158_s1 + $0xfd4] ss:$100 sps:$4 sm:$0xff]  }
 0x2c5   :  { %v26340_v22 = vld [vmem:[%s38158_s1 + $0x110] ss:$100 sps:$4 sm:$0xff]  }
 0x2c7   :  { %8648 = vmatpush1.bf16.msra.mxu0 %v26274_v23  ;;  %8894 = vmatpush1.bf16.msra.mxu1 %v26277_v24  ;;  %v26343_v23 = vld [vmem:[%s38158_s1 + $0xfd0] ss:$100 sps:$4 sm:$0xff]   ;;  %v26348_v24 = vld [vmem:[%s38158_s1 + $0x1dc] ss:$100 sps:$4 sm:$0xff]  }
 0x2c8   :  { %8649 = vmatprep.subr.bf16.mxu0 %v26282_v28  ;;  %8895 = vmatprep.subr.bf16.mxu1 %v26285_v29  ;;  %v26346_v28 = vld [vmem:[%s38158_s1 + $0x1d8] ss:$100 sps:$4 sm:$0xff]  }
 0x2c9   :  { %v26349_v29 = vld [vmem:[%s38158_s1 + $0x1098] ss:$100 sps:$4 sm:$0xff]  }
 0x2cb   :  { %8650 = vmatpush1.bf16.msra.mxu0 %v26280_v31  ;;  %8896 = vmatpush1.bf16.msra.mxu1 %v26283_v32  ;;  %v26354_v31 = vld [vmem:[%s38158_s1 + $0x2a4] ss:$100 sps:$4 sm:$0xff]  }
 0x2cc   :  { %8651 = vmatprep.subr.bf16.mxu0 %v26288_v33  ;;  %8897 = vmatprep.subr.bf16.mxu1 %v26291_v35  ;;  %v26357_v32 = vld [vmem:[%s38158_s1 + $0x1164] ss:$100 sps:$4 sm:$0xff]  }
 0x2cf   :  { %8652 = vmatpush1.bf16.msra.mxu0 %v26286_v36  ;;  %8898 = vmatpush1.bf16.msra.mxu1 %v26289_v25  ;;  %v26352_v25 = vld [vmem:[%s38158_s1 + $0x2a0] ss:$100 sps:$4 sm:$0xff]  }
 0x2d0   :  { %8653 = vmatprep.subr.bf16.mxu0 %v26294_v37  ;;  %8899 = vmatprep.subr.bf16.mxu1 %v26297_v38  ;;  %v26355_v37 = vld [vmem:[%s38158_s1 + $0x1160] ss:$100 sps:$4 sm:$0xff]  }
 0x2d3   :  { %8654 = vmatpush1.bf16.msra.mxu0 %v26292_v39  ;;  %8900 = vmatpush1.bf16.msra.mxu1 %v26295_v40  ;;  %v26360_v39 = vld [vmem:[%s38158_s1 + $0x36c] ss:$100 sps:$4 sm:$0xff]  }
 0x2d4   :  { %8655 = vmatprep.subr.bf16.mxu0 %v26300_v41  ;;  %8901 = vmatprep.subr.bf16.mxu1 %v26303_v43  ;;  %v26363_v40 = vld [vmem:[%s38158_s1 + $0x122c] ss:$100 sps:$4 sm:$0xff]  }
 0x2d5   :  { %v26358_v41 = vld [vmem:[%s38158_s1 + $0x368] ss:$100 sps:$4 sm:$0xff]  }
 0x2d6   :  { %v26361_v43 = vld [vmem:[%s38158_s1 + $0x1228] ss:$100 sps:$4 sm:$0xff]  }
 0x2d7   :  { %8656 = vmatpush1.bf16.msra.mxu0 %v26298_v44  ;;  %8902 = vmatpush1.bf16.msra.mxu1 %v26301_v45  ;;  %v26366_v44 = vld [vmem:[%s38158_s1 + $0x434] ss:$100 sps:$4 sm:$0xff]  }
 0x2d8   :  { %8657 = vmatprep.subr.bf16.mxu0 %v26306_v47  ;;  %8903 = vmatprep.subr.bf16.mxu1 %v26309_v49  ;;  %v26369_v45 = vld [vmem:[%s38158_s1 + $0x12f4] ss:$100 sps:$4 sm:$0xff]  }
 0x2d9   :  { %v26364_v47 = vld [vmem:[%s38158_s1 + $0x430] ss:$100 sps:$4 sm:$0xff]  }
 0x2da   :  { %v26367_v49 = vld [vmem:[%s38158_s1 + $0x12f0] ss:$100 sps:$4 sm:$0xff]  }
 0x2db   :  { %8658 = vmatpush1.bf16.msra.mxu0 %v26304_v50  ;;  %8904 = vmatpush1.bf16.msra.mxu1 %v26307_v2  ;;  %v26372_v50 = vld [vmem:[%s38158_s1 + $0x4fc] ss:$100 sps:$4 sm:$0xff]  }
 0x2dc   :  { %8659 = vmatprep.subr.bf16.mxu0 %v26312_v52  ;;  %8905 = vmatprep.subr.bf16.mxu1 %v26315_v55  ;;  %v26375_v2 = vld [vmem:[%s38158_s1 + $0x13bc] ss:$100 sps:$4 sm:$0xff]  }
 0x2dd   :  { %v26370_v52 = vld [vmem:[%s38158_s1 + $0x4f8] ss:$100 sps:$4 sm:$0xff]  }
 0x2de   :  { %v26373_v55 = vld [vmem:[%s38158_s1 + $0x13b8] ss:$100 sps:$4 sm:$0xff]  }
 0x2df   :  { %8660 = vmatpush1.bf16.msra.mxu0 %v26310_v56  ;;  %8906 = vmatpush1.bf16.msra.mxu1 %v26313_v57  ;;  %v26378_v56 = vld [vmem:[%s38158_s1 + $0x5c4] ss:$100 sps:$4 sm:$0xff]  }
 0x2e0   :  { %8661 = vmatprep.subr.bf16.mxu0 %v26318_v58  ;;  %8907 = vmatprep.subr.bf16.mxu1 %v26321_v59  ;;  %v26381_v57 = vld [vmem:[%s38158_s1 + $0x1484] ss:$100 sps:$4 sm:$0xff]  }
 0x2e1   :  { %v26376_v58 = vld [vmem:[%s38158_s1 + $0x5c0] ss:$100 sps:$4 sm:$0xff]  }
 0x2e2   :  { %v26379_v59 = vld [vmem:[%s38158_s1 + $0x1480] ss:$100 sps:$4 sm:$0xff]  }
 0x2e3   :  { %8662 = vmatpush1.bf16.msra.mxu0 %v26316_v60  ;;  %8908 = vmatpush1.bf16.msra.mxu1 %v26319_v61  ;;  %v26384_v60 = vld [vmem:[%s38158_s1 + $0x68c] ss:$100 sps:$4 sm:$0xff]  }
 0x2e4   :  { %8672 = vmatprep.subr.bf16.mxu0 %v26324_v62  ;;  %8918 = vmatprep.subr.bf16.mxu1 %v26327_v63  ;;  %v26387_v61 = vld [vmem:[%s38158_s1 + $0x154c] ss:$100 sps:$4 sm:$0xff]  }
 0x2e5   :  { %v26382_v62 = vld [vmem:[%s38158_s1 + $0x688] ss:$100 sps:$4 sm:$0xff]  }
 0x2e6   :  { %8910 = vmatmul.mubr.bf16.vlgmr.msra.gmra.mrb[12].mxu1 %v29738_v15  ;;  %8664 = vmatmul.mubr.bf16.vlgmr.msra.gmra.mrb[16].mxu0 %v29524_v6  ;;  %v26385_v63 = vld [vmem:[%s38158_s1 + $0x1548] ss:$100 sps:$4 sm:$0xff]  }
 0x2e7   :  { %8673 = vmatpush1.bf16.msra.mxu0 %v26322_v0  ;;  %8919 = vmatpush1.bf16.msra.mxu1 %v26325_v26  ;;  %v26390_v0 = vld [vmem:[%s38158_s1 + $0x754] ss:$100 sps:$4 sm:$0xff]  }
 0x2e8   :  { %8674 = vmatprep.subr.bf16.mxu0 %v26330_v1  ;;  %8950 = vmatprep.mubr.bf16.mxu1 %v29260_v21  ;;  %v26393_v26 = vld [vmem:[%s38158_s1 + $0x1614] ss:$100 sps:$4 sm:$0xff]  }
 0x2e9   :  { %9123 = vmatprep.subr.bf16.mxu1 %v26336_v3  ;;  %8704 = vmatprep.mubr.bf16.mxu0 %v29472_v53  ;;  %v26388_v1 = vld [vmem:[%s38158_s1 + $0x750] ss:$100 sps:$4 sm:$0xff]  }
 0x2ea   :  { %v26391_v3 = vld [vmem:[%s38158_s1 + $0x1610] ss:$100 sps:$4 sm:$0xff]  }
 0x2eb   :  { %8675 = vmatpush1.bf16.msra.mxu0 %v26328_v4  ;;  %v26396_v4 = vld [vmem:[%s38158_s1 + $0x81c] ss:$100 sps:$4 sm:$0xff]  }
 0x2ec   :  { %8676 = vmatprep.subr.bf16.mxu0 %v26333_v8  ;;  %v26399_v8 = vld [vmem:[%s38158_s1 + $0x16dc] ss:$100 sps:$4 sm:$0xff]  }
 0x2ef   :  { %8677 = vmatpush1.bf16.msra.mxu0 %v26331_v11  ;;  %v26394_v11 = vld [vmem:[%s38158_s1 + $0x818] ss:$100 sps:$4 sm:$0xff]  }
 0x2f0   :  { %8678 = vmatprep.subr.bf16.mxu0 %v26339_v12  ;;  %v26397_v12 = vld [vmem:[%s38158_s1 + $0x16d8] ss:$100 sps:$4 sm:$0xff]  }
 0x2f2   :  { %22996 = vmatmul.mubr.msk.bf16.vlgmr.msra.gmra.mrb[12].mxu1 %vm7643_vm0, %v31416_v42  ;;  %v26351_v42 = vld [vmem:[%s38158_s1 + $0x109c] ss:$100 sps:$4 sm:$0xff]  }
 0x2f3   :  { %9124 = vmatpush1.bf16.msra.mxu1 %v26334_v13  ;;  %8679 = vmatpush1.bf16.msra.mxu0 %v26337_v14  ;;  %v26402_v13 = vld [vmem:[%s38158_s1 + $0x8e4] ss:$100 sps:$4 sm:$0xff]  }
 0x2f4   :  { %9125 = vmatprep.subr.bf16.mxu1 %v26342_v17  ;;  %8680 = vmatprep.subr.bf16.mxu0 %v26345_v20  ;;  %v26405_v14 = vld [vmem:[%s38158_s1 + $0x17a4] ss:$100 sps:$4 sm:$0xff]  }
 0x2f5   :  { %9155 = vmatprep.mubr.bf16.mxu1 %v29458_v48  ;;  %v26400_v17 = vld [vmem:[%s38158_s1 + $0x8e0] ss:$100 sps:$4 sm:$0xff]  }
 0x2f6   :  { %v26403_v20 = vld [vmem:[%s38158_s1 + $0x17a0] ss:$100 sps:$4 sm:$0xff]  }
 0x2f7   :  { %9126 = vmatpush1.bf16.msra.mxu1 %v26340_v22  ;;  %8681 = vmatpush1.bf16.msra.mxu0 %v26343_v23  ;;  %v26408_v22 = vld [vmem:[%s38158_s1 + $0x9ac] ss:$100 sps:$4 sm:$0xff]  }
 0x2f8   :  { %9127 = vmatprep.subr.bf16.mxu1 %v26348_v24  ;;  %8682 = vmatprep.subr.bf16.mxu0 %v26351_v42  ;;  %v26411_v23 = vld [vmem:[%s38158_s1 + $0x186c] ss:$100 sps:$4 sm:$0xff]  }
 0x2f9   :  { %v31674_v33 = vpop.f32.mrb[8].mxu1  ;;  %v26406_v24 = vld [vmem:[%s38158_s1 + $0x9a8] ss:$100 sps:$4 sm:$0xff]  }
 0x2fa   :  { %v31676_v35 = vpop.f32.mrb[9].mxu1  ;;  %v26409_v42 = vld [vmem:[%s38158_s1 + $0x1868] ss:$100 sps:$4 sm:$0xff]  }
 0x2fb   :  { %9128 = vmatpush1.bf16.msra.mxu1 %v26346_v28  ;;  %8683 = vmatpush1.bf16.msra.mxu0 %v26349_v29  ;;  %v8628_v36 = vpop.f32.mrb[10].mxu1  ;;  %v26414_v28 = vld [vmem:[%s38158_s1 + $0xa74] ss:$100 sps:$4 sm:$0xff]  }
 0x2fc   :  { %v8629_v38 = vpop.f32.mrb[11].mxu1  ;;  %9129 = vmatprep.subr.bf16.mxu1 %v26354_v31  ;;  %8684 = vmatprep.subr.bf16.mxu0 %v26357_v32  ;;  %v26417_v29 = vld [vmem:[%s38158_s1 + $0x1934] ss:$100 sps:$4 sm:$0xff]   ;;  %v26420_v36 = vld [vmem:[%s38158_s1 + $0xb3c] ss:$100 sps:$4 sm:$0xff]  }
 0x2fd   :  { %v26412_v31 = vld [vmem:[%s38158_s1 + $0xa70] ss:$100 sps:$4 sm:$0xff]   ;;  %v26421_v38 = vld [vmem:[%s38158_s1 + $0x19f8] ss:$100 sps:$4 sm:$0xff]  }
 0x2fe   :  { %v26415_v32 = vld [vmem:[%s38158_s1 + $0x1930] ss:$100 sps:$4 sm:$0xff]  }
 0x2ff   :  { %9130 = vmatpush1.bf16.msra.mxu1 %v26352_v25  ;;  %8685 = vmatpush1.bf16.msra.mxu0 %v26355_v37  ;;  %v26423_v25 = vld [vmem:[%s38158_s1 + $0x19fc] ss:$100 sps:$4 sm:$0xff]  }
 0x300   :  { %9131 = vmatprep.subr.bf16.mxu1 %v26360_v39  ;;  %8686 = vmatprep.subr.bf16.mxu0 %v26363_v40  ;;  %v26418_v37 = vld [vmem:[%s38158_s1 + $0xb38] ss:$100 sps:$4 sm:$0xff]   ;;  %v26426_v39 = vld [vmem:[%s38158_s1 + $0xc04] ss:$100 sps:$4 sm:$0xff]  }
 0x301   :  { %v26429_v40 = vld [vmem:[%s38158_s1 + $0x1ac4] ss:$100 sps:$4 sm:$0xff]  }
 0x303   :  { %9132 = vmatpush1.bf16.msra.mxu1 %v26358_v41  ;;  %8687 = vmatpush1.bf16.msra.mxu0 %v26361_v43  ;;  %v26424_v41 = vld [vmem:[%s38158_s1 + $0xc00] ss:$100 sps:$4 sm:$0xff]  }
 0x304   :  { %9133 = vmatprep.subr.bf16.mxu1 %v26366_v44  ;;  %8688 = vmatprep.subr.bf16.mxu0 %v26369_v45  ;;  %v26427_v43 = vld [vmem:[%s38158_s1 + $0x1ac0] ss:$100 sps:$4 sm:$0xff]   ;;  %v26432_v44 = vld [vmem:[%s38158_s1 + $0xccc] ss:$100 sps:$4 sm:$0xff]  }
 0x305   :  { %v26435_v45 = vld [vmem:[%s38158_s1 + $0x1b8c] ss:$100 sps:$4 sm:$0xff]  }
 0x307   :  { %9134 = vmatpush1.bf16.msra.mxu1 %v26364_v47  ;;  %8689 = vmatpush1.bf16.msra.mxu0 %v26367_v49  ;;  %v26430_v47 = vld [vmem:[%s38158_s1 + $0xcc8] ss:$100 sps:$4 sm:$0xff]  }
 0x308   :  { %9135 = vmatprep.subr.bf16.mxu1 %v26372_v50  ;;  %8690 = vmatprep.subr.bf16.mxu0 %v26375_v2  ;;  %v26433_v49 = vld [vmem:[%s38158_s1 + $0x1b88] ss:$100 sps:$4 sm:$0xff]   ;;  %v26438_v50 = vld [vmem:[%s38158_s1 + $0xd94] ss:$100 sps:$4 sm:$0xff]  }
 0x309   :  { %v26441_v2 = vld [vmem:[%s38158_s1 + $0x1c54] ss:$100 sps:$4 sm:$0xff]  }
 0x30b   :  { %9136 = vmatpush1.bf16.msra.mxu1 %v26370_v52  ;;  %8691 = vmatpush1.bf16.msra.mxu0 %v26373_v55  ;;  %v26436_v52 = vld [vmem:[%s38158_s1 + $0xd90] ss:$100 sps:$4 sm:$0xff]  }
 0x30c   :  { %9137 = vmatprep.subr.bf16.mxu1 %v26378_v56  ;;  %8692 = vmatprep.subr.bf16.mxu0 %v26381_v57  ;;  %v26439_v55 = vld [vmem:[%s38158_s1 + $0x1c50] ss:$100 sps:$4 sm:$0xff]   ;;  %v26444_v56 = vld [vmem:[%s38158_s1 + $0xe5c] ss:$100 sps:$4 sm:$0xff]  }
 0x30d   :  { %v26447_v57 = vld [vmem:[%s38158_s1 + $0x1d1c] ss:$100 sps:$4 sm:$0xff]  }
 0x30f   :  { %9138 = vmatpush1.bf16.msra.mxu1 %v26376_v58  ;;  %8693 = vmatpush1.bf16.msra.mxu0 %v26379_v59  ;;  %v26442_v58 = vld [vmem:[%s38158_s1 + $0xe58] ss:$100 sps:$4 sm:$0xff]  }
 0x310   :  { %9139 = vmatprep.subr.bf16.mxu1 %v26384_v60  ;;  %8694 = vmatprep.subr.bf16.mxu0 %v26387_v61  ;;  %v26445_v59 = vld [vmem:[%s38158_s1 + $0x1d18] ss:$100 sps:$4 sm:$0xff]   ;;  %v26450_v60 = vld [vmem:[%s38158_s1 + $0xf24] ss:$100 sps:$4 sm:$0xff]  }
 0x311   :  { %v26453_v61 = vld [vmem:[%s38158_s1 + $0x1de4] ss:$100 sps:$4 sm:$0xff]  }
 0x313   :  { %9140 = vmatpush1.bf16.msra.mxu1 %v26382_v62  ;;  %8695 = vmatpush1.bf16.msra.mxu0 %v26385_v63  ;;  %v26448_v62 = vld [vmem:[%s38158_s1 + $0xf20] ss:$100 sps:$4 sm:$0xff]  }
 0x314   :  { %9141 = vmatprep.subr.bf16.mxu1 %v26390_v0  ;;  %8696 = vmatprep.subr.bf16.mxu0 %v26393_v26  ;;  %v26451_v63 = vld [vmem:[%s38158_s1 + $0x1de0] ss:$100 sps:$4 sm:$0xff]   ;;  %v26456_v0 = vld [vmem:[%s38158_s1 + $0xfec] ss:$100 sps:$4 sm:$0xff]  }
 0x315   :  { %v26459_v26 = vld [vmem:[%s38158_s1 + $0x1eac] ss:$100 sps:$4 sm:$0xff]  }
 0x317   :  { %9142 = vmatpush1.bf16.msra.mxu1 %v26388_v1  ;;  %8697 = vmatpush1.bf16.msra.mxu0 %v26391_v3  ;;  %v26454_v1 = vld [vmem:[%s38158_s1 + $0xfe8] ss:$100 sps:$4 sm:$0xff]  }
 0x318   :  { %9143 = vmatprep.subr.bf16.mxu1 %v26396_v4  ;;  %8698 = vmatprep.subr.bf16.mxu0 %v26399_v8  ;;  %v26457_v3 = vld [vmem:[%s38158_s1 + $0x1ea8] ss:$100 sps:$4 sm:$0xff]   ;;  %v26462_v4 = vld [vmem:[%s38158_s1 + $0x10b4] ss:$100 sps:$4 sm:$0xff]  }
 0x319   :  { %v26465_v8 = vld [vmem:[%s38158_s1 + $0x1f74] ss:$100 sps:$4 sm:$0xff]  }
 0x31b   :  { %9144 = vmatpush1.bf16.msra.mxu1 %v26394_v11  ;;  %8699 = vmatpush1.bf16.msra.mxu0 %v26397_v12  ;;  %v26460_v11 = vld [vmem:[%s38158_s1 + $0x10b0] ss:$100 sps:$4 sm:$0xff]  }
 0x31c   :  { %9145 = vmatprep.subr.bf16.mxu1 %v26402_v13  ;;  %8700 = vmatprep.subr.bf16.mxu0 %v26405_v14  ;;  %v26463_v12 = vld [vmem:[%s38158_s1 + $0x1f70] ss:$100 sps:$4 sm:$0xff]   ;;  %v26468_v13 = vld [vmem:[%s38158_s1 + $0x117c] ss:$100 sps:$4 sm:$0xff]  }
 0x31d   :  { %v26471_v14 = vld [vmem:[%s38158_s1 + $0x203c] ss:$100 sps:$4 sm:$0xff]  }
 0x31f   :  { %9146 = vmatpush1.bf16.msra.mxu1 %v26400_v17  ;;  %8701 = vmatpush1.bf16.msra.mxu0 %v26403_v20  ;;  %v26466_v17 = vld [vmem:[%s38158_s1 + $0x1178] ss:$100 sps:$4 sm:$0xff]  }
 0x320   :  { %9147 = vmatprep.subr.bf16.mxu1 %v26408_v22  ;;  %8702 = vmatprep.subr.bf16.mxu0 %v26411_v23  ;;  %v26469_v20 = vld [vmem:[%s38158_s1 + $0x2038] ss:$100 sps:$4 sm:$0xff]   ;;  %v26474_v22 = vld [vmem:[%s38158_s1 + $0x1244] ss:$100 sps:$4 sm:$0xff]  }
 0x321   :  { %v26477_v23 = vld [vmem:[%s38158_s1 + $0x2104] ss:$100 sps:$4 sm:$0xff]  }
 0x323   :  { %9148 = vmatpush1.bf16.msra.mxu1 %v26406_v24  ;;  %8703 = vmatpush1.bf16.msra.mxu0 %v26409_v42  ;;  %v26472_v24 = vld [vmem:[%s38158_s1 + $0x1240] ss:$100 sps:$4 sm:$0xff]  }
 0x324   :  { %9149 = vmatprep.subr.bf16.mxu1 %v26414_v28  ;;  %8713 = vmatprep.subr.bf16.mxu0 %v26417_v29  ;;  %v26475_v42 = vld [vmem:[%s38158_s1 + $0x2100] ss:$100 sps:$4 sm:$0xff]   ;;  %v26480_v28 = vld [vmem:[%s38158_s1 + $0x130c] ss:$100 sps:$4 sm:$0xff]  }
 0x325   :  { %v26483_v29 = vld [vmem:[%s38158_s1 + $0x21cc] ss:$100 sps:$4 sm:$0xff]  }
 0x326   :  { %8705 = vmatmul.mubr.bf16.vlgmr.msra.gmra.mrb[16].mxu0 %v29526_v7 }
 0x327   :  { %9150 = vmatpush1.bf16.msra.mxu1 %v26412_v31  ;;  %8714 = vmatpush1.bf16.msra.mxu0 %v26415_v32  ;;  %v26478_v31 = vld [vmem:[%s38158_s1 + $0x1308] ss:$100 sps:$4 sm:$0xff]  }
 0x328   :  { %9151 = vmatprep.subr.bf16.mxu1 %v26420_v36  ;;  %8715 = vmatprep.subr.bf16.mxu0 %v26423_v25  ;;  %v26481_v32 = vld [vmem:[%s38158_s1 + $0x21c8] ss:$100 sps:$4 sm:$0xff]   ;;  %v26486_v36 = vld [vmem:[%s38158_s1 + $0x13d4] ss:$100 sps:$4 sm:$0xff]  }
 0x329   :  { %8745 = vmatprep.mubr.bf16.mxu0 %v29613_v34  ;;  %v26489_v25 = vld [vmem:[%s38158_s1 + $0x2294] ss:$100 sps:$4 sm:$0xff]  }
 0x32b   :  { %9152 = vmatpush1.bf16.msra.mxu1 %v26418_v37  ;;  %8716 = vmatpush1.bf16.msra.mxu0 %v26421_v38  ;;  %v26484_v37 = vld [vmem:[%s38158_s1 + $0x13d0] ss:$100 sps:$4 sm:$0xff]  }
 0x32c   :  { %9153 = vmatprep.subr.bf16.mxu1 %v26426_v39  ;;  %8717 = vmatprep.subr.bf16.mxu0 %v26429_v40  ;;  %v26487_v38 = vld [vmem:[%s38158_s1 + $0x2290] ss:$100 sps:$4 sm:$0xff]   ;;  %v26492_v39 = vld [vmem:[%s38158_s1 + $0x149c] ss:$100 sps:$4 sm:$0xff]  }
 0x32d   :  { %v26495_v40 = vld [vmem:[%s38158_s1 + $0x235c] ss:$100 sps:$4 sm:$0xff]  }
 0x32f   :  { %9154 = vmatpush1.bf16.msra.mxu1 %v26424_v41  ;;  %8718 = vmatpush1.bf16.msra.mxu0 %v26427_v43  ;;  %v26490_v41 = vld [vmem:[%s38158_s1 + $0x1498] ss:$100 sps:$4 sm:$0xff]  }
 0x330   :  { %9164 = vmatprep.subr.bf16.mxu1 %v26432_v44  ;;  %8719 = vmatprep.subr.bf16.mxu0 %v26435_v45  ;;  %v26493_v43 = vld [vmem:[%s38158_s1 + $0x2358] ss:$100 sps:$4 sm:$0xff]   ;;  %v26498_v44 = vld [vmem:[%s38158_s1 + $0x1564] ss:$100 sps:$4 sm:$0xff]  }
 0x331   :  { %v26501_v45 = vld [vmem:[%s38158_s1 + $0x2424] ss:$100 sps:$4 sm:$0xff]  }
 0x332   :  { %9156 = vmatmul.mubr.bf16.vlgmr.msra.gmra.mrb[16].mxu1 %v29524_v6 }
 0x333   :  { %9165 = vmatpush1.bf16.msra.mxu1 %v26430_v47  ;;  %8720 = vmatpush1.bf16.msra.mxu0 %v26433_v49  ;;  %v26496_v47 = vld [vmem:[%s38158_s1 + $0x1560] ss:$100 sps:$4 sm:$0xff]  }
 0x334   :  { %9166 = vmatprep.subr.bf16.mxu1 %v26438_v50  ;;  %8721 = vmatprep.subr.bf16.mxu0 %v26441_v2  ;;  %v26499_v49 = vld [vmem:[%s38158_s1 + $0x2420] ss:$100 sps:$4 sm:$0xff]   ;;  %v26504_v50 = vld [vmem:[%s38158_s1 + $0x162c] ss:$100 sps:$4 sm:$0xff]  }
 0x335   :  { %9196 = vmatprep.mubr.bf16.mxu1 %v29472_v53  ;;  %v26507_v2 = vld [vmem:[%s38158_s1 + $0x24ec] ss:$100 sps:$4 sm:$0xff]  }
 0x337   :  { %9167 = vmatpush1.bf16.msra.mxu1 %v26436_v52  ;;  %8722 = vmatpush1.bf16.msra.mxu0 %v26439_v55  ;;  %v26502_v52 = vld [vmem:[%s38158_s1 + $0x1628] ss:$100 sps:$4 sm:$0xff]  }
 0x338   :  { %9168 = vmatprep.subr.bf16.mxu1 %v26444_v56  ;;  %8723 = vmatprep.subr.bf16.mxu0 %v26447_v57  ;;  %v26505_v55 = vld [vmem:[%s38158_s1 + $0x24e8] ss:$100 sps:$4 sm:$0xff]   ;;  %v26510_v56 = vld [vmem:[%s38158_s1 + $0x16f4] ss:$100 sps:$4 sm:$0xff]  }
 0x339   :  { %v26516_v57 = vld [vmem:[%s38158_s1 + $0x25b4] ss:$100 sps:$4 sm:$0xff]  }
 0x33b   :  { %9169 = vmatpush1.bf16.msra.mxu1 %v26442_v58  ;;  %8724 = vmatpush1.bf16.msra.mxu0 %v26445_v59  ;;  %v26508_v58 = vld [vmem:[%s38158_s1 + $0x16f0] ss:$100 sps:$4 sm:$0xff]  }
 0x33c   :  { %9170 = vmatprep.subr.bf16.mxu1 %v26450_v60  ;;  %8725 = vmatprep.subr.bf16.mxu0 %v26453_v61  ;;  %v26514_v59 = vld [vmem:[%s38158_s1 + $0x25b0] ss:$100 sps:$4 sm:$0xff]   ;;  %v26513_v60 = vld [vmem:[%s38158_s1 + $0x17bc] ss:$100 sps:$4 sm:$0xff]   ;;  %v26522_v61 = vld [vmem:[%s38158_s1 + $0x44] ss:$100 sps:$4 sm:$0xff]  }
 0x33f   :  { %9171 = vmatpush1.bf16.msra.mxu1 %v26448_v62  ;;  %8726 = vmatpush1.bf16.msra.mxu0 %v26451_v63  ;;  %v26511_v62 = vld [vmem:[%s38158_s1 + $0x17b8] ss:$100 sps:$4 sm:$0xff]   ;;  %v26519_v63 = vld [vmem:[%s38158_s1 + $0x1884] ss:$100 sps:$4 sm:$0xff]  }
 0x340   :  { %9172 = vmatprep.subr.bf16.mxu1 %v26456_v0  ;;  %8727 = vmatprep.subr.bf16.mxu0 %v26459_v26  ;;  %v26517_v0 = vld [vmem:[%s38158_s1 + $0x1880] ss:$100 sps:$4 sm:$0xff]   ;;  %v26525_v26 = vld [vmem:[%s38158_s1 + $0x194c] ss:$100 sps:$4 sm:$0xff]  }
 0x343   :  { %9173 = vmatpush1.bf16.msra.mxu1 %v26454_v1  ;;  %8728 = vmatpush1.bf16.msra.mxu0 %v26457_v3  ;;  %v26520_v1 = vld [vmem:[%s38158_s1 + $0x40] ss:$100 sps:$4 sm:$0xff]   ;;  %v26523_v3 = vld [vmem:[%s38158_s1 + $0x1948] ss:$100 sps:$4 sm:$0xff]  }
 0x344   :  { %9174 = vmatprep.subr.bf16.mxu1 %v26462_v4  ;;  %8729 = vmatprep.subr.bf16.mxu0 %v26465_v8  ;;  %v26528_v4 = vld [vmem:[%s38158_s1 + $0x10c] ss:$100 sps:$4 sm:$0xff]   ;;  %v26531_v8 = vld [vmem:[%s38158_s1 + $0x1a14] ss:$100 sps:$4 sm:$0xff]  }
 0x347   :  { %9175 = vmatpush1.bf16.msra.mxu1 %v26460_v11  ;;  %8730 = vmatpush1.bf16.msra.mxu0 %v26463_v12  ;;  %v32035_v11 = vld [vmem:[%s38157_s0 + $0x18] ss:$0 sps:$4 sm:$0xff]   ;;  %v26526_v12 = vld [vmem:[%s38158_s1 + $0x108] ss:$100 sps:$4 sm:$0xff]  }
 0x348   :  { %9176 = vmatprep.subr.bf16.mxu1 %v26468_v13  ;;  %8731 = vmatprep.subr.bf16.mxu0 %v26471_v14  ;;  %v26529_v13 = vld [vmem:[%s38158_s1 + $0x1a10] ss:$100 sps:$4 sm:$0xff]  }
 0x349   :  { %v26534_v14 = vld [vmem:[%s38158_s1 + $0x1d4] ss:$100 sps:$4 sm:$0xff]  }
 0x34b   :  { %9177 = vmatpush1.bf16.msra.mxu1 %v26466_v17  ;;  %8732 = vmatpush1.bf16.msra.mxu0 %v26469_v20  ;;  %v26537_v17 = vld [vmem:[%s38158_s1 + $0x1adc] ss:$100 sps:$4 sm:$0xff]   ;;  %v26532_v20 = vld [vmem:[%s38158_s1 + $0x1d0] ss:$100 sps:$4 sm:$0xff]  }
 0x34c   :  { %9178 = vmatprep.subr.bf16.mxu1 %v26474_v22  ;;  %8733 = vmatprep.subr.bf16.mxu0 %v26477_v23  ;;  %v26535_v22 = vld [vmem:[%s38158_s1 + $0x1ad8] ss:$100 sps:$4 sm:$0xff]  }
 0x34d   :  { %v26540_v23 = vld [vmem:[%s38158_s1 + $0x29c] ss:$100 sps:$4 sm:$0xff]  }
 0x34f   :  { %9179 = vmatpush1.bf16.msra.mxu1 %v26472_v24  ;;  %8734 = vmatpush1.bf16.msra.mxu0 %v26475_v42  ;;  %v26543_v24 = vld [vmem:[%s38158_s1 + $0x1ba4] ss:$100 sps:$4 sm:$0xff]  }
 0x350   :  { %9180 = vmatprep.subr.bf16.mxu1 %v26480_v28  ;;  %8735 = vmatprep.subr.bf16.mxu0 %v26483_v29  ;;  %v26538_v29 = vld [vmem:[%s38158_s1 + $0x298] ss:$100 sps:$4 sm:$0xff]  }
 0x353   :  { %9181 = vmatpush1.bf16.msra.mxu1 %v26478_v31  ;;  %8736 = vmatpush1.bf16.msra.mxu0 %v26481_v32  ;;  %v26541_v31 = vld [vmem:[%s38158_s1 + $0x1ba0] ss:$100 sps:$4 sm:$0xff]  }
 0x354   :  { %9182 = vmatprep.subr.bf16.mxu1 %v26486_v36  ;;  %8737 = vmatprep.subr.bf16.mxu0 %v26489_v25  ;;  %v26546_v36 = vld [vmem:[%s38158_s1 + $0x364] ss:$100 sps:$4 sm:$0xff]   ;;  %v26549_v25 = vld [vmem:[%s38158_s1 + $0x1c6c] ss:$100 sps:$4 sm:$0xff]  }
 0x357   :  { %9183 = vmatpush1.bf16.msra.mxu1 %v26484_v37  ;;  %8738 = vmatpush1.bf16.msra.mxu0 %v26487_v38  ;;  %v26544_v38 = vld [vmem:[%s38158_s1 + $0x360] ss:$100 sps:$4 sm:$0xff]  }
 0x358   :  { %9184 = vmatprep.subr.bf16.mxu1 %v26492_v39  ;;  %8739 = vmatprep.subr.bf16.mxu0 %v26495_v40  ;;  %v26547_v39 = vld [vmem:[%s38158_s1 + $0x1c68] ss:$100 sps:$4 sm:$0xff]  }
 0x359   :  { %v26552_v40 = vld [vmem:[%s38158_s1 + $0x42c] ss:$100 sps:$4 sm:$0xff]  }
 0x35b   :  { %9185 = vmatpush1.bf16.msra.mxu1 %v26490_v41  ;;  %8740 = vmatpush1.bf16.msra.mxu0 %v26493_v43  ;;  %v26555_v41 = vld [vmem:[%s38158_s1 + $0x1d34] ss:$100 sps:$4 sm:$0xff]   ;;  %v26550_v43 = vld [vmem:[%s38158_s1 + $0x428] ss:$100 sps:$4 sm:$0xff]  }
 0x35c   :  { %9186 = vmatprep.subr.bf16.mxu1 %v26498_v44  ;;  %8741 = vmatprep.subr.bf16.mxu0 %v26501_v45  ;;  %v26553_v44 = vld [vmem:[%s38158_s1 + $0x1d30] ss:$100 sps:$4 sm:$0xff]  }
 0x35d   :  { %v26558_v45 = vld [vmem:[%s38158_s1 + $0x4f4] ss:$100 sps:$4 sm:$0xff]  }
 0x35f   :  { %9187 = vmatpush1.bf16.msra.mxu1 %v26496_v47  ;;  %8742 = vmatpush1.bf16.msra.mxu0 %v26499_v49  ;;  %v26561_v47 = vld [vmem:[%s38158_s1 + $0x1dfc] ss:$100 sps:$4 sm:$0xff]   ;;  %v26556_v49 = vld [vmem:[%s38158_s1 + $0x4f0] ss:$100 sps:$4 sm:$0xff]  }
 0x360   :  { %9188 = vmatprep.subr.bf16.mxu1 %v26504_v50  ;;  %8743 = vmatprep.subr.bf16.mxu0 %v26507_v2  ;;  %v26559_v50 = vld [vmem:[%s38158_s1 + $0x1df8] ss:$100 sps:$4 sm:$0xff]  }
 0x361   :  { %v26564_v2 = vld [vmem:[%s38158_s1 + $0x5bc] ss:$100 sps:$4 sm:$0xff]  }
 0x363   :  { %9189 = vmatpush1.bf16.msra.mxu1 %v26502_v52  ;;  %8744 = vmatpush1.bf16.msra.mxu0 %v26505_v55  ;;  %v26567_v52 = vld [vmem:[%s38158_s1 + $0x1ec4] ss:$100 sps:$4 sm:$0xff]   ;;  %v26562_v55 = vld [vmem:[%s38158_s1 + $0x5b8] ss:$100 sps:$4 sm:$0xff]  }
 0x364   :  { %9190 = vmatprep.subr.bf16.mxu1 %v26510_v56  ;;  %8754 = vmatprep.subr.bf16.mxu0 %v26516_v57  ;;  %v26565_v56 = vld [vmem:[%s38158_s1 + $0x1ec0] ss:$100 sps:$4 sm:$0xff]  }
 0x365   :  { %v26570_v57 = vld [vmem:[%s38158_s1 + $0x684] ss:$100 sps:$4 sm:$0xff]  }
 0x366   :  { %8746 = vmatmul.mubr.bf16.vlgmr.msra.gmra.mrb[16].mxu0 %v29738_v15 }
 0x367   :  { %9191 = vmatpush1.bf16.msra.mxu1 %v26508_v58  ;;  %8755 = vmatpush1.bf16.msra.mxu0 %v26514_v59  ;;  %v26573_v58 = vld [vmem:[%s38158_s1 + $0x1f8c] ss:$100 sps:$4 sm:$0xff]   ;;  %v26568_v59 = vld [vmem:[%s38158_s1 + $0x680] ss:$100 sps:$4 sm:$0xff]  }
 0x368   :  { %9192 = vmatprep.subr.bf16.mxu1 %v26513_v60  ;;  %8786 = vmatprep.mubr.bf16.mxu0 %v29260_v21  ;;  %v26571_v60 = vld [vmem:[%s38158_s1 + $0x1f88] ss:$100 sps:$4 sm:$0xff]  }
 0x369   :  { %8959 = vmatprep.subr.bf16.mxu0 %v26522_v61  ;;  %v26576_v61 = vld [vmem:[%s38158_s1 + $0x74c] ss:$100 sps:$4 sm:$0xff]  }
 0x36b   :  { %9193 = vmatpush1.bf16.msra.mxu1 %v26511_v62  ;;  %v26579_v62 = vld [vmem:[%s38158_s1 + $0x2054] ss:$100 sps:$4 sm:$0xff]  }
 0x36c   :  { %9194 = vmatprep.subr.bf16.mxu1 %v26519_v63  ;;  %v26574_v63 = vld [vmem:[%s38158_s1 + $0x748] ss:$100 sps:$4 sm:$0xff]  }
 0x36f   :  { %9195 = vmatpush1.bf16.msra.mxu1 %v26517_v0  ;;  %v26577_v0 = vld [vmem:[%s38158_s1 + $0x2050] ss:$100 sps:$4 sm:$0xff]  }
 0x370   :  { %9205 = vmatprep.subr.bf16.mxu1 %v26525_v26  ;;  %v26582_v26 = vld [vmem:[%s38158_s1 + $0x814] ss:$100 sps:$4 sm:$0xff]  }
 0x372   :  { %22995 = vmatmul.mubr.msk.bf16.vlgmr.msra.gmra.mrb[16].mxu0 %vm7643_vm0, %v32035_v11  ;;  %9197 = vmatmul.mubr.bf16.vlgmr.msra.gmra.mrb[16].mxu1 %v29526_v7 }
 0x373   :  { %8960 = vmatpush1.bf16.msra.mxu0 %v26520_v1  ;;  %9206 = vmatpush1.bf16.msra.mxu1 %v26523_v3  ;;  %v26585_v1 = vld [vmem:[%s38158_s1 + $0x211c] ss:$100 sps:$4 sm:$0xff]   ;;  %v26580_v3 = vld [vmem:[%s38158_s1 + $0x810] ss:$100 sps:$4 sm:$0xff]  }
 0x374   :  { %8961 = vmatprep.subr.bf16.mxu0 %v26528_v4  ;;  %9207 = vmatprep.subr.bf16.mxu1 %v26531_v8  ;;  %v26583_v4 = vld [vmem:[%s38158_s1 + $0x2118] ss:$100 sps:$4 sm:$0xff]  }
 0x375   :  { %9237 = vmatprep.mubr.bf16.mxu1 %v29613_v34  ;;  %8991 = vmatprep.mubr.bf16.mxu0 %v29458_v48  ;;  %v26588_v8 = vld [vmem:[%s38158_s1 + $0x8dc] ss:$100 sps:$4 sm:$0xff]  }
 0x377   :  { %8962 = vmatpush1.bf16.msra.mxu0 %v26526_v12  ;;  %9208 = vmatpush1.bf16.msra.mxu1 %v26529_v13  ;;  %v26591_v12 = vld [vmem:[%s38158_s1 + $0x21e4] ss:$100 sps:$4 sm:$0xff]   ;;  %v26586_v13 = vld [vmem:[%s38158_s1 + $0x8d8] ss:$100 sps:$4 sm:$0xff]  }
 0x378   :  { %8963 = vmatprep.subr.bf16.mxu0 %v26534_v14  ;;  %9209 = vmatprep.subr.bf16.mxu1 %v26537_v17  ;;  %v26589_v14 = vld [vmem:[%s38158_s1 + $0x21e0] ss:$100 sps:$4 sm:$0xff]  }
 0x379   :  { %v32066_v42 = vpop.f32.mrb[12].mxu0  ;;  %v26594_v17 = vld [vmem:[%s38158_s1 + $0x9a4] ss:$100 sps:$4 sm:$0xff]  }
 0x37a   :  { %v32068_v28 = vpop.f32.mrb[13].mxu0 }
 0x37b   :  { %8964 = vmatpush1.bf16.msra.mxu0 %v26532_v20  ;;  %9210 = vmatpush1.bf16.msra.mxu1 %v26535_v22  ;;  %v8464_v32 = vpop.f32.mrb[14].mxu0  ;;  %v26597_v20 = vld [vmem:[%s38158_s1 + $0x22ac] ss:$100 sps:$4 sm:$0xff]   ;;  %v26592_v22 = vld [vmem:[%s38158_s1 + $0x9a0] ss:$100 sps:$4 sm:$0xff]  }
 0x37c   :  { %8965 = vmatprep.subr.bf16.mxu0 %v26540_v23  ;;  %9211 = vmatprep.subr.bf16.mxu1 %v26543_v24  ;;  %v8465_v37 = vpop.f32.mrb[15].mxu0  ;;  %v26595_v23 = vld [vmem:[%s38158_s1 + $0x22a8] ss:$100 sps:$4 sm:$0xff]   ;;  %v26601_v32 = vld [vmem:[%s38158_s1 + $0x2370] ss:$100 sps:$4 sm:$0xff]  }
 0x37d   :  { %v26600_v24 = vld [vmem:[%s38158_s1 + $0xa6c] ss:$100 sps:$4 sm:$0xff]  }
 0x37e   :  { %v26604_v37 = vld [vmem:[%s38158_s1 + $0xb30] ss:$100 sps:$4 sm:$0xff]  }
 0x37f   :  { %8966 = vmatpush1.bf16.msra.mxu0 %v26538_v29  ;;  %9212 = vmatpush1.bf16.msra.mxu1 %v26541_v31  ;;  %v26603_v29 = vld [vmem:[%s38158_s1 + $0x2374] ss:$100 sps:$4 sm:$0xff]   ;;  %v26598_v31 = vld [vmem:[%s38158_s1 + $0xa68] ss:$100 sps:$4 sm:$0xff]  }
 0x380   :  { %8967 = vmatprep.subr.bf16.mxu0 %v26546_v36  ;;  %9213 = vmatprep.subr.bf16.mxu1 %v26549_v25  ;;  %v26606_v36 = vld [vmem:[%s38158_s1 + $0xb34] ss:$100 sps:$4 sm:$0xff]   ;;  %v26609_v25 = vld [vmem:[%s38158_s1 + $0x243c] ss:$100 sps:$4 sm:$0xff]  }
 0x383   :  { %8968 = vmatpush1.bf16.msra.mxu0 %v26544_v38  ;;  %9214 = vmatpush1.bf16.msra.mxu1 %v26547_v39  ;;  %v26607_v38 = vld [vmem:[%s38158_s1 + $0x2438] ss:$100 sps:$4 sm:$0xff]  }
 0x384   :  { %8969 = vmatprep.subr.bf16.mxu0 %v26552_v40  ;;  %9215 = vmatprep.subr.bf16.mxu1 %v26555_v41  ;;  %v26612_v39 = vld [vmem:[%s38158_s1 + $0xbfc] ss:$100 sps:$4 sm:$0xff]   ;;  %v26615_v40 = vld [vmem:[%s38158_s1 + $0x2504] ss:$100 sps:$4 sm:$0xff]  }
 0x385   :  { %v26610_v41 = vld [vmem:[%s38158_s1 + $0xbf8] ss:$100 sps:$4 sm:$0xff]  }
 0x387   :  { %8970 = vmatpush1.bf16.msra.mxu0 %v26550_v43  ;;  %9216 = vmatpush1.bf16.msra.mxu1 %v26553_v44  ;;  %v26613_v43 = vld [vmem:[%s38158_s1 + $0x2500] ss:$100 sps:$4 sm:$0xff]  }
 0x388   :  { %8971 = vmatprep.subr.bf16.mxu0 %v26558_v45  ;;  %9217 = vmatprep.subr.bf16.mxu1 %v26561_v47  ;;  %v26618_v44 = vld [vmem:[%s38158_s1 + $0xcc4] ss:$100 sps:$4 sm:$0xff]   ;;  %v26621_v45 = vld [vmem:[%s38158_s1 + $0x25cc] ss:$100 sps:$4 sm:$0xff]  }
 0x389   :  { %v26616_v47 = vld [vmem:[%s38158_s1 + $0xcc0] ss:$100 sps:$4 sm:$0xff]  }
 0x38b   :  { %8972 = vmatpush1.bf16.msra.mxu0 %v26556_v49  ;;  %9218 = vmatpush1.bf16.msra.mxu1 %v26559_v50  ;;  %v26619_v49 = vld [vmem:[%s38158_s1 + $0x25c8] ss:$100 sps:$4 sm:$0xff]  }
 0x38c   :  { %8973 = vmatprep.subr.bf16.mxu0 %v26564_v2  ;;  %9219 = vmatprep.subr.bf16.mxu1 %v26567_v52  ;;  %v26624_v50 = vld [vmem:[%s38158_s1 + $0xd8c] ss:$100 sps:$4 sm:$0xff]   ;;  %v26630_v2 = vld [vmem:[%s38158_s1 + $0x5c] ss:$100 sps:$4 sm:$0xff]  }
 0x38d   :  { %v26622_v52 = vld [vmem:[%s38158_s1 + $0xd88] ss:$100 sps:$4 sm:$0xff]  }
 0x38f   :  { %8974 = vmatpush1.bf16.msra.mxu0 %v26562_v55  ;;  %9220 = vmatpush1.bf16.msra.mxu1 %v26565_v56  ;;  %v26627_v55 = vld [vmem:[%s38158_s1 + $0xe54] ss:$100 sps:$4 sm:$0xff]  }
 0x390   :  { %8975 = vmatprep.subr.bf16.mxu0 %v26570_v57  ;;  %9221 = vmatprep.subr.bf16.mxu1 %v26573_v58  ;;  %v26625_v56 = vld [vmem:[%s38158_s1 + $0xe50] ss:$100 sps:$4 sm:$0xff]   ;;  %v26633_v57 = vld [vmem:[%s38158_s1 + $0xf1c] ss:$100 sps:$4 sm:$0xff]  }
 0x391   :  { %v26628_v58 = vld [vmem:[%s38158_s1 + $0x58] ss:$100 sps:$4 sm:$0xff]  }
 0x393   :  { %8976 = vmatpush1.bf16.msra.mxu0 %v26568_v59  ;;  %9222 = vmatpush1.bf16.msra.mxu1 %v26571_v60  ;;  %v26631_v59 = vld [vmem:[%s38158_s1 + $0xf18] ss:$100 sps:$4 sm:$0xff]   ;;  %v26636_v60 = vld [vmem:[%s38158_s1 + $0x124] ss:$100 sps:$4 sm:$0xff]  }
 0x394   :  { %8977 = vmatprep.subr.bf16.mxu0 %v26576_v61  ;;  %9223 = vmatprep.subr.bf16.mxu1 %v26579_v62  ;;  %v26639_v61 = vld [vmem:[%s38158_s1 + $0xfe4] ss:$100 sps:$4 sm:$0xff]  }
 0x395   :  { %v26634_v62 = vld [vmem:[%s38158_s1 + $0x120] ss:$100 sps:$4 sm:$0xff]  }
 0x397   :  { %8978 = vmatpush1.bf16.msra.mxu0 %v26574_v63  ;;  %9224 = vmatpush1.bf16.msra.mxu1 %v26577_v0  ;;  %v26637_v63 = vld [vmem:[%s38158_s1 + $0xfe0] ss:$100 sps:$4 sm:$0xff]   ;;  %v26642_v0 = vld [vmem:[%s38158_s1 + $0x1ec] ss:$100 sps:$4 sm:$0xff]  }
 0x398   :  { %8979 = vmatprep.subr.bf16.mxu0 %v26582_v26  ;;  %9225 = vmatprep.subr.bf16.mxu1 %v26585_v1  ;;  %v26640_v26 = vld [vmem:[%s38158_s1 + $0x1e8] ss:$100 sps:$4 sm:$0xff]  }
 0x399   :  { %v26643_v1 = vld [vmem:[%s38158_s1 + $0x10a8] ss:$100 sps:$4 sm:$0xff]  }
 0x39b   :  { %8980 = vmatpush1.bf16.msra.mxu0 %v26580_v3  ;;  %9226 = vmatpush1.bf16.msra.mxu1 %v26583_v4  ;;  %v26648_v3 = vld [vmem:[%s38158_s1 + $0x2b4] ss:$100 sps:$4 sm:$0xff]  }
 0x39c   :  { %8981 = vmatprep.subr.bf16.mxu0 %v26588_v8  ;;  %9227 = vmatprep.subr.bf16.mxu1 %v26591_v12  ;;  %v26651_v4 = vld [vmem:[%s38158_s1 + $0x1174] ss:$100 sps:$4 sm:$0xff]  }
 0x39f   :  { %8982 = vmatpush1.bf16.msra.mxu0 %v26586_v13  ;;  %9228 = vmatpush1.bf16.msra.mxu1 %v26589_v14  ;;  %v26646_v14 = vld [vmem:[%s38158_s1 + $0x2b0] ss:$100 sps:$4 sm:$0xff]  }
 0x3a0   :  { %8983 = vmatprep.subr.bf16.mxu0 %v26594_v17  ;;  %9229 = vmatprep.subr.bf16.mxu1 %v26597_v20  ;;  %v26649_v17 = vld [vmem:[%s38158_s1 + $0x1170] ss:$100 sps:$4 sm:$0xff]  }
 0x3a3   :  { %8984 = vmatpush1.bf16.msra.mxu0 %v26592_v22  ;;  %9230 = vmatpush1.bf16.msra.mxu1 %v26595_v23  ;;  %v26654_v22 = vld [vmem:[%s38158_s1 + $0x37c] ss:$100 sps:$4 sm:$0xff]  }
 0x3a4   :  { %8985 = vmatprep.subr.bf16.mxu0 %v26600_v24  ;;  %9231 = vmatprep.subr.bf16.mxu1 %v26603_v29  ;;  %v26657_v23 = vld [vmem:[%s38158_s1 + $0x123c] ss:$100 sps:$4 sm:$0xff]  }
 0x3a5   :  { %v26652_v24 = vld [vmem:[%s38158_s1 + $0x378] ss:$100 sps:$4 sm:$0xff]  }
 0x3a6   :  { %v26655_v29 = vld [vmem:[%s38158_s1 + $0x1238] ss:$100 sps:$4 sm:$0xff]  }
 0x3a7   :  { %8986 = vmatpush1.bf16.msra.mxu0 %v26598_v31  ;;  %9232 = vmatpush1.bf16.msra.mxu1 %v26601_v32  ;;  %v26660_v31 = vld [vmem:[%s38158_s1 + $0x444] ss:$100 sps:$4 sm:$0xff]  }
 0x3a8   :  { %8987 = vmatprep.subr.bf16.mxu0 %v26606_v36  ;;  %9233 = vmatprep.subr.bf16.mxu1 %v26609_v25  ;;  %v26663_v32 = vld [vmem:[%s38158_s1 + $0x1304] ss:$100 sps:$4 sm:$0xff]  }
 0x3a9   :  { %v26658_v36 = vld [vmem:[%s38158_s1 + $0x440] ss:$100 sps:$4 sm:$0xff]  }
 0x3aa   :  { %v26661_v25 = vld [vmem:[%s38158_s1 + $0x1300] ss:$100 sps:$4 sm:$0xff]  }
 0x3ab   :  { %8988 = vmatpush1.bf16.msra.mxu0 %v26604_v37  ;;  %9234 = vmatpush1.bf16.msra.mxu1 %v26607_v38  ;;  %v26666_v37 = vld [vmem:[%s38158_s1 + $0x50c] ss:$100 sps:$4 sm:$0xff]  }
 0x3ac   :  { %8989 = vmatprep.subr.bf16.mxu0 %v26612_v39  ;;  %9235 = vmatprep.subr.bf16.mxu1 %v26615_v40  ;;  %v26669_v38 = vld [vmem:[%s38158_s1 + $0x13cc] ss:$100 sps:$4 sm:$0xff]  }
 0x3ad   :  { %v26664_v39 = vld [vmem:[%s38158_s1 + $0x508] ss:$100 sps:$4 sm:$0xff]  }
 0x3ae   :  { %v26667_v40 = vld [vmem:[%s38158_s1 + $0x13c8] ss:$100 sps:$4 sm:$0xff]  }
 0x3af   :  { %8990 = vmatpush1.bf16.msra.mxu0 %v26610_v41  ;;  %9236 = vmatpush1.bf16.msra.mxu1 %v26613_v43  ;;  %v26672_v41 = vld [vmem:[%s38158_s1 + $0x5d4] ss:$100 sps:$4 sm:$0xff]  }
 0x3b0   :  { %9000 = vmatprep.subr.bf16.mxu0 %v26618_v44  ;;  %9246 = vmatprep.subr.bf16.mxu1 %v26621_v45  ;;  %v26675_v43 = vld [vmem:[%s38158_s1 + $0x1494] ss:$100 sps:$4 sm:$0xff]  }
 0x3b1   :  { %v26670_v44 = vld [vmem:[%s38158_s1 + $0x5d0] ss:$100 sps:$4 sm:$0xff]  }
 0x3b2   :  { %9238 = vmatmul.mubr.bf16.vlgmr.msra.gmra.mrb[16].mxu1 %v29738_v15  ;;  %8992 = vmatmul.mubr.bf16.vlgmr.msra.gmra.mrb[20].mxu0 %v29524_v6  ;;  %v26673_v45 = vld [vmem:[%s38158_s1 + $0x1490] ss:$100 sps:$4 sm:$0xff]  }
 0x3b3   :  { %9001 = vmatpush1.bf16.msra.mxu0 %v26616_v47  ;;  %9247 = vmatpush1.bf16.msra.mxu1 %v26619_v49  ;;  %v26678_v47 = vld [vmem:[%s38158_s1 + $0x69c] ss:$100 sps:$4 sm:$0xff]  }
 0x3b4   :  { %9002 = vmatprep.subr.bf16.mxu0 %v26624_v50  ;;  %9278 = vmatprep.mubr.bf16.mxu1 %v29260_v21  ;;  %v26681_v49 = vld [vmem:[%s38158_s1 + $0x155c] ss:$100 sps:$4 sm:$0xff]  }
 0x3b5   :  { %9451 = vmatprep.subr.bf16.mxu1 %v26630_v2  ;;  %9032 = vmatprep.mubr.bf16.mxu0 %v29472_v53  ;;  %v26676_v50 = vld [vmem:[%s38158_s1 + $0x698] ss:$100 sps:$4 sm:$0xff]  }
 0x3b6   :  { %v26679_v2 = vld [vmem:[%s38158_s1 + $0x1558] ss:$100 sps:$4 sm:$0xff]  }
 0x3b7   :  { %9003 = vmatpush1.bf16.msra.mxu0 %v26622_v52  ;;  %v26684_v52 = vld [vmem:[%s38158_s1 + $0x764] ss:$100 sps:$4 sm:$0xff]  }
 0x3b8   :  { %9004 = vmatprep.subr.bf16.mxu0 %v26627_v55  ;;  %v26687_v55 = vld [vmem:[%s38158_s1 + $0x1624] ss:$100 sps:$4 sm:$0xff]  }
 0x3bb   :  { %9005 = vmatpush1.bf16.msra.mxu0 %v26625_v56  ;;  %v26682_v56 = vld [vmem:[%s38158_s1 + $0x760] ss:$100 sps:$4 sm:$0xff]  }
 0x3bc   :  { %9006 = vmatprep.subr.bf16.mxu0 %v26633_v57  ;;  %v26685_v57 = vld [vmem:[%s38158_s1 + $0x1620] ss:$100 sps:$4 sm:$0xff]  }
 0x3be   :  { %22998 = vmatmul.mubr.msk.bf16.vlgmr.msra.gmra.mrb[16].mxu1 %vm7643_vm0, %v32035_v11  ;;  %v26645_v11 = vld [vmem:[%s38158_s1 + $0x10ac] ss:$100 sps:$4 sm:$0xff]  }
 0x3bf   :  { %9452 = vmatpush1.bf16.msra.mxu1 %v26628_v58  ;;  %9007 = vmatpush1.bf16.msra.mxu0 %v26631_v59  ;;  %v26690_v58 = vld [vmem:[%s38158_s1 + $0x82c] ss:$100 sps:$4 sm:$0xff]  }
 0x3c0   :  { %9453 = vmatprep.subr.bf16.mxu1 %v26636_v60  ;;  %9008 = vmatprep.subr.bf16.mxu0 %v26639_v61  ;;  %v26693_v59 = vld [vmem:[%s38158_s1 + $0x16ec] ss:$100 sps:$4 sm:$0xff]  }
 0x3c1   :  { %9483 = vmatprep.mubr.bf16.mxu1 %v29458_v48  ;;  %v26688_v60 = vld [vmem:[%s38158_s1 + $0x828] ss:$100 sps:$4 sm:$0xff]  }
 0x3c2   :  { %v26691_v61 = vld [vmem:[%s38158_s1 + $0x16e8] ss:$100 sps:$4 sm:$0xff]  }
 0x3c3   :  { %9454 = vmatpush1.bf16.msra.mxu1 %v26634_v62  ;;  %9009 = vmatpush1.bf16.msra.mxu0 %v26637_v63  ;;  %v26696_v62 = vld [vmem:[%s38158_s1 + $0x8f4] ss:$100 sps:$4 sm:$0xff]  }
 0x3c4   :  { %9455 = vmatprep.subr.bf16.mxu1 %v26642_v0  ;;  %9010 = vmatprep.subr.bf16.mxu0 %v26645_v11  ;;  %v26699_v63 = vld [vmem:[%s38158_s1 + $0x17b4] ss:$100 sps:$4 sm:$0xff]  }
 0x3c5   :  { %v32293_v8 = vpop.f32.mrb[12].mxu1  ;;  %v26694_v0 = vld [vmem:[%s38158_s1 + $0x8f0] ss:$100 sps:$4 sm:$0xff]  }
 0x3c6   :  { %v32295_v12 = vpop.f32.mrb[13].mxu1  ;;  %v26697_v11 = vld [vmem:[%s38158_s1 + $0x17b0] ss:$100 sps:$4 sm:$0xff]  }
 0x3c7   :  { %9456 = vmatpush1.bf16.msra.mxu1 %v26640_v26  ;;  %9011 = vmatpush1.bf16.msra.mxu0 %v26643_v1  ;;  %v8956_v13 = vpop.f32.mrb[14].mxu1  ;;  %v26702_v26 = vld [vmem:[%s38158_s1 + $0x9bc] ss:$100 sps:$4 sm:$0xff]  }
 0x3c8   :  { %v8957_v20 = vpop.f32.mrb[15].mxu1  ;;  %9457 = vmatprep.subr.bf16.mxu1 %v26648_v3  ;;  %9012 = vmatprep.subr.bf16.mxu0 %v26651_v4  ;;  %v26705_v1 = vld [vmem:[%s38158_s1 + $0x187c] ss:$100 sps:$4 sm:$0xff]   ;;  %v26708_v13 = vld [vmem:[%s38158_s1 + $0xa84] ss:$100 sps:$4 sm:$0xff]  }
 0x3c9   :  { %v26700_v3 = vld [vmem:[%s38158_s1 + $0x9b8] ss:$100 sps:$4 sm:$0xff]   ;;  %v26709_v20 = vld [vmem:[%s38158_s1 + $0x1940] ss:$100 sps:$4 sm:$0xff]  }
 0x3ca   :  { %v26703_v4 = vld [vmem:[%s38158_s1 + $0x1878] ss:$100 sps:$4 sm:$0xff]  }
 0x3cb   :  { %9458 = vmatpush1.bf16.msra.mxu1 %v26646_v14  ;;  %9013 = vmatpush1.bf16.msra.mxu0 %v26649_v17  ;;  %v26711_v14 = vld [vmem:[%s38158_s1 + $0x1944] ss:$100 sps:$4 sm:$0xff]  }
 0x3cc   :  { %9459 = vmatprep.subr.bf16.mxu1 %v26654_v22  ;;  %9014 = vmatprep.subr.bf16.mxu0 %v26657_v23  ;;  %v26706_v17 = vld [vmem:[%s38158_s1 + $0xa80] ss:$100 sps:$4 sm:$0xff]   ;;  %v26714_v22 = vld [vmem:[%s38158_s1 + $0xb4c] ss:$100 sps:$4 sm:$0xff]  }
 0x3cd   :  { %v26717_v23 = vld [vmem:[%s38158_s1 + $0x1a0c] ss:$100 sps:$4 sm:$0xff]  }
 0x3cf   :  { %9460 = vmatpush1.bf16.msra.mxu1 %v26652_v24  ;;  %9015 = vmatpush1.bf16.msra.mxu0 %v26655_v29  ;;  %v26712_v24 = vld [vmem:[%s38158_s1 + $0xb48] ss:$100 sps:$4 sm:$0xff]  }
 0x3d0   :  { %9461 = vmatprep.subr.bf16.mxu1 %v26660_v31  ;;  %9016 = vmatprep.subr.bf16.mxu0 %v26663_v32  ;;  %v26715_v29 = vld [vmem:[%s38158_s1 + $0x1a08] ss:$100 sps:$4 sm:$0xff]   ;;  %v26720_v31 = vld [vmem:[%s38158_s1 + $0xc14] ss:$100 sps:$4 sm:$0xff]  }
 0x3d1   :  { %v26723_v32 = vld [vmem:[%s38158_s1 + $0x1ad4] ss:$100 sps:$4 sm:$0xff]  }
 0x3d3   :  { %9462 = vmatpush1.bf16.msra.mxu1 %v26658_v36  ;;  %9017 = vmatpush1.bf16.msra.mxu0 %v26661_v25  ;;  %v26718_v36 = vld [vmem:[%s38158_s1 + $0xc10] ss:$100 sps:$4 sm:$0xff]  }
 0x3d4   :  { %9463 = vmatprep.subr.bf16.mxu1 %v26666_v37  ;;  %9018 = vmatprep.subr.bf16.mxu0 %v26669_v38  ;;  %v26721_v25 = vld [vmem:[%s38158_s1 + $0x1ad0] ss:$100 sps:$4 sm:$0xff]   ;;  %v26726_v37 = vld [vmem:[%s38158_s1 + $0xcdc] ss:$100 sps:$4 sm:$0xff]  }
 0x3d5   :  { %v26729_v38 = vld [vmem:[%s38158_s1 + $0x1b9c] ss:$100 sps:$4 sm:$0xff]  }
 0x3d7   :  { %9464 = vmatpush1.bf16.msra.mxu1 %v26664_v39  ;;  %9019 = vmatpush1.bf16.msra.mxu0 %v26667_v40  ;;  %v26724_v39 = vld [vmem:[%s38158_s1 + $0xcd8] ss:$100 sps:$4 sm:$0xff]  }
 0x3d8   :  { %9465 = vmatprep.subr.bf16.mxu1 %v26672_v41  ;;  %9020 = vmatprep.subr.bf16.mxu0 %v26675_v43  ;;  %v26727_v40 = vld [vmem:[%s38158_s1 + $0x1b98] ss:$100 sps:$4 sm:$0xff]   ;;  %v26732_v41 = vld [vmem:[%s38158_s1 + $0xda4] ss:$100 sps:$4 sm:$0xff]  }
 0x3d9   :  { %v26735_v43 = vld [vmem:[%s38158_s1 + $0x1c64] ss:$100 sps:$4 sm:$0xff]  }
 0x3db   :  { %9466 = vmatpush1.bf16.msra.mxu1 %v26670_v44  ;;  %9021 = vmatpush1.bf16.msra.mxu0 %v26673_v45  ;;  %v26730_v44 = vld [vmem:[%s38158_s1 + $0xda0] ss:$100 sps:$4 sm:$0xff]  }
 0x3dc   :  { %9467 = vmatprep.subr.bf16.mxu1 %v26678_v47  ;;  %9022 = vmatprep.subr.bf16.mxu0 %v26681_v49  ;;  %v26733_v45 = vld [vmem:[%s38158_s1 + $0x1c60] ss:$100 sps:$4 sm:$0xff]   ;;  %v26738_v47 = vld [vmem:[%s38158_s1 + $0xe6c] ss:$100 sps:$4 sm:$0xff]  }
 0x3dd   :  { %v26741_v49 = vld [vmem:[%s38158_s1 + $0x1d2c] ss:$100 sps:$4 sm:$0xff]  }
 0x3df   :  { %9468 = vmatpush1.bf16.msra.mxu1 %v26676_v50  ;;  %9023 = vmatpush1.bf16.msra.mxu0 %v26679_v2  ;;  %v26736_v50 = vld [vmem:[%s38158_s1 + $0xe68] ss:$100 sps:$4 sm:$0xff]  }
 0x3e0   :  { %9469 = vmatprep.subr.bf16.mxu1 %v26684_v52  ;;  %9024 = vmatprep.subr.bf16.mxu0 %v26687_v55  ;;  %v26739_v2 = vld [vmem:[%s38158_s1 + $0x1d28] ss:$100 sps:$4 sm:$0xff]   ;;  %v26744_v52 = vld [vmem:[%s38158_s1 + $0xf34] ss:$100 sps:$4 sm:$0xff]  }
 0x3e1   :  { %v26747_v55 = vld [vmem:[%s38158_s1 + $0x1df4] ss:$100 sps:$4 sm:$0xff]  }
 0x3e3   :  { %9470 = vmatpush1.bf16.msra.mxu1 %v26682_v56  ;;  %9025 = vmatpush1.bf16.msra.mxu0 %v26685_v57  ;;  %v26742_v56 = vld [vmem:[%s38158_s1 + $0xf30] ss:$100 sps:$4 sm:$0xff]  }
 0x3e4   :  { %9471 = vmatprep.subr.bf16.mxu1 %v26690_v58  ;;  %9026 = vmatprep.subr.bf16.mxu0 %v26693_v59  ;;  %v26745_v57 = vld [vmem:[%s38158_s1 + $0x1df0] ss:$100 sps:$4 sm:$0xff]   ;;  %v26750_v58 = vld [vmem:[%s38158_s1 + $0xffc] ss:$100 sps:$4 sm:$0xff]  }
 0x3e5   :  { %v26753_v59 = vld [vmem:[%s38158_s1 + $0x1ebc] ss:$100 sps:$4 sm:$0xff]  }
 0x3e7   :  { %9472 = vmatpush1.bf16.msra.mxu1 %v26688_v60  ;;  %9027 = vmatpush1.bf16.msra.mxu0 %v26691_v61  ;;  %v26748_v60 = vld [vmem:[%s38158_s1 + $0xff8] ss:$100 sps:$4 sm:$0xff]  }
 0x3e8   :  { %9473 = vmatprep.subr.bf16.mxu1 %v26696_v62  ;;  %9028 = vmatprep.subr.bf16.mxu0 %v26699_v63  ;;  %v26751_v61 = vld [vmem:[%s38158_s1 + $0x1eb8] ss:$100 sps:$4 sm:$0xff]   ;;  %v26756_v62 = vld [vmem:[%s38158_s1 + $0x10c4] ss:$100 sps:$4 sm:$0xff]  }
 0x3e9   :  { %v26759_v63 = vld [vmem:[%s38158_s1 + $0x1f84] ss:$100 sps:$4 sm:$0xff]  }
 0x3eb   :  { %9474 = vmatpush1.bf16.msra.mxu1 %v26694_v0  ;;  %9029 = vmatpush1.bf16.msra.mxu0 %v26697_v11  ;;  %v26754_v0 = vld [vmem:[%s38158_s1 + $0x10c0] ss:$100 sps:$4 sm:$0xff]  }
 0x3ec   :  { %9475 = vmatprep.subr.bf16.mxu1 %v26702_v26  ;;  %9030 = vmatprep.subr.bf16.mxu0 %v26705_v1  ;;  %v26757_v11 = vld [vmem:[%s38158_s1 + $0x1f80] ss:$100 sps:$4 sm:$0xff]   ;;  %v26762_v26 = vld [vmem:[%s38158_s1 + $0x118c] ss:$100 sps:$4 sm:$0xff]  }
 0x3ed   :  { %v26765_v1 = vld [vmem:[%s38158_s1 + $0x204c] ss:$100 sps:$4 sm:$0xff]  }
 0x3ef   :  { %9476 = vmatpush1.bf16.msra.mxu1 %v26700_v3  ;;  %9031 = vmatpush1.bf16.msra.mxu0 %v26703_v4  ;;  %v26760_v3 = vld [vmem:[%s38158_s1 + $0x1188] ss:$100 sps:$4 sm:$0xff]  }
 0x3f0   :  { %9477 = vmatprep.subr.bf16.mxu1 %v26708_v13  ;;  %9041 = vmatprep.subr.bf16.mxu0 %v26711_v14  ;;  %v26763_v4 = vld [vmem:[%s38158_s1 + $0x2048] ss:$100 sps:$4 sm:$0xff]   ;;  %v26768_v13 = vld [vmem:[%s38158_s1 + $0x1254] ss:$100 sps:$4 sm:$0xff]  }
 0x3f1   :  { %v26771_v14 = vld [vmem:[%s38158_s1 + $0x2114] ss:$100 sps:$4 sm:$0xff]  }
 0x3f2   :  { %9033 = vmatmul.mubr.bf16.vlgmr.msra.gmra.mrb[20].mxu0 %v29526_v7 }
 0x3f3   :  { %9478 = vmatpush1.bf16.msra.mxu1 %v26706_v17  ;;  %9042 = vmatpush1.bf16.msra.mxu0 %v26709_v20  ;;  %v26766_v17 = vld [vmem:[%s38158_s1 + $0x1250] ss:$100 sps:$4 sm:$0xff]  }
 0x3f4   :  { %9479 = vmatprep.subr.bf16.mxu1 %v26714_v22  ;;  %9043 = vmatprep.subr.bf16.mxu0 %v26717_v23  ;;  %v26769_v20 = vld [vmem:[%s38158_s1 + $0x2110] ss:$100 sps:$4 sm:$0xff]   ;;  %v26774_v22 = vld [vmem:[%s38158_s1 + $0x131c] ss:$100 sps:$4 sm:$0xff]  }
 0x3f5   :  { %9073 = vmatprep.mubr.bf16.mxu0 %v29613_v34  ;;  %v26777_v23 = vld [vmem:[%s38158_s1 + $0x21dc] ss:$100 sps:$4 sm:$0xff]  }
 0x3f7   :  { %9480 = vmatpush1.bf16.msra.mxu1 %v26712_v24  ;;  %9044 = vmatpush1.bf16.msra.mxu0 %v26715_v29  ;;  %v26772_v24 = vld [vmem:[%s38158_s1 + $0x1318] ss:$100 sps:$4 sm:$0xff]  }
 0x3f8   :  { %9481 = vmatprep.subr.bf16.mxu1 %v26720_v31  ;;  %9045 = vmatprep.subr.bf16.mxu0 %v26723_v32  ;;  %v26775_v29 = vld [vmem:[%s38158_s1 + $0x21d8] ss:$100 sps:$4 sm:$0xff]   ;;  %v26780_v31 = vld [vmem:[%s38158_s1 + $0x13e4] ss:$100 sps:$4 sm:$0xff]  }
 0x3f9   :  { %v26783_v32 = vld [vmem:[%s38158_s1 + $0x22a4] ss:$100 sps:$4 sm:$0xff]  }
 0x3fb   :  { %9482 = vmatpush1.bf16.msra.mxu1 %v26718_v36  ;;  %9046 = vmatpush1.bf16.msra.mxu0 %v26721_v25  ;;  %v26778_v36 = vld [vmem:[%s38158_s1 + $0x13e0] ss:$100 sps:$4 sm:$0xff]  }
 0x3fc   :  { %9492 = vmatprep.subr.bf16.mxu1 %v26726_v37  ;;  %9047 = vmatprep.subr.bf16.mxu0 %v26729_v38  ;;  %v26781_v25 = vld [vmem:[%s38158_s1 + $0x22a0] ss:$100 sps:$4 sm:$0xff]   ;;  %v26786_v37 = vld [vmem:[%s38158_s1 + $0x14ac] ss:$100 sps:$4 sm:$0xff]  }
 0x3fd   :  { %v26789_v38 = vld [vmem:[%s38158_s1 + $0x236c] ss:$100 sps:$4 sm:$0xff]  }
 0x3fe   :  { %9484 = vmatmul.mubr.bf16.vlgmr.msra.gmra.mrb[20].mxu1 %v29524_v6 }
 0x3ff   :  { %9493 = vmatpush1.bf16.msra.mxu1 %v26724_v39  ;;  %9048 = vmatpush1.bf16.msra.mxu0 %v26727_v40  ;;  %v26784_v39 = vld [vmem:[%s38158_s1 + $0x14a8] ss:$100 sps:$4 sm:$0xff]  }
 0x400   :  { %9494 = vmatprep.subr.bf16.mxu1 %v26732_v41  ;;  %9049 = vmatprep.subr.bf16.mxu0 %v26735_v43  ;;  %v26787_v40 = vld [vmem:[%s38158_s1 + $0x2368] ss:$100 sps:$4 sm:$0xff]   ;;  %v26792_v41 = vld [vmem:[%s38158_s1 + $0x1574] ss:$100 sps:$4 sm:$0xff]  }
 0x401   :  { %9524 = vmatprep.mubr.bf16.mxu1 %v29472_v53  ;;  %v26795_v43 = vld [vmem:[%s38158_s1 + $0x2434] ss:$100 sps:$4 sm:$0xff]  }
 0x403   :  { %9495 = vmatpush1.bf16.msra.mxu1 %v26730_v44  ;;  %9050 = vmatpush1.bf16.msra.mxu0 %v26733_v45  ;;  %v26790_v44 = vld [vmem:[%s38158_s1 + $0x1570] ss:$100 sps:$4 sm:$0xff]  }
 0x404   :  { %9496 = vmatprep.subr.bf16.mxu1 %v26738_v47  ;;  %9051 = vmatprep.subr.bf16.mxu0 %v26741_v49  ;;  %v26793_v45 = vld [vmem:[%s38158_s1 + $0x2430] ss:$100 sps:$4 sm:$0xff]   ;;  %v26798_v47 = vld [vmem:[%s38158_s1 + $0x163c] ss:$100 sps:$4 sm:$0xff]  }
 0x405   :  { %v26801_v49 = vld [vmem:[%s38158_s1 + $0x24fc] ss:$100 sps:$4 sm:$0xff]  }
 0x407   :  { %9497 = vmatpush1.bf16.msra.mxu1 %v26736_v50  ;;  %9052 = vmatpush1.bf16.msra.mxu0 %v26739_v2  ;;  %v26796_v50 = vld [vmem:[%s38158_s1 + $0x1638] ss:$100 sps:$4 sm:$0xff]  }
 0x408   :  { %9498 = vmatprep.subr.bf16.mxu1 %v26744_v52  ;;  %9053 = vmatprep.subr.bf16.mxu0 %v26747_v55  ;;  %v26799_v2 = vld [vmem:[%s38158_s1 + $0x24f8] ss:$100 sps:$4 sm:$0xff]   ;;  %v26804_v52 = vld [vmem:[%s38158_s1 + $0x1704] ss:$100 sps:$4 sm:$0xff]  }
 0x409   :  { %v26810_v55 = vld [vmem:[%s38158_s1 + $0x25c4] ss:$100 sps:$4 sm:$0xff]  }
 0x40b   :  { %9499 = vmatpush1.bf16.msra.mxu1 %v26742_v56  ;;  %9054 = vmatpush1.bf16.msra.mxu0 %v26745_v57  ;;  %v26802_v56 = vld [vmem:[%s38158_s1 + $0x1700] ss:$100 sps:$4 sm:$0xff]   ;;  %v26807_v57 = vld [vmem:[%s38158_s1 + $0x17cc] ss:$100 sps:$4 sm:$0xff]  }
 0x40c   :  { %9500 = vmatprep.subr.bf16.mxu1 %v26750_v58  ;;  %9055 = vmatprep.subr.bf16.mxu0 %v26753_v59  ;;  %v26808_v58 = vld [vmem:[%s38158_s1 + $0x25c0] ss:$100 sps:$4 sm:$0xff]   ;;  %v26816_v59 = vld [vmem:[%s38158_s1 + $0x54] ss:$100 sps:$4 sm:$0xff]  }
 0x40f   :  { %9501 = vmatpush1.bf16.msra.mxu1 %v26748_v60  ;;  %9056 = vmatpush1.bf16.msra.mxu0 %v26751_v61  ;;  %v26805_v60 = vld [vmem:[%s38158_s1 + $0x17c8] ss:$100 sps:$4 sm:$0xff]   ;;  %v26813_v61 = vld [vmem:[%s38158_s1 + $0x1894] ss:$100 sps:$4 sm:$0xff]  }
 0x410   :  { %9502 = vmatprep.subr.bf16.mxu1 %v26756_v62  ;;  %9057 = vmatprep.subr.bf16.mxu0 %v26759_v63  ;;  %v26811_v62 = vld [vmem:[%s38158_s1 + $0x1890] ss:$100 sps:$4 sm:$0xff]   ;;  %v26819_v63 = vld [vmem:[%s38158_s1 + $0x195c] ss:$100 sps:$4 sm:$0xff]  }
 0x413   :  { %9503 = vmatpush1.bf16.msra.mxu1 %v26754_v0  ;;  %9058 = vmatpush1.bf16.msra.mxu0 %v26757_v11  ;;  %v26814_v0 = vld [vmem:[%s38158_s1 + $0x50] ss:$100 sps:$4 sm:$0xff]   ;;  %v26817_v11 = vld [vmem:[%s38158_s1 + $0x1958] ss:$100 sps:$4 sm:$0xff]  }
 0x414   :  { %9504 = vmatprep.subr.bf16.mxu1 %v26762_v26  ;;  %9059 = vmatprep.subr.bf16.mxu0 %v26765_v1  ;;  %v26822_v26 = vld [vmem:[%s38158_s1 + $0x11c] ss:$100 sps:$4 sm:$0xff]   ;;  %v26825_v1 = vld [vmem:[%s38158_s1 + $0x1a24] ss:$100 sps:$4 sm:$0xff]  }
 0x417   :  { %9505 = vmatpush1.bf16.msra.mxu1 %v26760_v3  ;;  %9060 = vmatpush1.bf16.msra.mxu0 %v26763_v4  ;;  %v32654_v3 = vld [vmem:[%s38157_s0 + $0x18] ss:$0 sps:$4 sm:$0xff]  }
 0x418   :  { %9506 = vmatprep.subr.bf16.mxu1 %v26768_v13  ;;  %9061 = vmatprep.subr.bf16.mxu0 %v26771_v14  ;;  %v26820_v4 = vld [vmem:[%s38158_s1 + $0x118] ss:$100 sps:$4 sm:$0xff]   ;;  %v26823_v13 = vld [vmem:[%s38158_s1 + $0x1a20] ss:$100 sps:$4 sm:$0xff]  }
 0x419   :  { %v26828_v14 = vld [vmem:[%s38158_s1 + $0x1e4] ss:$100 sps:$4 sm:$0xff]  }
 0x41b   :  { %9507 = vmatpush1.bf16.msra.mxu1 %v26766_v17  ;;  %9062 = vmatpush1.bf16.msra.mxu0 %v26769_v20  ;;  %v26831_v17 = vld [vmem:[%s38158_s1 + $0x1aec] ss:$100 sps:$4 sm:$0xff]   ;;  %v26826_v20 = vld [vmem:[%s38158_s1 + $0x1e0] ss:$100 sps:$4 sm:$0xff]  }
 0x41c   :  { %9508 = vmatprep.subr.bf16.mxu1 %v26774_v22  ;;  %9063 = vmatprep.subr.bf16.mxu0 %v26777_v23  ;;  %v26829_v22 = vld [vmem:[%s38158_s1 + $0x1ae8] ss:$100 sps:$4 sm:$0xff]  }
 0x41d   :  { %v26834_v23 = vld [vmem:[%s38158_s1 + $0x2ac] ss:$100 sps:$4 sm:$0xff]  }
 0x41f   :  { %9509 = vmatpush1.bf16.msra.mxu1 %v26772_v24  ;;  %9064 = vmatpush1.bf16.msra.mxu0 %v26775_v29  ;;  %v26837_v24 = vld [vmem:[%s38158_s1 + $0x1bb4] ss:$100 sps:$4 sm:$0xff]  }
 0x420   :  { %9510 = vmatprep.subr.bf16.mxu1 %v26780_v31  ;;  %9065 = vmatprep.subr.bf16.mxu0 %v26783_v32  ;;  %v26832_v31 = vld [vmem:[%s38158_s1 + $0x2a8] ss:$100 sps:$4 sm:$0xff]  }
 0x423   :  { %9511 = vmatpush1.bf16.msra.mxu1 %v26778_v36  ;;  %9066 = vmatpush1.bf16.msra.mxu0 %v26781_v25  ;;  %v26835_v36 = vld [vmem:[%s38158_s1 + $0x1bb0] ss:$100 sps:$4 sm:$0xff]  }
 0x424   :  { %9512 = vmatprep.subr.bf16.mxu1 %v26786_v37  ;;  %9067 = vmatprep.subr.bf16.mxu0 %v26789_v38  ;;  %v26840_v37 = vld [vmem:[%s38158_s1 + $0x374] ss:$100 sps:$4 sm:$0xff]   ;;  %v26843_v38 = vld [vmem:[%s38158_s1 + $0x1c7c] ss:$100 sps:$4 sm:$0xff]  }
 0x427   :  { %9513 = vmatpush1.bf16.msra.mxu1 %v26784_v39  ;;  %9068 = vmatpush1.bf16.msra.mxu0 %v26787_v40  ;;  %v26838_v40 = vld [vmem:[%s38158_s1 + $0x370] ss:$100 sps:$4 sm:$0xff]  }
 0x428   :  { %9514 = vmatprep.subr.bf16.mxu1 %v26792_v41  ;;  %9069 = vmatprep.subr.bf16.mxu0 %v26795_v43  ;;  %v26841_v41 = vld [vmem:[%s38158_s1 + $0x1c78] ss:$100 sps:$4 sm:$0xff]  }
 0x429   :  { %v26846_v43 = vld [vmem:[%s38158_s1 + $0x43c] ss:$100 sps:$4 sm:$0xff]  }
 0x42b   :  { %9515 = vmatpush1.bf16.msra.mxu1 %v26790_v44  ;;  %9070 = vmatpush1.bf16.msra.mxu0 %v26793_v45  ;;  %v26849_v44 = vld [vmem:[%s38158_s1 + $0x1d44] ss:$100 sps:$4 sm:$0xff]   ;;  %v26844_v45 = vld [vmem:[%s38158_s1 + $0x438] ss:$100 sps:$4 sm:$0xff]  }
 0x42c   :  { %9516 = vmatprep.subr.bf16.mxu1 %v26798_v47  ;;  %9071 = vmatprep.subr.bf16.mxu0 %v26801_v49  ;;  %v26847_v47 = vld [vmem:[%s38158_s1 + $0x1d40] ss:$100 sps:$4 sm:$0xff]  }
 0x42d   :  { %v26852_v49 = vld [vmem:[%s38158_s1 + $0x504] ss:$100 sps:$4 sm:$0xff]  }
 0x42f   :  { %9517 = vmatpush1.bf16.msra.mxu1 %v26796_v50  ;;  %9072 = vmatpush1.bf16.msra.mxu0 %v26799_v2  ;;  %v26855_v50 = vld [vmem:[%s38158_s1 + $0x1e0c] ss:$100 sps:$4 sm:$0xff]   ;;  %v26850_v2 = vld [vmem:[%s38158_s1 + $0x500] ss:$100 sps:$4 sm:$0xff]  }
 0x430   :  { %9518 = vmatprep.subr.bf16.mxu1 %v26804_v52  ;;  %9082 = vmatprep.subr.bf16.mxu0 %v26810_v55  ;;  %v26853_v52 = vld [vmem:[%s38158_s1 + $0x1e08] ss:$100 sps:$4 sm:$0xff]  }
 0x431   :  { %v26858_v55 = vld [vmem:[%s38158_s1 + $0x5cc] ss:$100 sps:$4 sm:$0xff]  }
 0x432   :  { %9074 = vmatmul.mubr.bf16.vlgmr.msra.gmra.mrb[20].mxu0 %v29738_v15 }
 0x433   :  { %9519 = vmatpush1.bf16.msra.mxu1 %v26802_v56  ;;  %9083 = vmatpush1.bf16.msra.mxu0 %v26808_v58  ;;  %v26861_v56 = vld [vmem:[%s38158_s1 + $0x1ed4] ss:$100 sps:$4 sm:$0xff]  }
 0x434   :  { %9520 = vmatprep.subr.bf16.mxu1 %v26807_v57  ;;  %9114 = vmatprep.mubr.bf16.mxu0 %v29260_v21  ;;  %v26856_v57 = vld [vmem:[%s38158_s1 + $0x5c8] ss:$100 sps:$4 sm:$0xff]   ;;  %v26859_v58 = vld [vmem:[%s38158_s1 + $0x1ed0] ss:$100 sps:$4 sm:$0xff]  }
 0x435   :  { %9287 = vmatprep.subr.bf16.mxu0 %v26816_v59  ;;  %v26864_v59 = vld [vmem:[%s38158_s1 + $0x694] ss:$100 sps:$4 sm:$0xff]  }
 0x437   :  { %9521 = vmatpush1.bf16.msra.mxu1 %v26805_v60  ;;  %v26867_v60 = vld [vmem:[%s38158_s1 + $0x1f9c] ss:$100 sps:$4 sm:$0xff]  }
 0x438   :  { %9522 = vmatprep.subr.bf16.mxu1 %v26813_v61  ;;  %v26862_v61 = vld [vmem:[%s38158_s1 + $0x690] ss:$100 sps:$4 sm:$0xff]  }
 0x43b   :  { %9523 = vmatpush1.bf16.msra.mxu1 %v26811_v62  ;;  %v26865_v62 = vld [vmem:[%s38158_s1 + $0x1f98] ss:$100 sps:$4 sm:$0xff]  }
 0x43c   :  { %9533 = vmatprep.subr.bf16.mxu1 %v26819_v63  ;;  %v26870_v63 = vld [vmem:[%s38158_s1 + $0x75c] ss:$100 sps:$4 sm:$0xff]  }
 0x43e   :  { %22997 = vmatmul.mubr.msk.bf16.vlgmr.msra.gmra.mrb[20].mxu0 %vm7643_vm0, %v32654_v3  ;;  %9525 = vmatmul.mubr.bf16.vlgmr.msra.gmra.mrb[20].mxu1 %v29526_v7 }
 0x43f   :  { %9288 = vmatpush1.bf16.msra.mxu0 %v26814_v0  ;;  %9534 = vmatpush1.bf16.msra.mxu1 %v26817_v11  ;;  %v26873_v0 = vld [vmem:[%s38158_s1 + $0x2064] ss:$100 sps:$4 sm:$0xff]   ;;  %v26868_v11 = vld [vmem:[%s38158_s1 + $0x758] ss:$100 sps:$4 sm:$0xff]  }
 0x440   :  { %9289 = vmatprep.subr.bf16.mxu0 %v26822_v26  ;;  %9535 = vmatprep.subr.bf16.mxu1 %v26825_v1  ;;  %v26871_v26 = vld [vmem:[%s38158_s1 + $0x2060] ss:$100 sps:$4 sm:$0xff]  }
 0x441   :  { %9565 = vmatprep.mubr.bf16.mxu1 %v29613_v34  ;;  %9319 = vmatprep.mubr.bf16.mxu0 %v29458_v48  ;;  %v26876_v1 = vld [vmem:[%s38158_s1 + $0x824] ss:$100 sps:$4 sm:$0xff]  }
 0x443   :  { %9290 = vmatpush1.bf16.msra.mxu0 %v26820_v4  ;;  %9536 = vmatpush1.bf16.msra.mxu1 %v26823_v13  ;;  %v26879_v4 = vld [vmem:[%s38158_s1 + $0x212c] ss:$100 sps:$4 sm:$0xff]   ;;  %v26874_v13 = vld [vmem:[%s38158_s1 + $0x820] ss:$100 sps:$4 sm:$0xff]  }
 0x444   :  { %9291 = vmatprep.subr.bf16.mxu0 %v26828_v14  ;;  %9537 = vmatprep.subr.bf16.mxu1 %v26831_v17  ;;  %v26877_v14 = vld [vmem:[%s38158_s1 + $0x2128] ss:$100 sps:$4 sm:$0xff]  }
 0x445   :  { %v32685_v29 = vpop.f32.mrb[16].mxu0  ;;  %v26882_v17 = vld [vmem:[%s38158_s1 + $0x8ec] ss:$100 sps:$4 sm:$0xff]  }
 0x446   :  { %v32690_v32 = vpop.f32.mrb[17].mxu0 }
 0x447   :  { %9292 = vmatpush1.bf16.msra.mxu0 %v26826_v20  ;;  %9538 = vmatpush1.bf16.msra.mxu1 %v26829_v22  ;;  %v8792_v25 = vpop.f32.mrb[18].mxu0  ;;  %v26885_v20 = vld [vmem:[%s38158_s1 + $0x21f4] ss:$100 sps:$4 sm:$0xff]   ;;  %v26880_v22 = vld [vmem:[%s38158_s1 + $0x8e8] ss:$100 sps:$4 sm:$0xff]  }
 0x448   :  { %9293 = vmatprep.subr.bf16.mxu0 %v26834_v23  ;;  %9539 = vmatprep.subr.bf16.mxu1 %v26837_v24  ;;  %v8793_v39 = vpop.f32.mrb[19].mxu0  ;;  %v26883_v23 = vld [vmem:[%s38158_s1 + $0x21f0] ss:$100 sps:$4 sm:$0xff]   ;;  %v26889_v25 = vld [vmem:[%s38158_s1 + $0x22b8] ss:$100 sps:$4 sm:$0xff]  }
 0x449   :  { %v26888_v24 = vld [vmem:[%s38158_s1 + $0x9b4] ss:$100 sps:$4 sm:$0xff]  }
 0x44a   :  { %v26892_v39 = vld [vmem:[%s38158_s1 + $0xa78] ss:$100 sps:$4 sm:$0xff]  }
 0x44b   :  { %9294 = vmatpush1.bf16.msra.mxu0 %v26832_v31  ;;  %9540 = vmatpush1.bf16.msra.mxu1 %v26835_v36  ;;  %v26891_v31 = vld [vmem:[%s38158_s1 + $0x22bc] ss:$100 sps:$4 sm:$0xff]   ;;  %v26886_v36 = vld [vmem:[%s38158_s1 + $0x9b0] ss:$100 sps:$4 sm:$0xff]  }
 0x44c   :  { %9295 = vmatprep.subr.bf16.mxu0 %v26840_v37  ;;  %9541 = vmatprep.subr.bf16.mxu1 %v26843_v38  ;;  %v26894_v37 = vld [vmem:[%s38158_s1 + $0xa7c] ss:$100 sps:$4 sm:$0xff]   ;;  %v26897_v38 = vld [vmem:[%s38158_s1 + $0x2384] ss:$100 sps:$4 sm:$0xff]  }
 0x44f   :  { %9296 = vmatpush1.bf16.msra.mxu0 %v26838_v40  ;;  %9542 = vmatpush1.bf16.msra.mxu1 %v26841_v41  ;;  %v26895_v40 = vld [vmem:[%s38158_s1 + $0x2380] ss:$100 sps:$4 sm:$0xff]  }
 0x450   :  { %9297 = vmatprep.subr.bf16.mxu0 %v26846_v43  ;;  %9543 = vmatprep.subr.bf16.mxu1 %v26849_v44  ;;  %v26900_v41 = vld [vmem:[%s38158_s1 + $0xb44] ss:$100 sps:$4 sm:$0xff]   ;;  %v26903_v43 = vld [vmem:[%s38158_s1 + $0x244c] ss:$100 sps:$4 sm:$0xff]  }
 0x451   :  { %v26898_v44 = vld [vmem:[%s38158_s1 + $0xb40] ss:$100 sps:$4 sm:$0xff]  }
 0x453   :  { %9298 = vmatpush1.bf16.msra.mxu0 %v26844_v45  ;;  %9544 = vmatpush1.bf16.msra.mxu1 %v26847_v47  ;;  %v26901_v45 = vld [vmem:[%s38158_s1 + $0x2448] ss:$100 sps:$4 sm:$0xff]  }
 0x454   :  { %9299 = vmatprep.subr.bf16.mxu0 %v26852_v49  ;;  %9545 = vmatprep.subr.bf16.mxu1 %v26855_v50  ;;  %v26906_v47 = vld [vmem:[%s38158_s1 + $0xc0c] ss:$100 sps:$4 sm:$0xff]   ;;  %v26909_v49 = vld [vmem:[%s38158_s1 + $0x2514] ss:$100 sps:$4 sm:$0xff]  }
 0x455   :  { %v26904_v50 = vld [vmem:[%s38158_s1 + $0xc08] ss:$100 sps:$4 sm:$0xff]  }
 0x457   :  { %9300 = vmatpush1.bf16.msra.mxu0 %v26850_v2  ;;  %9546 = vmatpush1.bf16.msra.mxu1 %v26853_v52  ;;  %v26907_v2 = vld [vmem:[%s38158_s1 + $0x2510] ss:$100 sps:$4 sm:$0xff]  }
 0x458   :  { %9301 = vmatprep.subr.bf16.mxu0 %v26858_v55  ;;  %9547 = vmatprep.subr.bf16.mxu1 %v26861_v56  ;;  %v26912_v52 = vld [vmem:[%s38158_s1 + $0xcd4] ss:$100 sps:$4 sm:$0xff]   ;;  %v26915_v55 = vld [vmem:[%s38158_s1 + $0x25dc] ss:$100 sps:$4 sm:$0xff]  }
 0x459   :  { %v26910_v56 = vld [vmem:[%s38158_s1 + $0xcd0] ss:$100 sps:$4 sm:$0xff]  }
 0x45b   :  { %9302 = vmatpush1.bf16.msra.mxu0 %v26856_v57  ;;  %9548 = vmatpush1.bf16.msra.mxu1 %v26859_v58  ;;  %v26913_v57 = vld [vmem:[%s38158_s1 + $0x25d8] ss:$100 sps:$4 sm:$0xff]  }
 0x45c   :  { %9303 = vmatprep.subr.bf16.mxu0 %v26864_v59  ;;  %9549 = vmatprep.subr.bf16.mxu1 %v26867_v60  ;;  %v26918_v58 = vld [vmem:[%s38158_s1 + $0xd9c] ss:$100 sps:$4 sm:$0xff]  }
 0x45d   :  { %v26922_v59 = vld [vmem:[%s38158_s1 + $0x1320] ss:$100 sps:$4 sm:$0xff]   ;;  %v26916_v60 = vld [vmem:[%s38158_s1 + $0xd98] ss:$100 sps:$4 sm:$0xff]  }
 0x45f   :  { %9304 = vmatpush1.bf16.msra.mxu0 %v26862_v61  ;;  %9550 = vmatpush1.bf16.msra.mxu1 %v26865_v62  ;;  %v26921_v61 = vld [vmem:[%s38158_s1 + $0xe64] ss:$100 sps:$4 sm:$0xff]  }
 0x460   :  { %9305 = vmatprep.subr.bf16.mxu0 %v26870_v63  ;;  %9551 = vmatprep.subr.bf16.mxu1 %v26873_v0  ;;  %v26919_v62 = vld [vmem:[%s38158_s1 + $0xe60] ss:$100 sps:$4 sm:$0xff]   ;;  %v26925_v63 = vld [vmem:[%s38158_s1 + $0xf2c] ss:$100 sps:$4 sm:$0xff]  }
 0x461   :  { %v26923_v0 = vld [vmem:[%s38158_s1 + $0xf28] ss:$100 sps:$4 sm:$0xff]  }
 0x463   :  { %9306 = vmatpush1.bf16.msra.mxu0 %v26868_v11  ;;  %9552 = vmatpush1.bf16.msra.mxu1 %v26871_v26  ;;  %v26926_v11 = vld [vmem:[%s38158_s1 + $0xce0] ss:$100 sps:$4 sm:$0xff]   ;;  %v26927_v26 = vld [vmem:[%s38158_s1 + $0x13e8] ss:$100 sps:$4 sm:$0xff]  }
 0x464   :  { %9307 = vmatprep.subr.bf16.mxu0 %v26876_v1  ;;  %9553 = vmatprep.subr.bf16.mxu1 %v26879_v4  ;;  %v26930_v1 = vld [vmem:[%s38158_s1 + $0xff4] ss:$100 sps:$4 sm:$0xff]  }
 0x465   :  { %v26928_v4 = vld [vmem:[%s38158_s1 + $0xff0] ss:$100 sps:$4 sm:$0xff]  }
 0x467   :  { %9308 = vmatpush1.bf16.msra.mxu0 %v26874_v13  ;;  %9554 = vmatpush1.bf16.msra.mxu1 %v26877_v14  ;;  %v26931_v13 = vld [vmem:[%s38158_s1 + $0xda8] ss:$100 sps:$4 sm:$0xff]   ;;  %v26932_v14 = vld [vmem:[%s38158_s1 + $0x14b0] ss:$100 sps:$4 sm:$0xff]  }
 0x468   :  { %9309 = vmatprep.subr.bf16.mxu0 %v26882_v17  ;;  %9555 = vmatprep.subr.bf16.mxu1 %v26885_v20  ;;  %v26935_v17 = vld [vmem:[%s38158_s1 + $0x10bc] ss:$100 sps:$4 sm:$0xff]   ;;  %v26936_v20 = vld [vmem:[%s38158_s1 + $0xe70] ss:$100 sps:$4 sm:$0xff]  }
 0x46b   :  { %9310 = vmatpush1.bf16.msra.mxu0 %v26880_v22  ;;  %9556 = vmatpush1.bf16.msra.mxu1 %v26883_v23  ;;  %v26933_v22 = vld [vmem:[%s38158_s1 + $0x10b8] ss:$100 sps:$4 sm:$0xff]  }
 0x46c   :  { %9311 = vmatprep.subr.bf16.mxu0 %v26888_v24  ;;  %9557 = vmatprep.subr.bf16.mxu1 %v26891_v31  ;;  %v26937_v23 = vld [vmem:[%s38158_s1 + $0x1578] ss:$100 sps:$4 sm:$0xff]   ;;  %v26940_v24 = vld [vmem:[%s38158_s1 + $0x1184] ss:$100 sps:$4 sm:$0xff]  }
 0x46f   :  { %9312 = vmatpush1.bf16.msra.mxu0 %v26886_v36  ;;  %9558 = vmatpush1.bf16.msra.mxu1 %v26889_v25  ;;  %v26938_v25 = vld [vmem:[%s38158_s1 + $0x1180] ss:$100 sps:$4 sm:$0xff]  }
 0x470   :  { %9313 = vmatprep.subr.bf16.mxu0 %v26894_v37  ;;  %9559 = vmatprep.subr.bf16.mxu1 %v26897_v38 }
 0x473   :  { %9314 = vmatpush1.bf16.msra.mxu0 %v26892_v39  ;;  %9560 = vmatpush1.bf16.msra.mxu1 %v26895_v40  ;;  %v26942_v39 = vld [vmem:[%s38158_s1 + $0x1640] ss:$100 sps:$4 sm:$0xff]   ;;  %v26945_v40 = vld [vmem:[%s38158_s1 + $0x124c] ss:$100 sps:$4 sm:$0xff]  }
 0x474   :  { %9315 = vmatprep.subr.bf16.mxu0 %v26900_v41  ;;  %9561 = vmatprep.subr.bf16.mxu1 %v26903_v43  ;;  %v26943_v41 = vld [vmem:[%s38158_s1 + $0x1248] ss:$100 sps:$4 sm:$0xff]   ;;  %v26946_v43 = vld [vmem:[%s38158_s1 + $0x1000] ss:$100 sps:$4 sm:$0xff]  }
 0x477   :  { %9316 = vmatpush1.bf16.msra.mxu0 %v26898_v44  ;;  %9562 = vmatpush1.bf16.msra.mxu1 %v26901_v45  ;;  %v26947_v44 = vld [vmem:[%s38158_s1 + $0x1708] ss:$100 sps:$4 sm:$0xff]   ;;  %v26950_v45 = vld [vmem:[%s38158_s1 + $0x1314] ss:$100 sps:$4 sm:$0xff]  }
 0x478   :  { %9317 = vmatprep.subr.bf16.mxu0 %v26906_v47  ;;  %9563 = vmatprep.subr.bf16.mxu1 %v26909_v49  ;;  %v26948_v47 = vld [vmem:[%s38158_s1 + $0x1310] ss:$100 sps:$4 sm:$0xff]   ;;  %v26951_v49 = vld [vmem:[%s38158_s1 + $0x10c8] ss:$100 sps:$4 sm:$0xff]  }
 0x47b   :  { %9318 = vmatpush1.bf16.msra.mxu0 %v26904_v50  ;;  %9564 = vmatpush1.bf16.msra.mxu1 %v26907_v2  ;;  %v26952_v50 = vld [vmem:[%s38158_s1 + $0x17d0] ss:$100 sps:$4 sm:$0xff]   ;;  %v26955_v2 = vld [vmem:[%s38158_s1 + $0x13dc] ss:$100 sps:$4 sm:$0xff]  }
 0x47c   :  { %9328 = vmatprep.subr.bf16.mxu0 %v26912_v52  ;;  %9574 = vmatprep.subr.bf16.mxu1 %v26915_v55  ;;  %v26953_v52 = vld [vmem:[%s38158_s1 + $0x13d8] ss:$100 sps:$4 sm:$0xff]   ;;  %v26956_v55 = vld [vmem:[%s38158_s1 + $0x1190] ss:$100 sps:$4 sm:$0xff]  }
 0x47e   :  { %9566 = vmatmul.mubr.bf16.vlgmr.msra.gmra.mrb[20].mxu1 %v29738_v15  ;;  %9320 = vmatmul.mubr.bf16.vlgmr.msra.gmra.mrb[24].mxu0 %v29524_v6 }
 0x47f   :  { %9329 = vmatpush1.bf16.msra.mxu0 %v26910_v56  ;;  %9575 = vmatpush1.bf16.msra.mxu1 %v26913_v57  ;;  %v32959_v56 = vsub.s32 1, %v30767_v16  ;;  %v26957_v57 = vld [vmem:[%s38158_s1 + $0x1898] ss:$100 sps:$4 sm:$0xff]  }
 0x480   :  { %9330 = vmatprep.subr.bf16.mxu0 %v26918_v58  ;;  %9606 = vmatprep.mubr.bf16.mxu1 %v29260_v21  ;;  %v26960_v58 = vld [vmem:[%s38158_s1 + $0x14a4] ss:$100 sps:$4 sm:$0xff]  }
 0x481   :  { %24540 = vmatprep.subr.bf16.mxu1 %v26922_v59  ;;  %9360 = vmatprep.mubr.bf16.mxu0 %v29472_v53  ;;  %v26958_v59 = vld [vmem:[%s38158_s1 + $0x14a0] ss:$100 sps:$4 sm:$0xff]  }
 0x483   :  { %9331 = vmatpush1.bf16.msra.mxu0 %v26916_v60  ;;  %v26961_v60 = vld [vmem:[%s38158_s1 + $0x1258] ss:$100 sps:$4 sm:$0xff]  }
 0x484   :  { %9332 = vmatprep.subr.bf16.mxu0 %v26921_v61  ;;  %v32976_v61 = vld [vmem:[%s38159_s2] sm:$0xff] }
 0x487   :  { %9333 = vmatpush1.bf16.msra.mxu0 %v26919_v62  ;;  %v1327_v62 = vrot.slane %v32976_v61, %v32959_v56 }
 0x488   :  { %9334 = vmatprep.subr.bf16.mxu0 %v26925_v63  ;;  %v26964_v63 = vld [vmem:[%s38158_s1 + $0x156c] ss:$100 sps:$4 sm:$0xff]  }
 0x48a   :  { %23000 = vmatmul.mubr.msk.bf16.vlgmr.msra.gmra.mrb[20].mxu1 %vm7643_vm0, %v32654_v3 }
 0x48b   :  { %24541 = vmatpush3.bf16.msra.mxu1 %v26926_v11  ;;  %9335 = vmatpush1.bf16.msra.mxu0 %v26923_v0  ;;  %v26962_v0 = vld [vmem:[%s38158_s1 + $0x1568] ss:$100 sps:$4 sm:$0xff]   ;;  %v26965_v11 = vld [vmem:[%s38158_s1 + $0x25e0] ss:$100 sps:$4 sm:$0xff]  }
 0x48c   :  { %24542 = vmatprep.subr.bf16.mxu1 %v26927_v26  ;;  %9336 = vmatprep.subr.bf16.mxu0 %v26930_v1  ;;  %v24908_v26 = vadd.f32 %v30619_v19, %v1327_v62  ;;  %v29261_v1 = vmov 0.0   ;;  %v27008_v62 = vld [vmem:[%s38158_s1 + $0x1ba8] ss:$100 sps:$4 sm:$0xff]  }
 0x48d   :  { %9687 = vmatprep.mubr.bf16.mxu1 %v29472_v53  ;;  %v26941_v53 = vld [vmem:[%s38158_s1 + $0xf38] ss:$100 sps:$4 sm:$0xff]  }
 0x48e   :  { %v9776_v19 = vmax.f32 %v24908_v26, 0.0  ;;  %v27014_v26 = vld [vmem:[%s38158_s1 + $0x1c70] ss:$100 sps:$4 sm:$0xff]  }
 0x48f   :  { %24543 = vmatpush3.bf16.msra.mxu1 %v26931_v13  ;;  %9337 = vmatpush1.bf16.msra.mxu0 %v26928_v4  ;;  %v26968_v4 = vld [vmem:[%s38158_s1 + $0x1634] ss:$100 sps:$4 sm:$0xff]   ;;  %v26971_v13 = vld [vmem:[%s38160_s3 + $0x4] ss:$28 sps:$4 sm:$0xff]  }
 0x490   :  { %24544 = vmatprep.subr.bf16.mxu1 %v26932_v14  ;;  %9338 = vmatprep.subr.bf16.mxu0 %v26935_v17  ;;  %v26966_v14 = vld [vmem:[%s38158_s1 + $0x1630] ss:$100 sps:$4 sm:$0xff]   ;;  %v26974_v17 = vld [vmem:[%s38158_s1 + $0x16fc] ss:$100 sps:$4 sm:$0xff]  }
 0x491   :  { %v32912_v31 = vpop.f32.mrb[16].mxu1 }
 0x492   :  { %v32917_v36 = vpop.f32.mrb[17].mxu1 }
 0x493   :  { %24545 = vmatpush3.bf16.msra.mxu1 %v26936_v20  ;;  %9339 = vmatpush1.bf16.msra.mxu0 %v26933_v22  ;;  %v9284_v37 = vpop.f32.mrb[18].mxu1  ;;  %v26969_v20 = vld [vmem:[%s38160_s3] ss:$28 sps:$4 sm:$0xff]  }
 0x494   :  { %v9285_v38 = vpop.f32.mrb[19].mxu1  ;;  %24546 = vmatprep.subr.bf16.mxu1 %v26937_v23  ;;  %9340 = vmatprep.subr.bf16.mxu0 %v26940_v24  ;;  %v26972_v22 = vld [vmem:[%s38158_s1 + $0x16f8] ss:$100 sps:$4 sm:$0xff]   ;;  %v33015_v24 = vpack.c.bf16 %v9776_v19, %v9776_v19  ;;  %v26978_v37 = vld [vmem:[%s38158_s1 + $0x17c0] ss:$100 sps:$4 sm:$0xff]  }
 0x495   :  { %v26977_v23 = vld [vmem:[%s38160_s3 + $0x3c] ss:$28 sps:$4 sm:$0xff]   ;;  %v26983_v38 = vld [vmem:[%s38160_s3 + $0x74] ss:$28 sps:$4 sm:$0xff]  }
 0x496   :  { %v27020_v19 = vld [vmem:[%s38158_s1 + $0x1d38] ss:$100 sps:$4 sm:$0xff]  }
 0x497   :  { %24547 = vmatpush3.bf16.msra.mxu1 %v26941_v53  ;;  %9341 = vmatpush1.bf16.msra.mxu0 %v26938_v25  ;;  %v26980_v53 = vld [vmem:[%s38158_s1 + $0x17c4] ss:$100 sps:$4 sm:$0xff]   ;;  %v26975_v25 = vld [vmem:[%s38160_s3 + $0x38] ss:$28 sps:$4 sm:$0xff]  }
 0x498   :  { %24548 = vmatprep.subr.bf16.mxu1 %v26942_v39  ;;  %9342 = vmatprep.subr.bf16.mxu0 %v26945_v40  ;;  %v26981_v39 = vld [vmem:[%s38160_s3 + $0x70] ss:$28 sps:$4 sm:$0xff]  }
 0x499   :  { %v26984_v40 = vld [vmem:[%s38158_s1 + $0x1888] ss:$100 sps:$4 sm:$0xff]  }
 0x49b   :  { %24549 = vmatpush3.bf16.msra.mxu1 %v26946_v43  ;;  %9343 = vmatpush1.bf16.msra.mxu0 %v26943_v41  ;;  %v26989_v41 = vld [vmem:[%s38160_s3 + $0xac] ss:$28 sps:$4 sm:$0xff]   ;;  %v26992_v43 = vld [vmem:[%s38158_s1 + $0x1954] ss:$100 sps:$4 sm:$0xff]  }
 0x49c   :  { %24550 = vmatprep.subr.bf16.mxu1 %v26947_v44  ;;  %9344 = vmatprep.subr.bf16.mxu0 %v26950_v45  ;;  %v26987_v44 = vld [vmem:[%s38160_s3 + $0xa8] ss:$28 sps:$4 sm:$0xff]   ;;  %v26990_v45 = vld [vmem:[%s38158_s1 + $0x1950] ss:$100 sps:$4 sm:$0xff]  }
 0x49f   :  { %24551 = vmatpush3.bf16.msra.mxu1 %v26951_v49  ;;  %9345 = vmatpush1.bf16.msra.mxu0 %v26948_v47  ;;  %v26995_v47 = vld [vmem:[%s38160_s3 + $0xe4] ss:$28 sps:$4 sm:$0xff]  }
 0x4a0   :  { %24552 = vmatprep.subr.bf16.mxu1 %v26952_v50  ;;  %9346 = vmatprep.subr.bf16.mxu0 %v26955_v2  ;;  %v26998_v49 = vld [vmem:[%s38158_s1 + $0x1a1c] ss:$100 sps:$4 sm:$0xff]  }
 0x4a1   :  { %v26993_v50 = vld [vmem:[%s38160_s3 + $0xe0] ss:$28 sps:$4 sm:$0xff]  }
 0x4a2   :  { %v26996_v2 = vld [vmem:[%s38158_s1 + $0x1a18] ss:$100 sps:$4 sm:$0xff]  }
 0x4a3   :  { %24553 = vmatpush3.bf16.msra.mxu1 %v26956_v55  ;;  %9347 = vmatpush1.bf16.msra.mxu0 %v26953_v52  ;;  %v27001_v52 = vld [vmem:[%s38160_s3 + $0x11c] ss:$28 sps:$4 sm:$0xff]   ;;  %v27004_v55 = vld [vmem:[%s38158_s1 + $0x1ae4] ss:$100 sps:$4 sm:$0xff]  }
 0x4a4   :  { %24554 = vmatprep.subr.bf16.mxu1 %v26957_v57  ;;  %9348 = vmatprep.subr.bf16.mxu0 %v26960_v58  ;;  %v27002_v57 = vld [vmem:[%s38158_s1 + $0x1ae0] ss:$100 sps:$4 sm:$0xff]   ;;  %v27007_v58 = vld [vmem:[%s38160_s3 + $0x154] ss:$28 sps:$4 sm:$0xff]  }
 0x4a7   :  { %24555 = vmatpush3.bf16.msra.mxu1 %v26961_v60  ;;  %9349 = vmatpush1.bf16.msra.mxu0 %v26958_v59  ;;  %v27010_v59 = vld [vmem:[%s38158_s1 + $0x1bac] ss:$100 sps:$4 sm:$0xff]  }
 0x4a8   :  { %24881 = vmatprep.subr.bf16.mxu1 %v29261_v1  ;;  %9350 = vmatprep.subr.bf16.mxu0 %v26964_v63  ;;  %v27005_v60 = vld [vmem:[%s38160_s3 + $0x150] ss:$28 sps:$4 sm:$0xff]  }
 0x4a9   :  { %v27013_v63 = vld [vmem:[%s38160_s3 + $0x18c] ss:$28 sps:$4 sm:$0xff]  }
 0x4aa   :  { %9688 = vmatmul.mubr.bf16.vlgmr.msra.gmra.mrb[24].mxu1 %v29526_v7 }
 0x4ab   :  { %24882 = vmatpush3.bf16.msra.mxu1 %v26965_v11  ;;  %9351 = vmatpush1.bf16.msra.mxu0 %v26962_v0  ;;  %v27016_v0 = vld [vmem:[%s38158_s1 + $0x1c74] ss:$100 sps:$4 sm:$0xff]   ;;  %v27011_v11 = vld [vmem:[%s38160_s3 + $0x188] ss:$28 sps:$4 sm:$0xff]  }
 0x4ac   :  { %9352 = vmatprep.subr.bf16.mxu0 %v26968_v4  ;;  %24883 = vmatprep.mubr.msk.bf16.mxu1 %vm29262_vm1, %v29261_v1  ;;  %v27019_v4 = vld [vmem:[%s38160_s3 + $0x1c4] ss:$28 sps:$4 sm:$0xff]  }
 0x4ad   :  { %18662 = vmatprep.subr.bf16.mxu1 %v26971_v13  ;;  %v27022_v13 = vld [vmem:[%s38158_s1 + $0x1d3c] ss:$100 sps:$4 sm:$0xff]  }
 0x4af   :  { %9353 = vmatpush1.bf16.msra.mxu0 %v26966_v14  ;;  %v27017_v14 = vld [vmem:[%s38160_s3 + $0x1c0] ss:$28 sps:$4 sm:$0xff]  }
 0x4b0   :  { %9354 = vmatprep.subr.bf16.mxu0 %v26974_v17  ;;  %v27025_v17 = vld [vmem:[%s38160_s3 + $0x1fc] ss:$28 sps:$4 sm:$0xff]  }
 0x4b2   :  { %24884 = vmatmul.mubr.msk.bf16.vlgmr.msra.gmra.mrb[28].mxu1 %vm7643_vm0, %v32654_v3  ;;  %v26986_v3 = vld [vmem:[%s38158_s1 + $0x188c] ss:$100 sps:$4 sm:$0xff]  }
 0x4b3   :  { %18663 = vmatpush1.bf16.msra.mxu1 %v26969_v20  ;;  %18694 = vmatprep.mubr.bf16.mxu1 %v33015_v24  ;;  %v27028_v20 = vld [vmem:[%s38158_s1 + $0x1e04] ss:$100 sps:$4 sm:$0xff]  }
 0x4b4   :  { %9355 = vmatpush1.bf16.msra.mxu0 %v26972_v22  ;;  %18664 = vmatprep.subr.bf16.mxu1 %v26977_v23  ;;  %v27023_v22 = vld [vmem:[%s38160_s3 + $0x1f8] ss:$28 sps:$4 sm:$0xff]   ;;  %v27026_v23 = vld [vmem:[%s38158_s1 + $0x1e00] ss:$100 sps:$4 sm:$0xff]  }
 0x4b5   :  { %9356 = vmatprep.subr.bf16.mxu0 %v26980_v53  ;;  %v27031_v53 = vld [vmem:[%s38160_s3 + $0x234] ss:$28 sps:$4 sm:$0xff]  }
 0x4b7   :  { %18665 = vmatpush1.bf16.msra.mxu1 %v26975_v25  ;;  %v27034_v25 = vld [vmem:[%s38158_s1 + $0x1ecc] ss:$100 sps:$4 sm:$0xff]  }
 0x4b8   :  { %9357 = vmatpush1.bf16.msra.mxu0 %v26978_v37  ;;  %18666 = vmatprep.subr.bf16.mxu1 %v26983_v38  ;;  %v27029_v37 = vld [vmem:[%s38160_s3 + $0x230] ss:$28 sps:$4 sm:$0xff]  }
 0x4b9   :  { %9358 = vmatprep.subr.bf16.mxu0 %v26986_v3  ;;  %v27032_v38 = vld [vmem:[%s38158_s1 + $0x1ec8] ss:$100 sps:$4 sm:$0xff]  }
 0x4ba   :  { %v27037_v3 = vld [vmem:[%s38160_s3 + $0x26c] ss:$28 sps:$4 sm:$0xff]  }
 0x4bb   :  { %18667 = vmatpush1.bf16.msra.mxu1 %v26981_v39  ;;  %v27040_v39 = vld [vmem:[%s38158_s1 + $0x1f94] ss:$100 sps:$4 sm:$0xff]  }
 0x4bc   :  { %9359 = vmatpush1.bf16.msra.mxu0 %v26984_v40  ;;  %18668 = vmatprep.subr.bf16.mxu1 %v26989_v41  ;;  %v27035_v40 = vld [vmem:[%s38160_s3 + $0x268] ss:$28 sps:$4 sm:$0xff]   ;;  %v27038_v41 = vld [vmem:[%s38158_s1 + $0x1f90] ss:$100 sps:$4 sm:$0xff]  }
 0x4bd   :  { %9369 = vmatprep.subr.bf16.mxu0 %v26992_v43  ;;  %v27043_v43 = vld [vmem:[%s38160_s3 + $0x2a4] ss:$28 sps:$4 sm:$0xff]  }
 0x4bf   :  { %18669 = vmatpush1.bf16.msra.mxu1 %v26987_v44  ;;  %9361 = vmatmul.mubr.bf16.vlgmr.msra.gmra.mrb[24].mxu0 %v29526_v7  ;;  %v26999_v7 = vld [vmem:[%s38160_s3 + $0x118] ss:$28 sps:$4 sm:$0xff]   ;;  %v27041_v44 = vld [vmem:[%s38160_s3 + $0x2a0] ss:$28 sps:$4 sm:$0xff]  }
 0x4c0   :  { %9370 = vmatpush1.bf16.msra.mxu0 %v26990_v45  ;;  %18670 = vmatprep.subr.bf16.mxu1 %v26995_v47  ;;  %v27046_v45 = vld [vmem:[%s38158_s1 + $0x205c] ss:$100 sps:$4 sm:$0xff]  }
 0x4c1   :  { %9371 = vmatprep.subr.bf16.mxu0 %v26998_v49  ;;  %9401 = vmatprep.mubr.bf16.mxu0 %v29613_v34  ;;  %v27044_v47 = vld [vmem:[%s38158_s1 + $0x2058] ss:$100 sps:$4 sm:$0xff]   ;;  %v33164_v49 = vsub.s32 0, %v30767_v16 }
 0x4c3   :  { %18671 = vmatpush1.bf16.msra.mxu1 %v26993_v50  ;;  %v27049_v50 = vld [vmem:[%s38160_s3 + $0x2dc] ss:$28 sps:$4 sm:$0xff]  }
 0x4c4   :  { %9372 = vmatpush1.bf16.msra.mxu0 %v26996_v2  ;;  %18672 = vmatprep.subr.bf16.mxu1 %v27001_v52  ;;  %v27052_v2 = vld [vmem:[%s38158_s1 + $0x2124] ss:$100 sps:$4 sm:$0xff]   ;;  %v27047_v52 = vld [vmem:[%s38160_s3 + $0x2d8] ss:$28 sps:$4 sm:$0xff]  }
 0x4c5   :  { %9373 = vmatprep.subr.bf16.mxu0 %v27004_v55  ;;  %v1323_v55 = vrot.slane %v32976_v61, %v33164_v49  ;;  %v27053_v61 = vld [vmem:[%s38160_s3 + $0x310] ss:$28 sps:$4 sm:$0xff]  }
 0x4c7   :  { %18673 = vmatpush1.bf16.msra.mxu1 %v26999_v7  ;;  %v27050_v7 = vld [vmem:[%s38158_s1 + $0x2120] ss:$100 sps:$4 sm:$0xff]  }
 0x4c8   :  { %9374 = vmatpush1.bf16.msra.mxu0 %v27002_v57  ;;  %18674 = vmatprep.subr.bf16.mxu1 %v27007_v58  ;;  %v27055_v57 = vld [vmem:[%s38160_s3 + $0x314] ss:$28 sps:$4 sm:$0xff]  }
 0x4c9   :  { %9375 = vmatprep.subr.bf16.mxu0 %v27010_v59  ;;  %v27058_v58 = vld [vmem:[%s38158_s1 + $0x21ec] ss:$100 sps:$4 sm:$0xff]   ;;  %v24907_v59 = vadd.f32 %v30617_v18, %v1323_v55  ;;  %v27059_v18 = vld [vmem:[%s38160_s3 + $0x348] ss:$28 sps:$4 sm:$0xff]  }
 0x4ca   :  { %v27095_v55 = vld [vmem:[%s38160_s3 + $0x4d0] ss:$28 sps:$4 sm:$0xff]  }
 0x4cb   :  { %18675 = vmatpush1.bf16.msra.mxu1 %v27005_v60  ;;  %v27056_v60 = vld [vmem:[%s38158_s1 + $0x21e8] ss:$100 sps:$4 sm:$0xff]  }
 0x4cc   :  { %9376 = vmatpush1.bf16.msra.mxu0 %v27008_v62  ;;  %18676 = vmatprep.subr.bf16.mxu1 %v27013_v63  ;;  %v27061_v62 = vld [vmem:[%s38160_s3 + $0x34c] ss:$28 sps:$4 sm:$0xff]   ;;  %v27064_v63 = vld [vmem:[%s38158_s1 + $0x22b4] ss:$100 sps:$4 sm:$0xff]  }
 0x4cd   :  { %9377 = vmatprep.subr.bf16.mxu0 %v27016_v0  ;;  %v9775_v0 = vmax.f32 %v24907_v59, 0.0  ;;  %v29230_v59 = vld [vmem:[%s38157_s0 + $0x18] ss:$0 sps:$4 sm:$0xff]  }
 0x4cf   :  { %18677 = vmatpush1.bf16.msra.mxu1 %v27011_v11  ;;  %v27062_v11 = vld [vmem:[%s38158_s1 + $0x22b0] ss:$100 sps:$4 sm:$0xff]  }
 0x4d0   :  { %9378 = vmatpush1.bf16.msra.mxu0 %v27014_v26  ;;  %18678 = vmatprep.subr.bf16.mxu1 %v27019_v4  ;;  %v27067_v26 = vld [vmem:[%s38160_s3 + $0x384] ss:$28 sps:$4 sm:$0xff]   ;;  %v9778_v4 = vmax.f32 %v30842_v51, 0.0  ;;  %v27073_v51 = vld [vmem:[%s38160_s3 + $0x3bc] ss:$28 sps:$4 sm:$0xff]  }
 0x4d1   :  { %9379 = vmatprep.subr.bf16.mxu0 %v27022_v13  ;;  %v27065_v13 = vld [vmem:[%s38160_s3 + $0x380] ss:$28 sps:$4 sm:$0xff]  }
 0x4d3   :  { %18679 = vmatpush1.bf16.msra.mxu1 %v27017_v14  ;;  %v27070_v14 = vld [vmem:[%s38158_s1 + $0x237c] ss:$100 sps:$4 sm:$0xff]  }
 0x4d4   :  { %9380 = vmatpush1.bf16.msra.mxu0 %v27020_v19  ;;  %18680 = vmatprep.subr.bf16.mxu1 %v27025_v17  ;;  %v27068_v19 = vld [vmem:[%s38158_s1 + $0x2378] ss:$100 sps:$4 sm:$0xff]   ;;  %v33218_v17 = vpack.c.bf16 %v9775_v0, %v9775_v0  ;;  %v27109_v0 = vld [vmem:[%s38158_s1 + $0x1f0] ss:$100 sps:$4 sm:$0xff]  }
 0x4d5   :  { %9381 = vmatprep.subr.bf16.mxu0 %v27028_v20  ;;  %v33223_v20 = vpack.c.bf16 %v9778_v4, %v9778_v4  ;;  %v27110_v4 = vld [vmem:[%s38160_s3 + $0x578] ss:$28 sps:$4 sm:$0xff]  }
 0x4d7   :  { %18681 = vmatpush1.bf16.msra.mxu1 %v27023_v22  ;;  %v27076_v22 = vld [vmem:[%s38158_s1 + $0x2444] ss:$100 sps:$4 sm:$0xff]  }
 0x4d8   :  { %9382 = vmatpush1.bf16.msra.mxu0 %v27026_v23  ;;  %18682 = vmatprep.subr.bf16.mxu1 %v27031_v53  ;;  %v27071_v23 = vld [vmem:[%s38160_s3 + $0x3b8] ss:$28 sps:$4 sm:$0xff]   ;;  %v27074_v53 = vld [vmem:[%s38158_s1 + $0x2440] ss:$100 sps:$4 sm:$0xff]  }
 0x4d9   :  { %9383 = vmatprep.subr.bf16.mxu0 %v27034_v25  ;;  %v27079_v25 = vld [vmem:[%s38160_s3 + $0x3f4] ss:$28 sps:$4 sm:$0xff]  }
 0x4db   :  { %18683 = vmatpush1.bf16.msra.mxu1 %v27029_v37  ;;  %v27082_v37 = vld [vmem:[%s38158_s1 + $0x250c] ss:$100 sps:$4 sm:$0xff]  }
 0x4dc   :  { %9384 = vmatpush1.bf16.msra.mxu0 %v27032_v38  ;;  %18684 = vmatprep.subr.bf16.mxu1 %v27037_v3  ;;  %v27077_v38 = vld [vmem:[%s38160_s3 + $0x3f0] ss:$28 sps:$4 sm:$0xff]  }
 0x4dd   :  { %9385 = vmatprep.subr.bf16.mxu0 %v27040_v39  ;;  %v27080_v3 = vld [vmem:[%s38158_s1 + $0x2508] ss:$100 sps:$4 sm:$0xff]  }
 0x4de   :  { %v27085_v39 = vld [vmem:[%s38160_s3 + $0x42c] ss:$28 sps:$4 sm:$0xff]  }
 0x4df   :  { %18685 = vmatpush1.bf16.msra.mxu1 %v27035_v40  ;;  %v27083_v40 = vld [vmem:[%s38160_s3 + $0x428] ss:$28 sps:$4 sm:$0xff]  }
 0x4e0   :  { %9386 = vmatpush1.bf16.msra.mxu0 %v27038_v41  ;;  %18686 = vmatprep.subr.bf16.mxu1 %v27043_v43  ;;  %v27094_v41 = vld [vmem:[%s38158_s1 + $0x25d4] ss:$100 sps:$4 sm:$0xff]   ;;  %v27088_v43 = vld [vmem:[%s38160_s3 + $0x464] ss:$28 sps:$4 sm:$0xff]  }
 0x4e1   :  { %9387 = vmatprep.subr.bf16.mxu0 %v27046_v45  ;;  %v27098_v45 = vld [vmem:[%s38158_s1 + $0x6a0] ss:$100 sps:$4 sm:$0xff]  }
 0x4e3   :  { %18687 = vmatpush1.bf16.msra.mxu1 %v27041_v44  ;;  %v27092_v44 = vld [vmem:[%s38158_s1 + $0x25d0] ss:$100 sps:$4 sm:$0xff]  }
 0x4e4   :  { %9388 = vmatpush1.bf16.msra.mxu0 %v27044_v47  ;;  %18688 = vmatprep.subr.bf16.mxu1 %v27049_v50  ;;  %v27086_v47 = vld [vmem:[%s38160_s3 + $0x460] ss:$28 sps:$4 sm:$0xff]  }
 0x4e5   :  { %9389 = vmatprep.subr.bf16.mxu0 %v27052_v2  ;;  %v27091_v50 = vld [vmem:[%s38160_s3 + $0x49c] ss:$28 sps:$4 sm:$0xff]  }
 0x4e6   :  { %v27089_v2 = vld [vmem:[%s38160_s3 + $0x498] ss:$28 sps:$4 sm:$0xff]  }
 0x4e7   :  { %18689 = vmatpush1.bf16.msra.mxu1 %v27047_v52  ;;  %v27097_v52 = vld [vmem:[%s38160_s3 + $0x4d4] ss:$28 sps:$4 sm:$0xff]  }
 0x4e8   :  { %9390 = vmatpush1.bf16.msra.mxu0 %v27050_v7  ;;  %18690 = vmatprep.subr.bf16.mxu1 %v27055_v57  ;;  %v27099_v7 = vld [vmem:[%s38158_s1 + $0x60] ss:$100 sps:$4 sm:$0xff]   ;;  %v27102_v57 = vld [vmem:[%s38160_s3 + $0x50c] ss:$28 sps:$4 sm:$0xff]  }
 0x4e9   :  { %9391 = vmatprep.subr.bf16.mxu0 %v27058_v58  ;;  %v27103_v58 = vld [vmem:[%s38158_s1 + $0x768] ss:$100 sps:$4 sm:$0xff]  }
 0x4eb   :  { %18691 = vmatpush1.bf16.msra.mxu1 %v27053_v61  ;;  %v27100_v61 = vld [vmem:[%s38160_s3 + $0x508] ss:$28 sps:$4 sm:$0xff]  }
 0x4ec   :  { %9392 = vmatpush1.bf16.msra.mxu0 %v27056_v60  ;;  %18692 = vmatprep.subr.bf16.mxu1 %v27061_v62  ;;  %v27104_v60 = vld [vmem:[%s38158_s1 + $0x128] ss:$100 sps:$4 sm:$0xff]   ;;  %v27107_v62 = vld [vmem:[%s38160_s3 + $0x544] ss:$28 sps:$4 sm:$0xff]  }
 0x4ed   :  { %9393 = vmatprep.subr.bf16.mxu0 %v27064_v63  ;;  %v27108_v63 = vld [vmem:[%s38158_s1 + $0x830] ss:$100 sps:$4 sm:$0xff]  }
 0x4ef   :  { %18693 = vmatpush1.bf16.msra.mxu1 %v27059_v18  ;;  %v27105_v18 = vld [vmem:[%s38160_s3 + $0x540] ss:$28 sps:$4 sm:$0xff]  }
 0x4f0   :  { %9394 = vmatpush1.bf16.msra.mxu0 %v27062_v11  ;;  %18703 = vmatprep.subr.bf16.mxu1 %v27067_v26  ;;  %v27112_v11 = vld [vmem:[%s38160_s3 + $0x57c] ss:$28 sps:$4 sm:$0xff]  }
 0x4f1   :  { %9395 = vmatprep.subr.bf16.mxu0 %v27070_v14 }
 0x4f2   :  { %18695 = vmatmul.mubr.bf16.vlgmr.msra.gmra.mrb[32].mxu1 %v33218_v17 }
 0x4f3   :  { %18704 = vmatpush1.bf16.msra.mxu1 %v27065_v13  ;;  %18735 = vmatprep.mubr.bf16.mxu1 %v33223_v20 }
 0x4f4   :  { %9396 = vmatpush1.bf16.msra.mxu0 %v27068_v19  ;;  %18705 = vmatprep.subr.bf16.mxu1 %v27073_v51  ;;  %v27114_v19 = vld [vmem:[%s38158_s1 + $0x2b8] ss:$100 sps:$4 sm:$0xff]   ;;  %v27117_v51 = vld [vmem:[%s38160_s3 + $0x5b4] ss:$28 sps:$4 sm:$0xff]  }
 0x4f5   :  { %9397 = vmatprep.subr.bf16.mxu0 %v27076_v22 }
 0x4f7   :  { %18706 = vmatpush1.bf16.msra.mxu1 %v27071_v23  ;;  %v27118_v23 = vld [vmem:[%s38158_s1 + $0x9c0] ss:$100 sps:$4 sm:$0xff]  }
 0x4f8   :  { %9398 = vmatpush1.bf16.msra.mxu0 %v27074_v53  ;;  %18707 = vmatprep.subr.bf16.mxu1 %v27079_v25  ;;  %v27115_v53 = vld [vmem:[%s38160_s3 + $0x5b0] ss:$28 sps:$4 sm:$0xff]   ;;  %v27119_v25 = vld [vmem:[%s38158_s1 + $0x380] ss:$100 sps:$4 sm:$0xff]  }
 0x4f9   :  { %9399 = vmatprep.subr.bf16.mxu0 %v27082_v37  ;;  %v27122_v37 = vld [vmem:[%s38160_s3 + $0x5ec] ss:$28 sps:$4 sm:$0xff]  }
 0x4fb   :  { %18708 = vmatpush1.bf16.msra.mxu1 %v27077_v38  ;;  %v27123_v38 = vld [vmem:[%s38158_s1 + $0xa88] ss:$100 sps:$4 sm:$0xff]  }
 0x4fc   :  { %9400 = vmatpush1.bf16.msra.mxu0 %v27080_v3  ;;  %18709 = vmatprep.subr.bf16.mxu1 %v27085_v39  ;;  %v27120_v3 = vld [vmem:[%s38160_s3 + $0x5e8] ss:$28 sps:$4 sm:$0xff]  }
 0x4fd   :  { %9410 = vmatprep.subr.bf16.mxu0 %v27094_v41  ;;  %v27124_v39 = vld [vmem:[%s38158_s1 + $0x448] ss:$100 sps:$4 sm:$0xff]   ;;  %v27128_v41 = vld [vmem:[%s38158_s1 + $0xb50] ss:$100 sps:$4 sm:$0xff]  }
 0x4ff   :  { %18710 = vmatpush1.bf16.msra.mxu1 %v27083_v40  ;;  %9402 = vmatmul.mubr.bf16.vlgmr.msra.gmra.mrb[24].mxu0 %v29738_v15  ;;  %v27127_v40 = vld [vmem:[%s38160_s3 + $0x624] ss:$28 sps:$4 sm:$0xff]  }
 0x500   :  { %18711 = vmatprep.subr.bf16.mxu1 %v27088_v43  ;;  %9411 = vmatpush1.bf16.msra.mxu0 %v27092_v44  ;;  %v27125_v43 = vld [vmem:[%s38160_s3 + $0x620] ss:$28 sps:$4 sm:$0xff]   ;;  %v27129_v44 = vld [vmem:[%s38158_s1 + $0x510] ss:$100 sps:$4 sm:$0xff]  }
 0x501   :  { %9442 = vmatprep.mubr.bf16.mxu0 %v29260_v21  ;;  %24518 = vmatprep.subr.bf16.mxu0 %v27098_v45  ;;  %v27132_v45 = vld [vmem:[%s38160_s3 + $0x65c] ss:$28 sps:$4 sm:$0xff]  }
 0x503   :  { %18712 = vmatpush1.bf16.msra.mxu1 %v27086_v47  ;;  %v33371_v47 = vsub.s32 5, %v30767_v16 }
 0x504   :  { %18713 = vmatprep.subr.bf16.mxu1 %v27091_v50  ;;  %v27133_v50 = vld [vmem:[%s38158_s1 + $0xc18] ss:$100 sps:$4 sm:$0xff]  }
 0x507   :  { %18714 = vmatpush1.bf16.msra.mxu1 %v27089_v2  ;;  %v27130_v2 = vld [vmem:[%s38160_s3 + $0x658] ss:$28 sps:$4 sm:$0xff]  }
 0x508   :  { %18715 = vmatprep.subr.bf16.mxu1 %v27097_v52  ;;  %v27134_v52 = vld [vmem:[%s38158_s1 + $0x5d8] ss:$100 sps:$4 sm:$0xff]  }
 0x50b   :  { %18716 = vmatpush1.bf16.msra.mxu1 %v27095_v55  ;;  %22999 = vmatmul.mubr.msk.bf16.vlgmr.msra.gmra.mrb[24].mxu0 %vm7643_vm0, %v29230_v59  ;;  %v27137_v55 = vld [vmem:[%s38160_s3 + $0x694] ss:$28 sps:$4 sm:$0xff]   ;;  %v27139_v59 = vld [vmem:[%s38158_s1 + $0x1960] ss:$100 sps:$4 sm:$0xff]  }
 0x50c   :  { %24519 = vmatpush3.bf16.msra.mxu0 %v27099_v7  ;;  %18717 = vmatprep.subr.bf16.mxu1 %v27102_v57  ;;  %v33388_v7 = vld [vmem:[%s38159_s2] sm:$0xff] }
 0x50d   :  { %24520 = vmatprep.subr.bf16.mxu0 %v27103_v58  ;;  %9647 = vmatprep.mubr.bf16.mxu0 %v29458_v48  ;;  %v27113_v48 = vld [vmem:[%s38158_s1 + $0x8f8] ss:$100 sps:$4 sm:$0xff]   ;;  %v1343_v57 = vrot.slane %v33388_v7, %v33371_v47  ;;  %v27138_v58 = vld [vmem:[%s38158_s1 + $0x1fa0] ss:$100 sps:$4 sm:$0xff]  }
 0x50f   :  { %18718 = vmatpush1.bf16.msra.mxu1 %v27100_v61  ;;  %v27135_v61 = vld [vmem:[%s38160_s3 + $0x690] ss:$28 sps:$4 sm:$0xff]  }
 0x510   :  { %24521 = vmatpush3.bf16.msra.mxu0 %v27104_v60  ;;  %18719 = vmatprep.subr.bf16.mxu1 %v27107_v62  ;;  %v27142_v60 = vld [vmem:[%s38160_s3 + $0x6cc] ss:$28 sps:$4 sm:$0xff]   ;;  %v24914_v62 = vadd.f32 %v31449_v5, %v1343_v57  ;;  %v27174_v57 = vld [vmem:[%s38158_s1 + $0x1ed8] ss:$100 sps:$4 sm:$0xff]  }
 0x511   :  { %24522 = vmatprep.subr.bf16.mxu0 %v27108_v63  ;;  %v33321_v26 = vpop.f32.mrb[20].mxu0  ;;  %v27143_v63 = vld [vmem:[%s38158_s1 + $0x2068] ss:$100 sps:$4 sm:$0xff]  }
 0x512   :  { %v33326_v13 = vpop.f32.mrb[21].mxu0  ;;  %v27144_v5 = vld [vmem:[%s38158_s1 + $0x1a28] ss:$100 sps:$4 sm:$0xff]  }
 0x513   :  { %18720 = vmatpush1.bf16.msra.mxu1 %v27105_v18  ;;  %v9120_v14 = vpop.f32.mrb[22].mxu0  ;;  %v9777_v18 = vmax.f32 %v30833_v46, 0.0  ;;  %v27145_v46 = vld [vmem:[%s38160_s3 + $0x700] ss:$28 sps:$4 sm:$0xff]  }
 0x514   :  { %24523 = vmatpush3.bf16.msra.mxu0 %v27109_v0  ;;  %18721 = vmatprep.subr.bf16.mxu1 %v27112_v11  ;;  %v9121_v22 = vpop.f32.mrb[23].mxu0  ;;  %v27140_v0 = vld [vmem:[%s38160_s3 + $0x6c8] ss:$28 sps:$4 sm:$0xff]  }
 0x515   :  { %24524 = vmatprep.subr.bf16.mxu0 %v27113_v48  ;;  %v27147_v11 = vld [vmem:[%s38160_s3 + $0x704] ss:$28 sps:$4 sm:$0xff]   ;;  %v9780_v48 = vmax.f32 %v24914_v62, 0.0  ;;  %v33429_v14 = vpack.c.bf16 %v9777_v18, %v9777_v18  ;;  %v27150_v22 = vld [vmem:[%s38160_s3 + $0x738] ss:$28 sps:$4 sm:$0xff]  }
 0x516   :  { %v27183_v62 = vld [vmem:[%s38160_s3 + $0x88c] ss:$28 sps:$4 sm:$0xff]  }
 0x517   :  { %18722 = vmatpush1.bf16.msra.mxu1 %v27110_v4  ;;  %v27149_v4 = vld [vmem:[%s38158_s1 + $0x1af0] ss:$100 sps:$4 sm:$0xff]   ;;  %v27181_v18 = vld [vmem:[%s38160_s3 + $0x888] ss:$28 sps:$4 sm:$0xff]  }
 0x518   :  { %24525 = vmatpush3.bf16.msra.mxu0 %v27114_v19  ;;  %18723 = vmatprep.subr.bf16.mxu1 %v27117_v51  ;;  %v27152_v19 = vld [vmem:[%s38160_s3 + $0x73c] ss:$28 sps:$4 sm:$0xff]   ;;  %v33434_v51 = vpack.c.bf16 %v9780_v48, %v9780_v48 }
 0x519   :  { %24526 = vmatprep.subr.bf16.mxu0 %v27118_v23  ;;  %v27154_v23 = vld [vmem:[%s38158_s1 + $0x1bb8] ss:$100 sps:$4 sm:$0xff]  }
 0x51a   :  { %v27190_v48 = vld [vmem:[%s38160_s3 + $0x78] ss:$28 sps:$4 sm:$0xff]  }
 0x51b   :  { %18724 = vmatpush1.bf16.msra.mxu1 %v27115_v53  ;;  %v27157_v53 = vld [vmem:[%s38160_s3 + $0x774] ss:$28 sps:$4 sm:$0xff]  }
 0x51c   :  { %24527 = vmatpush3.bf16.msra.mxu0 %v27119_v25  ;;  %18725 = vmatprep.subr.bf16.mxu1 %v27122_v37  ;;  %v27158_v25 = vld [vmem:[%s38158_s1 + $0x22c0] ss:$100 sps:$4 sm:$0xff]   ;;  %v27155_v37 = vld [vmem:[%s38160_s3 + $0x770] ss:$28 sps:$4 sm:$0xff]  }
 0x51d   :  { %24528 = vmatprep.subr.bf16.mxu0 %v27123_v38  ;;  %v27159_v38 = vld [vmem:[%s38158_s1 + $0x1c80] ss:$100 sps:$4 sm:$0xff]  }
 0x51f   :  { %18726 = vmatpush1.bf16.msra.mxu1 %v27120_v3  ;;  %v27162_v3 = vld [vmem:[%s38160_s3 + $0x7ac] ss:$28 sps:$4 sm:$0xff]  }
 0x520   :  { %24529 = vmatpush3.bf16.msra.mxu0 %v27124_v39  ;;  %18727 = vmatprep.subr.bf16.mxu1 %v27127_v40  ;;  %v27163_v39 = vld [vmem:[%s38158_s1 + $0x2388] ss:$100 sps:$4 sm:$0xff]  }
 0x521   :  { %24530 = vmatprep.subr.bf16.mxu0 %v27128_v41  ;;  %v27160_v40 = vld [vmem:[%s38160_s3 + $0x7a8] ss:$28 sps:$4 sm:$0xff]  }
 0x522   :  { %v27164_v41 = vld [vmem:[%s38158_s1 + $0x1d48] ss:$100 sps:$4 sm:$0xff]  }
 0x523   :  { %18728 = vmatpush1.bf16.msra.mxu1 %v27125_v43  ;;  %v27167_v43 = vld [vmem:[%s38160_s3 + $0x7e4] ss:$28 sps:$4 sm:$0xff]  }
 0x524   :  { %24531 = vmatpush3.bf16.msra.mxu0 %v27129_v44  ;;  %18729 = vmatprep.subr.bf16.mxu1 %v27132_v45  ;;  %v27168_v44 = vld [vmem:[%s38158_s1 + $0x2450] ss:$100 sps:$4 sm:$0xff]   ;;  %v27165_v45 = vld [vmem:[%s38160_s3 + $0x7e0] ss:$28 sps:$4 sm:$0xff]  }
 0x525   :  { %24532 = vmatprep.subr.bf16.mxu0 %v27133_v50  ;;  %v27169_v50 = vld [vmem:[%s38158_s1 + $0x1e10] ss:$100 sps:$4 sm:$0xff]  }
 0x527   :  { %18730 = vmatpush1.bf16.msra.mxu1 %v27130_v2  ;;  %v27172_v2 = vld [vmem:[%s38160_s3 + $0x81c] ss:$28 sps:$4 sm:$0xff]  }
 0x528   :  { %24533 = vmatpush3.bf16.msra.mxu0 %v27134_v52  ;;  %18731 = vmatprep.subr.bf16.mxu1 %v27137_v55  ;;  %v27173_v52 = vld [vmem:[%s38158_s1 + $0x2518] ss:$100 sps:$4 sm:$0xff]  }
 0x529   :  { %24562 = vmatprep.subr.bf16.mxu0 %v27138_v58  ;;  %v27170_v55 = vld [vmem:[%s38160_s3 + $0x818] ss:$28 sps:$4 sm:$0xff]  }
 0x52a   :  { %v27177_v58 = vld [vmem:[%s38160_s3 + $0x854] ss:$28 sps:$4 sm:$0xff]  }
 0x52b   :  { %9648 = vmatmul.mubr.bf16.vlgmr.msra.gmra.mrb[28].mxu0 %v29524_v6  ;;  %18732 = vmatpush1.bf16.msra.mxu1 %v27135_v61  ;;  %v27148_v6 = vld [vmem:[%s38158_s1 + $0x2130] ss:$100 sps:$4 sm:$0xff]   ;;  %v27180_v61 = vld [vmem:[%s38160_s3 + $0xc] ss:$28 sps:$4 sm:$0xff]  }
 0x52c   :  { %24563 = vmatpush3.bf16.msra.mxu0 %v27139_v59  ;;  %18733 = vmatprep.subr.bf16.mxu1 %v27142_v60  ;;  %v27175_v59 = vld [vmem:[%s38160_s3 + $0x850] ss:$28 sps:$4 sm:$0xff]   ;;  %v27178_v60 = vld [vmem:[%s38160_s3 + $0x8] ss:$28 sps:$4 sm:$0xff]  }
 0x52d   :  { %24564 = vmatprep.subr.bf16.mxu0 %v27143_v63  ;;  %9727 = vmatprep.mubr.bf16.mxu0 %v29613_v34  ;;  %v27153_v34 = vld [vmem:[%s38158_s1 + $0x21f8] ss:$100 sps:$4 sm:$0xff]   ;;  %v27186_v63 = vld [vmem:[%s38160_s3 + $0x44] ss:$28 sps:$4 sm:$0xff]  }
 0x52f   :  { %18734 = vmatpush1.bf16.msra.mxu1 %v27140_v0  ;;  %v27184_v0 = vld [vmem:[%s38160_s3 + $0x40] ss:$28 sps:$4 sm:$0xff]  }
 0x530   :  { %24565 = vmatpush3.bf16.msra.mxu0 %v27144_v5  ;;  %18744 = vmatprep.subr.bf16.mxu1 %v27147_v11  ;;  %v27189_v5 = vld [vmem:[%s38160_s3 + $0x8c4] ss:$28 sps:$4 sm:$0xff]   ;;  %v27192_v11 = vld [vmem:[%s38160_s3 + $0x7c] ss:$28 sps:$4 sm:$0xff]  }
 0x531   :  { %24566 = vmatprep.subr.bf16.mxu0 %v27148_v6  ;;  %v27198_v6 = vld [vmem:[%s38160_s3 + $0xb4] ss:$28 sps:$4 sm:$0xff]  }
 0x532   :  { %18736 = vmatmul.mubr.bf16.vlgmr.msra.gmra.mrb[32].mxu1 %v33429_v14 }
 0x533   :  { %18745 = vmatpush1.bf16.msra.mxu1 %v27145_v46  ;;  %18776 = vmatprep.mubr.bf16.mxu1 %v33434_v51  ;;  %v27195_v46 = vld [vmem:[%s38160_s3 + $0x8fc] ss:$28 sps:$4 sm:$0xff]  }
 0x534   :  { %24567 = vmatpush3.bf16.msra.mxu0 %v27149_v4  ;;  %18746 = vmatprep.subr.bf16.mxu1 %v27152_v19  ;;  %v27193_v4 = vld [vmem:[%s38160_s3 + $0x8f8] ss:$28 sps:$4 sm:$0xff]   ;;  %v27196_v19 = vld [vmem:[%s38160_s3 + $0xb0] ss:$28 sps:$4 sm:$0xff]  }
 0x535   :  { %24568 = vmatprep.subr.bf16.mxu0 %v27153_v34  ;;  %v27201_v34 = vld [vmem:[%s38160_s3 + $0x934] ss:$28 sps:$4 sm:$0xff]  }
 0x537   :  { %18747 = vmatpush1.bf16.msra.mxu1 %v27150_v22  ;;  %v27204_v22 = vld [vmem:[%s38160_s3 + $0xec] ss:$28 sps:$4 sm:$0xff]  }
 0x538   :  { %24569 = vmatpush3.bf16.msra.mxu0 %v27154_v23  ;;  %18748 = vmatprep.subr.bf16.mxu1 %v27157_v53  ;;  %v27199_v23 = vld [vmem:[%s38160_s3 + $0x930] ss:$28 sps:$4 sm:$0xff]   ;;  %v27202_v53 = vld [vmem:[%s38160_s3 + $0xe8] ss:$28 sps:$4 sm:$0xff]  }
 0x539   :  { %24570 = vmatprep.subr.bf16.mxu0 %v27158_v25  ;;  %v27207_v25 = vld [vmem:[%s38160_s3 + $0x96c] ss:$28 sps:$4 sm:$0xff]  }
 0x53b   :  { %18749 = vmatpush1.bf16.msra.mxu1 %v27155_v37  ;;  %v27210_v37 = vld [vmem:[%s38160_s3 + $0x124] ss:$28 sps:$4 sm:$0xff]  }
 0x53c   :  { %24571 = vmatpush3.bf16.msra.mxu0 %v27159_v38  ;;  %18750 = vmatprep.subr.bf16.mxu1 %v27162_v3  ;;  %v27205_v38 = vld [vmem:[%s38160_s3 + $0x968] ss:$28 sps:$4 sm:$0xff]   ;;  %v27208_v3 = vld [vmem:[%s38160_s3 + $0x120] ss:$28 sps:$4 sm:$0xff]  }
 0x53d   :  { %24572 = vmatprep.subr.bf16.mxu0 %v27163_v39  ;;  %v27213_v39 = vld [vmem:[%s38160_s3 + $0x9a4] ss:$28 sps:$4 sm:$0xff]  }
 0x53f   :  { %18751 = vmatpush1.bf16.msra.mxu1 %v27160_v40 }
 0x540   :  { %24573 = vmatpush3.bf16.msra.mxu0 %v27164_v41  ;;  %18752 = vmatprep.subr.bf16.mxu1 %v27167_v43  ;;  %v27216_v41 = vld [vmem:[%s38160_s3 + $0x15c] ss:$28 sps:$4 sm:$0xff]  }
 0x541   :  { %24574 = vmatprep.subr.bf16.mxu0 %v27168_v44  ;;  %v27211_v44 = vld [vmem:[%s38160_s3 + $0x9a0] ss:$28 sps:$4 sm:$0xff]  }
 0x543   :  { %18753 = vmatpush1.bf16.msra.mxu1 %v27165_v45 }
 0x544   :  { %24575 = vmatpush3.bf16.msra.mxu0 %v27169_v50  ;;  %18754 = vmatprep.subr.bf16.mxu1 %v27172_v2  ;;  %v33583_v50 = vsub.s32 4, %v30767_v16 }
 0x545   :  { %24576 = vmatprep.subr.bf16.mxu0 %v27173_v52  ;;  %v27214_v52 = vld [vmem:[%s38160_s3 + $0x158] ss:$28 sps:$4 sm:$0xff]  }
 0x547   :  { %18755 = vmatpush1.bf16.msra.mxu1 %v27170_v55  ;;  %v27219_v55 = vld [vmem:[%s38160_s3 + $0x9dc] ss:$28 sps:$4 sm:$0xff]  }
 0x548   :  { %24577 = vmatpush3.bf16.msra.mxu0 %v27174_v57  ;;  %18756 = vmatprep.subr.bf16.mxu1 %v27177_v58  ;;  %v33592_v57 = vsub.s32 7, %v30767_v16  ;;  %v27222_v58 = vld [vmem:[%s38160_s3 + $0x194] ss:$28 sps:$4 sm:$0xff]  }
 0x549   :  { %19195 = vmatprep.subr.bf16.mxu0 %v27180_v61  ;;  %v27217_v61 = vld [vmem:[%s38160_s3 + $0x9d8] ss:$28 sps:$4 sm:$0xff]  }
 0x54b   :  { %9728 = vmatmul.mubr.bf16.vlgmr.msra.gmra.mrb[32].mxu0 %v29738_v15  ;;  %18757 = vmatpush1.bf16.msra.mxu1 %v27175_v59  ;;  %v27187_v15 = vld [vmem:[%s38160_s3 + $0x8c0] ss:$28 sps:$4 sm:$0xff]   ;;  %v1339_v59 = vrot.slane %v33388_v7, %v33583_v50 }
 0x54c   :  { %19196 = vmatpush1.bf16.msra.mxu0 %v27178_v60  ;;  %19227 = vmatprep.mubr.bf16.mxu0 %v33015_v24  ;;  %v27220_v60 = vld [vmem:[%s38160_s3 + $0x190] ss:$28 sps:$4 sm:$0xff]  }
 0x54d   :  { %18758 = vmatprep.subr.bf16.mxu1 %v27183_v62  ;;  %19197 = vmatprep.subr.bf16.mxu0 %v27186_v63  ;;  %v27225_v62 = vld [vmem:[%s38160_s3 + $0xa14] ss:$28 sps:$4 sm:$0xff]   ;;  %v1351_v63 = vrot.slane %v33388_v7, %v33592_v57  ;;  %v27231_v7 = vld [vmem:[%s38160_s3 + $0xa4c] ss:$28 sps:$4 sm:$0xff]  }
 0x54f   :  { %18759 = vmatpush1.bf16.msra.mxu1 %v27181_v18  ;;  %v27228_v18 = vld [vmem:[%s38160_s3 + $0x1cc] ss:$28 sps:$4 sm:$0xff]  }
 0x550   :  { %19198 = vmatpush1.bf16.msra.mxu0 %v27184_v0  ;;  %18760 = vmatprep.subr.bf16.mxu1 %v27189_v5  ;;  %v27223_v0 = vld [vmem:[%s38160_s3 + $0xa10] ss:$28 sps:$4 sm:$0xff]   ;;  %v24913_v5 = vadd.f32 %v31447_v54, %v1339_v59  ;;  %v27229_v54 = vld [vmem:[%s38160_s3 + $0xa48] ss:$28 sps:$4 sm:$0xff]  }
 0x551   :  { %19199 = vmatprep.subr.bf16.mxu0 %v27192_v11  ;;  %v27226_v11 = vld [vmem:[%s38160_s3 + $0x1c8] ss:$28 sps:$4 sm:$0xff]  }
 0x553   :  { %18761 = vmatpush1.bf16.msra.mxu1 %v27187_v15  ;;  %v24916_v15 = vadd.f32 %v31057_v10, %v1351_v63  ;;  %v27237_v10 = vld [vmem:[%s38160_s3 + $0xa84] ss:$28 sps:$4 sm:$0xff]  }
 0x554   :  { %19200 = vmatpush1.bf16.msra.mxu0 %v27190_v48  ;;  %18762 = vmatprep.subr.bf16.mxu1 %v27195_v46  ;;  %v27234_v48 = vld [vmem:[%s38160_s3 + $0x204] ss:$28 sps:$4 sm:$0xff]   ;;  %v9779_v46 = vmax.f32 %v24913_v5, 0.0 }
 0x555   :  { %19201 = vmatprep.subr.bf16.mxu0 %v27198_v6  ;;  %v27232_v6 = vld [vmem:[%s38160_s3 + $0x200] ss:$28 sps:$4 sm:$0xff]  }
 0x556   :  { %v27259_v63 = vld [vmem:[%s38160_s3 + $0xb60] ss:$28 sps:$4 sm:$0xff]  }
 0x557   :  { %18763 = vmatpush1.bf16.msra.mxu1 %v27193_v4  ;;  %v9782_v4 = vmax.f32 %v24916_v15, 0.0  ;;  %v27270_v15 = vld [vmem:[%s38160_s3 + $0x354] ss:$28 sps:$4 sm:$0xff]  }
 0x558   :  { %19202 = vmatpush1.bf16.msra.mxu0 %v27196_v19  ;;  %18764 = vmatprep.subr.bf16.mxu1 %v27201_v34  ;;  %v27235_v19 = vld [vmem:[%s38160_s3 + $0xa80] ss:$28 sps:$4 sm:$0xff]  }
 0x559   :  { %19203 = vmatprep.subr.bf16.mxu0 %v27204_v22  ;;  %v27240_v34 = vld [vmem:[%s38160_s3 + $0x23c] ss:$28 sps:$4 sm:$0xff]  }
 0x55a   :  { %v27238_v22 = vld [vmem:[%s38160_s3 + $0x238] ss:$28 sps:$4 sm:$0xff]  }
 0x55b   :  { %18765 = vmatpush1.bf16.msra.mxu1 %v27199_v23  ;;  %v33645_v23 = vpack.c.bf16 %v9779_v46, %v9779_v46  ;;  %v27273_v46 = vld [vmem:[%s38160_s3 + $0xbd4] ss:$28 sps:$4 sm:$0xff]  }
 0x55c   :  { %19204 = vmatpush1.bf16.msra.mxu0 %v27202_v53  ;;  %18766 = vmatprep.subr.bf16.mxu1 %v27207_v25  ;;  %v27243_v53 = vld [vmem:[%s38160_s3 + $0xabc] ss:$28 sps:$4 sm:$0xff]   ;;  %v33650_v25 = vpack.c.bf16 %v9782_v4, %v9782_v4 }
 0x55d   :  { %v33572_v40 = vpop.f32.mrb[20].mxu1  ;;  %19205 = vmatprep.subr.bf16.mxu0 %v27210_v37  ;;  %v27246_v37 = vld [vmem:[%s38160_s3 + $0x274] ss:$28 sps:$4 sm:$0xff]  }
 0x55e   :  { %v33577_v43 = vpop.f32.mrb[21].mxu1 }
 0x55f   :  { %18767 = vmatpush1.bf16.msra.mxu1 %v27205_v38  ;;  %v9612_v45 = vpop.f32.mrb[22].mxu1  ;;  %v27241_v38 = vld [vmem:[%s38160_s3 + $0xab8] ss:$28 sps:$4 sm:$0xff]  }
 0x560   :  { %19206 = vmatpush1.bf16.msra.mxu0 %v27208_v3  ;;  %v9613_v2 = vpop.f32.mrb[23].mxu1  ;;  %18768 = vmatprep.subr.bf16.mxu1 %v27213_v39  ;;  %v27244_v3 = vld [vmem:[%s38160_s3 + $0x270] ss:$28 sps:$4 sm:$0xff]   ;;  %v27250_v45 = vld [vmem:[%s38160_s3 + $0x2a8] ss:$28 sps:$4 sm:$0xff]  }
 0x561   :  { %19207 = vmatprep.subr.bf16.mxu0 %v27216_v41  ;;  %v27249_v39 = vld [vmem:[%s38160_s3 + $0xaf4] ss:$28 sps:$4 sm:$0xff]   ;;  %v27252_v41 = vld [vmem:[%s38160_s3 + $0x2ac] ss:$28 sps:$4 sm:$0xff]  }
 0x562   :  { %v27255_v2 = vld [vmem:[%s38160_s3 + $0xb2c] ss:$28 sps:$4 sm:$0xff]  }
 0x563   :  { %18769 = vmatpush1.bf16.msra.mxu1 %v27211_v44  ;;  %v27247_v44 = vld [vmem:[%s38160_s3 + $0xaf0] ss:$28 sps:$4 sm:$0xff]  }
 0x564   :  { %19208 = vmatpush1.bf16.msra.mxu0 %v27214_v52  ;;  %18770 = vmatprep.subr.bf16.mxu1 %v27219_v55  ;;  %v27253_v52 = vld [vmem:[%s38160_s3 + $0xb28] ss:$28 sps:$4 sm:$0xff]  }
 0x565   :  { %19209 = vmatprep.subr.bf16.mxu0 %v27222_v58  ;;  %v27258_v55 = vld [vmem:[%s38160_s3 + $0x2e4] ss:$28 sps:$4 sm:$0xff]  }
 0x566   :  { %v27256_v58 = vld [vmem:[%s38160_s3 + $0x2e0] ss:$28 sps:$4 sm:$0xff]  }
 0x567   :  { %18771 = vmatpush1.bf16.msra.mxu1 %v27217_v61  ;;  %v27261_v61 = vld [vmem:[%s38160_s3 + $0xb64] ss:$28 sps:$4 sm:$0xff]  }
 0x568   :  { %19210 = vmatpush1.bf16.msra.mxu0 %v27220_v60  ;;  %18772 = vmatprep.subr.bf16.mxu1 %v27225_v62  ;;  %v27264_v60 = vld [vmem:[%s38160_s3 + $0x31c] ss:$28 sps:$4 sm:$0xff]  }
 0x569   :  { %19211 = vmatprep.subr.bf16.mxu0 %v27228_v18  ;;  %v27262_v18 = vld [vmem:[%s38160_s3 + $0x318] ss:$28 sps:$4 sm:$0xff]  }
 0x56b   :  { %18773 = vmatpush1.bf16.msra.mxu1 %v27223_v0 }
 0x56c   :  { %19212 = vmatpush1.bf16.msra.mxu0 %v27226_v11  ;;  %18774 = vmatprep.subr.bf16.mxu1 %v27231_v7  ;;  %v27267_v7 = vld [vmem:[%s38160_s3 + $0xb9c] ss:$28 sps:$4 sm:$0xff]  }
 0x56d   :  { %19213 = vmatprep.subr.bf16.mxu0 %v27234_v48  ;;  %v27265_v48 = vld [vmem:[%s38160_s3 + $0xb98] ss:$28 sps:$4 sm:$0xff]  }
 0x56f   :  { %18775 = vmatpush1.bf16.msra.mxu1 %v27229_v54  ;;  %v27268_v54 = vld [vmem:[%s38160_s3 + $0x350] ss:$28 sps:$4 sm:$0xff]  }
 0x570   :  { %19214 = vmatpush1.bf16.msra.mxu0 %v27232_v6  ;;  %18785 = vmatprep.subr.bf16.mxu1 %v27237_v10  ;;  %v27276_v10 = vld [vmem:[%s38160_s3 + $0x38c] ss:$28 sps:$4 sm:$0xff]  }
 0x571   :  { %19215 = vmatprep.subr.bf16.mxu0 %v27240_v34 }
 0x572   :  { %18777 = vmatmul.mubr.bf16.vlgmr.msra.gmra.mrb[32].mxu1 %v33645_v23 }
 0x573   :  { %18786 = vmatpush1.bf16.msra.mxu1 %v27235_v19  ;;  %18817 = vmatprep.mubr.bf16.mxu1 %v33650_v25  ;;  %v27271_v19 = vld [vmem:[%s38160_s3 + $0xbd0] ss:$28 sps:$4 sm:$0xff]  }
 0x574   :  { %19216 = vmatpush1.bf16.msra.mxu0 %v27238_v22  ;;  %18787 = vmatprep.subr.bf16.mxu1 %v27243_v53  ;;  %v27274_v53 = vld [vmem:[%s38160_s3 + $0x388] ss:$28 sps:$4 sm:$0xff]  }
 0x575   :  { %19217 = vmatprep.subr.bf16.mxu0 %v27246_v37  ;;  %v27279_v37 = vld [vmem:[%s38160_s3 + $0xc0c] ss:$28 sps:$4 sm:$0xff]  }
 0x577   :  { %18788 = vmatpush1.bf16.msra.mxu1 %v27241_v38  ;;  %v27282_v38 = vld [vmem:[%s38160_s3 + $0x3c4] ss:$28 sps:$4 sm:$0xff]  }
 0x578   :  { %19218 = vmatpush1.bf16.msra.mxu0 %v27244_v3  ;;  %18789 = vmatprep.subr.bf16.mxu1 %v27249_v39  ;;  %v27277_v3 = vld [vmem:[%s38160_s3 + $0xc08] ss:$28 sps:$4 sm:$0xff]   ;;  %v27280_v39 = vld [vmem:[%s38160_s3 + $0x3c0] ss:$28 sps:$4 sm:$0xff]  }
 0x579   :  { %19219 = vmatprep.subr.bf16.mxu0 %v27252_v41  ;;  %v27285_v41 = vld [vmem:[%s38160_s3 + $0xc44] ss:$28 sps:$4 sm:$0xff]  }
 0x57b   :  { %18790 = vmatpush1.bf16.msra.mxu1 %v27247_v44  ;;  %v27288_v44 = vld [vmem:[%s38160_s3 + $0x3fc] ss:$28 sps:$4 sm:$0xff]  }
 0x57c   :  { %19220 = vmatpush1.bf16.msra.mxu0 %v27250_v45  ;;  %18791 = vmatprep.subr.bf16.mxu1 %v27255_v2  ;;  %v27283_v45 = vld [vmem:[%s38160_s3 + $0xc40] ss:$28 sps:$4 sm:$0xff]   ;;  %v27286_v2 = vld [vmem:[%s38160_s3 + $0x3f8] ss:$28 sps:$4 sm:$0xff]  }
 0x57d   :  { %v24556_v59 = vpop.f32.mrb[24].mxu1  ;;  %19221 = vmatprep.subr.bf16.mxu0 %v27258_v55  ;;  %v27294_v55 = vld [vmem:[%s38160_s3 + $0x434] ss:$28 sps:$4 sm:$0xff]  }
 0x57e   :  { %v24557_v62 = vpop.f32.mrb[25].mxu1 }
 0x57f   :  { %v33699_v0 = vadd.f32 %v24557_v62, %v24556_v59  ;;  %18792 = vmatpush1.bf16.msra.mxu1 %v27253_v52  ;;  %v24559_v5 = vpop.f32.mrb[26].mxu1  ;;  %v27291_v52 = vld [vmem:[%s38160_s3 + $0xc7c] ss:$28 sps:$4 sm:$0xff]   ;;  %v27297_v59 = vld [vmem:[%s38160_s3 + $0xcb4] ss:$28 sps:$4 sm:$0xff]  }
 0x580   :  { %19222 = vmatpush1.bf16.msra.mxu0 %v27256_v58  ;;  %v24560_v11 = vpop.f32.mrb[27].mxu1  ;;  %18793 = vmatprep.subr.bf16.mxu1 %v27261_v61  ;;  %v27289_v58 = vld [vmem:[%s38160_s3 + $0xc78] ss:$28 sps:$4 sm:$0xff]   ;;  %v27292_v61 = vld [vmem:[%s38160_s3 + $0x430] ss:$28 sps:$4 sm:$0xff]  }
 0x581   :  { %19223 = vmatprep.subr.bf16.mxu0 %v27264_v60  ;;  %v27300_v60 = vld [vmem:[%s38160_s3 + $0x46c] ss:$28 sps:$4 sm:$0xff]   ;;  %v27306_v11 = vld [vmem:[%s38160_s3 + $0x4a4] ss:$28 sps:$4 sm:$0xff]  }
 0x582   :  { %v27295_v62 = vld [vmem:[%s38160_s3 + $0xcb0] ss:$28 sps:$4 sm:$0xff]   ;;  %v27301_v5 = vld [vmem:[%s38160_s3 + $0xce8] ss:$28 sps:$4 sm:$0xff]  }
 0x583   :  { %18794 = vmatpush1.bf16.msra.mxu1 %v27259_v63  ;;  %v27298_v63 = vld [vmem:[%s38160_s3 + $0x468] ss:$28 sps:$4 sm:$0xff]  }
 0x584   :  { %19224 = vmatpush1.bf16.msra.mxu0 %v27262_v18  ;;  %18795 = vmatprep.subr.bf16.mxu1 %v27267_v7  ;;  %v27303_v18 = vld [vmem:[%s38160_s3 + $0xcec] ss:$28 sps:$4 sm:$0xff]   ;;  %v27304_v7 = vld [vmem:[%s38160_s3 + $0x4a0] ss:$28 sps:$4 sm:$0xff]  }
 0x585   :  { %v33716_v6 = vpop.f32.mrb[28].mxu1  ;;  %19225 = vmatprep.subr.bf16.mxu0 %v27270_v15  ;;  %v27309_v15 = vld [vmem:[%s38160_s3 + $0xd24] ss:$28 sps:$4 sm:$0xff]  }
 0x586   :  { %v24885_v4 = vpop.f32.mrb[29].mxu1 }
 0x587   :  { %18796 = vmatpush1.bf16.msra.mxu1 %v27265_v48  ;;  %v9772_v34 = vpop.f32.mrb[30].mxu1  ;;  %v27307_v48 = vld [vmem:[%s38160_s3 + $0xd20] ss:$28 sps:$4 sm:$0xff]  }
 0x588   :  { %19226 = vmatpush1.bf16.msra.mxu0 %v27268_v54  ;;  %v24886_v22 = vpop.f32.mrb[31].mxu1  ;;  %18797 = vmatprep.subr.bf16.mxu1 %v27273_v46  ;;  %v27312_v54 = vld [vmem:[%s38160_s3 + $0x4dc] ss:$28 sps:$4 sm:$0xff]   ;;  %v27318_v34 = vld [vmem:[%s38160_s3 + $0x514] ss:$28 sps:$4 sm:$0xff]  }
 0x589   :  { %19236 = vmatprep.subr.bf16.mxu0 %v27276_v10  ;;  %v27310_v46 = vld [vmem:[%s38160_s3 + $0x4d8] ss:$28 sps:$4 sm:$0xff]   ;;  %v33802_v10 = vsub.s32 6, %v30767_v16  ;;  %v33816_v16 = vld [vmem:[%s38159_s2 + $0x8] sm:$0xff] }
 0x58a   :  { %v27315_v4 = vld [vmem:[%s38160_s3 + $0xd5c] ss:$28 sps:$4 sm:$0xff]   ;;  %v27316_v22 = vld [vmem:[%s38160_s3 + $0x510] ss:$28 sps:$4 sm:$0xff]  }
 0x58b   :  { %18798 = vmatpush1.bf16.msra.mxu1 %v27271_v19  ;;  %19228 = vmatmul.mubr.bf16.vlgmr.msra.gmra.mrb[36].mxu0 %v33218_v17  ;;  %v27313_v19 = vld [vmem:[%s38160_s3 + $0xd58] ss:$28 sps:$4 sm:$0xff]  }
 0x58c   :  { %19237 = vmatpush1.bf16.msra.mxu0 %v27274_v53  ;;  %19268 = vmatprep.mubr.bf16.mxu0 %v33223_v20  ;;  %v29232_v53 = vld [vmem:[%s38159_s2] sm:$0xff] }
 0x58d   :  { %18799 = vmatprep.subr.bf16.mxu1 %v27279_v37  ;;  %19238 = vmatprep.subr.bf16.mxu0 %v27282_v38  ;;  %v1347_v37 = vrot.slane %v29232_v53, %v33802_v10  ;;  %v27321_v38 = vld [vmem:[%s38160_s3 + $0xd94] ss:$28 sps:$4 sm:$0xff]   ;;  %v27349_v53 = vld [vmem:[%s38160_s3 + $0xea8] ss:$28 sps:$4 sm:$0xff]  }
 0x58f   :  { %18800 = vmatpush1.bf16.msra.mxu1 %v27277_v3  ;;  %v1359_v3 = vrot.slane %v33816_v16, %v32959_v56 }
 0x590   :  { %19239 = vmatpush1.bf16.msra.mxu0 %v27280_v39  ;;  %18801 = vmatprep.subr.bf16.mxu1 %v27285_v41  ;;  %v27324_v39 = vld [vmem:[%s38160_s3 + $0x54c] ss:$28 sps:$4 sm:$0xff]  }
 0x591   :  { %19240 = vmatprep.subr.bf16.mxu0 %v27288_v44  ;;  %v27319_v41 = vld [vmem:[%s38160_s3 + $0xd90] ss:$28 sps:$4 sm:$0xff]   ;;  %v24915_v44 = vadd.f32 %v31055_v9, %v1347_v37  ;;  %v27325_v9 = vld [vmem:[%s38160_s3 + $0xdc8] ss:$28 sps:$4 sm:$0xff]   ;;  %v27352_v37 = vld [vmem:[%s38160_s3 + $0x660] ss:$28 sps:$4 sm:$0xff]  }
 0x593   :  { %18802 = vmatpush1.bf16.msra.mxu1 %v27283_v45  ;;  %v27322_v45 = vld [vmem:[%s38160_s3 + $0x548] ss:$28 sps:$4 sm:$0xff]  }
 0x594   :  { %19241 = vmatpush1.bf16.msra.mxu0 %v27286_v2  ;;  %18803 = vmatprep.subr.bf16.mxu1 %v27291_v52  ;;  %v27327_v2 = vld [vmem:[%s38160_s3 + $0xdcc] ss:$28 sps:$4 sm:$0xff]   ;;  %v24918_v52 = vadd.f32 %v32068_v28, %v1359_v3  ;;  %v27333_v28 = vld [vmem:[%s38160_s3 + $0xe04] ss:$28 sps:$4 sm:$0xff]   ;;  %v27360_v3 = vld [vmem:[%s38160_s3 + $0x69c] ss:$28 sps:$4 sm:$0xff]  }
 0x595   :  { %19242 = vmatprep.subr.bf16.mxu0 %v27294_v55  ;;  %v27330_v55 = vld [vmem:[%s38160_s3 + $0x584] ss:$28 sps:$4 sm:$0xff]  }
 0x597   :  { %18804 = vmatpush1.bf16.msra.mxu1 %v27289_v58  ;;  %v9781_v58 = vmax.f32 %v24915_v44, 0.0  ;;  %v27363_v44 = vld [vmem:[%s38160_s3 + $0xf1c] ss:$28 sps:$4 sm:$0xff]  }
 0x598   :  { %19243 = vmatpush1.bf16.msra.mxu0 %v27292_v61  ;;  %18805 = vmatprep.subr.bf16.mxu1 %v27297_v59  ;;  %v27328_v61 = vld [vmem:[%s38160_s3 + $0x580] ss:$28 sps:$4 sm:$0xff]   ;;  %v9784_v59 = vmax.f32 %v24918_v52, 0.0  ;;  %v27364_v52 = vld [vmem:[%s38160_s3 + $0x6d0] ss:$28 sps:$4 sm:$0xff]  }
 0x599   :  { %19244 = vmatprep.subr.bf16.mxu0 %v27300_v60  ;;  %v27331_v60 = vld [vmem:[%s38160_s3 + $0xe00] ss:$28 sps:$4 sm:$0xff]  }
 0x59b   :  { %18806 = vmatpush1.bf16.msra.mxu1 %v27295_v62  ;;  %v27336_v62 = vld [vmem:[%s38160_s3 + $0x5bc] ss:$28 sps:$4 sm:$0xff]  }
 0x59c   :  { %19245 = vmatpush1.bf16.msra.mxu0 %v27298_v63  ;;  %18807 = vmatprep.subr.bf16.mxu1 %v27303_v18  ;;  %v27334_v63 = vld [vmem:[%s38160_s3 + $0x5b8] ss:$28 sps:$4 sm:$0xff]   ;;  %v33865_v18 = vpack.c.bf16 %v9781_v58, %v9781_v58  ;;  %v27367_v58 = vld [vmem:[%s38160_s3 + $0xf50] ss:$28 sps:$4 sm:$0xff]  }
 0x59d   :  { %19246 = vmatprep.subr.bf16.mxu0 %v27306_v11  ;;  %v33870_v11 = vpack.c.bf16 %v9784_v59, %v9784_v59  ;;  %v27378_v59 = vld [vmem:[%s38160_s3 + $0x744] ss:$28 sps:$4 sm:$0xff]  }
 0x59f   :  { %18808 = vmatpush1.bf16.msra.mxu1 %v27301_v5  ;;  %v27339_v5 = vld [vmem:[%s38160_s3 + $0xe3c] ss:$28 sps:$4 sm:$0xff]  }
 0x5a0   :  { %19247 = vmatpush1.bf16.msra.mxu0 %v27304_v7  ;;  %18809 = vmatprep.subr.bf16.mxu1 %v27309_v15  ;;  %v27342_v7 = vld [vmem:[%s38160_s3 + $0x5f4] ss:$28 sps:$4 sm:$0xff]  }
 0x5a1   :  { %19248 = vmatprep.subr.bf16.mxu0 %v27312_v54  ;;  %v27337_v15 = vld [vmem:[%s38160_s3 + $0xe38] ss:$28 sps:$4 sm:$0xff]  }
 0x5a2   :  { %v27345_v54 = vld [vmem:[%s38160_s3 + $0xe74] ss:$28 sps:$4 sm:$0xff]  }
 0x5a3   :  { %18810 = vmatpush1.bf16.msra.mxu1 %v27307_v48  ;;  %v27340_v48 = vld [vmem:[%s38160_s3 + $0x5f0] ss:$28 sps:$4 sm:$0xff]  }
 0x5a4   :  { %19249 = vmatpush1.bf16.msra.mxu0 %v27310_v46  ;;  %18811 = vmatprep.subr.bf16.mxu1 %v27315_v4  ;;  %v27348_v46 = vld [vmem:[%s38160_s3 + $0x62c] ss:$28 sps:$4 sm:$0xff]  }
 0x5a5   :  { %19250 = vmatprep.subr.bf16.mxu0 %v27318_v34  ;;  %v27343_v4 = vld [vmem:[%s38160_s3 + $0xe70] ss:$28 sps:$4 sm:$0xff]  }
 0x5a6   :  { %v27351_v34 = vld [vmem:[%s38160_s3 + $0xeac] ss:$28 sps:$4 sm:$0xff]  }
 0x5a7   :  { %18812 = vmatpush1.bf16.msra.mxu1 %v27313_v19  ;;  %v27346_v19 = vld [vmem:[%s38160_s3 + $0x628] ss:$28 sps:$4 sm:$0xff]  }
 0x5a8   :  { %19251 = vmatpush1.bf16.msra.mxu0 %v27316_v22  ;;  %18813 = vmatprep.subr.bf16.mxu1 %v27321_v38  ;;  %v27354_v22 = vld [vmem:[%s38160_s3 + $0x664] ss:$28 sps:$4 sm:$0xff]  }
 0x5a9   :  { %19252 = vmatprep.subr.bf16.mxu0 %v27324_v39  ;;  %v27357_v38 = vld [vmem:[%s38160_s3 + $0xee4] ss:$28 sps:$4 sm:$0xff]  }
 0x5aa   :  { %v27355_v39 = vld [vmem:[%s38160_s3 + $0xee0] ss:$28 sps:$4 sm:$0xff]  }
 0x5ab   :  { %18814 = vmatpush1.bf16.msra.mxu1 %v27319_v41  ;;  %v27358_v41 = vld [vmem:[%s38160_s3 + $0x698] ss:$28 sps:$4 sm:$0xff]  }
 0x5ac   :  { %19253 = vmatpush1.bf16.msra.mxu0 %v27322_v45  ;;  %18815 = vmatprep.subr.bf16.mxu1 %v27327_v2  ;;  %v27366_v45 = vld [vmem:[%s38160_s3 + $0x6d4] ss:$28 sps:$4 sm:$0xff]  }
 0x5ad   :  { %19254 = vmatprep.subr.bf16.mxu0 %v27330_v55  ;;  %v27361_v2 = vld [vmem:[%s38160_s3 + $0xf18] ss:$28 sps:$4 sm:$0xff]  }
 0x5ae   :  { %v27369_v55 = vld [vmem:[%s38160_s3 + $0xf54] ss:$28 sps:$4 sm:$0xff]  }
 0x5af   :  { %18816 = vmatpush1.bf16.msra.mxu1 %v27325_v9  ;;  %v27372_v9 = vld [vmem:[%s38160_s3 + $0x70c] ss:$28 sps:$4 sm:$0xff]  }
 0x5b0   :  { %19255 = vmatpush1.bf16.msra.mxu0 %v27328_v61  ;;  %18826 = vmatprep.subr.bf16.mxu1 %v27333_v28  ;;  %v27370_v61 = vld [vmem:[%s38160_s3 + $0x708] ss:$28 sps:$4 sm:$0xff]  }
 0x5b1   :  { %19256 = vmatprep.subr.bf16.mxu0 %v27336_v62  ;;  %v27375_v28 = vld [vmem:[%s38160_s3 + $0xf8c] ss:$28 sps:$4 sm:$0xff]   ;;  %v27376_v62 = vld [vmem:[%s38160_s3 + $0x740] ss:$28 sps:$4 sm:$0xff]  }
 0x5b2   :  { %18818 = vmatmul.mubr.bf16.vlgmr.msra.gmra.mrb[32].mxu1 %v33865_v18 }
 0x5b3   :  { %18827 = vmatpush1.bf16.msra.mxu1 %v27331_v60  ;;  %18858 = vmatprep.mubr.bf16.mxu1 %v33870_v11  ;;  %v27373_v60 = vld [vmem:[%s38160_s3 + $0xf88] ss:$28 sps:$4 sm:$0xff]  }
 0x5b4   :  { %19257 = vmatpush1.bf16.msra.mxu0 %v27334_v63  ;;  %18828 = vmatprep.subr.bf16.mxu1 %v27339_v5  ;;  %v27381_v63 = vld [vmem:[%s38160_s3 + $0xfc4] ss:$28 sps:$4 sm:$0xff]   ;;  %v27384_v5 = vld [vmem:[%s38160_s3 + $0x77c] ss:$28 sps:$4 sm:$0xff]  }
 0x5b5   :  { %19258 = vmatprep.subr.bf16.mxu0 %v27342_v7  ;;  %v27379_v7 = vld [vmem:[%s38160_s3 + $0xfc0] ss:$28 sps:$4 sm:$0xff]  }
 0x5b7   :  { %18829 = vmatpush1.bf16.msra.mxu1 %v27337_v15  ;;  %v27382_v15 = vld [vmem:[%s38160_s3 + $0x778] ss:$28 sps:$4 sm:$0xff]  }
 0x5b8   :  { %19259 = vmatpush1.bf16.msra.mxu0 %v27340_v48  ;;  %18830 = vmatprep.subr.bf16.mxu1 %v27345_v54  ;;  %v27387_v48 = vld [vmem:[%s38160_s3 + $0xffc] ss:$28 sps:$4 sm:$0xff]   ;;  %v27390_v54 = vld [vmem:[%s38160_s3 + $0x7b4] ss:$28 sps:$4 sm:$0xff]  }
 0x5b9   :  { %19260 = vmatprep.subr.bf16.mxu0 %v27348_v46  ;;  %v27385_v46 = vld [vmem:[%s38160_s3 + $0xff8] ss:$28 sps:$4 sm:$0xff]  }
 0x5bb   :  { %18831 = vmatpush1.bf16.msra.mxu1 %v27343_v4  ;;  %v27388_v4 = vld [vmem:[%s38160_s3 + $0x7b0] ss:$28 sps:$4 sm:$0xff]  }
 0x5bc   :  { %19261 = vmatpush1.bf16.msra.mxu0 %v27346_v19  ;;  %18832 = vmatprep.subr.bf16.mxu1 %v27351_v34  ;;  %v27393_v19 = vld [vmem:[%s38160_s3 + $0x1034] ss:$28 sps:$4 sm:$0xff]   ;;  %v27396_v34 = vld [vmem:[%s38160_s3 + $0x7ec] ss:$28 sps:$4 sm:$0xff]  }
 0x5bd   :  { %19262 = vmatprep.subr.bf16.mxu0 %v27354_v22  ;;  %v27391_v22 = vld [vmem:[%s38160_s3 + $0x1030] ss:$28 sps:$4 sm:$0xff]  }
 0x5bf   :  { %18833 = vmatpush1.bf16.msra.mxu1 %v27349_v53  ;;  %v27394_v53 = vld [vmem:[%s38160_s3 + $0x7e8] ss:$28 sps:$4 sm:$0xff]  }
 0x5c0   :  { %19263 = vmatpush1.bf16.msra.mxu0 %v27352_v37  ;;  %18834 = vmatprep.subr.bf16.mxu1 %v27357_v38  ;;  %v27399_v37 = vld [vmem:[%s38160_s3 + $0x106c] ss:$28 sps:$4 sm:$0xff]   ;;  %v27402_v38 = vld [vmem:[%s38160_s3 + $0x824] ss:$28 sps:$4 sm:$0xff]  }
 0x5c1   :  { %19264 = vmatprep.subr.bf16.mxu0 %v27360_v3  ;;  %v27397_v3 = vld [vmem:[%s38160_s3 + $0x1068] ss:$28 sps:$4 sm:$0xff]  }
 0x5c3   :  { %18835 = vmatpush1.bf16.msra.mxu1 %v27355_v39  ;;  %v27400_v39 = vld [vmem:[%s38160_s3 + $0x820] ss:$28 sps:$4 sm:$0xff]  }
 0x5c4   :  { %19265 = vmatpush1.bf16.msra.mxu0 %v27358_v41  ;;  %18836 = vmatprep.subr.bf16.mxu1 %v27363_v44  ;;  %v27405_v41 = vld [vmem:[%s38160_s3 + $0x10a4] ss:$28 sps:$4 sm:$0xff]   ;;  %v27408_v44 = vld [vmem:[%s38160_s3 + $0x85c] ss:$28 sps:$4 sm:$0xff]  }
 0x5c5   :  { %19266 = vmatprep.subr.bf16.mxu0 %v27366_v45  ;;  %v27403_v45 = vld [vmem:[%s38160_s3 + $0x10a0] ss:$28 sps:$4 sm:$0xff]  }
 0x5c7   :  { %18837 = vmatpush1.bf16.msra.mxu1 %v27361_v2 }
 0x5c8   :  { %19267 = vmatpush1.bf16.msra.mxu0 %v27364_v52  ;;  %18838 = vmatprep.subr.bf16.mxu1 %v27369_v55  ;;  %v27406_v55 = vld [vmem:[%s38160_s3 + $0x858] ss:$28 sps:$4 sm:$0xff]  }
 0x5c9   :  { %19277 = vmatprep.subr.bf16.mxu0 %v27372_v9  ;;  %v27411_v9 = vld [vmem:[%s38160_s3 + $0x10dc] ss:$28 sps:$4 sm:$0xff]  }
 0x5cb   :  { %18839 = vmatpush1.bf16.msra.mxu1 %v27367_v58  ;;  %19269 = vmatmul.mubr.bf16.vlgmr.msra.gmra.mrb[36].mxu0 %v33429_v14 }
 0x5cc   :  { %19278 = vmatpush1.bf16.msra.mxu0 %v27370_v61  ;;  %19309 = vmatprep.mubr.bf16.mxu0 %v33434_v51  ;;  %v27414_v61 = vld [vmem:[%s38160_s3 + $0x894] ss:$28 sps:$4 sm:$0xff]  }
 0x5cd   :  { %18840 = vmatprep.subr.bf16.mxu1 %v27375_v28  ;;  %19279 = vmatprep.subr.bf16.mxu0 %v27378_v59  ;;  %v27409_v59 = vld [vmem:[%s38160_s3 + $0x10d8] ss:$28 sps:$4 sm:$0xff]  }
 0x5cf   :  { %18841 = vmatpush1.bf16.msra.mxu1 %v27373_v60  ;;  %v1355_v60 = vrot.slane %v33816_v16, %v33164_v49 }
 0x5d0   :  { %19280 = vmatpush1.bf16.msra.mxu0 %v27376_v62  ;;  %18842 = vmatprep.subr.bf16.mxu1 %v27381_v63  ;;  %v27412_v62 = vld [vmem:[%s38160_s3 + $0x890] ss:$28 sps:$4 sm:$0xff]  }
 0x5d1   :  { %19281 = vmatprep.subr.bf16.mxu0 %v27384_v5  ;;  %v27417_v63 = vld [vmem:[%s38160_s3 + $0x1114] ss:$28 sps:$4 sm:$0xff]   ;;  %v1367_v5 = vrot.slane %v33816_v16, %v30802_v30  ;;  %v27423_v16 = vld [vmem:[%s38160_s3 + $0x114c] ss:$28 sps:$4 sm:$0xff]  }
 0x5d3   :  { %18843 = vmatpush1.bf16.msra.mxu1 %v27379_v7  ;;  %v27420_v7 = vld [vmem:[%s38160_s3 + $0x8cc] ss:$28 sps:$4 sm:$0xff]  }
 0x5d4   :  { %19282 = vmatpush1.bf16.msra.mxu0 %v27382_v15  ;;  %18844 = vmatprep.subr.bf16.mxu1 %v27387_v48  ;;  %v27415_v15 = vld [vmem:[%s38160_s3 + $0x1110] ss:$28 sps:$4 sm:$0xff]   ;;  %v24917_v48 = vadd.f32 %v32066_v42, %v1355_v60  ;;  %v27421_v42 = vld [vmem:[%s38160_s3 + $0x1148] ss:$28 sps:$4 sm:$0xff]  }
 0x5d5   :  { %19283 = vmatprep.subr.bf16.mxu0 %v27390_v54  ;;  %v27418_v54 = vld [vmem:[%s38160_s3 + $0x8c8] ss:$28 sps:$4 sm:$0xff]  }
 0x5d6   :  { %v27450_v60 = vld [vmem:[%s38160_s3 + $0x9e4] ss:$28 sps:$4 sm:$0xff]  }
 0x5d7   :  { %18845 = vmatpush1.bf16.msra.mxu1 %v27385_v46  ;;  %v24920_v46 = vadd.f32 %v31676_v35, %v1367_v5  ;;  %v27429_v35 = vld [vmem:[%s38160_s3 + $0x1184] ss:$28 sps:$4 sm:$0xff]  }
 0x5d8   :  { %19284 = vmatpush1.bf16.msra.mxu0 %v27388_v4  ;;  %18846 = vmatprep.subr.bf16.mxu1 %v27393_v19  ;;  %v27426_v4 = vld [vmem:[%s38160_s3 + $0x904] ss:$28 sps:$4 sm:$0xff]   ;;  %v9783_v19 = vmax.f32 %v24917_v48, 0.0 }
 0x5d9   :  { %19285 = vmatprep.subr.bf16.mxu0 %v27396_v34  ;;  %v27424_v34 = vld [vmem:[%s38160_s3 + $0x900] ss:$28 sps:$4 sm:$0xff]  }
 0x5da   :  { %v27453_v5 = vld [vmem:[%s38160_s3 + $0x1264] ss:$28 sps:$4 sm:$0xff]  }
 0x5db   :  { %18847 = vmatpush1.bf16.msra.mxu1 %v27391_v22  ;;  %v9786_v22 = vmax.f32 %v24920_v46, 0.0 }
 0x5dc   :  { %19286 = vmatpush1.bf16.msra.mxu0 %v27394_v53  ;;  %18848 = vmatprep.subr.bf16.mxu1 %v27399_v37  ;;  %v27427_v53 = vld [vmem:[%s38160_s3 + $0x1180] ss:$28 sps:$4 sm:$0xff]  }
 0x5dd   :  { %19287 = vmatprep.subr.bf16.mxu0 %v27402_v38  ;;  %v27432_v37 = vld [vmem:[%s38160_s3 + $0x93c] ss:$28 sps:$4 sm:$0xff]  }
 0x5de   :  { %v34014_v2 = vpop.f32.mrb[24].mxu0  ;;  %v27430_v38 = vld [vmem:[%s38160_s3 + $0x938] ss:$28 sps:$4 sm:$0xff]  }
 0x5df   :  { %18849 = vmatpush1.bf16.msra.mxu1 %v27397_v3  ;;  %v34016_v52 = vpop.f32.mrb[25].mxu0  ;;  %v34075_v3 = vpack.c.bf16 %v9783_v19, %v9783_v19 }
 0x5e0   :  { %19288 = vmatpush1.bf16.msra.mxu0 %v27400_v39  ;;  %18850 = vmatprep.subr.bf16.mxu1 %v27405_v41  ;;  %v9448_v58 = vpop.f32.mrb[26].mxu0  ;;  %v27435_v39 = vld [vmem:[%s38160_s3 + $0x11bc] ss:$28 sps:$4 sm:$0xff]   ;;  %v34080_v41 = vpack.c.bf16 %v9786_v22, %v9786_v22 }
 0x5e1   :  { %19289 = vmatprep.subr.bf16.mxu0 %v27408_v44  ;;  %v9449_v28 = vpop.f32.mrb[27].mxu0  ;;  %v27438_v44 = vld [vmem:[%s38160_s3 + $0x974] ss:$28 sps:$4 sm:$0xff]   ;;  %v27444_v58 = vld [vmem:[%s38160_s3 + $0x9ac] ss:$28 sps:$4 sm:$0xff]  }
 0x5e2   :  { %v27442_v28 = vld [vmem:[%s38160_s3 + $0x9a8] ss:$28 sps:$4 sm:$0xff]  }
 0x5e3   :  { %18851 = vmatpush1.bf16.msra.mxu1 %v27403_v45  ;;  %v27433_v45 = vld [vmem:[%s38160_s3 + $0x11b8] ss:$28 sps:$4 sm:$0xff]  }
 0x5e4   :  { %19290 = vmatpush1.bf16.msra.mxu0 %v27406_v55  ;;  %18852 = vmatprep.subr.bf16.mxu1 %v27411_v9  ;;  %v27436_v55 = vld [vmem:[%s38160_s3 + $0x970] ss:$28 sps:$4 sm:$0xff]  }
 0x5e5   :  { %19291 = vmatprep.subr.bf16.mxu0 %v27414_v61  ;;  %v27441_v9 = vld [vmem:[%s38160_s3 + $0x11f4] ss:$28 sps:$4 sm:$0xff]  }
 0x5e6   :  { %v27439_v61 = vld [vmem:[%s38160_s3 + $0x11f0] ss:$28 sps:$4 sm:$0xff]  }
 0x5e7   :  { %18853 = vmatpush1.bf16.msra.mxu1 %v27409_v59  ;;  %v27447_v59 = vld [vmem:[%s38160_s3 + $0x122c] ss:$28 sps:$4 sm:$0xff]  }
 0x5e8   :  { %19292 = vmatpush1.bf16.msra.mxu0 %v27412_v62  ;;  %18854 = vmatprep.subr.bf16.mxu1 %v27417_v63  ;;  %v27445_v62 = vld [vmem:[%s38160_s3 + $0x1228] ss:$28 sps:$4 sm:$0xff]   ;;  %v27448_v63 = vld [vmem:[%s38160_s3 + $0x9e0] ss:$28 sps:$4 sm:$0xff]  }
 0x5e9   :  { %19293 = vmatprep.subr.bf16.mxu0 %v27420_v7  ;;  %v21756_v7 = vld [vmem:[%s38159_s2 + $0x18] ss:$0 sm:$0xff] }
 0x5eb   :  { %18855 = vmatpush1.bf16.msra.mxu1 %v27415_v15  ;;  %v27456_v15 = vld [vmem:[%s38160_s3 + $0xa1c] ss:$28 sps:$4 sm:$0xff]  }
 0x5ec   :  { %19294 = vmatpush1.bf16.msra.mxu0 %v27418_v54  ;;  %18856 = vmatprep.subr.bf16.mxu1 %v27423_v16  ;;  %v27451_v54 = vld [vmem:[%s38160_s3 + $0x1260] ss:$28 sps:$4 sm:$0xff]  }
 0x5ed   :  { %19295 = vmatprep.subr.bf16.mxu0 %v27426_v4  ;;  %v27454_v4 = vld [vmem:[%s38160_s3 + $0xa18] ss:$28 sps:$4 sm:$0xff]  }
 0x5ef   :  { %18857 = vmatpush1.bf16.msra.mxu1 %v27421_v42  ;;  %v27459_v42 = vld [vmem:[%s38160_s3 + $0x129c] ss:$28 sps:$4 sm:$0xff]  }
 0x5f0   :  { %19296 = vmatpush1.bf16.msra.mxu0 %v27424_v34  ;;  %18867 = vmatprep.subr.bf16.mxu1 %v27429_v35  ;;  %v27462_v34 = vld [vmem:[%s38160_s3 + $0xa54] ss:$28 sps:$4 sm:$0xff]  }
 0x5f1   :  { %19297 = vmatprep.subr.bf16.mxu0 %v27432_v37  ;;  %v27460_v37 = vld [vmem:[%s38160_s3 + $0xa50] ss:$28 sps:$4 sm:$0xff]  }
 0x5f2   :  { %18859 = vmatmul.mubr.bf16.vlgmr.msra.gmra.mrb[32].mxu1 %v34075_v3 }
 0x5f3   :  { %18868 = vmatpush1.bf16.msra.mxu1 %v27427_v53  ;;  %18899 = vmatprep.mubr.bf16.mxu1 %v34080_v41  ;;  %v27457_v53 = vld [vmem:[%s38160_s3 + $0x1298] ss:$28 sps:$4 sm:$0xff]  }
 0x5f4   :  { %19298 = vmatpush1.bf16.msra.mxu0 %v27430_v38  ;;  %18869 = vmatprep.subr.bf16.mxu1 %v27435_v39  ;;  %v27465_v38 = vld [vmem:[%s38160_s3 + $0x12d4] ss:$28 sps:$4 sm:$0xff]  }
 0x5f5   :  { %19299 = vmatprep.subr.bf16.mxu0 %v27438_v44  ;;  %v27468_v44 = vld [vmem:[%s38160_s3 + $0xa8c] ss:$28 sps:$4 sm:$0xff]  }
 0x5f7   :  { %18870 = vmatpush1.bf16.msra.mxu1 %v27433_v45  ;;  %v27463_v45 = vld [vmem:[%s38160_s3 + $0x12d0] ss:$28 sps:$4 sm:$0xff]  }
 0x5f8   :  { %19300 = vmatpush1.bf16.msra.mxu0 %v27436_v55  ;;  %18871 = vmatprep.subr.bf16.mxu1 %v27441_v9  ;;  %v27466_v55 = vld [vmem:[%s38160_s3 + $0xa88] ss:$28 sps:$4 sm:$0xff]  }
 0x5f9   :  { %19301 = vmatprep.subr.bf16.mxu0 %v27444_v58  ;;  %v27474_v9 = vld [vmem:[%s38160_s3 + $0xac4] ss:$28 sps:$4 sm:$0xff]  }
 0x5fa   :  { %v27469_v58 = vld [vmem:[%s38160_s3 + $0x1308] ss:$28 sps:$4 sm:$0xff]  }
 0x5fb   :  { %18872 = vmatpush1.bf16.msra.mxu1 %v27439_v61  ;;  %v27472_v61 = vld [vmem:[%s38160_s3 + $0xac0] ss:$28 sps:$4 sm:$0xff]  }
 0x5fc   :  { %19302 = vmatpush1.bf16.msra.mxu0 %v27442_v28  ;;  %18873 = vmatprep.subr.bf16.mxu1 %v27447_v59  ;;  %v27477_v28 = vld [vmem:[%s38160_s3 + $0x1344] ss:$28 sps:$4 sm:$0xff]   ;;  %v27480_v59 = vld [vmem:[%s38160_s3 + $0xafc] ss:$28 sps:$4 sm:$0xff]  }
 0x5fd   :  { %19303 = vmatprep.subr.bf16.mxu0 %v27450_v60  ;;  %v27475_v60 = vld [vmem:[%s38160_s3 + $0x1340] ss:$28 sps:$4 sm:$0xff]  }
 0x5fe   :  { %v24534_v48 = vpop.f32.mrb[28].mxu0 }
 0x5ff   :  { %v24535_v16 = vpop.f32.mrb[29].mxu0  ;;  %18874 = vmatpush1.bf16.msra.mxu1 %v27445_v62 }
 0x600   :  { %v24536_v46 = vadd.f32 %v24535_v16, %v24534_v48  ;;  %19304 = vmatpush1.bf16.msra.mxu0 %v27448_v63  ;;  %18875 = vmatprep.subr.bf16.mxu1 %v27453_v5  ;;  %v24537_v19 = vpop.f32.mrb[30].mxu0 }
 0x601   :  { %19305 = vmatprep.subr.bf16.mxu0 %v27456_v15  ;;  %v24538_v35 = vpop.f32.mrb[31].mxu0 }
 0x602   :  { %v9650_v22 = vadd.f32 %v24536_v46, %v21756_v7 }
 0x603   :  { %18876 = vmatpush1.bf16.msra.mxu1 %v27451_v54 }
 0x604   :  { %19306 = vmatpush1.bf16.msra.mxu0 %v27454_v4  ;;  %18877 = vmatprep.subr.bf16.mxu1 %v27459_v42  ;;  %v34148_v39 = vadd.f32 %v33699_v0, %v9650_v22  ;;  %v27471_v0 = vld [vmem:[%s38160_s3 + $0x130c] ss:$28 sps:$4 sm:$0xff]  }
 0x605   :  { %19307 = vmatprep.subr.bf16.mxu0 %v27462_v34 }
 0x607   :  { %18878 = vmatpush1.bf16.msra.mxu1 %v27457_v53 }
 0x608   :  { %19308 = vmatpush1.bf16.msra.mxu0 %v27460_v37  ;;  %18879 = vmatprep.subr.bf16.mxu1 %v27465_v38 }
 0x609   :  { %19318 = vmatprep.subr.bf16.mxu0 %v27468_v44 }
 0x60b   :  { %18880 = vmatpush1.bf16.msra.mxu1 %v27463_v45  ;;  %19310 = vmatmul.mubr.bf16.vlgmr.msra.gmra.mrb[36].mxu0 %v33645_v23 }
 0x60c   :  { %19319 = vmatpush1.bf16.msra.mxu0 %v27466_v55  ;;  %19350 = vmatprep.mubr.bf16.mxu0 %v33650_v25 }
 0x60d   :  { %18881 = vmatprep.subr.bf16.mxu1 %v27471_v0  ;;  %19320 = vmatprep.subr.bf16.mxu0 %v27474_v9 }
 0x60f   :  { %18882 = vmatpush1.bf16.msra.mxu1 %v27469_v58 }
 0x610   :  { %14 = vsyncpa [#allocation3], 0  ;;  %19321 = vmatpush1.bf16.msra.mxu0 %v27472_v61  ;;  %18883 = vmatprep.subr.bf16.mxu1 %v27477_v28  ;;  %v27478_v62 = vld [vmem:[%s38160_s3 + $0xaf8] ss:$28 sps:$4 sm:$0xff]   ;;  %v27484_v15 = vld [vmem:[%s38160_s3 + $0xb30] ss:$28 sps:$4 sm:$0xff]  }
 0x611   :  { %v27483_v63 = vld [vmem:[%s38160_s3 + $0x137c] ss:$28 sps:$4 sm:$0xff]   ;;  %19322 = vmatprep.subr.bf16.mxu0 %v27480_v59  ;;  %v27486_v5 = vld [vmem:[%s38160_s3 + $0xb34] ss:$28 sps:$4 sm:$0xff]   ;;  %v27492_v54 = vld [vmem:[%s38160_s3 + $0xb6c] ss:$28 sps:$4 sm:$0xff]  }
 0x612   :  { %v27481_v7 = vld [vmem:[%s38160_s3 + $0x1378] ss:$28 sps:$4 sm:$0xff]   ;;  %v27487_v16 = vld [vmem:[%s38160_s3 + $0x13b0] ss:$28 sps:$4 sm:$0xff]   ;;  %v27490_v46 = vld [vmem:[%s38160_s3 + $0xb68] ss:$28 sps:$4 sm:$0xff]  }
 0x613   :  { %18884 = vmatpush1.bf16.msra.mxu1 %v27475_v60  ;;  %v27489_v48 = vld [vmem:[%s38160_s3 + $0x13b4] ss:$28 sps:$4 sm:$0xff]   ;;  %v27495_v4 = vld [vmem:[%s38160_s3 + $0x13ec] ss:$28 sps:$4 sm:$0xff]   ;;  %v27498_v42 = vld [vmem:[%s38160_s3 + $0xba4] ss:$28 sps:$4 sm:$0xff]  }
 0x614   :  { %19323 = vmatpush1.bf16.msra.mxu0 %v27478_v62  ;;  %18885 = vmatprep.subr.bf16.mxu1 %v27483_v63  ;;  %v27493_v19 = vld [vmem:[%s38160_s3 + $0x13e8] ss:$28 sps:$4 sm:$0xff]   ;;  %v27496_v34 = vld [vmem:[%s38160_s3 + $0xba0] ss:$28 sps:$4 sm:$0xff]   ;;  %v27502_v45 = vld [vmem:[%s38160_s3 + $0xbd8] ss:$28 sps:$4 sm:$0xff]  }
 0x615   :  { %19324 = vmatprep.subr.bf16.mxu0 %v27486_v5  ;;  %v27501_v35 = vld [vmem:[%s38160_s3 + $0x1424] ss:$28 sps:$4 sm:$0xff]   ;;  %v27504_v22 = vld [vmem:[%s38160_s3 + $0xbdc] ss:$28 sps:$4 sm:$0xff]   ;;  %v27510_v9 = vld [vmem:[%s38160_s3 + $0xc14] ss:$28 sps:$4 sm:$0xff]  }
 0x616   :  { %v27499_v38 = vld [vmem:[%s38160_s3 + $0x1420] ss:$28 sps:$4 sm:$0xff]   ;;  %v27505_v28 = vld [vmem:[%s38160_s3 + $0x1458] ss:$28 sps:$4 sm:$0xff]   ;;  %v34246_v59 = vld [vmem:[%s38159_s2 + $0x8] sm:$0xff]  ;;  %s29263_s12 = smov [#allocation2]  }
 0x617   :  { %18886 = vmatpush1.bf16.msra.mxu1 %v27481_v7  ;;  %v27507_v55 = vld [vmem:[%s38160_s3 + $0x145c] ss:$28 sps:$4 sm:$0xff]   ;;  %v1363_v60 = vrot.slane %v34246_v59, %v30793_v27  ;;  %v27513_v63 = vld [vmem:[%s38160_s3 + $0x1494] ss:$28 sps:$4 sm:$0xff]   ;;  %v1375_v5 = vrot.slane %v34246_v59, %v33371_v47  ;;  %v27516_v7 = vld [vmem:[%s38160_s3 + $0xc4c] ss:$28 sps:$4 sm:$0xff]  }
 0x618   :  { %19325 = vmatpush1.bf16.msra.mxu0 %v27484_v15  ;;  %18887 = vmatprep.subr.bf16.mxu1 %v27489_v48  ;;  %v27514_v48 = vld [vmem:[%s38160_s3 + $0xc48] ss:$28 sps:$4 sm:$0xff]   ;;  %s21748_s13 = sshll.u32 %s29263_s12, 4  ;;  %s21749_s13 = int_to_ptr.vmem [resolvable:$true] %s21748_s13 }
 0x619   :  { %19326 = vmatprep.subr.bf16.mxu0 %v27492_v54  ;;  %v24919_v15 = vadd.f32 %v31674_v33, %v1363_v60  ;;  %v27519_v54 = vld [vmem:[%s38160_s3 + $0x14cc] ss:$28 sps:$4 sm:$0xff]   ;;  %v27546_v60 = vld [vmem:[%s38160_s3 + $0xd64] ss:$28 sps:$4 sm:$0xff]   ;;  %s29236_s1 = scalar_lea.vmem %s21749_s13, 128  ;;  %p29241_p1 = scmp.lt.s32.totalorder %s21749_s13, %s21749_s13 }
 0x61a   :  { %v27517_v33 = vld [vmem:[%s38160_s3 + $0x14c8] ss:$28 sps:$4 sm:$0xff]   ;;  %p29237_p0 = scmp.ne.s32.totalorder %s21749_s13, %s29236_s1  ;;  %p29242_p2 = scmp.lt.s32.totalorder %s29236_s1, %s29236_s1 }
 0x61b   :  { %18888 = vmatpush1.bf16.msra.mxu1 %v27487_v16  ;;  %v24922_v16 = vadd.f32 %v32690_v32, %v1375_v5  ;;  %v27525_v32 = vld [vmem:[%s38160_s3 + $0x1504] ss:$28 sps:$4 sm:$0xff]  }
 0x61c   :  { %19327 = vmatpush1.bf16.msra.mxu0 %v27490_v46  ;;  %18889 = vmatprep.subr.bf16.mxu1 %v27495_v4  ;;  %v27522_v46 = vld [vmem:[%s38160_s3 + $0xc84] ss:$28 sps:$4 sm:$0xff]   ;;  %v9785_v4 = vmax.f32 %v24919_v15, 0.0  ;;  %v27550_v15 = vld [vmem:[%s38160_s3 + $0xd98] ss:$28 sps:$4 sm:$0xff]   ;;  %p29243_p3 = por %p29242_p2, %p29241_p1 }
 0x61d   :  { %19328 = vmatprep.subr.bf16.mxu0 %v27498_v42  ;;  %v27520_v42 = vld [vmem:[%s38160_s3 + $0xc80] ss:$28 sps:$4 sm:$0xff]  }
 0x61e   :  { %v24578_v53 = vpop.f32.mrb[32].mxu0  ;;  %v27549_v5 = vld [vmem:[%s38160_s3 + $0x15e4] ss:$28 sps:$4 sm:$0xff]   ;;  %p29244_p4 = pnand %p29243_p3, %p29237_p0 }
 0x61f   :  { %v24579_v37 = vpop.f32.mrb[33].mxu0  ;;  %18890 = vmatpush1.bf16.msra.mxu1 %v27493_v19  ;;  %v9788_v19 = vmax.f32 %v24922_v16, 0.0  ;;  %v27553_v16 = vld [vmem:[%s38160_s3 + $0x1618] ss:$28 sps:$4 sm:$0xff]  }
 0x620   :  { %v24580_v44 = vadd.f32 %v24579_v37, %v24578_v53  ;;  %19329 = vmatpush1.bf16.msra.mxu0 %v27496_v34  ;;  %18891 = vmatprep.subr.bf16.mxu1 %v27501_v35  ;;  %v24581_v0 = vpop.f32.mrb[34].mxu0  ;;  %v27528_v34 = vld [vmem:[%s38160_s3 + $0xcbc] ss:$28 sps:$4 sm:$0xff]  }
 0x621   :  { %19330 = vmatprep.subr.bf16.mxu0 %v27504_v22  ;;  %v24582_v58 = vpop.f32.mrb[35].mxu0  ;;  %v27523_v35 = vld [vmem:[%s38160_s3 + $0x1500] ss:$28 sps:$4 sm:$0xff]   ;;  %v34293_v22 = vpack.c.bf16 %v9785_v4, %v9785_v4  ;;  %v27526_v53 = vld [vmem:[%s38160_s3 + $0xcb8] ss:$28 sps:$4 sm:$0xff]  }
 0x622   :  { %v9730_v61 = vadd.f32 %v24580_v44, %v34148_v39  ;;  %v27508_v39 = vld [vmem:[%s38160_s3 + $0xc10] ss:$28 sps:$4 sm:$0xff]   ;;  %v27531_v37 = vld [vmem:[%s38160_s3 + $0x153c] ss:$28 sps:$4 sm:$0xff]  }
 0x623   :  { %18892 = vmatpush1.bf16.msra.mxu1 %v27499_v38  ;;  %v34301_v38 = vpack.c.bf16 %v9788_v19, %v9788_v19  ;;  %v27534_v44 = vld [vmem:[%s38160_s3 + $0xcf4] ss:$28 sps:$4 sm:$0xff]   ;;  %v27564_v4 = vld [vmem:[%s38160_s3 + $0xe0c] ss:$28 sps:$4 sm:$0xff]  }
 0x624   :  { %v34251_v62 = vadd.f32 %v33716_v6, %v9730_v61  ;;  %19331 = vmatpush1.bf16.msra.mxu0 %v27502_v45  ;;  %18893 = vmatprep.subr.bf16.mxu1 %v27507_v55  ;;  %v27511_v6 = vld [vmem:[%s38160_s3 + $0x1490] ss:$28 sps:$4 sm:$0xff]   ;;  %v27529_v45 = vld [vmem:[%s38160_s3 + $0x1538] ss:$28 sps:$4 sm:$0xff]   ;;  %v27538_v61 = vld [vmem:[%s38160_s3 + $0xd28] ss:$28 sps:$4 sm:$0xff]  }
 0x625   :  { %19332 = vmatprep.subr.bf16.mxu0 %v27510_v9  ;;  %v27532_v55 = vld [vmem:[%s38160_s3 + $0xcf0] ss:$28 sps:$4 sm:$0xff]  }
 0x626   :  { %v27537_v0 = vld [vmem:[%s38160_s3 + $0x1574] ss:$28 sps:$4 sm:$0xff]   ;;  %v27540_v9 = vld [vmem:[%s38160_s3 + $0xd2c] ss:$28 sps:$4 sm:$0xff]  }
 0x627   :  { %18894 = vmatpush1.bf16.msra.mxu1 %v27505_v28  ;;  %v27535_v58 = vld [vmem:[%s38160_s3 + $0x1570] ss:$28 sps:$4 sm:$0xff]  }
 0x628   :  { %19333 = vmatpush1.bf16.msra.mxu0 %v27508_v39  ;;  %18895 = vmatprep.subr.bf16.mxu1 %v27513_v63  ;;  %v27543_v28 = vld [vmem:[%s38160_s3 + $0x15ac] ss:$28 sps:$4 sm:$0xff]   ;;  %v27544_v63 = vld [vmem:[%s38160_s3 + $0xd60] ss:$28 sps:$4 sm:$0xff]  }
 0x629   :  { %19334 = vmatprep.subr.bf16.mxu0 %v27516_v7  ;;  %v27541_v39 = vld [vmem:[%s38160_s3 + $0x15a8] ss:$28 sps:$4 sm:$0xff]   ;;  %v27552_v7 = vld [vmem:[%s38160_s3 + $0xd9c] ss:$28 sps:$4 sm:$0xff]  }
 0x62a   :  { %v27567_v19 = vld [vmem:[%s38160_s3 + $0x168c] ss:$28 sps:$4 sm:$0xff]  }
 0x62b   :  { %18896 = vmatpush1.bf16.msra.mxu1 %v27511_v6  ;;  %v27547_v6 = vld [vmem:[%s38160_s3 + $0x15e0] ss:$28 sps:$4 sm:$0xff]  }
 0x62c   :  { %19335 = vmatpush1.bf16.msra.mxu0 %v27514_v48  ;;  %18897 = vmatprep.subr.bf16.mxu1 %v27519_v54  ;;  %v27555_v48 = vld [vmem:[%s38160_s3 + $0x161c] ss:$28 sps:$4 sm:$0xff]   ;;  %v27558_v54 = vld [vmem:[%s38160_s3 + $0xdd4] ss:$28 sps:$4 sm:$0xff]  }
 0x62d   :  { %19336 = vmatprep.subr.bf16.mxu0 %v27522_v46  ;;  %v27556_v46 = vld [vmem:[%s38160_s3 + $0xdd0] ss:$28 sps:$4 sm:$0xff]  }
 0x62f   :  { %18898 = vmatpush1.bf16.msra.mxu1 %v27517_v33  ;;  %v27561_v33 = vld [vmem:[%s38160_s3 + $0x1654] ss:$28 sps:$4 sm:$0xff]  }
 0x630   :  { %19337 = vmatpush1.bf16.msra.mxu0 %v27520_v42  ;;  %18908 = vmatprep.subr.bf16.mxu1 %v27525_v32  ;;  %v27559_v42 = vld [vmem:[%s38160_s3 + $0x1650] ss:$28 sps:$4 sm:$0xff]   ;;  %v27562_v32 = vld [vmem:[%s38160_s3 + $0xe08] ss:$28 sps:$4 sm:$0xff]  }
 0x631   :  { %19338 = vmatprep.subr.bf16.mxu0 %v27528_v34  ;;  %v27570_v34 = vld [vmem:[%s38160_s3 + $0xe44] ss:$28 sps:$4 sm:$0xff]  }
 0x632   :  { %18900 = vmatmul.mubr.bf16.vlgmr.msra.gmra.mrb[32].mxu1 %v34293_v22 }
 0x633   :  { %18909 = vmatpush1.bf16.msra.mxu1 %v27523_v35  ;;  %18940 = vmatprep.mubr.bf16.mxu1 %v34301_v38  ;;  %v27565_v35 = vld [vmem:[%s38160_s3 + $0x1688] ss:$28 sps:$4 sm:$0xff]  }
 0x634   :  { %19339 = vmatpush1.bf16.msra.mxu0 %v27526_v53  ;;  %18910 = vmatprep.subr.bf16.mxu1 %v27531_v37  ;;  %v27568_v53 = vld [vmem:[%s38160_s3 + $0xe40] ss:$28 sps:$4 sm:$0xff]  }
 0x635   :  { %19340 = vmatprep.subr.bf16.mxu0 %v27534_v44  ;;  %v27573_v37 = vld [vmem:[%s38160_s3 + $0x16c4] ss:$28 sps:$4 sm:$0xff]   ;;  %v27576_v44 = vld [vmem:[%s38160_s3 + $0xe7c] ss:$28 sps:$4 sm:$0xff]  }
 0x637   :  { %18911 = vmatpush1.bf16.msra.mxu1 %v27529_v45  ;;  %v27571_v45 = vld [vmem:[%s38160_s3 + $0x16c0] ss:$28 sps:$4 sm:$0xff]  }
 0x638   :  { %19341 = vmatpush1.bf16.msra.mxu0 %v27532_v55  ;;  %18912 = vmatprep.subr.bf16.mxu1 %v27537_v0  ;;  %v27574_v55 = vld [vmem:[%s38160_s3 + $0xe78] ss:$28 sps:$4 sm:$0xff]  }
 0x639   :  { %19342 = vmatprep.subr.bf16.mxu0 %v27540_v9  ;;  %v27579_v0 = vld [vmem:[%s38160_s3 + $0x16fc] ss:$28 sps:$4 sm:$0xff]   ;;  %v27582_v9 = vld [vmem:[%s38160_s3 + $0xeb4] ss:$28 sps:$4 sm:$0xff]  }
 0x63b   :  { %18913 = vmatpush1.bf16.msra.mxu1 %v27535_v58  ;;  %v27577_v58 = vld [vmem:[%s38160_s3 + $0x16f8] ss:$28 sps:$4 sm:$0xff]  }
 0x63c   :  { %19343 = vmatpush1.bf16.msra.mxu0 %v27538_v61  ;;  %18914 = vmatprep.subr.bf16.mxu1 %v27543_v28  ;;  %v27580_v61 = vld [vmem:[%s38160_s3 + $0xeb0] ss:$28 sps:$4 sm:$0xff]  }
 0x63d   :  { %19344 = vmatprep.subr.bf16.mxu0 %v27546_v60  ;;  %v27585_v28 = vld [vmem:[%s38160_s3 + $0x1734] ss:$28 sps:$4 sm:$0xff]   ;;  %v27588_v60 = vld [vmem:[%s38160_s3 + $0xeec] ss:$28 sps:$4 sm:$0xff]  }
 0x63f   :  { %18915 = vmatpush1.bf16.msra.mxu1 %v27541_v39  ;;  %v27583_v39 = vld [vmem:[%s38160_s3 + $0x1730] ss:$28 sps:$4 sm:$0xff]  }
 0x640   :  { %19345 = vmatpush1.bf16.msra.mxu0 %v27544_v63  ;;  %18916 = vmatprep.subr.bf16.mxu1 %v27549_v5  ;;  %v27586_v63 = vld [vmem:[%s38160_s3 + $0xee8] ss:$28 sps:$4 sm:$0xff]  }
 0x641   :  { %19346 = vmatprep.subr.bf16.mxu0 %v27552_v7  ;;  %v27591_v5 = vld [vmem:[%s38160_s3 + $0x176c] ss:$28 sps:$4 sm:$0xff]   ;;  %v27594_v7 = vld [vmem:[%s38160_s3 + $0xf24] ss:$28 sps:$4 sm:$0xff]  }
 0x643   :  { %18917 = vmatpush1.bf16.msra.mxu1 %v27547_v6  ;;  %v27589_v6 = vld [vmem:[%s38160_s3 + $0x1768] ss:$28 sps:$4 sm:$0xff]  }
 0x644   :  { %19347 = vmatpush1.bf16.msra.mxu0 %v27550_v15  ;;  %18918 = vmatprep.subr.bf16.mxu1 %v27555_v48  ;;  %v27592_v15 = vld [vmem:[%s38160_s3 + $0xf20] ss:$28 sps:$4 sm:$0xff]  }
 0x645   :  { %19348 = vmatprep.subr.bf16.mxu0 %v27558_v54  ;;  %v27597_v48 = vld [vmem:[%s38160_s3 + $0x17a4] ss:$28 sps:$4 sm:$0xff]   ;;  %v27600_v54 = vld [vmem:[%s38160_s3 + $0xf5c] ss:$28 sps:$4 sm:$0xff]  }
 0x647   :  { %18919 = vmatpush1.bf16.msra.mxu1 %v27553_v16  ;;  %v27595_v16 = vld [vmem:[%s38160_s3 + $0x17a0] ss:$28 sps:$4 sm:$0xff]  }
 0x648   :  { %19349 = vmatpush1.bf16.msra.mxu0 %v27556_v46  ;;  %18920 = vmatprep.subr.bf16.mxu1 %v27561_v33  ;;  %v27598_v46 = vld [vmem:[%s38160_s3 + $0xf58] ss:$28 sps:$4 sm:$0xff]  }
 0x649   :  { %19359 = vmatprep.subr.bf16.mxu0 %v27564_v4  ;;  %v27603_v33 = vld [vmem:[%s38160_s3 + $0x17dc] ss:$28 sps:$4 sm:$0xff]   ;;  %v27606_v4 = vld [vmem:[%s38160_s3 + $0xf94] ss:$28 sps:$4 sm:$0xff]  }
 0x64b   :  { %18921 = vmatpush1.bf16.msra.mxu1 %v27559_v42  ;;  %19351 = vmatmul.mubr.bf16.vlgmr.msra.gmra.mrb[36].mxu0 %v33865_v18  ;;  %v27601_v42 = vld [vmem:[%s38160_s3 + $0x17d8] ss:$28 sps:$4 sm:$0xff]  }
 0x64c   :  { %19360 = vmatpush1.bf16.msra.mxu0 %v27562_v32  ;;  %19391 = vmatprep.mubr.bf16.mxu0 %v33870_v11  ;;  %v1371_v32 = vrot.slane %v34246_v59, %v33583_v50 }
 0x64d   :  { %18922 = vmatprep.subr.bf16.mxu1 %v27567_v19  ;;  %19361 = vmatprep.subr.bf16.mxu0 %v27570_v34  ;;  %v27604_v19 = vld [vmem:[%s38160_s3 + $0xf90] ss:$28 sps:$4 sm:$0xff]  }
 0x64e   :  { %v27609_v34 = vld [vmem:[%s38160_s3 + $0x1814] ss:$28 sps:$4 sm:$0xff]  }
 0x64f   :  { %18923 = vmatpush1.bf16.msra.mxu1 %v27565_v35  ;;  %v1383_v35 = vrot.slane %v34246_v59, %v33592_v57 }
 0x650   :  { %19362 = vmatpush1.bf16.msra.mxu0 %v27568_v53  ;;  %18924 = vmatprep.subr.bf16.mxu1 %v27573_v37  ;;  %v27612_v53 = vld [vmem:[%s38160_s3 + $0xfcc] ss:$28 sps:$4 sm:$0xff]  }
 0x651   :  { %19363 = vmatprep.subr.bf16.mxu0 %v27576_v44  ;;  %v27607_v37 = vld [vmem:[%s38160_s3 + $0x1810] ss:$28 sps:$4 sm:$0xff]   ;;  %v24921_v44 = vadd.f32 %v32685_v29, %v1371_v32  ;;  %v27613_v29 = vld [vmem:[%s38160_s3 + $0x1848] ss:$28 sps:$4 sm:$0xff]  }
 0x652   :  { %v27642_v32 = vld [vmem:[%s38160_s3 + $0x10e4] ss:$28 sps:$4 sm:$0xff]  }
 0x653   :  { %18925 = vmatpush1.bf16.msra.mxu1 %v27571_v45  ;;  %v27610_v45 = vld [vmem:[%s38160_s3 + $0xfc8] ss:$28 sps:$4 sm:$0xff]  }
 0x654   :  { %19364 = vmatpush1.bf16.msra.mxu0 %v27574_v55  ;;  %18926 = vmatprep.subr.bf16.mxu1 %v27579_v0  ;;  %v27615_v55 = vld [vmem:[%s38160_s3 + $0x184c] ss:$28 sps:$4 sm:$0xff]   ;;  %v24924_v0 = vadd.f32 %v32295_v12, %v1383_v35  ;;  %v27621_v12 = vld [vmem:[%s38160_s3 + $0x1884] ss:$28 sps:$4 sm:$0xff]  }
 0x655   :  { %19365 = vmatprep.subr.bf16.mxu0 %v27582_v9  ;;  %v27618_v9 = vld [vmem:[%s38160_s3 + $0x1004] ss:$28 sps:$4 sm:$0xff]  }
 0x656   :  { %v27645_v35 = vld [vmem:[%s38160_s3 + $0x1964] ss:$28 sps:$4 sm:$0xff]  }
 0x657   :  { %18927 = vmatpush1.bf16.msra.mxu1 %v27577_v58  ;;  %v9787_v58 = vmax.f32 %v24921_v44, 0.0  ;;  %v27646_v44 = vld [vmem:[%s38160_s3 + $0x1118] ss:$28 sps:$4 sm:$0xff]  }
 0x658   :  { %19366 = vmatpush1.bf16.msra.mxu0 %v27580_v61  ;;  %18928 = vmatprep.subr.bf16.mxu1 %v27585_v28  ;;  %v27616_v61 = vld [vmem:[%s38160_s3 + $0x1000] ss:$28 sps:$4 sm:$0xff]   ;;  %v9790_v28 = vmax.f32 %v24924_v0, 0.0  ;;  %v27649_v0 = vld [vmem:[%s38160_s3 + $0x1998] ss:$28 sps:$4 sm:$0xff]  }
 0x659   :  { %19367 = vmatprep.subr.bf16.mxu0 %v27588_v60  ;;  %v27624_v60 = vld [vmem:[%s38160_s3 + $0x103c] ss:$28 sps:$4 sm:$0xff]  }
 0x65b   :  { %18929 = vmatpush1.bf16.msra.mxu1 %v27583_v39  ;;  %v27619_v39 = vld [vmem:[%s38160_s3 + $0x1880] ss:$28 sps:$4 sm:$0xff]  }
 0x65c   :  { %19368 = vmatpush1.bf16.msra.mxu0 %v27586_v63  ;;  %18930 = vmatprep.subr.bf16.mxu1 %v27591_v5  ;;  %v34499_v63 = vpack.c.bf16 %v9787_v58, %v9787_v58  ;;  %v27622_v5 = vld [vmem:[%s38160_s3 + $0x1038] ss:$28 sps:$4 sm:$0xff]   ;;  %v27660_v58 = vld [vmem:[%s38160_s3 + $0x118c] ss:$28 sps:$4 sm:$0xff]  }
 0x65d   :  { %19369 = vmatprep.subr.bf16.mxu0 %v27594_v7  ;;  %v27627_v7 = vld [vmem:[%s38160_s3 + $0x18bc] ss:$28 sps:$4 sm:$0xff]  }
 0x65f   :  { %18931 = vmatpush1.bf16.msra.mxu1 %v27589_v6  ;;  %v34507_v6 = vpack.c.bf16 %v9790_v28, %v9790_v28  ;;  %v27663_v28 = vld [vmem:[%s38160_s3 + $0x1a0c] ss:$28 sps:$4 sm:$0xff]  }
 0x660   :  { %19370 = vmatpush1.bf16.msra.mxu0 %v27592_v15  ;;  %18932 = vmatprep.subr.bf16.mxu1 %v27597_v48  ;;  %v27630_v15 = vld [vmem:[%s38160_s3 + $0x1074] ss:$28 sps:$4 sm:$0xff]  }
 0x661   :  { %19371 = vmatprep.subr.bf16.mxu0 %v27600_v54  ;;  %v27625_v48 = vld [vmem:[%s38160_s3 + $0x18b8] ss:$28 sps:$4 sm:$0xff]   ;;  %v27628_v54 = vld [vmem:[%s38160_s3 + $0x1070] ss:$28 sps:$4 sm:$0xff]  }
 0x663   :  { %18933 = vmatpush1.bf16.msra.mxu1 %v27595_v16  ;;  %v27633_v16 = vld [vmem:[%s38160_s3 + $0x18f4] ss:$28 sps:$4 sm:$0xff]  }
 0x664   :  { %19372 = vmatpush1.bf16.msra.mxu0 %v27598_v46  ;;  %18934 = vmatprep.subr.bf16.mxu1 %v27603_v33  ;;  %v27636_v46 = vld [vmem:[%s38160_s3 + $0x10ac] ss:$28 sps:$4 sm:$0xff]  }
 0x665   :  { %19373 = vmatprep.subr.bf16.mxu0 %v27606_v4  ;;  %v27631_v33 = vld [vmem:[%s38160_s3 + $0x18f0] ss:$28 sps:$4 sm:$0xff]   ;;  %v27634_v4 = vld [vmem:[%s38160_s3 + $0x10a8] ss:$28 sps:$4 sm:$0xff]  }
 0x667   :  { %18935 = vmatpush1.bf16.msra.mxu1 %v27601_v42  ;;  %v27639_v42 = vld [vmem:[%s38160_s3 + $0x192c] ss:$28 sps:$4 sm:$0xff]  }
 0x668   :  { %19374 = vmatpush1.bf16.msra.mxu0 %v27604_v19  ;;  %18936 = vmatprep.subr.bf16.mxu1 %v27609_v34  ;;  %v27637_v19 = vld [vmem:[%s38160_s3 + $0x1928] ss:$28 sps:$4 sm:$0xff]   ;;  %v27640_v34 = vld [vmem:[%s38160_s3 + $0x10e0] ss:$28 sps:$4 sm:$0xff]  }
 0x669   :  { %19375 = vmatprep.subr.bf16.mxu0 %v27612_v53  ;;  %v27648_v53 = vld [vmem:[%s38160_s3 + $0x111c] ss:$28 sps:$4 sm:$0xff]  }
 0x66b   :  { %18937 = vmatpush1.bf16.msra.mxu1 %v27607_v37  ;;  %v27643_v37 = vld [vmem:[%s38160_s3 + $0x1960] ss:$28 sps:$4 sm:$0xff]  }
 0x66c   :  { %19376 = vmatpush1.bf16.msra.mxu0 %v27610_v45  ;;  %18938 = vmatprep.subr.bf16.mxu1 %v27615_v55  ;;  %v27651_v45 = vld [vmem:[%s38160_s3 + $0x199c] ss:$28 sps:$4 sm:$0xff]   ;;  %v27654_v55 = vld [vmem:[%s38160_s3 + $0x1154] ss:$28 sps:$4 sm:$0xff]  }
 0x66d   :  { %19377 = vmatprep.subr.bf16.mxu0 %v27618_v9  ;;  %v27652_v9 = vld [vmem:[%s38160_s3 + $0x1150] ss:$28 sps:$4 sm:$0xff]  }
 0x66f   :  { %18939 = vmatpush1.bf16.msra.mxu1 %v27613_v29  ;;  %v27657_v29 = vld [vmem:[%s38160_s3 + $0x19d4] ss:$28 sps:$4 sm:$0xff]  }
 0x670   :  { %19378 = vmatpush1.bf16.msra.mxu0 %v27616_v61  ;;  %18949 = vmatprep.subr.bf16.mxu1 %v27621_v12  ;;  %v27655_v61 = vld [vmem:[%s38160_s3 + $0x19d0] ss:$28 sps:$4 sm:$0xff]   ;;  %v27658_v12 = vld [vmem:[%s38160_s3 + $0x1188] ss:$28 sps:$4 sm:$0xff]  }
 0x671   :  { %19379 = vmatprep.subr.bf16.mxu0 %v27624_v60  ;;  %v27666_v60 = vld [vmem:[%s38160_s3 + $0x11c4] ss:$28 sps:$4 sm:$0xff]  }
 0x672   :  { %18941 = vmatmul.mubr.bf16.vlgmr.msra.gmra.mrb[32].mxu1 %v34499_v63 }
 0x673   :  { %18950 = vmatpush1.bf16.msra.mxu1 %v27619_v39  ;;  %18981 = vmatprep.mubr.bf16.mxu1 %v34507_v6  ;;  %v27661_v39 = vld [vmem:[%s38160_s3 + $0x1a08] ss:$28 sps:$4 sm:$0xff]  }
 0x674   :  { %19380 = vmatpush1.bf16.msra.mxu0 %v27622_v5  ;;  %18951 = vmatprep.subr.bf16.mxu1 %v27627_v7  ;;  %v27664_v5 = vld [vmem:[%s38160_s3 + $0x11c0] ss:$28 sps:$4 sm:$0xff]  }
 0x675   :  { %19381 = vmatprep.subr.bf16.mxu0 %v27630_v15  ;;  %v27669_v7 = vld [vmem:[%s38160_s3 + $0x1a44] ss:$28 sps:$4 sm:$0xff]   ;;  %v27672_v15 = vld [vmem:[%s38160_s3 + $0x11fc] ss:$28 sps:$4 sm:$0xff]  }
 0x677   :  { %18952 = vmatpush1.bf16.msra.mxu1 %v27625_v48  ;;  %v27667_v48 = vld [vmem:[%s38160_s3 + $0x1a40] ss:$28 sps:$4 sm:$0xff]  }
 0x678   :  { %19382 = vmatpush1.bf16.msra.mxu0 %v27628_v54  ;;  %18953 = vmatprep.subr.bf16.mxu1 %v27633_v16  ;;  %v27670_v54 = vld [vmem:[%s38160_s3 + $0x11f8] ss:$28 sps:$4 sm:$0xff]  }
 0x679   :  { %19383 = vmatprep.subr.bf16.mxu0 %v27636_v46  ;;  %v27675_v16 = vld [vmem:[%s38160_s3 + $0x1a7c] ss:$28 sps:$4 sm:$0xff]   ;;  %v27678_v46 = vld [vmem:[%s38160_s3 + $0x1234] ss:$28 sps:$4 sm:$0xff]  }
 0x67b   :  { %18954 = vmatpush1.bf16.msra.mxu1 %v27631_v33  ;;  %v27673_v33 = vld [vmem:[%s38160_s3 + $0x1a78] ss:$28 sps:$4 sm:$0xff]  }
 0x67c   :  { %19384 = vmatpush1.bf16.msra.mxu0 %v27634_v4  ;;  %18955 = vmatprep.subr.bf16.mxu1 %v27639_v42  ;;  %v27676_v4 = vld [vmem:[%s38160_s3 + $0x1230] ss:$28 sps:$4 sm:$0xff]  }
 0x67d   :  { %19385 = vmatprep.subr.bf16.mxu0 %v27642_v32  ;;  %v27681_v42 = vld [vmem:[%s38160_s3 + $0x1ab4] ss:$28 sps:$4 sm:$0xff]   ;;  %v27684_v32 = vld [vmem:[%s38160_s3 + $0x126c] ss:$28 sps:$4 sm:$0xff]  }
 0x67f   :  { %18956 = vmatpush1.bf16.msra.mxu1 %v27637_v19  ;;  %v27679_v19 = vld [vmem:[%s38160_s3 + $0x1ab0] ss:$28 sps:$4 sm:$0xff]  }
 0x680   :  { %19386 = vmatpush1.bf16.msra.mxu0 %v27640_v34  ;;  %18957 = vmatprep.subr.bf16.mxu1 %v27645_v35  ;;  %v27682_v34 = vld [vmem:[%s38160_s3 + $0x1268] ss:$28 sps:$4 sm:$0xff]  }
 0x681   :  { %19387 = vmatprep.subr.bf16.mxu0 %v27648_v53  ;;  %v27687_v35 = vld [vmem:[%s38160_s3 + $0x1aec] ss:$28 sps:$4 sm:$0xff]   ;;  %v27690_v53 = vld [vmem:[%s38160_s3 + $0x12a4] ss:$28 sps:$4 sm:$0xff]  }
 0x683   :  { %18958 = vmatpush1.bf16.msra.mxu1 %v27643_v37  ;;  %v27685_v37 = vld [vmem:[%s38160_s3 + $0x1ae8] ss:$28 sps:$4 sm:$0xff]  }
 0x684   :  { %19388 = vmatpush1.bf16.msra.mxu0 %v27646_v44  ;;  %18959 = vmatprep.subr.bf16.mxu1 %v27651_v45  ;;  %v27688_v44 = vld [vmem:[%s38160_s3 + $0x12a0] ss:$28 sps:$4 sm:$0xff]  }
 0x685   :  { %19389 = vmatprep.subr.bf16.mxu0 %v27654_v55  ;;  %v27693_v45 = vld [vmem:[%s38160_s3 + $0x1b24] ss:$28 sps:$4 sm:$0xff]   ;;  %v27696_v55 = vld [vmem:[%s38160_s3 + $0x12dc] ss:$28 sps:$4 sm:$0xff]  }
 0x687   :  { %18960 = vmatpush1.bf16.msra.mxu1 %v27649_v0  ;;  %v27691_v0 = vld [vmem:[%s38160_s3 + $0x1b20] ss:$28 sps:$4 sm:$0xff]  }
 0x688   :  { %19390 = vmatpush1.bf16.msra.mxu0 %v27652_v9  ;;  %18961 = vmatprep.subr.bf16.mxu1 %v27657_v29  ;;  %v27694_v9 = vld [vmem:[%s38160_s3 + $0x12d8] ss:$28 sps:$4 sm:$0xff]  }
 0x689   :  { %19400 = vmatprep.subr.bf16.mxu0 %v27660_v58  ;;  %v27699_v29 = vld [vmem:[%s38160_s3 + $0x1b5c] ss:$28 sps:$4 sm:$0xff]   ;;  %v27702_v58 = vld [vmem:[%s38160_s3 + $0x1314] ss:$28 sps:$4 sm:$0xff]  }
 0x68b   :  { %18962 = vmatpush1.bf16.msra.mxu1 %v27655_v61  ;;  %19392 = vmatmul.mubr.bf16.vlgmr.msra.gmra.mrb[36].mxu0 %v34075_v3  ;;  %v27697_v61 = vld [vmem:[%s38160_s3 + $0x1b58] ss:$28 sps:$4 sm:$0xff]  }
 0x68c   :  { %19401 = vmatpush1.bf16.msra.mxu0 %v27658_v12  ;;  %19432 = vmatprep.mubr.bf16.mxu0 %v34080_v41  ;;  %v1379_v12 = vrot.slane %v34246_v59, %v33802_v10  ;;  %v27708_v59 = vld [vmem:[%s38160_s3 + $0x134c] ss:$28 sps:$4 sm:$0xff]  }
 0x68d   :  { %18963 = vmatprep.subr.bf16.mxu1 %v27663_v28  ;;  %19402 = vmatprep.subr.bf16.mxu0 %v27666_v60  ;;  %v34668_v28 = vld [vmem:[%s38159_s2 + $0x10] sm:$0xff] }
 0x68e   :  { %v27700_v60 = vld [vmem:[%s38160_s3 + $0x1310] ss:$28 sps:$4 sm:$0xff]  }
 0x68f   :  { %18964 = vmatpush1.bf16.msra.mxu1 %v27661_v39  ;;  %v27705_v39 = vld [vmem:[%s38160_s3 + $0x1b94] ss:$28 sps:$4 sm:$0xff]  }
 0x690   :  { %19403 = vmatpush1.bf16.msra.mxu0 %v27664_v5  ;;  %18965 = vmatprep.subr.bf16.mxu1 %v27669_v7  ;;  %v1391_v5 = vrot.slane %v34668_v28, %v32959_v56  ;;  %v27703_v7 = vld [vmem:[%s38160_s3 + $0x1b90] ss:$28 sps:$4 sm:$0xff]  }
 0x691   :  { %19404 = vmatprep.subr.bf16.mxu0 %v27672_v15  ;;  %v24923_v15 = vadd.f32 %v32293_v8, %v1379_v12  ;;  %v27709_v8 = vld [vmem:[%s38160_s3 + $0x1bc8] ss:$28 sps:$4 sm:$0xff]  }
 0x692   :  { %v27738_v12 = vld [vmem:[%s38160_s3 + $0x1464] ss:$28 sps:$4 sm:$0xff]  }
 0x693   :  { %18966 = vmatpush1.bf16.msra.mxu1 %v27667_v48  ;;  %v27706_v48 = vld [vmem:[%s38160_s3 + $0x1348] ss:$28 sps:$4 sm:$0xff]  }
 0x694   :  { %19405 = vmatpush1.bf16.msra.mxu0 %v27670_v54  ;;  %18967 = vmatprep.subr.bf16.mxu1 %v27675_v16  ;;  %v27711_v54 = vld [vmem:[%s38160_s3 + $0x1bcc] ss:$28 sps:$4 sm:$0xff]   ;;  %v24926_v16 = vadd.f32 %v33326_v13, %v1391_v5  ;;  %v27717_v13 = vld [vmem:[%s38160_s3 + $0x1c04] ss:$28 sps:$4 sm:$0xff]  }
 0x695   :  { %19406 = vmatprep.subr.bf16.mxu0 %v27678_v46  ;;  %v27714_v46 = vld [vmem:[%s38160_s3 + $0x1384] ss:$28 sps:$4 sm:$0xff]  }
 0x696   :  { %v27741_v5 = vld [vmem:[%s38160_s3 + $0x1ce4] ss:$28 sps:$4 sm:$0xff]  }
 0x697   :  { %18968 = vmatpush1.bf16.msra.mxu1 %v27673_v33  ;;  %v9789_v33 = vmax.f32 %v24923_v15, 0.0  ;;  %v27742_v15 = vld [vmem:[%s38160_s3 + $0x1498] ss:$28 sps:$4 sm:$0xff]  }
 0x698   :  { %19407 = vmatpush1.bf16.msra.mxu0 %v27676_v4  ;;  %18969 = vmatprep.subr.bf16.mxu1 %v27681_v42  ;;  %v27712_v4 = vld [vmem:[%s38160_s3 + $0x1380] ss:$28 sps:$4 sm:$0xff]   ;;  %v9792_v42 = vmax.f32 %v24926_v16, 0.0  ;;  %v27745_v16 = vld [vmem:[%s38160_s3 + $0x1d18] ss:$28 sps:$4 sm:$0xff]  }
 0x699   :  { %19408 = vmatprep.subr.bf16.mxu0 %v27684_v32  ;;  %v27720_v32 = vld [vmem:[%s38160_s3 + $0x13bc] ss:$28 sps:$4 sm:$0xff]  }
 0x69b   :  { %18970 = vmatpush1.bf16.msra.mxu1 %v27679_v19  ;;  %v27715_v19 = vld [vmem:[%s38160_s3 + $0x1c00] ss:$28 sps:$4 sm:$0xff]  }
 0x69c   :  { %19409 = vmatpush1.bf16.msra.mxu0 %v27682_v34  ;;  %18971 = vmatprep.subr.bf16.mxu1 %v27687_v35  ;;  %v34710_v34 = vpack.c.bf16 %v9789_v33, %v9789_v33  ;;  %v27718_v35 = vld [vmem:[%s38160_s3 + $0x13b8] ss:$28 sps:$4 sm:$0xff]   ;;  %v27756_v33 = vld [vmem:[%s38160_s3 + $0x150c] ss:$28 sps:$4 sm:$0xff]  }
 0x69d   :  { %19410 = vmatprep.subr.bf16.mxu0 %v27690_v53  ;;  %v27723_v53 = vld [vmem:[%s38160_s3 + $0x1c3c] ss:$28 sps:$4 sm:$0xff]  }
 0x69f   :  { %18972 = vmatpush1.bf16.msra.mxu1 %v27685_v37  ;;  %v34718_v37 = vpack.c.bf16 %v9792_v42, %v9792_v42  ;;  %v27759_v42 = vld [vmem:[%s38160_s3 + $0x1d8c] ss:$28 sps:$4 sm:$0xff]  }
 0x6a0   :  { %19411 = vmatpush1.bf16.msra.mxu0 %v27688_v44  ;;  %18973 = vmatprep.subr.bf16.mxu1 %v27693_v45  ;;  %v27726_v44 = vld [vmem:[%s38160_s3 + $0x13f4] ss:$28 sps:$4 sm:$0xff]  }
 0x6a1   :  { %19412 = vmatprep.subr.bf16.mxu0 %v27696_v55  ;;  %v27721_v45 = vld [vmem:[%s38160_s3 + $0x1c38] ss:$28 sps:$4 sm:$0xff]   ;;  %v27724_v55 = vld [vmem:[%s38160_s3 + $0x13f0] ss:$28 sps:$4 sm:$0xff]  }
 0x6a3   :  { %18974 = vmatpush1.bf16.msra.mxu1 %v27691_v0  ;;  %v27729_v0 = vld [vmem:[%s38160_s3 + $0x1c74] ss:$28 sps:$4 sm:$0xff]  }
 0x6a4   :  { %19413 = vmatpush1.bf16.msra.mxu0 %v27694_v9  ;;  %18975 = vmatprep.subr.bf16.mxu1 %v27699_v29  ;;  %v27732_v9 = vld [vmem:[%s38160_s3 + $0x142c] ss:$28 sps:$4 sm:$0xff]  }
 0x6a5   :  { %19414 = vmatprep.subr.bf16.mxu0 %v27702_v58  ;;  %v27727_v29 = vld [vmem:[%s38160_s3 + $0x1c70] ss:$28 sps:$4 sm:$0xff]   ;;  %v27730_v58 = vld [vmem:[%s38160_s3 + $0x1428] ss:$28 sps:$4 sm:$0xff]  }
 0x6a7   :  { %18976 = vmatpush1.bf16.msra.mxu1 %v27697_v61  ;;  %v27735_v61 = vld [vmem:[%s38160_s3 + $0x1cac] ss:$28 sps:$4 sm:$0xff]  }
 0x6a8   :  { %19415 = vmatpush1.bf16.msra.mxu0 %v27700_v60  ;;  %18977 = vmatprep.subr.bf16.mxu1 %v27705_v39  ;;  %v27733_v60 = vld [vmem:[%s38160_s3 + $0x1ca8] ss:$28 sps:$4 sm:$0xff]   ;;  %v27736_v39 = vld [vmem:[%s38160_s3 + $0x1460] ss:$28 sps:$4 sm:$0xff]  }
 0x6a9   :  { %19416 = vmatprep.subr.bf16.mxu0 %v27708_v59  ;;  %v27744_v59 = vld [vmem:[%s38160_s3 + $0x149c] ss:$28 sps:$4 sm:$0xff]  }
 0x6ab   :  { %18978 = vmatpush1.bf16.msra.mxu1 %v27703_v7  ;;  %v27739_v7 = vld [vmem:[%s38160_s3 + $0x1ce0] ss:$28 sps:$4 sm:$0xff]  }
 0x6ac   :  { %19417 = vmatpush1.bf16.msra.mxu0 %v27706_v48  ;;  %18979 = vmatprep.subr.bf16.mxu1 %v27711_v54  ;;  %v27747_v48 = vld [vmem:[%s38160_s3 + $0x1d1c] ss:$28 sps:$4 sm:$0xff]   ;;  %v27750_v54 = vld [vmem:[%s38160_s3 + $0x14d4] ss:$28 sps:$4 sm:$0xff]  }
 0x6ad   :  { %19418 = vmatprep.subr.bf16.mxu0 %v27714_v46  ;;  %v27748_v46 = vld [vmem:[%s38160_s3 + $0x14d0] ss:$28 sps:$4 sm:$0xff]  }
 0x6af   :  { %18980 = vmatpush1.bf16.msra.mxu1 %v27709_v8  ;;  %v27753_v8 = vld [vmem:[%s38160_s3 + $0x1d54] ss:$28 sps:$4 sm:$0xff]  }
 0x6b0   :  { %19419 = vmatpush1.bf16.msra.mxu0 %v27712_v4  ;;  %18990 = vmatprep.subr.bf16.mxu1 %v27717_v13  ;;  %v27751_v4 = vld [vmem:[%s38160_s3 + $0x1d50] ss:$28 sps:$4 sm:$0xff]   ;;  %v27754_v13 = vld [vmem:[%s38160_s3 + $0x1508] ss:$28 sps:$4 sm:$0xff]  }
 0x6b1   :  { %19420 = vmatprep.subr.bf16.mxu0 %v27720_v32  ;;  %v27762_v32 = vld [vmem:[%s38160_s3 + $0x1544] ss:$28 sps:$4 sm:$0xff]  }
 0x6b2   :  { %18982 = vmatmul.mubr.bf16.vlgmr.msra.gmra.mrb[32].mxu1 %v34710_v34 }
 0x6b3   :  { %18991 = vmatpush1.bf16.msra.mxu1 %v27715_v19  ;;  %19022 = vmatprep.mubr.bf16.mxu1 %v34718_v37  ;;  %v27757_v19 = vld [vmem:[%s38160_s3 + $0x1d88] ss:$28 sps:$4 sm:$0xff]  }
 0x6b4   :  { %19421 = vmatpush1.bf16.msra.mxu0 %v27718_v35  ;;  %18992 = vmatprep.subr.bf16.mxu1 %v27723_v53  ;;  %v27760_v35 = vld [vmem:[%s38160_s3 + $0x1540] ss:$28 sps:$4 sm:$0xff]  }
 0x6b5   :  { %19422 = vmatprep.subr.bf16.mxu0 %v27726_v44  ;;  %v27765_v53 = vld [vmem:[%s38160_s3 + $0x1dc4] ss:$28 sps:$4 sm:$0xff]   ;;  %v27768_v44 = vld [vmem:[%s38160_s3 + $0x157c] ss:$28 sps:$4 sm:$0xff]  }
 0x6b7   :  { %18993 = vmatpush1.bf16.msra.mxu1 %v27721_v45  ;;  %v27763_v45 = vld [vmem:[%s38160_s3 + $0x1dc0] ss:$28 sps:$4 sm:$0xff]  }
 0x6b8   :  { %19423 = vmatpush1.bf16.msra.mxu0 %v27724_v55  ;;  %18994 = vmatprep.subr.bf16.mxu1 %v27729_v0  ;;  %v27766_v55 = vld [vmem:[%s38160_s3 + $0x1578] ss:$28 sps:$4 sm:$0xff]  }
 0x6b9   :  { %19424 = vmatprep.subr.bf16.mxu0 %v27732_v9  ;;  %v27771_v0 = vld [vmem:[%s38160_s3 + $0x1dfc] ss:$28 sps:$4 sm:$0xff]   ;;  %v27774_v9 = vld [vmem:[%s38160_s3 + $0x15b4] ss:$28 sps:$4 sm:$0xff]  }
 0x6bb   :  { %18995 = vmatpush1.bf16.msra.mxu1 %v27727_v29  ;;  %v27769_v29 = vld [vmem:[%s38160_s3 + $0x1df8] ss:$28 sps:$4 sm:$0xff]  }
 0x6bc   :  { %19425 = vmatpush1.bf16.msra.mxu0 %v27730_v58  ;;  %18996 = vmatprep.subr.bf16.mxu1 %v27735_v61  ;;  %v27772_v58 = vld [vmem:[%s38160_s3 + $0x15b0] ss:$28 sps:$4 sm:$0xff]  }
 0x6bd   :  { %19426 = vmatprep.subr.bf16.mxu0 %v27738_v12  ;;  %v27777_v61 = vld [vmem:[%s38160_s3 + $0x1e34] ss:$28 sps:$4 sm:$0xff]   ;;  %v27780_v12 = vld [vmem:[%s38160_s3 + $0x15ec] ss:$28 sps:$4 sm:$0xff]  }
 0x6bf   :  { %18997 = vmatpush1.bf16.msra.mxu1 %v27733_v60  ;;  %v27775_v60 = vld [vmem:[%s38160_s3 + $0x1e30] ss:$28 sps:$4 sm:$0xff]  }
 0x6c0   :  { %19427 = vmatpush1.bf16.msra.mxu0 %v27736_v39  ;;  %18998 = vmatprep.subr.bf16.mxu1 %v27741_v5  ;;  %v27778_v39 = vld [vmem:[%s38160_s3 + $0x15e8] ss:$28 sps:$4 sm:$0xff]  }
 0x6c1   :  { %19428 = vmatprep.subr.bf16.mxu0 %v27744_v59  ;;  %v27783_v5 = vld [vmem:[%s38160_s3 + $0x1e6c] ss:$28 sps:$4 sm:$0xff]   ;;  %v27786_v59 = vld [vmem:[%s38160_s3 + $0x1624] ss:$28 sps:$4 sm:$0xff]  }
 0x6c3   :  { %18999 = vmatpush1.bf16.msra.mxu1 %v27739_v7  ;;  %v27781_v7 = vld [vmem:[%s38160_s3 + $0x1e68] ss:$28 sps:$4 sm:$0xff]  }
 0x6c4   :  { %19429 = vmatpush1.bf16.msra.mxu0 %v27742_v15  ;;  %19000 = vmatprep.subr.bf16.mxu1 %v27747_v48  ;;  %v27784_v15 = vld [vmem:[%s38160_s3 + $0x1620] ss:$28 sps:$4 sm:$0xff]  }
 0x6c5   :  { %19430 = vmatprep.subr.bf16.mxu0 %v27750_v54  ;;  %v27789_v48 = vld [vmem:[%s38160_s3 + $0x1ea4] ss:$28 sps:$4 sm:$0xff]   ;;  %v27792_v54 = vld [vmem:[%s38160_s3 + $0x165c] ss:$28 sps:$4 sm:$0xff]  }
 0x6c7   :  { %19001 = vmatpush1.bf16.msra.mxu1 %v27745_v16  ;;  %v27787_v16 = vld [vmem:[%s38160_s3 + $0x1ea0] ss:$28 sps:$4 sm:$0xff]  }
 0x6c8   :  { %19431 = vmatpush1.bf16.msra.mxu0 %v27748_v46  ;;  %19002 = vmatprep.subr.bf16.mxu1 %v27753_v8  ;;  %v27790_v46 = vld [vmem:[%s38160_s3 + $0x1658] ss:$28 sps:$4 sm:$0xff]  }
 0x6c9   :  { %19441 = vmatprep.subr.bf16.mxu0 %v27756_v33  ;;  %v27795_v8 = vld [vmem:[%s38160_s3 + $0x1edc] ss:$28 sps:$4 sm:$0xff]   ;;  %v27798_v33 = vld [vmem:[%s38160_s3 + $0x1694] ss:$28 sps:$4 sm:$0xff]  }
 0x6cb   :  { %19003 = vmatpush1.bf16.msra.mxu1 %v27751_v4  ;;  %19433 = vmatmul.mubr.bf16.vlgmr.msra.gmra.mrb[36].mxu0 %v34293_v22  ;;  %v27793_v4 = vld [vmem:[%s38160_s3 + $0x1ed8] ss:$28 sps:$4 sm:$0xff]  }
 0x6cc   :  { %19442 = vmatpush1.bf16.msra.mxu0 %v27754_v13  ;;  %19473 = vmatprep.mubr.bf16.mxu0 %v34301_v38  ;;  %v1387_v13 = vrot.slane %v34668_v28, %v33164_v49 }
 0x6cd   :  { %19004 = vmatprep.subr.bf16.mxu1 %v27759_v42  ;;  %19443 = vmatprep.subr.bf16.mxu0 %v27762_v32  ;;  %v27796_v42 = vld [vmem:[%s38160_s3 + $0x1690] ss:$28 sps:$4 sm:$0xff]  }
 0x6ce   :  { %v27801_v32 = vld [vmem:[%s38160_s3 + $0x1f14] ss:$28 sps:$4 sm:$0xff]  }
 0x6cf   :  { %19005 = vmatpush1.bf16.msra.mxu1 %v27757_v19  ;;  %v1399_v19 = vrot.slane %v34668_v28, %v30802_v30 }
 0x6d0   :  { %19444 = vmatpush1.bf16.msra.mxu0 %v27760_v35  ;;  %19006 = vmatprep.subr.bf16.mxu1 %v27765_v53  ;;  %v27804_v35 = vld [vmem:[%s38160_s3 + $0x16cc] ss:$28 sps:$4 sm:$0xff]  }
 0x6d1   :  { %19445 = vmatprep.subr.bf16.mxu0 %v27768_v44  ;;  %v27799_v53 = vld [vmem:[%s38160_s3 + $0x1f10] ss:$28 sps:$4 sm:$0xff]   ;;  %v24925_v44 = vadd.f32 %v33321_v26, %v1387_v13  ;;  %v27805_v26 = vld [vmem:[%s38160_s3 + $0x1f48] ss:$28 sps:$4 sm:$0xff]  }
 0x6d2   :  { %v27834_v13 = vld [vmem:[%s38160_s3 + $0x17e4] ss:$28 sps:$4 sm:$0xff]  }
 0x6d3   :  { %19007 = vmatpush1.bf16.msra.mxu1 %v27763_v45  ;;  %v27802_v45 = vld [vmem:[%s38160_s3 + $0x16c8] ss:$28 sps:$4 sm:$0xff]  }
 0x6d4   :  { %19446 = vmatpush1.bf16.msra.mxu0 %v27766_v55  ;;  %19008 = vmatprep.subr.bf16.mxu1 %v27771_v0  ;;  %v27807_v55 = vld [vmem:[%s38160_s3 + $0x1f4c] ss:$28 sps:$4 sm:$0xff]   ;;  %v24928_v0 = vadd.f32 %v32917_v36, %v1399_v19  ;;  %v27813_v36 = vld [vmem:[%s38160_s3 + $0x1f84] ss:$28 sps:$4 sm:$0xff]  }
 0x6d5   :  { %19447 = vmatprep.subr.bf16.mxu0 %v27774_v9  ;;  %v27810_v9 = vld [vmem:[%s38160_s3 + $0x1704] ss:$28 sps:$4 sm:$0xff]  }
 0x6d6   :  { %v27837_v19 = vld [vmem:[%s38160_s3 + $0x2064] ss:$28 sps:$4 sm:$0xff]  }
 0x6d7   :  { %19009 = vmatpush1.bf16.msra.mxu1 %v27769_v29  ;;  %v9791_v29 = vmax.f32 %v24925_v44, 0.0  ;;  %v27838_v44 = vld [vmem:[%s38160_s3 + $0x1818] ss:$28 sps:$4 sm:$0xff]  }
 0x6d8   :  { %19448 = vmatpush1.bf16.msra.mxu0 %v27772_v58  ;;  %19010 = vmatprep.subr.bf16.mxu1 %v27777_v61  ;;  %v27808_v58 = vld [vmem:[%s38160_s3 + $0x1700] ss:$28 sps:$4 sm:$0xff]   ;;  %v9794_v61 = vmax.f32 %v24928_v0, 0.0  ;;  %v27841_v0 = vld [vmem:[%s38160_s3 + $0x2098] ss:$28 sps:$4 sm:$0xff]  }
 0x6d9   :  { %19449 = vmatprep.subr.bf16.mxu0 %v27780_v12  ;;  %v27816_v12 = vld [vmem:[%s38160_s3 + $0x173c] ss:$28 sps:$4 sm:$0xff]  }
 0x6db   :  { %19011 = vmatpush1.bf16.msra.mxu1 %v27775_v60  ;;  %v27811_v60 = vld [vmem:[%s38160_s3 + $0x1f80] ss:$28 sps:$4 sm:$0xff]  }
 0x6dc   :  { %19450 = vmatpush1.bf16.msra.mxu0 %v27778_v39  ;;  %19012 = vmatprep.subr.bf16.mxu1 %v27783_v5  ;;  %v34916_v39 = vpack.c.bf16 %v9791_v29, %v9791_v29  ;;  %v27814_v5 = vld [vmem:[%s38160_s3 + $0x1738] ss:$28 sps:$4 sm:$0xff]   ;;  %v27852_v29 = vld [vmem:[%s38160_s3 + $0x188c] ss:$28 sps:$4 sm:$0xff]  }
 0x6dd   :  { %19451 = vmatprep.subr.bf16.mxu0 %v27786_v59  ;;  %v27819_v59 = vld [vmem:[%s38160_s3 + $0x1fbc] ss:$28 sps:$4 sm:$0xff]  }
 0x6df   :  { %19013 = vmatpush1.bf16.msra.mxu1 %v27781_v7  ;;  %v34924_v7 = vpack.c.bf16 %v9794_v61, %v9794_v61  ;;  %v27855_v61 = vld [vmem:[%s38160_s3 + $0x210c] ss:$28 sps:$4 sm:$0xff]  }
 0x6e0   :  { %19452 = vmatpush1.bf16.msra.mxu0 %v27784_v15  ;;  %19014 = vmatprep.subr.bf16.mxu1 %v27789_v48  ;;  %v27822_v15 = vld [vmem:[%s38160_s3 + $0x1774] ss:$28 sps:$4 sm:$0xff]  }
 0x6e1   :  { %19453 = vmatprep.subr.bf16.mxu0 %v27792_v54  ;;  %v27817_v48 = vld [vmem:[%s38160_s3 + $0x1fb8] ss:$28 sps:$4 sm:$0xff]   ;;  %v27820_v54 = vld [vmem:[%s38160_s3 + $0x1770] ss:$28 sps:$4 sm:$0xff]  }
 0x6e3   :  { %19015 = vmatpush1.bf16.msra.mxu1 %v27787_v16  ;;  %v27825_v16 = vld [vmem:[%s38160_s3 + $0x1ff4] ss:$28 sps:$4 sm:$0xff]  }
 0x6e4   :  { %19454 = vmatpush1.bf16.msra.mxu0 %v27790_v46  ;;  %19016 = vmatprep.subr.bf16.mxu1 %v27795_v8  ;;  %v27828_v46 = vld [vmem:[%s38160_s3 + $0x17ac] ss:$28 sps:$4 sm:$0xff]  }
 0x6e5   :  { %19455 = vmatprep.subr.bf16.mxu0 %v27798_v33  ;;  %v27823_v8 = vld [vmem:[%s38160_s3 + $0x1ff0] ss:$28 sps:$4 sm:$0xff]   ;;  %v27826_v33 = vld [vmem:[%s38160_s3 + $0x17a8] ss:$28 sps:$4 sm:$0xff]  }
 0x6e7   :  { %19017 = vmatpush1.bf16.msra.mxu1 %v27793_v4  ;;  %v27831_v4 = vld [vmem:[%s38160_s3 + $0x202c] ss:$28 sps:$4 sm:$0xff]  }
 0x6e8   :  { %19456 = vmatpush1.bf16.msra.mxu0 %v27796_v42  ;;  %19018 = vmatprep.subr.bf16.mxu1 %v27801_v32  ;;  %v27829_v42 = vld [vmem:[%s38160_s3 + $0x2028] ss:$28 sps:$4 sm:$0xff]   ;;  %v27832_v32 = vld [vmem:[%s38160_s3 + $0x17e0] ss:$28 sps:$4 sm:$0xff]  }
 0x6e9   :  { %19457 = vmatprep.subr.bf16.mxu0 %v27804_v35  ;;  %v27840_v35 = vld [vmem:[%s38160_s3 + $0x181c] ss:$28 sps:$4 sm:$0xff]  }
 0x6eb   :  { %19019 = vmatpush1.bf16.msra.mxu1 %v27799_v53  ;;  %v27835_v53 = vld [vmem:[%s38160_s3 + $0x2060] ss:$28 sps:$4 sm:$0xff]  }
 0x6ec   :  { %19458 = vmatpush1.bf16.msra.mxu0 %v27802_v45  ;;  %19020 = vmatprep.subr.bf16.mxu1 %v27807_v55  ;;  %v27843_v45 = vld [vmem:[%s38160_s3 + $0x209c] ss:$28 sps:$4 sm:$0xff]   ;;  %v27846_v55 = vld [vmem:[%s38160_s3 + $0x1854] ss:$28 sps:$4 sm:$0xff]  }
 0x6ed   :  { %19459 = vmatprep.subr.bf16.mxu0 %v27810_v9  ;;  %v27844_v9 = vld [vmem:[%s38160_s3 + $0x1850] ss:$28 sps:$4 sm:$0xff]  }
 0x6ef   :  { %19021 = vmatpush1.bf16.msra.mxu1 %v27805_v26  ;;  %v27849_v26 = vld [vmem:[%s38160_s3 + $0x20d4] ss:$28 sps:$4 sm:$0xff]  }
 0x6f0   :  { %19460 = vmatpush1.bf16.msra.mxu0 %v27808_v58  ;;  %19031 = vmatprep.subr.bf16.mxu1 %v27813_v36  ;;  %v27847_v58 = vld [vmem:[%s38160_s3 + $0x20d0] ss:$28 sps:$4 sm:$0xff]   ;;  %v27850_v36 = vld [vmem:[%s38160_s3 + $0x1888] ss:$28 sps:$4 sm:$0xff]  }
 0x6f1   :  { %19461 = vmatprep.subr.bf16.mxu0 %v27816_v12  ;;  %v27858_v12 = vld [vmem:[%s38160_s3 + $0x18c4] ss:$28 sps:$4 sm:$0xff]  }
 0x6f2   :  { %19023 = vmatmul.mubr.bf16.vlgmr.msra.gmra.mrb[32].mxu1 %v34916_v39 }
 0x6f3   :  { %19032 = vmatpush1.bf16.msra.mxu1 %v27811_v60  ;;  %19063 = vmatprep.mubr.bf16.mxu1 %v34924_v7  ;;  %v27853_v60 = vld [vmem:[%s38160_s3 + $0x2108] ss:$28 sps:$4 sm:$0xff]  }
 0x6f4   :  { %19462 = vmatpush1.bf16.msra.mxu0 %v27814_v5  ;;  %19033 = vmatprep.subr.bf16.mxu1 %v27819_v59  ;;  %v27856_v5 = vld [vmem:[%s38160_s3 + $0x18c0] ss:$28 sps:$4 sm:$0xff]  }
 0x6f5   :  { %19463 = vmatprep.subr.bf16.mxu0 %v27822_v15  ;;  %v27861_v59 = vld [vmem:[%s38160_s3 + $0x2144] ss:$28 sps:$4 sm:$0xff]   ;;  %v27864_v15 = vld [vmem:[%s38160_s3 + $0x18fc] ss:$28 sps:$4 sm:$0xff]  }
 0x6f7   :  { %19034 = vmatpush1.bf16.msra.mxu1 %v27817_v48  ;;  %v27859_v48 = vld [vmem:[%s38160_s3 + $0x2140] ss:$28 sps:$4 sm:$0xff]  }
 0x6f8   :  { %19464 = vmatpush1.bf16.msra.mxu0 %v27820_v54  ;;  %19035 = vmatprep.subr.bf16.mxu1 %v27825_v16  ;;  %v27862_v54 = vld [vmem:[%s38160_s3 + $0x18f8] ss:$28 sps:$4 sm:$0xff]  }
 0x6f9   :  { %19465 = vmatprep.subr.bf16.mxu0 %v27828_v46  ;;  %v27867_v16 = vld [vmem:[%s38160_s3 + $0x217c] ss:$28 sps:$4 sm:$0xff]   ;;  %v27870_v46 = vld [vmem:[%s38160_s3 + $0x1934] ss:$28 sps:$4 sm:$0xff]  }
 0x6fb   :  { %19036 = vmatpush1.bf16.msra.mxu1 %v27823_v8  ;;  %v27865_v8 = vld [vmem:[%s38160_s3 + $0x2178] ss:$28 sps:$4 sm:$0xff]  }
 0x6fc   :  { %19466 = vmatpush1.bf16.msra.mxu0 %v27826_v33  ;;  %19037 = vmatprep.subr.bf16.mxu1 %v27831_v4  ;;  %v27868_v33 = vld [vmem:[%s38160_s3 + $0x1930] ss:$28 sps:$4 sm:$0xff]  }
 0x6fd   :  { %19467 = vmatprep.subr.bf16.mxu0 %v27834_v13  ;;  %v27873_v4 = vld [vmem:[%s38160_s3 + $0x21b4] ss:$28 sps:$4 sm:$0xff]   ;;  %v27876_v13 = vld [vmem:[%s38160_s3 + $0x196c] ss:$28 sps:$4 sm:$0xff]  }
 0x6ff   :  { %19038 = vmatpush1.bf16.msra.mxu1 %v27829_v42  ;;  %v27871_v42 = vld [vmem:[%s38160_s3 + $0x21b0] ss:$28 sps:$4 sm:$0xff]  }
 0x700   :  { %19468 = vmatpush1.bf16.msra.mxu0 %v27832_v32  ;;  %19039 = vmatprep.subr.bf16.mxu1 %v27837_v19  ;;  %v27874_v32 = vld [vmem:[%s38160_s3 + $0x1968] ss:$28 sps:$4 sm:$0xff]  }
 0x701   :  { %19469 = vmatprep.subr.bf16.mxu0 %v27840_v35  ;;  %v27879_v19 = vld [vmem:[%s38160_s3 + $0x21ec] ss:$28 sps:$4 sm:$0xff]   ;;  %v27882_v35 = vld [vmem:[%s38160_s3 + $0x19a4] ss:$28 sps:$4 sm:$0xff]  }
 0x703   :  { %19040 = vmatpush1.bf16.msra.mxu1 %v27835_v53  ;;  %v27877_v53 = vld [vmem:[%s38160_s3 + $0x21e8] ss:$28 sps:$4 sm:$0xff]  }
 0x704   :  { %19470 = vmatpush1.bf16.msra.mxu0 %v27838_v44  ;;  %19041 = vmatprep.subr.bf16.mxu1 %v27843_v45  ;;  %v27880_v44 = vld [vmem:[%s38160_s3 + $0x19a0] ss:$28 sps:$4 sm:$0xff]  }
 0x705   :  { %19471 = vmatprep.subr.bf16.mxu0 %v27846_v55  ;;  %v27885_v45 = vld [vmem:[%s38160_s3 + $0x2224] ss:$28 sps:$4 sm:$0xff]   ;;  %v27888_v55 = vld [vmem:[%s38160_s3 + $0x19dc] ss:$28 sps:$4 sm:$0xff]  }
 0x707   :  { %19042 = vmatpush1.bf16.msra.mxu1 %v27841_v0  ;;  %v27883_v0 = vld [vmem:[%s38160_s3 + $0x2220] ss:$28 sps:$4 sm:$0xff]  }
 0x708   :  { %19472 = vmatpush1.bf16.msra.mxu0 %v27844_v9  ;;  %19043 = vmatprep.subr.bf16.mxu1 %v27849_v26  ;;  %v27886_v9 = vld [vmem:[%s38160_s3 + $0x19d8] ss:$28 sps:$4 sm:$0xff]  }
 0x709   :  { %19482 = vmatprep.subr.bf16.mxu0 %v27852_v29  ;;  %v27891_v26 = vld [vmem:[%s38160_s3 + $0x225c] ss:$28 sps:$4 sm:$0xff]   ;;  %v27894_v29 = vld [vmem:[%s38160_s3 + $0x1a14] ss:$28 sps:$4 sm:$0xff]  }
 0x70b   :  { %19044 = vmatpush1.bf16.msra.mxu1 %v27847_v58  ;;  %19474 = vmatmul.mubr.bf16.vlgmr.msra.gmra.mrb[36].mxu0 %v34499_v63  ;;  %v27889_v58 = vld [vmem:[%s38160_s3 + $0x2258] ss:$28 sps:$4 sm:$0xff]  }
 0x70c   :  { %19483 = vmatpush1.bf16.msra.mxu0 %v27850_v36  ;;  %19514 = vmatprep.mubr.bf16.mxu0 %v34507_v6  ;;  %v1395_v36 = vrot.slane %v34668_v28, %v30793_v27 }
 0x70d   :  { %19045 = vmatprep.subr.bf16.mxu1 %v27855_v61  ;;  %19484 = vmatprep.subr.bf16.mxu0 %v27858_v12  ;;  %v27892_v61 = vld [vmem:[%s38160_s3 + $0x1a10] ss:$28 sps:$4 sm:$0xff]  }
 0x70e   :  { %v27897_v12 = vld [vmem:[%s38160_s3 + $0x2294] ss:$28 sps:$4 sm:$0xff]  }
 0x70f   :  { %19046 = vmatpush1.bf16.msra.mxu1 %v27853_v60  ;;  %v1407_v60 = vrot.slane %v34668_v28, %v33371_v47 }
 0x710   :  { %19485 = vmatpush1.bf16.msra.mxu0 %v27856_v5  ;;  %19047 = vmatprep.subr.bf16.mxu1 %v27861_v59  ;;  %v27900_v5 = vld [vmem:[%s38160_s3 + $0x1a4c] ss:$28 sps:$4 sm:$0xff]  }
 0x711   :  { %19486 = vmatprep.subr.bf16.mxu0 %v27864_v15  ;;  %v27895_v59 = vld [vmem:[%s38160_s3 + $0x2290] ss:$28 sps:$4 sm:$0xff]   ;;  %v24927_v15 = vadd.f32 %v32912_v31, %v1395_v36  ;;  %v27901_v31 = vld [vmem:[%s38160_s3 + $0x22c8] ss:$28 sps:$4 sm:$0xff]  }
 0x712   :  { %v27930_v36 = vld [vmem:[%s38160_s3 + $0x1b64] ss:$28 sps:$4 sm:$0xff]  }
 0x713   :  { %19048 = vmatpush1.bf16.msra.mxu1 %v27859_v48  ;;  %v27898_v48 = vld [vmem:[%s38160_s3 + $0x1a48] ss:$28 sps:$4 sm:$0xff]  }
 0x714   :  { %19487 = vmatpush1.bf16.msra.mxu0 %v27862_v54  ;;  %19049 = vmatprep.subr.bf16.mxu1 %v27867_v16  ;;  %v27903_v54 = vld [vmem:[%s38160_s3 + $0x22cc] ss:$28 sps:$4 sm:$0xff]   ;;  %v24930_v16 = vadd.f32 %v34016_v52, %v1407_v60  ;;  %v27909_v52 = vld [vmem:[%s38160_s3 + $0x2304] ss:$28 sps:$4 sm:$0xff]  }
 0x715   :  { %19488 = vmatprep.subr.bf16.mxu0 %v27870_v46  ;;  %v27906_v46 = vld [vmem:[%s38160_s3 + $0x1a84] ss:$28 sps:$4 sm:$0xff]  }
 0x716   :  { %v27933_v60 = vld [vmem:[%s38160_s3 + $0x23e4] ss:$28 sps:$4 sm:$0xff]  }
 0x717   :  { %19050 = vmatpush1.bf16.msra.mxu1 %v27865_v8  ;;  %v9793_v8 = vmax.f32 %v24927_v15, 0.0  ;;  %v27934_v15 = vld [vmem:[%s38160_s3 + $0x1b98] ss:$28 sps:$4 sm:$0xff]  }
 0x718   :  { %19489 = vmatpush1.bf16.msra.mxu0 %v27868_v33  ;;  %19051 = vmatprep.subr.bf16.mxu1 %v27873_v4  ;;  %v27904_v33 = vld [vmem:[%s38160_s3 + $0x1a80] ss:$28 sps:$4 sm:$0xff]   ;;  %v9796_v4 = vmax.f32 %v24930_v16, 0.0  ;;  %v27937_v16 = vld [vmem:[%s38160_s3 + $0x2418] ss:$28 sps:$4 sm:$0xff]  }
 0x719   :  { %19490 = vmatprep.subr.bf16.mxu0 %v27876_v13  ;;  %v27912_v13 = vld [vmem:[%s38160_s3 + $0x1abc] ss:$28 sps:$4 sm:$0xff]  }
 0x71b   :  { %19052 = vmatpush1.bf16.msra.mxu1 %v27871_v42  ;;  %v27907_v42 = vld [vmem:[%s38160_s3 + $0x2300] ss:$28 sps:$4 sm:$0xff]  }
 0x71c   :  { %19491 = vmatpush1.bf16.msra.mxu0 %v27874_v32  ;;  %19053 = vmatprep.subr.bf16.mxu1 %v27879_v19  ;;  %v35122_v32 = vpack.c.bf16 %v9793_v8, %v9793_v8  ;;  %v27910_v19 = vld [vmem:[%s38160_s3 + $0x1ab8] ss:$28 sps:$4 sm:$0xff]   ;;  %v27948_v8 = vld [vmem:[%s38160_s3 + $0x1c0c] ss:$28 sps:$4 sm:$0xff]  }
 0x71d   :  { %19492 = vmatprep.subr.bf16.mxu0 %v27882_v35  ;;  %v27915_v35 = vld [vmem:[%s38160_s3 + $0x233c] ss:$28 sps:$4 sm:$0xff]  }
 0x71f   :  { %19054 = vmatpush1.bf16.msra.mxu1 %v27877_v53  ;;  %v35130_v53 = vpack.c.bf16 %v9796_v4, %v9796_v4  ;;  %v27951_v4 = vld [vmem:[%s38160_s3 + $0x248c] ss:$28 sps:$4 sm:$0xff]  }
 0x720   :  { %19493 = vmatpush1.bf16.msra.mxu0 %v27880_v44  ;;  %19055 = vmatprep.subr.bf16.mxu1 %v27885_v45  ;;  %v27918_v44 = vld [vmem:[%s38160_s3 + $0x1af4] ss:$28 sps:$4 sm:$0xff]  }
 0x721   :  { %19494 = vmatprep.subr.bf16.mxu0 %v27888_v55  ;;  %v27913_v45 = vld [vmem:[%s38160_s3 + $0x2338] ss:$28 sps:$4 sm:$0xff]   ;;  %v27916_v55 = vld [vmem:[%s38160_s3 + $0x1af0] ss:$28 sps:$4 sm:$0xff]  }
 0x723   :  { %19056 = vmatpush1.bf16.msra.mxu1 %v27883_v0  ;;  %v27921_v0 = vld [vmem:[%s38160_s3 + $0x2374] ss:$28 sps:$4 sm:$0xff]  }
 0x724   :  { %19495 = vmatpush1.bf16.msra.mxu0 %v27886_v9  ;;  %19057 = vmatprep.subr.bf16.mxu1 %v27891_v26  ;;  %v27924_v9 = vld [vmem:[%s38160_s3 + $0x1b2c] ss:$28 sps:$4 sm:$0xff]  }
 0x725   :  { %19496 = vmatprep.subr.bf16.mxu0 %v27894_v29  ;;  %v27919_v26 = vld [vmem:[%s38160_s3 + $0x2370] ss:$28 sps:$4 sm:$0xff]   ;;  %v27922_v29 = vld [vmem:[%s38160_s3 + $0x1b28] ss:$28 sps:$4 sm:$0xff]  }
 0x727   :  { %19058 = vmatpush1.bf16.msra.mxu1 %v27889_v58  ;;  %v27927_v58 = vld [vmem:[%s38160_s3 + $0x23ac] ss:$28 sps:$4 sm:$0xff]  }
 0x728   :  { %19497 = vmatpush1.bf16.msra.mxu0 %v27892_v61  ;;  %19059 = vmatprep.subr.bf16.mxu1 %v27897_v12  ;;  %v27925_v61 = vld [vmem:[%s38160_s3 + $0x23a8] ss:$28 sps:$4 sm:$0xff]   ;;  %v27928_v12 = vld [vmem:[%s38160_s3 + $0x1b60] ss:$28 sps:$4 sm:$0xff]  }
 0x729   :  { %19498 = vmatprep.subr.bf16.mxu0 %v27900_v5  ;;  %v27936_v5 = vld [vmem:[%s38160_s3 + $0x1b9c] ss:$28 sps:$4 sm:$0xff]  }
 0x72b   :  { %19060 = vmatpush1.bf16.msra.mxu1 %v27895_v59  ;;  %v27931_v59 = vld [vmem:[%s38160_s3 + $0x23e0] ss:$28 sps:$4 sm:$0xff]  }
 0x72c   :  { %19499 = vmatpush1.bf16.msra.mxu0 %v27898_v48  ;;  %19061 = vmatprep.subr.bf16.mxu1 %v27903_v54  ;;  %v27939_v48 = vld [vmem:[%s38160_s3 + $0x241c] ss:$28 sps:$4 sm:$0xff]   ;;  %v27942_v54 = vld [vmem:[%s38160_s3 + $0x1bd4] ss:$28 sps:$4 sm:$0xff]  }
 0x72d   :  { %19500 = vmatprep.subr.bf16.mxu0 %v27906_v46  ;;  %v27940_v46 = vld [vmem:[%s38160_s3 + $0x1bd0] ss:$28 sps:$4 sm:$0xff]  }
 0x72f   :  { %19062 = vmatpush1.bf16.msra.mxu1 %v27901_v31  ;;  %v27945_v31 = vld [vmem:[%s38160_s3 + $0x2454] ss:$28 sps:$4 sm:$0xff]  }
 0x730   :  { %19501 = vmatpush1.bf16.msra.mxu0 %v27904_v33  ;;  %19072 = vmatprep.subr.bf16.mxu1 %v27909_v52  ;;  %v27943_v33 = vld [vmem:[%s38160_s3 + $0x2450] ss:$28 sps:$4 sm:$0xff]   ;;  %v27946_v52 = vld [vmem:[%s38160_s3 + $0x1c08] ss:$28 sps:$4 sm:$0xff]  }
 0x731   :  { %19502 = vmatprep.subr.bf16.mxu0 %v27912_v13  ;;  %v27954_v13 = vld [vmem:[%s38160_s3 + $0x1c44] ss:$28 sps:$4 sm:$0xff]  }
 0x732   :  { %19064 = vmatmul.mubr.bf16.vlgmr.msra.gmra.mrb[32].mxu1 %v35122_v32 }
 0x733   :  { %19073 = vmatpush1.bf16.msra.mxu1 %v27907_v42  ;;  %19104 = vmatprep.mubr.bf16.mxu1 %v35130_v53  ;;  %v27949_v42 = vld [vmem:[%s38160_s3 + $0x2488] ss:$28 sps:$4 sm:$0xff]  }
 0x734   :  { %19503 = vmatpush1.bf16.msra.mxu0 %v27910_v19  ;;  %19074 = vmatprep.subr.bf16.mxu1 %v27915_v35  ;;  %v27952_v19 = vld [vmem:[%s38160_s3 + $0x1c40] ss:$28 sps:$4 sm:$0xff]  }
 0x735   :  { %19504 = vmatprep.subr.bf16.mxu0 %v27918_v44  ;;  %v27957_v35 = vld [vmem:[%s38160_s3 + $0x24c4] ss:$28 sps:$4 sm:$0xff]   ;;  %v27960_v44 = vld [vmem:[%s38160_s3 + $0x1c7c] ss:$28 sps:$4 sm:$0xff]  }
 0x737   :  { %19075 = vmatpush1.bf16.msra.mxu1 %v27913_v45  ;;  %v27955_v45 = vld [vmem:[%s38160_s3 + $0x24c0] ss:$28 sps:$4 sm:$0xff]  }
 0x738   :  { %19505 = vmatpush1.bf16.msra.mxu0 %v27916_v55  ;;  %19076 = vmatprep.subr.bf16.mxu1 %v27921_v0  ;;  %v27958_v55 = vld [vmem:[%s38160_s3 + $0x1c78] ss:$28 sps:$4 sm:$0xff]  }
 0x739   :  { %19506 = vmatprep.subr.bf16.mxu0 %v27924_v9  ;;  %v27963_v0 = vld [vmem:[%s38160_s3 + $0x24fc] ss:$28 sps:$4 sm:$0xff]   ;;  %v27966_v9 = vld [vmem:[%s38160_s3 + $0x1cb4] ss:$28 sps:$4 sm:$0xff]  }
 0x73b   :  { %19077 = vmatpush1.bf16.msra.mxu1 %v27919_v26  ;;  %v27961_v26 = vld [vmem:[%s38160_s3 + $0x24f8] ss:$28 sps:$4 sm:$0xff]  }
 0x73c   :  { %19507 = vmatpush1.bf16.msra.mxu0 %v27922_v29  ;;  %19078 = vmatprep.subr.bf16.mxu1 %v27927_v58  ;;  %v27964_v29 = vld [vmem:[%s38160_s3 + $0x1cb0] ss:$28 sps:$4 sm:$0xff]  }
 0x73d   :  { %19508 = vmatprep.subr.bf16.mxu0 %v27930_v36  ;;  %v27969_v58 = vld [vmem:[%s38160_s3 + $0x2534] ss:$28 sps:$4 sm:$0xff]   ;;  %v27972_v36 = vld [vmem:[%s38160_s3 + $0x1cec] ss:$28 sps:$4 sm:$0xff]  }
 0x73f   :  { %19079 = vmatpush1.bf16.msra.mxu1 %v27925_v61  ;;  %v27967_v61 = vld [vmem:[%s38160_s3 + $0x2530] ss:$28 sps:$4 sm:$0xff]  }
 0x740   :  { %19509 = vmatpush1.bf16.msra.mxu0 %v27928_v12  ;;  %19080 = vmatprep.subr.bf16.mxu1 %v27933_v60  ;;  %v27970_v12 = vld [vmem:[%s38160_s3 + $0x1ce8] ss:$28 sps:$4 sm:$0xff]  }
 0x741   :  { %19510 = vmatprep.subr.bf16.mxu0 %v27936_v5  ;;  %v27975_v60 = vld [vmem:[%s38160_s3 + $0x256c] ss:$28 sps:$4 sm:$0xff]   ;;  %v27978_v5 = vld [vmem:[%s38160_s3 + $0x1d24] ss:$28 sps:$4 sm:$0xff]  }
 0x743   :  { %19081 = vmatpush1.bf16.msra.mxu1 %v27931_v59  ;;  %v27973_v59 = vld [vmem:[%s38160_s3 + $0x2568] ss:$28 sps:$4 sm:$0xff]  }
 0x744   :  { %19511 = vmatpush1.bf16.msra.mxu0 %v27934_v15  ;;  %19082 = vmatprep.subr.bf16.mxu1 %v27939_v48  ;;  %v27976_v15 = vld [vmem:[%s38160_s3 + $0x1d20] ss:$28 sps:$4 sm:$0xff]  }
 0x745   :  { %19512 = vmatprep.subr.bf16.mxu0 %v27942_v54  ;;  %v27981_v48 = vld [vmem:[%s38160_s3 + $0x25a4] ss:$28 sps:$4 sm:$0xff]   ;;  %v27984_v54 = vld [vmem:[%s38160_s3 + $0x1d5c] ss:$28 sps:$4 sm:$0xff]  }
 0x747   :  { %19083 = vmatpush1.bf16.msra.mxu1 %v27937_v16  ;;  %v27979_v16 = vld [vmem:[%s38160_s3 + $0x25a0] ss:$28 sps:$4 sm:$0xff]  }
 0x748   :  { %19513 = vmatpush1.bf16.msra.mxu0 %v27940_v46  ;;  %19084 = vmatprep.subr.bf16.mxu1 %v27945_v31  ;;  %v27982_v46 = vld [vmem:[%s38160_s3 + $0x1d58] ss:$28 sps:$4 sm:$0xff]  }
 0x749   :  { %19523 = vmatprep.subr.bf16.mxu0 %v27948_v8  ;;  %v27987_v31 = vld [vmem:[%s38160_s3 + $0x25dc] ss:$28 sps:$4 sm:$0xff]   ;;  %v27990_v8 = vld [vmem:[%s38160_s3 + $0x1d94] ss:$28 sps:$4 sm:$0xff]  }
 0x74b   :  { %19085 = vmatpush1.bf16.msra.mxu1 %v27943_v33  ;;  %19515 = vmatmul.mubr.bf16.vlgmr.msra.gmra.mrb[36].mxu0 %v34710_v34  ;;  %v27985_v33 = vld [vmem:[%s38160_s3 + $0x25d8] ss:$28 sps:$4 sm:$0xff]  }
 0x74c   :  { %19524 = vmatpush1.bf16.msra.mxu0 %v27946_v52  ;;  %19555 = vmatprep.mubr.bf16.mxu0 %v34718_v37  ;;  %v1403_v52 = vrot.slane %v34668_v28, %v33583_v50 }
 0x74d   :  { %19086 = vmatprep.subr.bf16.mxu1 %v27951_v4  ;;  %19525 = vmatprep.subr.bf16.mxu0 %v27954_v13  ;;  %v27988_v4 = vld [vmem:[%s38160_s3 + $0x1d90] ss:$28 sps:$4 sm:$0xff]  }
 0x74e   :  { %v27993_v13 = vld [vmem:[%s38160_s3 + $0x2614] ss:$28 sps:$4 sm:$0xff]  }
 0x74f   :  { %19087 = vmatpush1.bf16.msra.mxu1 %v27949_v42  ;;  %v1415_v42 = vrot.slane %v34668_v28, %v33592_v57  ;;  %v27999_v57 = vld [vmem:[%s38160_s3 + $0x264c] ss:$28 sps:$4 sm:$0xff]  }
 0x750   :  { %19526 = vmatpush1.bf16.msra.mxu0 %v27952_v19  ;;  %19088 = vmatprep.subr.bf16.mxu1 %v27957_v35  ;;  %v27996_v19 = vld [vmem:[%s38160_s3 + $0x1dcc] ss:$28 sps:$4 sm:$0xff]  }
 0x751   :  { %19527 = vmatprep.subr.bf16.mxu0 %v27960_v44  ;;  %v27991_v35 = vld [vmem:[%s38160_s3 + $0x2610] ss:$28 sps:$4 sm:$0xff]   ;;  %v24929_v44 = vadd.f32 %v34014_v2, %v1403_v52  ;;  %v24932_v28 = vadd.f32 %v33577_v43, %v1415_v42  ;;  %v27997_v2 = vld [vmem:[%s38160_s3 + $0x2648] ss:$28 sps:$4 sm:$0xff]   ;;  %v28024_v52 = vld [vmem:[%s38160_s3 + $0x1ee0] ss:$28 sps:$4 sm:$0xff]  }
 0x752   :  { %v28005_v43 = vld [vmem:[%s38160_s3 + $0x2684] ss:$28 sps:$4 sm:$0xff]  }
 0x753   :  { %19089 = vmatpush1.bf16.msra.mxu1 %v27955_v45  ;;  %v27994_v45 = vld [vmem:[%s38160_s3 + $0x1dc8] ss:$28 sps:$4 sm:$0xff]   ;;  %v28027_v42 = vld [vmem:[%s38160_s3 + $0x2760] ss:$28 sps:$4 sm:$0xff]  }
 0x754   :  { %19528 = vmatpush1.bf16.msra.mxu0 %v27958_v55  ;;  %19090 = vmatprep.subr.bf16.mxu1 %v27963_v0  ;;  %v28002_v55 = vld [vmem:[%s38160_s3 + $0x1e04] ss:$28 sps:$4 sm:$0xff]   ;;  %v9795_v0 = vmax.f32 %v24929_v44, 0.0  ;;  %v28038_v44 = vld [vmem:[%s38160_s3 + $0x1f54] ss:$28 sps:$4 sm:$0xff]  }
 0x755   :  { %19529 = vmatprep.subr.bf16.mxu0 %v27966_v9  ;;  %v28000_v9 = vld [vmem:[%s38160_s3 + $0x1e00] ss:$28 sps:$4 sm:$0xff]  }
 0x757   :  { %19091 = vmatpush1.bf16.msra.mxu1 %v27961_v26  ;;  %v9798_v26 = vmax.f32 %v24932_v28, 0.0  ;;  %v28041_v28 = vld [vmem:[%s38160_s3 + $0x27d4] ss:$28 sps:$4 sm:$0xff]  }
 0x758   :  { %19530 = vmatpush1.bf16.msra.mxu0 %v27964_v29  ;;  %19092 = vmatprep.subr.bf16.mxu1 %v27969_v58  ;;  %v28008_v29 = vld [vmem:[%s38160_s3 + $0x1e3c] ss:$28 sps:$4 sm:$0xff]  }
 0x759   :  { %19531 = vmatprep.subr.bf16.mxu0 %v27972_v36  ;;  %v28003_v58 = vld [vmem:[%s38160_s3 + $0x2680] ss:$28 sps:$4 sm:$0xff]   ;;  %v35328_v36 = vpack.c.bf16 %v9795_v0, %v9795_v0  ;;  %v28042_v0 = vld [vmem:[%s38160_s3 + $0x1f88] ss:$28 sps:$4 sm:$0xff]  }
 0x75b   :  { %19093 = vmatpush1.bf16.msra.mxu1 %v27967_v61  ;;  %v28006_v61 = vld [vmem:[%s38160_s3 + $0x1e38] ss:$28 sps:$4 sm:$0xff]  }
 0x75c   :  { %19532 = vmatpush1.bf16.msra.mxu0 %v27970_v12  ;;  %19094 = vmatprep.subr.bf16.mxu1 %v27975_v60  ;;  %v28011_v12 = vld [vmem:[%s38160_s3 + $0x26bc] ss:$28 sps:$4 sm:$0xff]   ;;  %v35336_v60 = vpack.c.bf16 %v9798_v26, %v9798_v26  ;;  %v28045_v26 = vld [vmem:[%s38160_s3 + $0x2808] ss:$28 sps:$4 sm:$0xff]  }
 0x75d   :  { %19533 = vmatprep.subr.bf16.mxu0 %v27978_v5  ;;  %v28014_v5 = vld [vmem:[%s38160_s3 + $0x1e74] ss:$28 sps:$4 sm:$0xff]  }
 0x75f   :  { %19095 = vmatpush1.bf16.msra.mxu1 %v27973_v59  ;;  %v28009_v59 = vld [vmem:[%s38160_s3 + $0x26b8] ss:$28 sps:$4 sm:$0xff]  }
 0x760   :  { %19534 = vmatpush1.bf16.msra.mxu0 %v27976_v15  ;;  %19096 = vmatprep.subr.bf16.mxu1 %v27981_v48  ;;  %v28012_v15 = vld [vmem:[%s38160_s3 + $0x1e70] ss:$28 sps:$4 sm:$0xff]  }
 0x761   :  { %19535 = vmatprep.subr.bf16.mxu0 %v27984_v54  ;;  %v28017_v48 = vld [vmem:[%s38160_s3 + $0x26f4] ss:$28 sps:$4 sm:$0xff]   ;;  %v28020_v54 = vld [vmem:[%s38160_s3 + $0x1eac] ss:$28 sps:$4 sm:$0xff]  }
 0x763   :  { %19097 = vmatpush1.bf16.msra.mxu1 %v27979_v16  ;;  %v28015_v16 = vld [vmem:[%s38160_s3 + $0x26f0] ss:$28 sps:$4 sm:$0xff]  }
 0x764   :  { %19536 = vmatpush1.bf16.msra.mxu0 %v27982_v46  ;;  %19098 = vmatprep.subr.bf16.mxu1 %v27987_v31  ;;  %v28018_v46 = vld [vmem:[%s38160_s3 + $0x1ea8] ss:$28 sps:$4 sm:$0xff]  }
 0x765   :  { %19537 = vmatprep.subr.bf16.mxu0 %v27990_v8  ;;  %v28023_v31 = vld [vmem:[%s38160_s3 + $0x272c] ss:$28 sps:$4 sm:$0xff]   ;;  %v28026_v8 = vld [vmem:[%s38160_s3 + $0x1ee4] ss:$28 sps:$4 sm:$0xff]  }
 0x767   :  { %19099 = vmatpush1.bf16.msra.mxu1 %v27985_v33  ;;  %v28021_v33 = vld [vmem:[%s38160_s3 + $0x2728] ss:$28 sps:$4 sm:$0xff]  }
 0x768   :  { %19538 = vmatpush1.bf16.msra.mxu0 %v27988_v4  ;;  %19100 = vmatprep.subr.bf16.mxu1 %v27993_v13  ;;  %v28029_v4 = vld [vmem:[%s38160_s3 + $0x2764] ss:$28 sps:$4 sm:$0xff]   ;;  %v28032_v13 = vld [vmem:[%s38160_s3 + $0x1f1c] ss:$28 sps:$4 sm:$0xff]  }
 0x769   :  { %19539 = vmatprep.subr.bf16.mxu0 %v27996_v19  ;;  %v28030_v19 = vld [vmem:[%s38160_s3 + $0x1f18] ss:$28 sps:$4 sm:$0xff]  }
 0x76b   :  { %19101 = vmatpush1.bf16.msra.mxu1 %v27991_v35  ;;  %v28035_v35 = vld [vmem:[%s38160_s3 + $0x279c] ss:$28 sps:$4 sm:$0xff]  }
 0x76c   :  { %19540 = vmatpush1.bf16.msra.mxu0 %v27994_v45  ;;  %19102 = vmatprep.subr.bf16.mxu1 %v27999_v57  ;;  %v28033_v45 = vld [vmem:[%s38160_s3 + $0x2798] ss:$28 sps:$4 sm:$0xff]   ;;  %v28036_v57 = vld [vmem:[%s38160_s3 + $0x1f50] ss:$28 sps:$4 sm:$0xff]  }
 0x76d   :  { %19541 = vmatprep.subr.bf16.mxu0 %v28002_v55  ;;  %v28044_v55 = vld [vmem:[%s38160_s3 + $0x1f8c] ss:$28 sps:$4 sm:$0xff]  }
 0x76f   :  { %19103 = vmatpush1.bf16.msra.mxu1 %v27997_v2  ;;  %v28039_v2 = vld [vmem:[%s38160_s3 + $0x27d0] ss:$28 sps:$4 sm:$0xff]  }
 0x770   :  { %19542 = vmatpush1.bf16.msra.mxu0 %v28000_v9  ;;  %19113 = vmatprep.subr.bf16.mxu1 %v28005_v43  ;;  %v28047_v9 = vld [vmem:[%s38160_s3 + $0x280c] ss:$28 sps:$4 sm:$0xff]   ;;  %v28050_v43 = vld [vmem:[%s38160_s3 + $0x1fc4] ss:$28 sps:$4 sm:$0xff]  }
 0x771   :  { %19543 = vmatprep.subr.bf16.mxu0 %v28008_v29  ;;  %v28048_v29 = vld [vmem:[%s38160_s3 + $0x1fc0] ss:$28 sps:$4 sm:$0xff]  }
 0x772   :  { %19105 = vmatmul.mubr.bf16.vlgmr.msra.gmra.mrb[32].mxu1 %v35328_v36 }
 0x773   :  { %19114 = vmatpush1.bf16.msra.mxu1 %v28003_v58  ;;  %19145 = vmatprep.mubr.bf16.mxu1 %v35336_v60  ;;  %v28053_v58 = vld [vmem:[%s38160_s3 + $0x2844] ss:$28 sps:$4 sm:$0xff]  }
 0x774   :  { %19544 = vmatpush1.bf16.msra.mxu0 %v28006_v61  ;;  %19115 = vmatprep.subr.bf16.mxu1 %v28011_v12  ;;  %v28056_v61 = vld [vmem:[%s38160_s3 + $0x1ffc] ss:$28 sps:$4 sm:$0xff]  }
 0x775   :  { %19545 = vmatprep.subr.bf16.mxu0 %v28014_v5  ;;  %v28051_v12 = vld [vmem:[%s38160_s3 + $0x2840] ss:$28 sps:$4 sm:$0xff]   ;;  %v28054_v5 = vld [vmem:[%s38160_s3 + $0x1ff8] ss:$28 sps:$4 sm:$0xff]  }
 0x777   :  { %19116 = vmatpush1.bf16.msra.mxu1 %v28009_v59  ;;  %v28059_v59 = vld [vmem:[%s38160_s3 + $0x287c] ss:$28 sps:$4 sm:$0xff]  }
 0x778   :  { %19546 = vmatpush1.bf16.msra.mxu0 %v28012_v15  ;;  %19117 = vmatprep.subr.bf16.mxu1 %v28017_v48  ;;  %v28062_v15 = vld [vmem:[%s38160_s3 + $0x2034] ss:$28 sps:$4 sm:$0xff]  }
 0x779   :  { %19547 = vmatprep.subr.bf16.mxu0 %v28020_v54  ;;  %v28057_v48 = vld [vmem:[%s38160_s3 + $0x2878] ss:$28 sps:$4 sm:$0xff]   ;;  %v28060_v54 = vld [vmem:[%s38160_s3 + $0x2030] ss:$28 sps:$4 sm:$0xff]  }
 0x77b   :  { %19118 = vmatpush1.bf16.msra.mxu1 %v28015_v16  ;;  %v28065_v16 = vld [vmem:[%s38160_s3 + $0x28b4] ss:$28 sps:$4 sm:$0xff]  }
 0x77c   :  { %19548 = vmatpush1.bf16.msra.mxu0 %v28018_v46  ;;  %19119 = vmatprep.subr.bf16.mxu1 %v28023_v31  ;;  %v28068_v46 = vld [vmem:[%s38160_s3 + $0x206c] ss:$28 sps:$4 sm:$0xff]  }
 0x77d   :  { %19549 = vmatprep.subr.bf16.mxu0 %v28026_v8  ;;  %v28063_v31 = vld [vmem:[%s38160_s3 + $0x28b0] ss:$28 sps:$4 sm:$0xff]   ;;  %v28066_v8 = vld [vmem:[%s38160_s3 + $0x2068] ss:$28 sps:$4 sm:$0xff]  }
 0x77f   :  { %19120 = vmatpush1.bf16.msra.mxu1 %v28021_v33  ;;  %v28071_v33 = vld [vmem:[%s38160_s3 + $0x28ec] ss:$28 sps:$4 sm:$0xff]  }
 0x780   :  { %19550 = vmatpush1.bf16.msra.mxu0 %v28024_v52  ;;  %19121 = vmatprep.subr.bf16.mxu1 %v28029_v4  ;;  %v28074_v52 = vld [vmem:[%s38160_s3 + $0x20a4] ss:$28 sps:$4 sm:$0xff]  }
 0x781   :  { %19551 = vmatprep.subr.bf16.mxu0 %v28032_v13  ;;  %v28069_v4 = vld [vmem:[%s38160_s3 + $0x28e8] ss:$28 sps:$4 sm:$0xff]   ;;  %v28072_v13 = vld [vmem:[%s38160_s3 + $0x20a0] ss:$28 sps:$4 sm:$0xff]  }
 0x783   :  { %19122 = vmatpush1.bf16.msra.mxu1 %v28027_v42  ;;  %v28077_v42 = vld [vmem:[%s38160_s3 + $0x2924] ss:$28 sps:$4 sm:$0xff]  }
 0x784   :  { %19552 = vmatpush1.bf16.msra.mxu0 %v28030_v19  ;;  %19123 = vmatprep.subr.bf16.mxu1 %v28035_v35  ;;  %v28080_v19 = vld [vmem:[%s38160_s3 + $0x20dc] ss:$28 sps:$4 sm:$0xff]  }
 0x785   :  { %19553 = vmatprep.subr.bf16.mxu0 %v28038_v44  ;;  %v28075_v35 = vld [vmem:[%s38160_s3 + $0x2920] ss:$28 sps:$4 sm:$0xff]   ;;  %v28078_v44 = vld [vmem:[%s38160_s3 + $0x20d8] ss:$28 sps:$4 sm:$0xff]  }
 0x787   :  { %19124 = vmatpush1.bf16.msra.mxu1 %v28033_v45  ;;  %v28083_v45 = vld [vmem:[%s38160_s3 + $0x295c] ss:$28 sps:$4 sm:$0xff]  }
 0x788   :  { %19554 = vmatpush1.bf16.msra.mxu0 %v28036_v57  ;;  %19125 = vmatprep.subr.bf16.mxu1 %v28041_v28  ;;  %v28086_v57 = vld [vmem:[%s38160_s3 + $0x2114] ss:$28 sps:$4 sm:$0xff]  }
 0x789   :  { %19564 = vmatprep.subr.bf16.mxu0 %v28044_v55  ;;  %v28081_v28 = vld [vmem:[%s38160_s3 + $0x2958] ss:$28 sps:$4 sm:$0xff]  }
 0x78a   :  { %v29234_v55 = vld [vmem:[%s38159_s2 + $0x10] sm:$0xff] }
 0x78b   :  { %19126 = vmatpush1.bf16.msra.mxu1 %v28039_v2  ;;  %19556 = vmatmul.mubr.bf16.vlgmr.msra.gmra.mrb[36].mxu0 %v34916_v39  ;;  %v1411_v2 = vrot.slane %v29234_v55, %v33802_v10  ;;  %v28128_v55 = vld [vmem:[%s38160_s3 + $0x229c] ss:$28 sps:$4 sm:$0xff]  }
 0x78c   :  { %19565 = vmatpush1.bf16.msra.mxu0 %v28042_v0  ;;  %19596 = vmatprep.mubr.bf16.mxu0 %v34924_v7  ;;  %v28084_v0 = vld [vmem:[%s38160_s3 + $0x2110] ss:$28 sps:$4 sm:$0xff]  }
 0x78d   :  { %19127 = vmatprep.subr.bf16.mxu1 %v28047_v9  ;;  %19566 = vmatprep.subr.bf16.mxu0 %v28050_v43  ;;  %v28089_v9 = vld [vmem:[%s38160_s3 + $0x2994] ss:$28 sps:$4 sm:$0xff]   ;;  %v28092_v43 = vld [vmem:[%s38160_s3 + $0x214c] ss:$28 sps:$4 sm:$0xff]  }
 0x78f   :  { %19128 = vmatpush1.bf16.msra.mxu1 %v28045_v26  ;;  %v28087_v26 = vld [vmem:[%s38160_s3 + $0x2990] ss:$28 sps:$4 sm:$0xff]  }
 0x790   :  { %19567 = vmatpush1.bf16.msra.mxu0 %v28048_v29  ;;  %19129 = vmatprep.subr.bf16.mxu1 %v28053_v58  ;;  %v24931_v29 = vadd.f32 %v33572_v40, %v1411_v2  ;;  %v28090_v58 = vld [vmem:[%s38160_s3 + $0x2148] ss:$28 sps:$4 sm:$0xff]   ;;  %v28123_v2 = vld [vmem:[%s38160_s3 + $0x2ae0] ss:$28 sps:$4 sm:$0xff]  }
 0x791   :  { %19568 = vmatprep.subr.bf16.mxu0 %v28056_v61  ;;  %v28095_v61 = vld [vmem:[%s38160_s3 + $0x29cc] ss:$28 sps:$4 sm:$0xff]  }
 0x792   :  { %v28093_v40 = vld [vmem:[%s38160_s3 + $0x29c8] ss:$28 sps:$4 sm:$0xff]  }
 0x793   :  { %19130 = vmatpush1.bf16.msra.mxu1 %v28051_v12  ;;  %v28098_v12 = vld [vmem:[%s38160_s3 + $0x2184] ss:$28 sps:$4 sm:$0xff]  }
 0x794   :  { %19569 = vmatpush1.bf16.msra.mxu0 %v28054_v5  ;;  %19131 = vmatprep.subr.bf16.mxu1 %v28059_v59  ;;  %v9797_v5 = vmax.f32 %v24931_v29, 0.0  ;;  %v28096_v59 = vld [vmem:[%s38160_s3 + $0x2180] ss:$28 sps:$4 sm:$0xff]   ;;  %v28132_v29 = vld [vmem:[%s38160_s3 + $0x22d0] ss:$28 sps:$4 sm:$0xff]  }
 0x795   :  { %19570 = vmatprep.subr.bf16.mxu0 %v28062_v15  ;;  %v28101_v15 = vld [vmem:[%s38160_s3 + $0x2a04] ss:$28 sps:$4 sm:$0xff]  }
 0x797   :  { %19132 = vmatpush1.bf16.msra.mxu1 %v28057_v48  ;;  %v28104_v48 = vld [vmem:[%s38160_s3 + $0x21bc] ss:$28 sps:$4 sm:$0xff]  }
 0x798   :  { %19571 = vmatpush1.bf16.msra.mxu0 %v28060_v54  ;;  %19133 = vmatprep.subr.bf16.mxu1 %v28065_v16  ;;  %v28099_v54 = vld [vmem:[%s38160_s3 + $0x2a00] ss:$28 sps:$4 sm:$0xff]   ;;  %v35533_v16 = vpack.c.bf16 %v9797_v5, %v9797_v5  ;;  %v28143_v5 = vld [vmem:[%s38160_s3 + $0x2b8c] ss:$28 sps:$4 sm:$0xff]  }
 0x799   :  { %19572 = vmatprep.subr.bf16.mxu0 %v28068_v46  ;;  %v28102_v46 = vld [vmem:[%s38160_s3 + $0x21b8] ss:$28 sps:$4 sm:$0xff]  }
 0x79b   :  { %19134 = vmatpush1.bf16.msra.mxu1 %v28063_v31  ;;  %v28107_v31 = vld [vmem:[%s38160_s3 + $0x2a3c] ss:$28 sps:$4 sm:$0xff]  }
 0x79c   :  { %19573 = vmatpush1.bf16.msra.mxu0 %v28066_v8  ;;  %19135 = vmatprep.subr.bf16.mxu1 %v28071_v33  ;;  %v28110_v8 = vld [vmem:[%s38160_s3 + $0x21f4] ss:$28 sps:$4 sm:$0xff]  }
 0x79d   :  { %19574 = vmatprep.subr.bf16.mxu0 %v28074_v52  ;;  %v28105_v33 = vld [vmem:[%s38160_s3 + $0x2a38] ss:$28 sps:$4 sm:$0xff]   ;;  %v28108_v52 = vld [vmem:[%s38160_s3 + $0x21f0] ss:$28 sps:$4 sm:$0xff]  }
 0x79f   :  { %19136 = vmatpush1.bf16.msra.mxu1 %v28069_v4  ;;  %v28113_v4 = vld [vmem:[%s38160_s3 + $0x2a74] ss:$28 sps:$4 sm:$0xff]  }
 0x7a0   :  { %19575 = vmatpush1.bf16.msra.mxu0 %v28072_v13  ;;  %19137 = vmatprep.subr.bf16.mxu1 %v28077_v42  ;;  %v28116_v13 = vld [vmem:[%s38160_s3 + $0x222c] ss:$28 sps:$4 sm:$0xff]  }
 0x7a1   :  { %19576 = vmatprep.subr.bf16.mxu0 %v28080_v19  ;;  %v28111_v42 = vld [vmem:[%s38160_s3 + $0x2a70] ss:$28 sps:$4 sm:$0xff]   ;;  %v28114_v19 = vld [vmem:[%s38160_s3 + $0x2228] ss:$28 sps:$4 sm:$0xff]  }
 0x7a3   :  { %19138 = vmatpush1.bf16.msra.mxu1 %v28075_v35  ;;  %v28119_v35 = vld [vmem:[%s38160_s3 + $0x2aac] ss:$28 sps:$4 sm:$0xff]  }
 0x7a4   :  { %19577 = vmatpush1.bf16.msra.mxu0 %v28078_v44  ;;  %19139 = vmatprep.subr.bf16.mxu1 %v28083_v45  ;;  %v28122_v44 = vld [vmem:[%s38160_s3 + $0x2264] ss:$28 sps:$4 sm:$0xff]  }
 0x7a5   :  { %19578 = vmatprep.subr.bf16.mxu0 %v28086_v57  ;;  %v28117_v45 = vld [vmem:[%s38160_s3 + $0x2aa8] ss:$28 sps:$4 sm:$0xff]   ;;  %v28120_v57 = vld [vmem:[%s38160_s3 + $0x2260] ss:$28 sps:$4 sm:$0xff]  }
 0x7a7   :  { %19140 = vmatpush1.bf16.msra.mxu1 %v28081_v28  ;;  %v28125_v28 = vld [vmem:[%s38160_s3 + $0x2ae4] ss:$28 sps:$4 sm:$0xff]  }
 0x7a8   :  { %19579 = vmatpush1.bf16.msra.mxu0 %v28084_v0  ;;  %19141 = vmatprep.subr.bf16.mxu1 %v28089_v9  ;;  %v28126_v0 = vld [vmem:[%s38160_s3 + $0x2298] ss:$28 sps:$4 sm:$0xff]  }
 0x7a9   :  { %19580 = vmatprep.subr.bf16.mxu0 %v28092_v43  ;;  %v28131_v9 = vld [vmem:[%s38160_s3 + $0x2b1c] ss:$28 sps:$4 sm:$0xff]   ;;  %v28134_v43 = vld [vmem:[%s38160_s3 + $0x22d4] ss:$28 sps:$4 sm:$0xff]  }
 0x7ab   :  { %19142 = vmatpush1.bf16.msra.mxu1 %v28087_v26  ;;  %v28129_v26 = vld [vmem:[%s38160_s3 + $0x2b18] ss:$28 sps:$4 sm:$0xff]  }
 0x7ac   :  { %19581 = vmatpush1.bf16.msra.mxu0 %v28090_v58  ;;  %19143 = vmatprep.subr.bf16.mxu1 %v28095_v61  ;;  %v28137_v58 = vld [vmem:[%s38160_s3 + $0x2b54] ss:$28 sps:$4 sm:$0xff]   ;;  %v28140_v61 = vld [vmem:[%s38160_s3 + $0x230c] ss:$28 sps:$4 sm:$0xff]  }
 0x7ad   :  { %19582 = vmatprep.subr.bf16.mxu0 %v28098_v12  ;;  %v28135_v12 = vld [vmem:[%s38160_s3 + $0x2b50] ss:$28 sps:$4 sm:$0xff]  }
 0x7af   :  { %19144 = vmatpush1.bf16.msra.mxu1 %v28093_v40  ;;  %v28138_v40 = vld [vmem:[%s38160_s3 + $0x2308] ss:$28 sps:$4 sm:$0xff]  }
 0x7b0   :  { %19583 = vmatpush1.bf16.msra.mxu0 %v28096_v59  ;;  %19154 = vmatprep.subr.bf16.mxu1 %v28101_v15  ;;  %v28146_v59 = vld [vmem:[%s38160_s3 + $0x2344] ss:$28 sps:$4 sm:$0xff]  }
 0x7b1   :  { %19584 = vmatprep.subr.bf16.mxu0 %v28104_v48  ;;  %v28141_v15 = vld [vmem:[%s38160_s3 + $0x2b88] ss:$28 sps:$4 sm:$0xff]   ;;  %v9799_v48 = vmax.f32 %v34251_v62, 0.0  ;;  %v28147_v62 = vld [vmem:[%s38160_s3 + $0x10] ss:$28 sps:$4 sm:$0xff]  }
 0x7b2   :  { %19146 = vmatmul.mubr.bf16.vlgmr.msra.gmra.mrb[32].mxu1 %v35533_v16 }
 0x7b3   :  { %19155 = vmatpush1.bf16.msra.mxu1 %v28099_v54  ;;  %19186 = vmatprep.mubr.bf16.mxu1 %v29260_v21  ;;  %v28144_v54 = vld [vmem:[%s38160_s3 + $0x2340] ss:$28 sps:$4 sm:$0xff]  }
 0x7b4   :  { %19585 = vmatpush1.bf16.msra.mxu0 %v28102_v46  ;;  %19156 = vmatprep.subr.bf16.mxu1 %v28107_v31  ;;  %v28149_v46 = vld [vmem:[%s38160_s3 + $0x14] ss:$28 sps:$4 sm:$0xff]   ;;  %v28152_v31 = vld [vmem:[%s38160_s3 + $0x237c] ss:$28 sps:$4 sm:$0xff]  }
 0x7b5   :  { %19586 = vmatprep.subr.bf16.mxu0 %v28110_v8  ;;  %v35636_v8 = vpack.c.bf16 %v9799_v48, %v9799_v48  ;;  %v28191_v48 = vld [vmem:[%s38160_s3 + $0x19c] ss:$28 sps:$4 sm:$0xff]  }
 0x7b7   :  { %19157 = vmatpush1.bf16.msra.mxu1 %v28105_v33  ;;  %v28150_v33 = vld [vmem:[%s38160_s3 + $0x2378] ss:$28 sps:$4 sm:$0xff]  }
 0x7b8   :  { %19587 = vmatpush1.bf16.msra.mxu0 %v28108_v52  ;;  %19158 = vmatprep.subr.bf16.mxu1 %v28113_v4  ;;  %v28155_v52 = vld [vmem:[%s38160_s3 + $0x4c] ss:$28 sps:$4 sm:$0xff]   ;;  %v28158_v4 = vld [vmem:[%s38160_s3 + $0x23b4] ss:$28 sps:$4 sm:$0xff]  }
 0x7b9   :  { %19588 = vmatprep.subr.bf16.mxu0 %v28116_v13  ;;  %v28153_v13 = vld [vmem:[%s38160_s3 + $0x48] ss:$28 sps:$4 sm:$0xff]  }
 0x7bb   :  { %19159 = vmatpush1.bf16.msra.mxu1 %v28111_v42  ;;  %v28156_v42 = vld [vmem:[%s38160_s3 + $0x23b0] ss:$28 sps:$4 sm:$0xff]  }
 0x7bc   :  { %19589 = vmatpush1.bf16.msra.mxu0 %v28114_v19  ;;  %19160 = vmatprep.subr.bf16.mxu1 %v28119_v35  ;;  %v28161_v19 = vld [vmem:[%s38160_s3 + $0x84] ss:$28 sps:$4 sm:$0xff]   ;;  %v28164_v35 = vld [vmem:[%s38160_s3 + $0x23ec] ss:$28 sps:$4 sm:$0xff]  }
 0x7bd   :  { %19590 = vmatprep.subr.bf16.mxu0 %v28122_v44  ;;  %v28159_v44 = vld [vmem:[%s38160_s3 + $0x80] ss:$28 sps:$4 sm:$0xff]  }
 0x7bf   :  { %19161 = vmatpush1.bf16.msra.mxu1 %v28117_v45  ;;  %v28162_v45 = vld [vmem:[%s38160_s3 + $0x23e8] ss:$28 sps:$4 sm:$0xff]  }
 0x7c0   :  { %19591 = vmatpush1.bf16.msra.mxu0 %v28120_v57  ;;  %19162 = vmatprep.subr.bf16.mxu1 %v28125_v28  ;;  %v28167_v57 = vld [vmem:[%s38160_s3 + $0xbc] ss:$28 sps:$4 sm:$0xff]   ;;  %v28170_v28 = vld [vmem:[%s38160_s3 + $0x2424] ss:$28 sps:$4 sm:$0xff]  }
 0x7c1   :  { %19592 = vmatprep.subr.bf16.mxu0 %v28128_v55  ;;  %v28165_v55 = vld [vmem:[%s38160_s3 + $0xb8] ss:$28 sps:$4 sm:$0xff]  }
 0x7c3   :  { %19163 = vmatpush1.bf16.msra.mxu1 %v28123_v2  ;;  %v28168_v2 = vld [vmem:[%s38160_s3 + $0x2420] ss:$28 sps:$4 sm:$0xff]  }
 0x7c4   :  { %19593 = vmatpush1.bf16.msra.mxu0 %v28126_v0  ;;  %19164 = vmatprep.subr.bf16.mxu1 %v28131_v9  ;;  %v28173_v0 = vld [vmem:[%s38160_s3 + $0xf4] ss:$28 sps:$4 sm:$0xff]   ;;  %v28176_v9 = vld [vmem:[%s38160_s3 + $0x245c] ss:$28 sps:$4 sm:$0xff]  }
 0x7c5   :  { %19594 = vmatprep.subr.bf16.mxu0 %v28134_v43  ;;  %v28171_v43 = vld [vmem:[%s38160_s3 + $0xf0] ss:$28 sps:$4 sm:$0xff]  }
 0x7c7   :  { %19165 = vmatpush1.bf16.msra.mxu1 %v28129_v26  ;;  %v28174_v26 = vld [vmem:[%s38160_s3 + $0x2458] ss:$28 sps:$4 sm:$0xff]  }
 0x7c8   :  { %19595 = vmatpush1.bf16.msra.mxu0 %v28132_v29  ;;  %19166 = vmatprep.subr.bf16.mxu1 %v28137_v58  ;;  %v28179_v29 = vld [vmem:[%s38160_s3 + $0x12c] ss:$28 sps:$4 sm:$0xff]   ;;  %v28182_v58 = vld [vmem:[%s38160_s3 + $0x2494] ss:$28 sps:$4 sm:$0xff]  }
 0x7c9   :  { %19605 = vmatprep.subr.bf16.mxu0 %v28140_v61  ;;  %v28177_v61 = vld [vmem:[%s38160_s3 + $0x128] ss:$28 sps:$4 sm:$0xff]  }
 0x7cb   :  { %19167 = vmatpush1.bf16.msra.mxu1 %v28135_v12  ;;  %19597 = vmatmul.mubr.bf16.vlgmr.msra.gmra.mrb[36].mxu0 %v35122_v32  ;;  %v28180_v12 = vld [vmem:[%s38160_s3 + $0x2490] ss:$28 sps:$4 sm:$0xff]  }
 0x7cc   :  { %19606 = vmatpush1.bf16.msra.mxu0 %v28138_v40  ;;  %19637 = vmatprep.mubr.bf16.mxu0 %v35130_v53  ;;  %v28185_v40 = vld [vmem:[%s38160_s3 + $0x164] ss:$28 sps:$4 sm:$0xff]  }
 0x7cd   :  { %19168 = vmatprep.subr.bf16.mxu1 %v28143_v5  ;;  %19607 = vmatprep.subr.bf16.mxu0 %v28146_v59  ;;  %v28188_v5 = vld [vmem:[%s38160_s3 + $0x24cc] ss:$28 sps:$4 sm:$0xff]   ;;  %v28183_v59 = vld [vmem:[%s38160_s3 + $0x160] ss:$28 sps:$4 sm:$0xff]  }
 0x7cf   :  { %19169 = vmatpush1.bf16.msra.mxu1 %v28141_v15  ;;  %v28186_v15 = vld [vmem:[%s38160_s3 + $0x24c8] ss:$28 sps:$4 sm:$0xff]  }
 0x7d0   :  { %19608 = vmatpush1.bf16.msra.mxu0 %v28144_v54  ;;  %19728 = vmatprep.subr.bf16.mxu1 %v28149_v46  ;;  %v28194_v54 = vld [vmem:[%s38160_s3 + $0x2504] ss:$28 sps:$4 sm:$0xff]   ;;  %v28189_v46 = vld [vmem:[%s38160_s3 + $0x198] ss:$28 sps:$4 sm:$0xff]  }
 0x7d1   :  { %19609 = vmatprep.subr.bf16.mxu0 %v28152_v31  ;;  %v28192_v31 = vld [vmem:[%s38160_s3 + $0x2500] ss:$28 sps:$4 sm:$0xff]  }
 0x7d2   :  { %19187 = vmatmul.mubr.bf16.vlgmr.msra.gmra.mrb[32].mxu1 %v35636_v8 }
 0x7d3   :  { %19729 = vmatpush1.bf16.msra.mxu1 %v28147_v62  ;;  %19760 = vmatprep.mubr.bf16.mxu1 %v33015_v24  ;;  %v28197_v62 = vld [vmem:[%s38160_s3 + $0x1d4] ss:$28 sps:$4 sm:$0xff]  }
 0x7d4   :  { %19610 = vmatpush1.bf16.msra.mxu0 %v28150_v33  ;;  %19730 = vmatprep.subr.bf16.mxu1 %v28155_v52  ;;  %v28200_v33 = vld [vmem:[%s38160_s3 + $0x253c] ss:$28 sps:$4 sm:$0xff]   ;;  %v28195_v52 = vld [vmem:[%s38160_s3 + $0x1d0] ss:$28 sps:$4 sm:$0xff]  }
 0x7d5   :  { %19611 = vmatprep.subr.bf16.mxu0 %v28158_v4  ;;  %v28198_v4 = vld [vmem:[%s38160_s3 + $0x2538] ss:$28 sps:$4 sm:$0xff]  }
 0x7d7   :  { %19731 = vmatpush1.bf16.msra.mxu1 %v28153_v13  ;;  %v28203_v13 = vld [vmem:[%s38160_s3 + $0x20c] ss:$28 sps:$4 sm:$0xff]  }
 0x7d8   :  { %19612 = vmatpush1.bf16.msra.mxu0 %v28156_v42  ;;  %19732 = vmatprep.subr.bf16.mxu1 %v28161_v19  ;;  %v28206_v42 = vld [vmem:[%s38160_s3 + $0x2574] ss:$28 sps:$4 sm:$0xff]   ;;  %v28201_v19 = vld [vmem:[%s38160_s3 + $0x208] ss:$28 sps:$4 sm:$0xff]  }
 0x7d9   :  { %19613 = vmatprep.subr.bf16.mxu0 %v28164_v35  ;;  %v28204_v35 = vld [vmem:[%s38160_s3 + $0x2570] ss:$28 sps:$4 sm:$0xff]  }
 0x7db   :  { %19733 = vmatpush1.bf16.msra.mxu1 %v28159_v44  ;;  %v28209_v44 = vld [vmem:[%s38160_s3 + $0x244] ss:$28 sps:$4 sm:$0xff]  }
 0x7dc   :  { %19614 = vmatpush1.bf16.msra.mxu0 %v28162_v45  ;;  %19734 = vmatprep.subr.bf16.mxu1 %v28167_v57  ;;  %v28212_v45 = vld [vmem:[%s38160_s3 + $0x25ac] ss:$28 sps:$4 sm:$0xff]   ;;  %v28207_v57 = vld [vmem:[%s38160_s3 + $0x240] ss:$28 sps:$4 sm:$0xff]  }
 0x7dd   :  { %19615 = vmatprep.subr.bf16.mxu0 %v28170_v28  ;;  %v28210_v28 = vld [vmem:[%s38160_s3 + $0x25a8] ss:$28 sps:$4 sm:$0xff]  }
 0x7df   :  { %19735 = vmatpush1.bf16.msra.mxu1 %v28165_v55  ;;  %v28215_v55 = vld [vmem:[%s38160_s3 + $0x27c] ss:$28 sps:$4 sm:$0xff]  }
 0x7e0   :  { %19616 = vmatpush1.bf16.msra.mxu0 %v28168_v2  ;;  %19736 = vmatprep.subr.bf16.mxu1 %v28173_v0  ;;  %v28218_v2 = vld [vmem:[%s38160_s3 + $0x25e4] ss:$28 sps:$4 sm:$0xff]   ;;  %v28213_v0 = vld [vmem:[%s38160_s3 + $0x278] ss:$28 sps:$4 sm:$0xff]  }
 0x7e1   :  { %19617 = vmatprep.subr.bf16.mxu0 %v28176_v9  ;;  %v28216_v9 = vld [vmem:[%s38160_s3 + $0x25e0] ss:$28 sps:$4 sm:$0xff]  }
 0x7e3   :  { %19737 = vmatpush1.bf16.msra.mxu1 %v28171_v43  ;;  %v28221_v43 = vld [vmem:[%s38160_s3 + $0x2b4] ss:$28 sps:$4 sm:$0xff]  }
 0x7e4   :  { %19618 = vmatpush1.bf16.msra.mxu0 %v28174_v26  ;;  %19738 = vmatprep.subr.bf16.mxu1 %v28179_v29  ;;  %v28224_v26 = vld [vmem:[%s38160_s3 + $0x261c] ss:$28 sps:$4 sm:$0xff]   ;;  %v28219_v29 = vld [vmem:[%s38160_s3 + $0x2b0] ss:$28 sps:$4 sm:$0xff]  }
 0x7e5   :  { %19619 = vmatprep.subr.bf16.mxu0 %v28182_v58  ;;  %v28222_v58 = vld [vmem:[%s38160_s3 + $0x2618] ss:$28 sps:$4 sm:$0xff]  }
 0x7e7   :  { %19739 = vmatpush1.bf16.msra.mxu1 %v28177_v61  ;;  %v28227_v61 = vld [vmem:[%s38160_s3 + $0x2ec] ss:$28 sps:$4 sm:$0xff]  }
 0x7e8   :  { %19620 = vmatpush1.bf16.msra.mxu0 %v28180_v12  ;;  %19740 = vmatprep.subr.bf16.mxu1 %v28185_v40  ;;  %v28230_v12 = vld [vmem:[%s38160_s3 + $0x2654] ss:$28 sps:$4 sm:$0xff]   ;;  %v28225_v40 = vld [vmem:[%s38160_s3 + $0x2e8] ss:$28 sps:$4 sm:$0xff]  }
 0x7e9   :  { %19621 = vmatprep.subr.bf16.mxu0 %v28188_v5  ;;  %v28228_v5 = vld [vmem:[%s38160_s3 + $0x2650] ss:$28 sps:$4 sm:$0xff]  }
 0x7eb   :  { %19741 = vmatpush1.bf16.msra.mxu1 %v28183_v59  ;;  %v28233_v59 = vld [vmem:[%s38160_s3 + $0x324] ss:$28 sps:$4 sm:$0xff]  }
 0x7ec   :  { %19622 = vmatpush1.bf16.msra.mxu0 %v28186_v15  ;;  %19742 = vmatprep.subr.bf16.mxu1 %v28191_v48  ;;  %v28236_v15 = vld [vmem:[%s38160_s3 + $0x268c] ss:$28 sps:$4 sm:$0xff]   ;;  %v28231_v48 = vld [vmem:[%s38160_s3 + $0x320] ss:$28 sps:$4 sm:$0xff]  }
 0x7ed   :  { %19623 = vmatprep.subr.bf16.mxu0 %v28194_v54  ;;  %v28234_v54 = vld [vmem:[%s38160_s3 + $0x2688] ss:$28 sps:$4 sm:$0xff]  }
 0x7ef   :  { %19743 = vmatpush1.bf16.msra.mxu1 %v28189_v46  ;;  %v28239_v46 = vld [vmem:[%s38160_s3 + $0x35c] ss:$28 sps:$4 sm:$0xff]  }
 0x7f0   :  { %19624 = vmatpush1.bf16.msra.mxu0 %v28192_v31  ;;  %19744 = vmatprep.subr.bf16.mxu1 %v28197_v62  ;;  %v28242_v31 = vld [vmem:[%s38160_s3 + $0x26c4] ss:$28 sps:$4 sm:$0xff]   ;;  %v28237_v62 = vld [vmem:[%s38160_s3 + $0x358] ss:$28 sps:$4 sm:$0xff]  }
 0x7f1   :  { %19625 = vmatprep.subr.bf16.mxu0 %v28200_v33  ;;  %v28240_v33 = vld [vmem:[%s38160_s3 + $0x26c0] ss:$28 sps:$4 sm:$0xff]  }
 0x7f3   :  { %19745 = vmatpush1.bf16.msra.mxu1 %v28195_v52  ;;  %v28245_v52 = vld [vmem:[%s38160_s3 + $0x394] ss:$28 sps:$4 sm:$0xff]  }
 0x7f4   :  { %19626 = vmatpush1.bf16.msra.mxu0 %v28198_v4  ;;  %19746 = vmatprep.subr.bf16.mxu1 %v28203_v13  ;;  %v28248_v4 = vld [vmem:[%s38160_s3 + $0x26fc] ss:$28 sps:$4 sm:$0xff]   ;;  %v28243_v13 = vld [vmem:[%s38160_s3 + $0x390] ss:$28 sps:$4 sm:$0xff]  }
 0x7f5   :  { %19627 = vmatprep.subr.bf16.mxu0 %v28206_v42  ;;  %v28246_v42 = vld [vmem:[%s38160_s3 + $0x26f8] ss:$28 sps:$4 sm:$0xff]  }
 0x7f7   :  { %19747 = vmatpush1.bf16.msra.mxu1 %v28201_v19  ;;  %v28251_v19 = vld [vmem:[%s38160_s3 + $0x3cc] ss:$28 sps:$4 sm:$0xff]  }
 0x7f8   :  { %19628 = vmatpush1.bf16.msra.mxu0 %v28204_v35  ;;  %19748 = vmatprep.subr.bf16.mxu1 %v28209_v44  ;;  %v28254_v35 = vld [vmem:[%s38160_s3 + $0x2734] ss:$28 sps:$4 sm:$0xff]   ;;  %v28249_v44 = vld [vmem:[%s38160_s3 + $0x3c8] ss:$28 sps:$4 sm:$0xff]  }
 0x7f9   :  { %19629 = vmatprep.subr.bf16.mxu0 %v28212_v45  ;;  %v28252_v45 = vld [vmem:[%s38160_s3 + $0x2730] ss:$28 sps:$4 sm:$0xff]  }
 0x7fb   :  { %19749 = vmatpush1.bf16.msra.mxu1 %v28207_v57  ;;  %v28257_v57 = vld [vmem:[%s38160_s3 + $0x404] ss:$28 sps:$4 sm:$0xff]  }
 0x7fc   :  { %19630 = vmatpush1.bf16.msra.mxu0 %v28210_v28  ;;  %19750 = vmatprep.subr.bf16.mxu1 %v28215_v55  ;;  %v28260_v28 = vld [vmem:[%s38160_s3 + $0x276c] ss:$28 sps:$4 sm:$0xff]   ;;  %v28255_v55 = vld [vmem:[%s38160_s3 + $0x400] ss:$28 sps:$4 sm:$0xff]  }
 0x7fd   :  { %19631 = vmatprep.subr.bf16.mxu0 %v28218_v2  ;;  %v28258_v2 = vld [vmem:[%s38160_s3 + $0x2768] ss:$28 sps:$4 sm:$0xff]  }
 0x7ff   :  { %19751 = vmatpush1.bf16.msra.mxu1 %v28213_v0  ;;  %v28263_v0 = vld [vmem:[%s38160_s3 + $0x43c] ss:$28 sps:$4 sm:$0xff]  }
 0x800   :  { %19632 = vmatpush1.bf16.msra.mxu0 %v28216_v9  ;;  %19752 = vmatprep.subr.bf16.mxu1 %v28221_v43  ;;  %v28266_v9 = vld [vmem:[%s38160_s3 + $0x27a4] ss:$28 sps:$4 sm:$0xff]   ;;  %v28261_v43 = vld [vmem:[%s38160_s3 + $0x438] ss:$28 sps:$4 sm:$0xff]  }
 0x801   :  { %19633 = vmatprep.subr.bf16.mxu0 %v28224_v26  ;;  %v28264_v26 = vld [vmem:[%s38160_s3 + $0x27a0] ss:$28 sps:$4 sm:$0xff]  }
 0x803   :  { %19753 = vmatpush1.bf16.msra.mxu1 %v28219_v29  ;;  %v28269_v29 = vld [vmem:[%s38160_s3 + $0x474] ss:$28 sps:$4 sm:$0xff]  }
 0x804   :  { %19634 = vmatpush1.bf16.msra.mxu0 %v28222_v58  ;;  %19754 = vmatprep.subr.bf16.mxu1 %v28227_v61  ;;  %v28272_v58 = vld [vmem:[%s38160_s3 + $0x27dc] ss:$28 sps:$4 sm:$0xff]   ;;  %v28267_v61 = vld [vmem:[%s38160_s3 + $0x470] ss:$28 sps:$4 sm:$0xff]  }
 0x805   :  { %19635 = vmatprep.subr.bf16.mxu0 %v28230_v12  ;;  %v28270_v12 = vld [vmem:[%s38160_s3 + $0x27d8] ss:$28 sps:$4 sm:$0xff]  }
 0x807   :  { %19755 = vmatpush1.bf16.msra.mxu1 %v28225_v40  ;;  %v28275_v40 = vld [vmem:[%s38160_s3 + $0x4ac] ss:$28 sps:$4 sm:$0xff]  }
 0x808   :  { %19636 = vmatpush1.bf16.msra.mxu0 %v28228_v5  ;;  %19756 = vmatprep.subr.bf16.mxu1 %v28233_v59  ;;  %v28278_v5 = vld [vmem:[%s38160_s3 + $0x2814] ss:$28 sps:$4 sm:$0xff]   ;;  %v28273_v59 = vld [vmem:[%s38160_s3 + $0x4a8] ss:$28 sps:$4 sm:$0xff]  }
 0x809   :  { %19646 = vmatprep.subr.bf16.mxu0 %v28236_v15  ;;  %v28276_v15 = vld [vmem:[%s38160_s3 + $0x2810] ss:$28 sps:$4 sm:$0xff]  }
 0x80b   :  { %19638 = vmatmul.mubr.bf16.vlgmr.msra.gmra.mrb[36].mxu0 %v35328_v36  ;;  %19757 = vmatpush1.bf16.msra.mxu1 %v28231_v48  ;;  %v28281_v48 = vld [vmem:[%s38160_s3 + $0x4e4] ss:$28 sps:$4 sm:$0xff]  }
 0x80c   :  { %19647 = vmatpush1.bf16.msra.mxu0 %v28234_v54  ;;  %19678 = vmatprep.mubr.bf16.mxu0 %v35336_v60  ;;  %v28284_v54 = vld [vmem:[%s38160_s3 + $0x284c] ss:$28 sps:$4 sm:$0xff]  }
 0x80d   :  { %19758 = vmatprep.subr.bf16.mxu1 %v28239_v46  ;;  %19648 = vmatprep.subr.bf16.mxu0 %v28242_v31  ;;  %v28279_v46 = vld [vmem:[%s38160_s3 + $0x4e0] ss:$28 sps:$4 sm:$0xff]   ;;  %v28282_v31 = vld [vmem:[%s38160_s3 + $0x2848] ss:$28 sps:$4 sm:$0xff]  }
 0x80f   :  { %19759 = vmatpush1.bf16.msra.mxu1 %v28237_v62  ;;  %v28287_v62 = vld [vmem:[%s38160_s3 + $0x51c] ss:$28 sps:$4 sm:$0xff]  }
 0x810   :  { %19649 = vmatpush1.bf16.msra.mxu0 %v28240_v33  ;;  %19769 = vmatprep.subr.bf16.mxu1 %v28245_v52  ;;  %v28290_v33 = vld [vmem:[%s38160_s3 + $0x2884] ss:$28 sps:$4 sm:$0xff]   ;;  %v28285_v52 = vld [vmem:[%s38160_s3 + $0x518] ss:$28 sps:$4 sm:$0xff]  }
 0x811   :  { %19650 = vmatprep.subr.bf16.mxu0 %v28248_v4  ;;  %v28288_v4 = vld [vmem:[%s38160_s3 + $0x2880] ss:$28 sps:$4 sm:$0xff]  }
 0x812   :  { %19761 = vmatmul.mubr.bf16.vlgmr.msra.gmra.mrb[36].mxu1 %v33218_v17 }
 0x813   :  { %19770 = vmatpush1.bf16.msra.mxu1 %v28243_v13  ;;  %19801 = vmatprep.mubr.bf16.mxu1 %v33223_v20  ;;  %v28293_v13 = vld [vmem:[%s38160_s3 + $0x554] ss:$28 sps:$4 sm:$0xff]  }
 0x814   :  { %19651 = vmatpush1.bf16.msra.mxu0 %v28246_v42  ;;  %19771 = vmatprep.subr.bf16.mxu1 %v28251_v19  ;;  %v28296_v42 = vld [vmem:[%s38160_s3 + $0x28bc] ss:$28 sps:$4 sm:$0xff]   ;;  %v28291_v19 = vld [vmem:[%s38160_s3 + $0x550] ss:$28 sps:$4 sm:$0xff]  }
 0x815   :  { %19652 = vmatprep.subr.bf16.mxu0 %v28254_v35  ;;  %v28294_v35 = vld [vmem:[%s38160_s3 + $0x28b8] ss:$28 sps:$4 sm:$0xff]  }
 0x817   :  { %19772 = vmatpush1.bf16.msra.mxu1 %v28249_v44  ;;  %v28299_v44 = vld [vmem:[%s38160_s3 + $0x58c] ss:$28 sps:$4 sm:$0xff]  }
 0x818   :  { %19653 = vmatpush1.bf16.msra.mxu0 %v28252_v45  ;;  %19773 = vmatprep.subr.bf16.mxu1 %v28257_v57  ;;  %v28302_v45 = vld [vmem:[%s38160_s3 + $0x28f4] ss:$28 sps:$4 sm:$0xff]   ;;  %v28297_v57 = vld [vmem:[%s38160_s3 + $0x588] ss:$28 sps:$4 sm:$0xff]  }
 0x819   :  { %19654 = vmatprep.subr.bf16.mxu0 %v28260_v28  ;;  %v28300_v28 = vld [vmem:[%s38160_s3 + $0x28f0] ss:$28 sps:$4 sm:$0xff]  }
 0x81b   :  { %19774 = vmatpush1.bf16.msra.mxu1 %v28255_v55  ;;  %v28305_v55 = vld [vmem:[%s38160_s3 + $0x5c4] ss:$28 sps:$4 sm:$0xff]  }
 0x81c   :  { %19655 = vmatpush1.bf16.msra.mxu0 %v28258_v2  ;;  %19775 = vmatprep.subr.bf16.mxu1 %v28263_v0  ;;  %v28308_v2 = vld [vmem:[%s38160_s3 + $0x292c] ss:$28 sps:$4 sm:$0xff]   ;;  %v28303_v0 = vld [vmem:[%s38160_s3 + $0x5c0] ss:$28 sps:$4 sm:$0xff]  }
 0x81d   :  { %19656 = vmatprep.subr.bf16.mxu0 %v28266_v9  ;;  %v28306_v9 = vld [vmem:[%s38160_s3 + $0x2928] ss:$28 sps:$4 sm:$0xff]  }
 0x81f   :  { %19776 = vmatpush1.bf16.msra.mxu1 %v28261_v43  ;;  %v28311_v43 = vld [vmem:[%s38160_s3 + $0x5fc] ss:$28 sps:$4 sm:$0xff]  }
 0x820   :  { %19657 = vmatpush1.bf16.msra.mxu0 %v28264_v26  ;;  %19777 = vmatprep.subr.bf16.mxu1 %v28269_v29  ;;  %v28314_v26 = vld [vmem:[%s38160_s3 + $0x2964] ss:$28 sps:$4 sm:$0xff]   ;;  %v28309_v29 = vld [vmem:[%s38160_s3 + $0x5f8] ss:$28 sps:$4 sm:$0xff]  }
 0x821   :  { %19658 = vmatprep.subr.bf16.mxu0 %v28272_v58  ;;  %v28312_v58 = vld [vmem:[%s38160_s3 + $0x2960] ss:$28 sps:$4 sm:$0xff]  }
 0x823   :  { %19778 = vmatpush1.bf16.msra.mxu1 %v28267_v61  ;;  %v28317_v61 = vld [vmem:[%s38160_s3 + $0x634] ss:$28 sps:$4 sm:$0xff]  }
 0x824   :  { %19659 = vmatpush1.bf16.msra.mxu0 %v28270_v12  ;;  %19779 = vmatprep.subr.bf16.mxu1 %v28275_v40  ;;  %v28320_v12 = vld [vmem:[%s38160_s3 + $0x299c] ss:$28 sps:$4 sm:$0xff]   ;;  %v28315_v40 = vld [vmem:[%s38160_s3 + $0x630] ss:$28 sps:$4 sm:$0xff]  }
 0x825   :  { %19660 = vmatprep.subr.bf16.mxu0 %v28278_v5  ;;  %v28318_v5 = vld [vmem:[%s38160_s3 + $0x2998] ss:$28 sps:$4 sm:$0xff]  }
 0x827   :  { %19780 = vmatpush1.bf16.msra.mxu1 %v28273_v59  ;;  %v28323_v59 = vld [vmem:[%s38160_s3 + $0x66c] ss:$28 sps:$4 sm:$0xff]  }
 0x828   :  { %19661 = vmatpush1.bf16.msra.mxu0 %v28276_v15  ;;  %19781 = vmatprep.subr.bf16.mxu1 %v28281_v48  ;;  %v28326_v15 = vld [vmem:[%s38160_s3 + $0x29d4] ss:$28 sps:$4 sm:$0xff]   ;;  %v28321_v48 = vld [vmem:[%s38160_s3 + $0x668] ss:$28 sps:$4 sm:$0xff]  }
 0x829   :  { %19662 = vmatprep.subr.bf16.mxu0 %v28284_v54  ;;  %v28324_v54 = vld [vmem:[%s38160_s3 + $0x29d0] ss:$28 sps:$4 sm:$0xff]  }
 0x82b   :  { %19782 = vmatpush1.bf16.msra.mxu1 %v28279_v46  ;;  %v28329_v46 = vld [vmem:[%s38160_s3 + $0x6a4] ss:$28 sps:$4 sm:$0xff]  }
 0x82c   :  { %19663 = vmatpush1.bf16.msra.mxu0 %v28282_v31  ;;  %19783 = vmatprep.subr.bf16.mxu1 %v28287_v62  ;;  %v28332_v31 = vld [vmem:[%s38160_s3 + $0x2a0c] ss:$28 sps:$4 sm:$0xff]   ;;  %v28327_v62 = vld [vmem:[%s38160_s3 + $0x6a0] ss:$28 sps:$4 sm:$0xff]  }
 0x82d   :  { %19664 = vmatprep.subr.bf16.mxu0 %v28290_v33  ;;  %v28330_v33 = vld [vmem:[%s38160_s3 + $0x2a08] ss:$28 sps:$4 sm:$0xff]  }
 0x82f   :  { %19784 = vmatpush1.bf16.msra.mxu1 %v28285_v52  ;;  %v28335_v52 = vld [vmem:[%s38160_s3 + $0x6dc] ss:$28 sps:$4 sm:$0xff]  }
 0x830   :  { %19665 = vmatpush1.bf16.msra.mxu0 %v28288_v4  ;;  %19785 = vmatprep.subr.bf16.mxu1 %v28293_v13  ;;  %v28338_v4 = vld [vmem:[%s38160_s3 + $0x2a44] ss:$28 sps:$4 sm:$0xff]   ;;  %v28333_v13 = vld [vmem:[%s38160_s3 + $0x6d8] ss:$28 sps:$4 sm:$0xff]  }
 0x831   :  { %19666 = vmatprep.subr.bf16.mxu0 %v28296_v42  ;;  %v28336_v42 = vld [vmem:[%s38160_s3 + $0x2a40] ss:$28 sps:$4 sm:$0xff]  }
 0x833   :  { %19786 = vmatpush1.bf16.msra.mxu1 %v28291_v19  ;;  %v28341_v19 = vld [vmem:[%s38160_s3 + $0x714] ss:$28 sps:$4 sm:$0xff]  }
 0x834   :  { %19667 = vmatpush1.bf16.msra.mxu0 %v28294_v35  ;;  %19787 = vmatprep.subr.bf16.mxu1 %v28299_v44  ;;  %v28344_v35 = vld [vmem:[%s38160_s3 + $0x2a7c] ss:$28 sps:$4 sm:$0xff]   ;;  %v28339_v44 = vld [vmem:[%s38160_s3 + $0x710] ss:$28 sps:$4 sm:$0xff]  }
 0x835   :  { %19668 = vmatprep.subr.bf16.mxu0 %v28302_v45  ;;  %v28342_v45 = vld [vmem:[%s38160_s3 + $0x2a78] ss:$28 sps:$4 sm:$0xff]  }
 0x837   :  { %19788 = vmatpush1.bf16.msra.mxu1 %v28297_v57  ;;  %v28347_v57 = vld [vmem:[%s38160_s3 + $0x74c] ss:$28 sps:$4 sm:$0xff]  }
 0x838   :  { %19669 = vmatpush1.bf16.msra.mxu0 %v28300_v28  ;;  %19789 = vmatprep.subr.bf16.mxu1 %v28305_v55  ;;  %v28350_v28 = vld [vmem:[%s38160_s3 + $0x2ab4] ss:$28 sps:$4 sm:$0xff]   ;;  %v28345_v55 = vld [vmem:[%s38160_s3 + $0x748] ss:$28 sps:$4 sm:$0xff]  }
 0x839   :  { %19670 = vmatprep.subr.bf16.mxu0 %v28308_v2  ;;  %v28348_v2 = vld [vmem:[%s38160_s3 + $0x2ab0] ss:$28 sps:$4 sm:$0xff]  }
 0x83b   :  { %19790 = vmatpush1.bf16.msra.mxu1 %v28303_v0  ;;  %v28353_v0 = vld [vmem:[%s38160_s3 + $0x784] ss:$28 sps:$4 sm:$0xff]  }
 0x83c   :  { %19671 = vmatpush1.bf16.msra.mxu0 %v28306_v9  ;;  %19791 = vmatprep.subr.bf16.mxu1 %v28311_v43  ;;  %v28356_v9 = vld [vmem:[%s38160_s3 + $0x2aec] ss:$28 sps:$4 sm:$0xff]   ;;  %v28351_v43 = vld [vmem:[%s38160_s3 + $0x780] ss:$28 sps:$4 sm:$0xff]  }
 0x83d   :  { %19672 = vmatprep.subr.bf16.mxu0 %v28314_v26  ;;  %v28354_v26 = vld [vmem:[%s38160_s3 + $0x2ae8] ss:$28 sps:$4 sm:$0xff]  }
 0x83f   :  { %19792 = vmatpush1.bf16.msra.mxu1 %v28309_v29  ;;  %v28359_v29 = vld [vmem:[%s38160_s3 + $0x7bc] ss:$28 sps:$4 sm:$0xff]  }
 0x840   :  { %19673 = vmatpush1.bf16.msra.mxu0 %v28312_v58  ;;  %19793 = vmatprep.subr.bf16.mxu1 %v28317_v61  ;;  %v28362_v58 = vld [vmem:[%s38160_s3 + $0x2b24] ss:$28 sps:$4 sm:$0xff]   ;;  %v28357_v61 = vld [vmem:[%s38160_s3 + $0x7b8] ss:$28 sps:$4 sm:$0xff]  }
 0x841   :  { %19674 = vmatprep.subr.bf16.mxu0 %v28320_v12  ;;  %v28360_v12 = vld [vmem:[%s38160_s3 + $0x2b20] ss:$28 sps:$4 sm:$0xff]  }
 0x843   :  { %19794 = vmatpush1.bf16.msra.mxu1 %v28315_v40  ;;  %v28365_v40 = vld [vmem:[%s38160_s3 + $0x7f4] ss:$28 sps:$4 sm:$0xff]  }
 0x844   :  { %19675 = vmatpush1.bf16.msra.mxu0 %v28318_v5  ;;  %19795 = vmatprep.subr.bf16.mxu1 %v28323_v59  ;;  %v28368_v5 = vld [vmem:[%s38160_s3 + $0x2b5c] ss:$28 sps:$4 sm:$0xff]   ;;  %v28363_v59 = vld [vmem:[%s38160_s3 + $0x7f0] ss:$28 sps:$4 sm:$0xff]  }
 0x845   :  { %19676 = vmatprep.subr.bf16.mxu0 %v28326_v15  ;;  %v28366_v15 = vld [vmem:[%s38160_s3 + $0x2b58] ss:$28 sps:$4 sm:$0xff]  }
 0x847   :  { %19796 = vmatpush1.bf16.msra.mxu1 %v28321_v48  ;;  %v28371_v48 = vld [vmem:[%s38160_s3 + $0x82c] ss:$28 sps:$4 sm:$0xff]  }
 0x848   :  { %19677 = vmatpush1.bf16.msra.mxu0 %v28324_v54  ;;  %19797 = vmatprep.subr.bf16.mxu1 %v28329_v46  ;;  %v28374_v54 = vld [vmem:[%s38160_s3 + $0x2b94] ss:$28 sps:$4 sm:$0xff]   ;;  %v28369_v46 = vld [vmem:[%s38160_s3 + $0x828] ss:$28 sps:$4 sm:$0xff]  }
 0x849   :  { %19687 = vmatprep.subr.bf16.mxu0 %v28332_v31  ;;  %v28372_v31 = vld [vmem:[%s38160_s3 + $0x2b90] ss:$28 sps:$4 sm:$0xff]  }
 0x84b   :  { %19679 = vmatmul.mubr.bf16.vlgmr.msra.gmra.mrb[36].mxu0 %v35533_v16  ;;  %19798 = vmatpush1.bf16.msra.mxu1 %v28327_v62  ;;  %v28377_v62 = vld [vmem:[%s38160_s3 + $0x864] ss:$28 sps:$4 sm:$0xff]  }
 0x84c   :  { %19688 = vmatpush1.bf16.msra.mxu0 %v28330_v33  ;;  %19799 = vmatprep.subr.bf16.mxu1 %v28335_v52  ;;  %v28378_v33 = vld [vmem:[%s38160_s3 + $0x1d8] ss:$28 sps:$4 sm:$0xff]   ;;  %v28375_v52 = vld [vmem:[%s38160_s3 + $0x860] ss:$28 sps:$4 sm:$0xff]  }
 0x84d   :  { %19689 = vmatprep.subr.bf16.mxu0 %v28338_v4  ;;  %19719 = vmatprep.mubr.bf16.mxu0 %v29260_v21  ;;  %v28379_v4 = vld [vmem:[%s38160_s3 + $0x18] ss:$28 sps:$4 sm:$0xff]  }
 0x84f   :  { %19800 = vmatpush1.bf16.msra.mxu1 %v28333_v13  ;;  %v28382_v13 = vld [vmem:[%s38160_s3 + $0x89c] ss:$28 sps:$4 sm:$0xff]  }
 0x850   :  { %19690 = vmatpush1.bf16.msra.mxu0 %v28336_v42  ;;  %19810 = vmatprep.subr.bf16.mxu1 %v28341_v19  ;;  %v28383_v42 = vld [vmem:[%s38160_s3 + $0x210] ss:$28 sps:$4 sm:$0xff]   ;;  %v28380_v19 = vld [vmem:[%s38160_s3 + $0x898] ss:$28 sps:$4 sm:$0xff]  }
 0x851   :  { %19691 = vmatprep.subr.bf16.mxu0 %v28344_v35  ;;  %v28384_v35 = vld [vmem:[%s38160_s3 + $0x50] ss:$28 sps:$4 sm:$0xff]  }
 0x852   :  { %19802 = vmatmul.mubr.bf16.vlgmr.msra.gmra.mrb[36].mxu1 %v33429_v14 }
 0x853   :  { %19811 = vmatpush1.bf16.msra.mxu1 %v28339_v44  ;;  %19842 = vmatprep.mubr.bf16.mxu1 %v33434_v51  ;;  %v28387_v44 = vld [vmem:[%s38160_s3 + $0x8d4] ss:$28 sps:$4 sm:$0xff]  }
 0x854   :  { %19692 = vmatpush1.bf16.msra.mxu0 %v28342_v45  ;;  %19812 = vmatprep.subr.bf16.mxu1 %v28347_v57  ;;  %v28388_v45 = vld [vmem:[%s38160_s3 + $0x248] ss:$28 sps:$4 sm:$0xff]   ;;  %v28385_v57 = vld [vmem:[%s38160_s3 + $0x8d0] ss:$28 sps:$4 sm:$0xff]  }
 0x855   :  { %19693 = vmatprep.subr.bf16.mxu0 %v28350_v28  ;;  %v28392_v28 = vld [vmem:[%s38160_s3 + $0x90c] ss:$28 sps:$4 sm:$0xff]  }
 0x857   :  { %19813 = vmatpush1.bf16.msra.mxu1 %v28345_v55  ;;  %v28393_v55 = vld [vmem:[%s38160_s3 + $0x280] ss:$28 sps:$4 sm:$0xff]  }
 0x858   :  { %19694 = vmatpush1.bf16.msra.mxu0 %v28348_v2  ;;  %19814 = vmatprep.subr.bf16.mxu1 %v28353_v0  ;;  %v28390_v2 = vld [vmem:[%s38160_s3 + $0x908] ss:$28 sps:$4 sm:$0xff]   ;;  %v28394_v0 = vld [vmem:[%s38160_s3 + $0xc0] ss:$28 sps:$4 sm:$0xff]  }
 0x859   :  { %19695 = vmatprep.subr.bf16.mxu0 %v28356_v9  ;;  %v28397_v9 = vld [vmem:[%s38160_s3 + $0x944] ss:$28 sps:$4 sm:$0xff]  }
 0x85b   :  { %19815 = vmatpush1.bf16.msra.mxu1 %v28351_v43  ;;  %v28398_v43 = vld [vmem:[%s38160_s3 + $0x2b8] ss:$28 sps:$4 sm:$0xff]  }
 0x85c   :  { %19696 = vmatpush1.bf16.msra.mxu0 %v28354_v26  ;;  %19816 = vmatprep.subr.bf16.mxu1 %v28359_v29  ;;  %v28395_v26 = vld [vmem:[%s38160_s3 + $0x940] ss:$28 sps:$4 sm:$0xff]   ;;  %v28399_v29 = vld [vmem:[%s38160_s3 + $0xf8] ss:$28 sps:$4 sm:$0xff]  }
 0x85d   :  { %19697 = vmatprep.subr.bf16.mxu0 %v28362_v58  ;;  %v28402_v58 = vld [vmem:[%s38160_s3 + $0x97c] ss:$28 sps:$4 sm:$0xff]  }
 0x85f   :  { %19817 = vmatpush1.bf16.msra.mxu1 %v28357_v61  ;;  %v28403_v61 = vld [vmem:[%s38160_s3 + $0x2f0] ss:$28 sps:$4 sm:$0xff]  }
 0x860   :  { %19698 = vmatpush1.bf16.msra.mxu0 %v28360_v12  ;;  %19818 = vmatprep.subr.bf16.mxu1 %v28365_v40  ;;  %v28400_v12 = vld [vmem:[%s38160_s3 + $0x978] ss:$28 sps:$4 sm:$0xff]   ;;  %v28404_v40 = vld [vmem:[%s38160_s3 + $0x130] ss:$28 sps:$4 sm:$0xff]  }
 0x861   :  { %19699 = vmatprep.subr.bf16.mxu0 %v28368_v5  ;;  %v28407_v5 = vld [vmem:[%s38160_s3 + $0x9b4] ss:$28 sps:$4 sm:$0xff]  }
 0x863   :  { %19819 = vmatpush1.bf16.msra.mxu1 %v28363_v59  ;;  %v28408_v59 = vld [vmem:[%s38160_s3 + $0x328] ss:$28 sps:$4 sm:$0xff]  }
 0x864   :  { %19700 = vmatpush1.bf16.msra.mxu0 %v28366_v15  ;;  %19820 = vmatprep.subr.bf16.mxu1 %v28371_v48  ;;  %v28405_v15 = vld [vmem:[%s38160_s3 + $0x9b0] ss:$28 sps:$4 sm:$0xff]   ;;  %v28409_v48 = vld [vmem:[%s38160_s3 + $0x168] ss:$28 sps:$4 sm:$0xff]  }
 0x865   :  { %19701 = vmatprep.subr.bf16.mxu0 %v28374_v54  ;;  %v28412_v54 = vld [vmem:[%s38160_s3 + $0x9ec] ss:$28 sps:$4 sm:$0xff]  }
 0x867   :  { %19821 = vmatpush1.bf16.msra.mxu1 %v28369_v46  ;;  %v28413_v46 = vld [vmem:[%s38160_s3 + $0x360] ss:$28 sps:$4 sm:$0xff]  }
 0x868   :  { %19702 = vmatpush1.bf16.msra.mxu0 %v28372_v31  ;;  %19822 = vmatprep.subr.bf16.mxu1 %v28377_v62  ;;  %v28410_v31 = vld [vmem:[%s38160_s3 + $0x9e8] ss:$28 sps:$4 sm:$0xff]   ;;  %v28414_v62 = vld [vmem:[%s38160_s3 + $0x1a0] ss:$28 sps:$4 sm:$0xff]  }
 0x869   :  { %24586 = vmatprep.subr.bf16.mxu0 %v28378_v33  ;;  %v28417_v33 = vld [vmem:[%s38160_s3 + $0xa24] ss:$28 sps:$4 sm:$0xff]  }
 0x86b   :  { %19720 = vmatmul.mubr.bf16.vlgmr.msra.gmra.mrb[36].mxu0 %v35636_v8  ;;  %19823 = vmatpush1.bf16.msra.mxu1 %v28375_v52  ;;  %v28418_v52 = vld [vmem:[%s38160_s3 + $0x558] ss:$28 sps:$4 sm:$0xff]  }
 0x86c   :  { %24587 = vmatpush3.bf16.msra.mxu0 %v28379_v4  ;;  %20293 = vmatprep.mubr.bf16.mxu0 %v33015_v24  ;;  %v28389_v24 = vld [vmem:[%s38160_s3 + $0x88] ss:$28 sps:$4 sm:$0xff]   ;;  %v28415_v4 = vld [vmem:[%s38160_s3 + $0xa20] ss:$28 sps:$4 sm:$0xff]  }
 0x86d   :  { %19824 = vmatprep.subr.bf16.mxu1 %v28382_v13  ;;  %24588 = vmatprep.subr.bf16.mxu0 %v28383_v42  ;;  %v28419_v13 = vld [vmem:[%s38160_s3 + $0x398] ss:$28 sps:$4 sm:$0xff]  }
 0x86e   :  { %v28422_v42 = vld [vmem:[%s38160_s3 + $0xa5c] ss:$28 sps:$4 sm:$0xff]  }
 0x86f   :  { %19825 = vmatpush1.bf16.msra.mxu1 %v28380_v19  ;;  %v28423_v19 = vld [vmem:[%s38160_s3 + $0x590] ss:$28 sps:$4 sm:$0xff]  }
 0x870   :  { %24589 = vmatpush3.bf16.msra.mxu0 %v28384_v35  ;;  %19826 = vmatprep.subr.bf16.mxu1 %v28387_v44  ;;  %v28420_v35 = vld [vmem:[%s38160_s3 + $0xa58] ss:$28 sps:$4 sm:$0xff]   ;;  %v28424_v44 = vld [vmem:[%s38160_s3 + $0x3d0] ss:$28 sps:$4 sm:$0xff]  }
 0x871   :  { %24590 = vmatprep.subr.bf16.mxu0 %v28388_v45  ;;  %v28427_v45 = vld [vmem:[%s38160_s3 + $0xa94] ss:$28 sps:$4 sm:$0xff]  }
 0x873   :  { %19827 = vmatpush1.bf16.msra.mxu1 %v28385_v57  ;;  %v28425_v57 = vld [vmem:[%s38160_s3 + $0xa90] ss:$28 sps:$4 sm:$0xff]  }
 0x874   :  { %24591 = vmatpush3.bf16.msra.mxu0 %v28389_v24  ;;  %19828 = vmatprep.subr.bf16.mxu1 %v28392_v28  ;;  %v28432_v24 = vld [vmem:[%s38160_s3 + $0xacc] ss:$28 sps:$4 sm:$0xff]   ;;  %v28433_v28 = vld [vmem:[%s38160_s3 + $0x600] ss:$28 sps:$4 sm:$0xff]  }
 0x875   :  { %24592 = vmatprep.subr.bf16.mxu0 %v28393_v55  ;;  %v28430_v55 = vld [vmem:[%s38160_s3 + $0xac8] ss:$28 sps:$4 sm:$0xff]  }
 0x877   :  { %19829 = vmatpush1.bf16.msra.mxu1 %v28390_v2  ;;  %v28434_v2 = vld [vmem:[%s38160_s3 + $0x440] ss:$28 sps:$4 sm:$0xff]  }
 0x878   :  { %24593 = vmatpush3.bf16.msra.mxu0 %v28394_v0  ;;  %19830 = vmatprep.subr.bf16.mxu1 %v28397_v9  ;;  %v28437_v0 = vld [vmem:[%s38160_s3 + $0xb04] ss:$28 sps:$4 sm:$0xff]   ;;  %v28438_v9 = vld [vmem:[%s38160_s3 + $0x638] ss:$28 sps:$4 sm:$0xff]  }
 0x879   :  { %24594 = vmatprep.subr.bf16.mxu0 %v28398_v43  ;;  %v28435_v43 = vld [vmem:[%s38160_s3 + $0xb00] ss:$28 sps:$4 sm:$0xff]  }
 0x87b   :  { %19831 = vmatpush1.bf16.msra.mxu1 %v28395_v26  ;;  %v28439_v26 = vld [vmem:[%s38160_s3 + $0x478] ss:$28 sps:$4 sm:$0xff]  }
 0x87c   :  { %24595 = vmatpush3.bf16.msra.mxu0 %v28399_v29  ;;  %19832 = vmatprep.subr.bf16.mxu1 %v28402_v58  ;;  %v28442_v29 = vld [vmem:[%s38160_s3 + $0xb3c] ss:$28 sps:$4 sm:$0xff]   ;;  %v28443_v58 = vld [vmem:[%s38160_s3 + $0x670] ss:$28 sps:$4 sm:$0xff]  }
 0x87d   :  { %24596 = vmatprep.subr.bf16.mxu0 %v28403_v61  ;;  %v28440_v61 = vld [vmem:[%s38160_s3 + $0xb38] ss:$28 sps:$4 sm:$0xff]  }
 0x87f   :  { %19833 = vmatpush1.bf16.msra.mxu1 %v28400_v12  ;;  %v28444_v12 = vld [vmem:[%s38160_s3 + $0x4b0] ss:$28 sps:$4 sm:$0xff]  }
 0x880   :  { %24597 = vmatpush3.bf16.msra.mxu0 %v28404_v40  ;;  %19834 = vmatprep.subr.bf16.mxu1 %v28407_v5  ;;  %v28447_v40 = vld [vmem:[%s38160_s3 + $0xb74] ss:$28 sps:$4 sm:$0xff]   ;;  %v28448_v5 = vld [vmem:[%s38160_s3 + $0x6a8] ss:$28 sps:$4 sm:$0xff]  }
 0x881   :  { %24598 = vmatprep.subr.bf16.mxu0 %v28408_v59  ;;  %v28445_v59 = vld [vmem:[%s38160_s3 + $0xb70] ss:$28 sps:$4 sm:$0xff]  }
 0x883   :  { %19835 = vmatpush1.bf16.msra.mxu1 %v28405_v15  ;;  %v28449_v15 = vld [vmem:[%s38160_s3 + $0x4e8] ss:$28 sps:$4 sm:$0xff]  }
 0x884   :  { %24599 = vmatpush3.bf16.msra.mxu0 %v28409_v48  ;;  %19836 = vmatprep.subr.bf16.mxu1 %v28412_v54  ;;  %v28452_v48 = vld [vmem:[%s38160_s3 + $0xbac] ss:$28 sps:$4 sm:$0xff]   ;;  %v28453_v54 = vld [vmem:[%s38160_s3 + $0x6e0] ss:$28 sps:$4 sm:$0xff]  }
 0x885   :  { %24600 = vmatprep.subr.bf16.mxu0 %v28413_v46  ;;  %v28450_v46 = vld [vmem:[%s38160_s3 + $0xba8] ss:$28 sps:$4 sm:$0xff]  }
 0x887   :  { %19837 = vmatpush1.bf16.msra.mxu1 %v28410_v31  ;;  %v28454_v31 = vld [vmem:[%s38160_s3 + $0x520] ss:$28 sps:$4 sm:$0xff]  }
 0x888   :  { %24601 = vmatpush3.bf16.msra.mxu0 %v28414_v62  ;;  %19838 = vmatprep.subr.bf16.mxu1 %v28417_v33  ;;  %v28457_v62 = vld [vmem:[%s38160_s3 + $0xbe4] ss:$28 sps:$4 sm:$0xff]  }
 0x889   :  { %24608 = vmatprep.subr.bf16.mxu0 %v28418_v52  ;;  %v28458_v52 = vld [vmem:[%s38160_s3 + $0x8d8] ss:$28 sps:$4 sm:$0xff]  }
 0x88b   :  { %19839 = vmatpush1.bf16.msra.mxu1 %v28415_v4  ;;  %20294 = vmatmul.mubr.bf16.vlgmr.msra.gmra.mrb[40].mxu0 %v33218_v17  ;;  %v28428_v17 = vld [vmem:[%s38160_s3 + $0x5c8] ss:$28 sps:$4 sm:$0xff]  }
 0x88c   :  { %24609 = vmatpush3.bf16.msra.mxu0 %v28419_v13  ;;  %20333 = vmatprep.mubr.bf16.mxu0 %v33223_v20  ;;  %v28429_v20 = vld [vmem:[%s38160_s3 + $0x408] ss:$28 sps:$4 sm:$0xff]  }
 0x88d   :  { %19840 = vmatprep.subr.bf16.mxu1 %v28422_v42  ;;  %24610 = vmatprep.subr.bf16.mxu0 %v28423_v19  ;;  %v28455_v42 = vld [vmem:[%s38160_s3 + $0xbe0] ss:$28 sps:$4 sm:$0xff]  }
 0x88f   :  { %19841 = vmatpush1.bf16.msra.mxu1 %v28420_v35  ;;  %v28459_v35 = vld [vmem:[%s38160_s3 + $0x718] ss:$28 sps:$4 sm:$0xff]  }
 0x890   :  { %24611 = vmatpush3.bf16.msra.mxu0 %v28424_v44  ;;  %19851 = vmatprep.subr.bf16.mxu1 %v28427_v45  ;;  %v28462_v44 = vld [vmem:[%s38160_s3 + $0xc1c] ss:$28 sps:$4 sm:$0xff]   ;;  %v28463_v45 = vld [vmem:[%s38160_s3 + $0x910] ss:$28 sps:$4 sm:$0xff]  }
 0x891   :  { %24612 = vmatprep.subr.bf16.mxu0 %v28428_v17  ;;  %v28460_v17 = vld [vmem:[%s38160_s3 + $0xc18] ss:$28 sps:$4 sm:$0xff]  }
 0x892   :  { %19843 = vmatmul.mubr.bf16.vlgmr.msra.gmra.mrb[36].mxu1 %v33645_v23 }
 0x893   :  { %19852 = vmatpush1.bf16.msra.mxu1 %v28425_v57  ;;  %19883 = vmatprep.mubr.bf16.mxu1 %v33650_v25  ;;  %v28464_v57 = vld [vmem:[%s38160_s3 + $0x750] ss:$28 sps:$4 sm:$0xff]  }
 0x894   :  { %24613 = vmatpush3.bf16.msra.mxu0 %v28429_v20  ;;  %19853 = vmatprep.subr.bf16.mxu1 %v28432_v24  ;;  %v28467_v20 = vld [vmem:[%s38160_s3 + $0xc54] ss:$28 sps:$4 sm:$0xff]  }
 0x895   :  { %24614 = vmatprep.subr.bf16.mxu0 %v28433_v28  ;;  %v28465_v24 = vld [vmem:[%s38160_s3 + $0xc50] ss:$28 sps:$4 sm:$0xff]  }
 0x896   :  { %v28472_v28 = vld [vmem:[%s38160_s3 + $0xc8c] ss:$28 sps:$4 sm:$0xff]  }
 0x897   :  { %19854 = vmatpush1.bf16.msra.mxu1 %v28430_v55  ;;  %v28473_v55 = vld [vmem:[%s38160_s3 + $0x980] ss:$28 sps:$4 sm:$0xff]  }
 0x898   :  { %24615 = vmatpush3.bf16.msra.mxu0 %v28434_v2  ;;  %19855 = vmatprep.subr.bf16.mxu1 %v28437_v0  ;;  %v28470_v2 = vld [vmem:[%s38160_s3 + $0xc88] ss:$28 sps:$4 sm:$0xff]   ;;  %v28474_v0 = vld [vmem:[%s38160_s3 + $0x7c0] ss:$28 sps:$4 sm:$0xff]  }
 0x899   :  { %24616 = vmatprep.subr.bf16.mxu0 %v28438_v9  ;;  %v28477_v9 = vld [vmem:[%s38160_s3 + $0xcc4] ss:$28 sps:$4 sm:$0xff]  }
 0x89b   :  { %19856 = vmatpush1.bf16.msra.mxu1 %v28435_v43  ;;  %v28478_v43 = vld [vmem:[%s38160_s3 + $0x9b8] ss:$28 sps:$4 sm:$0xff]  }
 0x89c   :  { %24617 = vmatpush3.bf16.msra.mxu0 %v28439_v26  ;;  %19857 = vmatprep.subr.bf16.mxu1 %v28442_v29  ;;  %v28475_v26 = vld [vmem:[%s38160_s3 + $0xcc0] ss:$28 sps:$4 sm:$0xff]   ;;  %v28479_v29 = vld [vmem:[%s38160_s3 + $0x7f8] ss:$28 sps:$4 sm:$0xff]  }
 0x89d   :  { %24618 = vmatprep.subr.bf16.mxu0 %v28443_v58  ;;  %v28482_v58 = vld [vmem:[%s38160_s3 + $0xcfc] ss:$28 sps:$4 sm:$0xff]  }
 0x89f   :  { %19858 = vmatpush1.bf16.msra.mxu1 %v28440_v61  ;;  %v28483_v61 = vld [vmem:[%s38160_s3 + $0x9f0] ss:$28 sps:$4 sm:$0xff]  }
 0x8a0   :  { %24619 = vmatpush3.bf16.msra.mxu0 %v28444_v12  ;;  %19859 = vmatprep.subr.bf16.mxu1 %v28447_v40  ;;  %v28480_v12 = vld [vmem:[%s38160_s3 + $0xcf8] ss:$28 sps:$4 sm:$0xff]   ;;  %v28484_v40 = vld [vmem:[%s38160_s3 + $0x830] ss:$28 sps:$4 sm:$0xff]  }
 0x8a1   :  { %24620 = vmatprep.subr.bf16.mxu0 %v28448_v5  ;;  %v28487_v5 = vld [vmem:[%s38160_s3 + $0xd34] ss:$28 sps:$4 sm:$0xff]  }
 0x8a3   :  { %19860 = vmatpush1.bf16.msra.mxu1 %v28445_v59  ;;  %v28488_v59 = vld [vmem:[%s38160_s3 + $0xa28] ss:$28 sps:$4 sm:$0xff]  }
 0x8a4   :  { %24621 = vmatpush3.bf16.msra.mxu0 %v28449_v15  ;;  %19861 = vmatprep.subr.bf16.mxu1 %v28452_v48  ;;  %v28485_v15 = vld [vmem:[%s38160_s3 + $0xd30] ss:$28 sps:$4 sm:$0xff]   ;;  %v28489_v48 = vld [vmem:[%s38160_s3 + $0x868] ss:$28 sps:$4 sm:$0xff]  }
 0x8a5   :  { %v36296_v33 = vpop.f32.mrb[32].mxu1  ;;  %24622 = vmatprep.subr.bf16.mxu0 %v28453_v54  ;;  %v28492_v54 = vld [vmem:[%s38160_s3 + $0xd6c] ss:$28 sps:$4 sm:$0xff]  }
 0x8a6   :  { %v36301_v4 = vpop.f32.mrb[33].mxu1 }
 0x8a7   :  { %v19192_v13 = vpop.f32.mrb[34].mxu1  ;;  %19862 = vmatpush1.bf16.msra.mxu1 %v28450_v46  ;;  %v28493_v46 = vld [vmem:[%s38160_s3 + $0xa60] ss:$28 sps:$4 sm:$0xff]  }
 0x8a8   :  { %v19193_v19 = vpop.f32.mrb[35].mxu1  ;;  %24623 = vmatpush3.bf16.msra.mxu0 %v28454_v31  ;;  %19863 = vmatprep.subr.bf16.mxu1 %v28457_v62  ;;  %v28490_v31 = vld [vmem:[%s38160_s3 + $0xd68] ss:$28 sps:$4 sm:$0xff]   ;;  %v28494_v62 = vld [vmem:[%s38160_s3 + $0x8a0] ss:$28 sps:$4 sm:$0xff]  }
 0x8a9   :  { %24630 = vmatprep.subr.bf16.mxu0 %v28458_v52  ;;  %v28497_v52 = vld [vmem:[%s38160_s3 + $0xda4] ss:$28 sps:$4 sm:$0xff]   ;;  %v28498_v13 = vld [vmem:[%s38160_s3 + $0xc58] ss:$28 sps:$4 sm:$0xff]  }
 0x8aa   :  { %v28499_v19 = vld [vmem:[%s38160_s3 + $0xa98] ss:$28 sps:$4 sm:$0xff]  }
 0x8ab   :  { %19864 = vmatpush1.bf16.msra.mxu1 %v28455_v42  ;;  %20334 = vmatmul.mubr.bf16.vlgmr.msra.gmra.mrb[44].mxu0 %v33429_v14  ;;  %v28468_v14 = vld [vmem:[%s38160_s3 + $0x948] ss:$28 sps:$4 sm:$0xff]   ;;  %v28495_v42 = vld [vmem:[%s38160_s3 + $0xda0] ss:$28 sps:$4 sm:$0xff]  }
 0x8ac   :  { %24631 = vmatpush3.bf16.msra.mxu0 %v28459_v35  ;;  %20373 = vmatprep.mubr.bf16.mxu0 %v33434_v51  ;;  %v28469_v51 = vld [vmem:[%s38160_s3 + $0x788] ss:$28 sps:$4 sm:$0xff]   ;;  %v28502_v35 = vld [vmem:[%s38160_s3 + $0xddc] ss:$28 sps:$4 sm:$0xff]  }
 0x8ad   :  { %19865 = vmatprep.subr.bf16.mxu1 %v28462_v44  ;;  %24632 = vmatprep.subr.bf16.mxu0 %v28463_v45  ;;  %v28503_v44 = vld [vmem:[%s38160_s3 + $0xc90] ss:$28 sps:$4 sm:$0xff]   ;;  %v28500_v45 = vld [vmem:[%s38160_s3 + $0xdd8] ss:$28 sps:$4 sm:$0xff]  }
 0x8af   :  { %19866 = vmatpush1.bf16.msra.mxu1 %v28460_v17  ;;  %v28504_v17 = vld [vmem:[%s38160_s3 + $0xad0] ss:$28 sps:$4 sm:$0xff]  }
 0x8b0   :  { %24633 = vmatpush3.bf16.msra.mxu0 %v28464_v57  ;;  %19867 = vmatprep.subr.bf16.mxu1 %v28467_v20  ;;  %v28507_v57 = vld [vmem:[%s38160_s3 + $0xe14] ss:$28 sps:$4 sm:$0xff]  }
 0x8b1   :  { %24634 = vmatprep.subr.bf16.mxu0 %v28468_v14  ;;  %v28505_v20 = vld [vmem:[%s38160_s3 + $0xe10] ss:$28 sps:$4 sm:$0xff]  }
 0x8b2   :  { %v28512_v14 = vld [vmem:[%s38160_s3 + $0xe4c] ss:$28 sps:$4 sm:$0xff]  }
 0x8b3   :  { %19868 = vmatpush1.bf16.msra.mxu1 %v28465_v24  ;;  %v28513_v24 = vld [vmem:[%s38160_s3 + $0xd00] ss:$28 sps:$4 sm:$0xff]  }
 0x8b4   :  { %24635 = vmatpush3.bf16.msra.mxu0 %v28469_v51  ;;  %19869 = vmatprep.subr.bf16.mxu1 %v28472_v28  ;;  %v28510_v51 = vld [vmem:[%s38160_s3 + $0xe48] ss:$28 sps:$4 sm:$0xff]   ;;  %v28514_v28 = vld [vmem:[%s38160_s3 + $0xb40] ss:$28 sps:$4 sm:$0xff]  }
 0x8b5   :  { %24636 = vmatprep.subr.bf16.mxu0 %v28473_v55  ;;  %v28517_v55 = vld [vmem:[%s38160_s3 + $0xe84] ss:$28 sps:$4 sm:$0xff]  }
 0x8b7   :  { %19870 = vmatpush1.bf16.msra.mxu1 %v28470_v2  ;;  %v28518_v2 = vld [vmem:[%s38160_s3 + $0xd38] ss:$28 sps:$4 sm:$0xff]  }
 0x8b8   :  { %24637 = vmatpush3.bf16.msra.mxu0 %v28474_v0  ;;  %19871 = vmatprep.subr.bf16.mxu1 %v28477_v9  ;;  %v28515_v0 = vld [vmem:[%s38160_s3 + $0xe80] ss:$28 sps:$4 sm:$0xff]   ;;  %v28519_v9 = vld [vmem:[%s38160_s3 + $0xb78] ss:$28 sps:$4 sm:$0xff]  }
 0x8b9   :  { %24638 = vmatprep.subr.bf16.mxu0 %v28478_v43  ;;  %v28522_v43 = vld [vmem:[%s38160_s3 + $0xebc] ss:$28 sps:$4 sm:$0xff]  }
 0x8bb   :  { %19872 = vmatpush1.bf16.msra.mxu1 %v28475_v26  ;;  %v28523_v26 = vld [vmem:[%s38160_s3 + $0xd70] ss:$28 sps:$4 sm:$0xff]  }
 0x8bc   :  { %24639 = vmatpush3.bf16.msra.mxu0 %v28479_v29  ;;  %19873 = vmatprep.subr.bf16.mxu1 %v28482_v58  ;;  %v28520_v29 = vld [vmem:[%s38160_s3 + $0xeb8] ss:$28 sps:$4 sm:$0xff]   ;;  %v28524_v58 = vld [vmem:[%s38160_s3 + $0xbb0] ss:$28 sps:$4 sm:$0xff]  }
 0x8bd   :  { %24640 = vmatprep.subr.bf16.mxu0 %v28483_v61  ;;  %v28527_v61 = vld [vmem:[%s38160_s3 + $0xef4] ss:$28 sps:$4 sm:$0xff]  }
 0x8bf   :  { %19874 = vmatpush1.bf16.msra.mxu1 %v28480_v12  ;;  %v28528_v12 = vld [vmem:[%s38160_s3 + $0xda8] ss:$28 sps:$4 sm:$0xff]  }
 0x8c0   :  { %24641 = vmatpush3.bf16.msra.mxu0 %v28484_v40  ;;  %19875 = vmatprep.subr.bf16.mxu1 %v28487_v5  ;;  %v28525_v40 = vld [vmem:[%s38160_s3 + $0xef0] ss:$28 sps:$4 sm:$0xff]   ;;  %v28529_v5 = vld [vmem:[%s38160_s3 + $0xbe8] ss:$28 sps:$4 sm:$0xff]  }
 0x8c1   :  { %24642 = vmatprep.subr.bf16.mxu0 %v28488_v59  ;;  %v28532_v59 = vld [vmem:[%s38160_s3 + $0xf2c] ss:$28 sps:$4 sm:$0xff]  }
 0x8c3   :  { %19876 = vmatpush1.bf16.msra.mxu1 %v28485_v15  ;;  %v28533_v15 = vld [vmem:[%s38160_s3 + $0xde0] ss:$28 sps:$4 sm:$0xff]  }
 0x8c4   :  { %24643 = vmatpush3.bf16.msra.mxu0 %v28489_v48  ;;  %19877 = vmatprep.subr.bf16.mxu1 %v28492_v54  ;;  %v28530_v48 = vld [vmem:[%s38160_s3 + $0xf28] ss:$28 sps:$4 sm:$0xff]   ;;  %v28534_v54 = vld [vmem:[%s38160_s3 + $0xc20] ss:$28 sps:$4 sm:$0xff]  }
 0x8c5   :  { %24644 = vmatprep.subr.bf16.mxu0 %v28493_v46  ;;  %v28537_v46 = vld [vmem:[%s38160_s3 + $0xf64] ss:$28 sps:$4 sm:$0xff]  }
 0x8c7   :  { %19878 = vmatpush1.bf16.msra.mxu1 %v28490_v31  ;;  %v28538_v31 = vld [vmem:[%s38160_s3 + $0xfd8] ss:$28 sps:$4 sm:$0xff]  }
 0x8c8   :  { %24645 = vmatpush3.bf16.msra.mxu0 %v28494_v62  ;;  %19879 = vmatprep.subr.bf16.mxu1 %v28497_v52  ;;  %v28535_v62 = vld [vmem:[%s38160_s3 + $0xf60] ss:$28 sps:$4 sm:$0xff]   ;;  %v28539_v52 = vld [vmem:[%s38160_s3 + $0xe18] ss:$28 sps:$4 sm:$0xff]  }
 0x8c9   :  { %24652 = vmatprep.subr.bf16.mxu0 %v28498_v13  ;;  %v28542_v13 = vld [vmem:[%s38160_s3 + $0xf9c] ss:$28 sps:$4 sm:$0xff]  }
 0x8cb   :  { %19880 = vmatpush1.bf16.msra.mxu1 %v28495_v42  ;;  %20374 = vmatmul.mubr.bf16.vlgmr.msra.gmra.mrb[48].mxu0 %v33645_v23  ;;  %v28508_v23 = vld [vmem:[%s38160_s3 + $0xcc8] ss:$28 sps:$4 sm:$0xff]   ;;  %v28543_v42 = vld [vmem:[%s38160_s3 + $0x1010] ss:$28 sps:$4 sm:$0xff]  }
 0x8cc   :  { %24653 = vmatpush3.bf16.msra.mxu0 %v28499_v19  ;;  %20413 = vmatprep.mubr.bf16.mxu0 %v33650_v25  ;;  %v28509_v25 = vld [vmem:[%s38160_s3 + $0xb08] ss:$28 sps:$4 sm:$0xff]   ;;  %v28540_v19 = vld [vmem:[%s38160_s3 + $0xf98] ss:$28 sps:$4 sm:$0xff]  }
 0x8cd   :  { %19881 = vmatprep.subr.bf16.mxu1 %v28502_v35  ;;  %24654 = vmatprep.subr.bf16.mxu0 %v28503_v44  ;;  %v28544_v35 = vld [vmem:[%s38160_s3 + $0xe50] ss:$28 sps:$4 sm:$0xff]  }
 0x8ce   :  { %v28547_v44 = vld [vmem:[%s38160_s3 + $0xfd4] ss:$28 sps:$4 sm:$0xff]  }
 0x8cf   :  { %19882 = vmatpush1.bf16.msra.mxu1 %v28500_v45  ;;  %v28545_v45 = vld [vmem:[%s38160_s3 + $0xfd0] ss:$28 sps:$4 sm:$0xff]  }
 0x8d0   :  { %24655 = vmatpush3.bf16.msra.mxu0 %v28504_v17  ;;  %19892 = vmatprep.subr.bf16.mxu1 %v28507_v57  ;;  %v28552_v17 = vld [vmem:[%s38160_s3 + $0x100c] ss:$28 sps:$4 sm:$0xff]   ;;  %v28553_v57 = vld [vmem:[%s38160_s3 + $0x1080] ss:$28 sps:$4 sm:$0xff]  }
 0x8d1   :  { %24656 = vmatprep.subr.bf16.mxu0 %v28508_v23  ;;  %v28550_v23 = vld [vmem:[%s38160_s3 + $0x1008] ss:$28 sps:$4 sm:$0xff]  }
 0x8d2   :  { %19884 = vmatmul.mubr.bf16.vlgmr.msra.gmra.mrb[36].mxu1 %v33865_v18 }
 0x8d3   :  { %19893 = vmatpush1.bf16.msra.mxu1 %v28505_v20  ;;  %19924 = vmatprep.mubr.bf16.mxu1 %v33870_v11  ;;  %v28554_v20 = vld [vmem:[%s38160_s3 + $0xec0] ss:$28 sps:$4 sm:$0xff]  }
 0x8d4   :  { %24657 = vmatpush3.bf16.msra.mxu0 %v28509_v25  ;;  %19894 = vmatprep.subr.bf16.mxu1 %v28512_v14  ;;  %v28557_v25 = vld [vmem:[%s38160_s3 + $0x1044] ss:$28 sps:$4 sm:$0xff]   ;;  %v28558_v14 = vld [vmem:[%s38160_s3 + $0x10b8] ss:$28 sps:$4 sm:$0xff]  }
 0x8d5   :  { %24658 = vmatprep.subr.bf16.mxu0 %v28513_v24  ;;  %v28555_v24 = vld [vmem:[%s38160_s3 + $0x1040] ss:$28 sps:$4 sm:$0xff]  }
 0x8d7   :  { %19895 = vmatpush1.bf16.msra.mxu1 %v28510_v51  ;;  %v28559_v51 = vld [vmem:[%s38160_s3 + $0xef8] ss:$28 sps:$4 sm:$0xff]  }
 0x8d8   :  { %24659 = vmatpush3.bf16.msra.mxu0 %v28514_v28  ;;  %19896 = vmatprep.subr.bf16.mxu1 %v28517_v55  ;;  %v28562_v28 = vld [vmem:[%s38160_s3 + $0x107c] ss:$28 sps:$4 sm:$0xff]   ;;  %v28563_v55 = vld [vmem:[%s38160_s3 + $0x10f0] ss:$28 sps:$4 sm:$0xff]  }
 0x8d9   :  { %24660 = vmatprep.subr.bf16.mxu0 %v28518_v2  ;;  %v28560_v2 = vld [vmem:[%s38160_s3 + $0x1078] ss:$28 sps:$4 sm:$0xff]  }
 0x8db   :  { %19897 = vmatpush1.bf16.msra.mxu1 %v28515_v0  ;;  %v28564_v0 = vld [vmem:[%s38160_s3 + $0xf30] ss:$28 sps:$4 sm:$0xff]  }
 0x8dc   :  { %24661 = vmatpush3.bf16.msra.mxu0 %v28519_v9  ;;  %19898 = vmatprep.subr.bf16.mxu1 %v28522_v43  ;;  %v28567_v9 = vld [vmem:[%s38160_s3 + $0x10b4] ss:$28 sps:$4 sm:$0xff]   ;;  %v28568_v43 = vld [vmem:[%s38160_s3 + $0x1128] ss:$28 sps:$4 sm:$0xff]  }
 0x8dd   :  { %24662 = vmatprep.subr.bf16.mxu0 %v28523_v26  ;;  %v28565_v26 = vld [vmem:[%s38160_s3 + $0x10b0] ss:$28 sps:$4 sm:$0xff]  }
 0x8df   :  { %19899 = vmatpush1.bf16.msra.mxu1 %v28520_v29  ;;  %v28569_v29 = vld [vmem:[%s38160_s3 + $0xf68] ss:$28 sps:$4 sm:$0xff]  }
 0x8e0   :  { %24663 = vmatpush3.bf16.msra.mxu0 %v28524_v58  ;;  %19900 = vmatprep.subr.bf16.mxu1 %v28527_v61  ;;  %v28572_v58 = vld [vmem:[%s38160_s3 + $0x10ec] ss:$28 sps:$4 sm:$0xff]   ;;  %v28573_v61 = vld [vmem:[%s38160_s3 + $0x1160] ss:$28 sps:$4 sm:$0xff]  }
 0x8e1   :  { %24664 = vmatprep.subr.bf16.mxu0 %v28528_v12  ;;  %v28570_v12 = vld [vmem:[%s38160_s3 + $0x10e8] ss:$28 sps:$4 sm:$0xff]  }
 0x8e3   :  { %19901 = vmatpush1.bf16.msra.mxu1 %v28525_v40  ;;  %v28574_v40 = vld [vmem:[%s38160_s3 + $0xfa0] ss:$28 sps:$4 sm:$0xff]  }
 0x8e4   :  { %24665 = vmatpush3.bf16.msra.mxu0 %v28529_v5  ;;  %19902 = vmatprep.subr.bf16.mxu1 %v28532_v59  ;;  %v28577_v5 = vld [vmem:[%s38160_s3 + $0x1124] ss:$28 sps:$4 sm:$0xff]   ;;  %v28578_v59 = vld [vmem:[%s38160_s3 + $0x1358] ss:$28 sps:$4 sm:$0xff]  }
 0x8e5   :  { %24666 = vmatprep.subr.bf16.mxu0 %v28533_v15  ;;  %v28575_v15 = vld [vmem:[%s38160_s3 + $0x1120] ss:$28 sps:$4 sm:$0xff]  }
 0x8e7   :  { %19903 = vmatpush1.bf16.msra.mxu1 %v28530_v48  ;;  %v28579_v48 = vld [vmem:[%s38160_s3 + $0x1198] ss:$28 sps:$4 sm:$0xff]  }
 0x8e8   :  { %24667 = vmatpush3.bf16.msra.mxu0 %v28534_v54  ;;  %19904 = vmatprep.subr.bf16.mxu1 %v28537_v46  ;;  %v28582_v54 = vld [vmem:[%s38160_s3 + $0x115c] ss:$28 sps:$4 sm:$0xff]   ;;  %v28583_v46 = vld [vmem:[%s38160_s3 + $0x1390] ss:$28 sps:$4 sm:$0xff]  }
 0x8e9   :  { %24674 = vmatprep.subr.bf16.mxu0 %v28538_v31  ;;  %v28580_v31 = vld [vmem:[%s38160_s3 + $0x1158] ss:$28 sps:$4 sm:$0xff]  }
 0x8eb   :  { %19905 = vmatpush1.bf16.msra.mxu1 %v28535_v62  ;;  %20414 = vmatmul.mubr.bf16.vlgmr.msra.gmra.mrb[52].mxu0 %v33865_v18  ;;  %v28548_v18 = vld [vmem:[%s38160_s3 + $0x1048] ss:$28 sps:$4 sm:$0xff]   ;;  %v28584_v62 = vld [vmem:[%s38160_s3 + $0x11d0] ss:$28 sps:$4 sm:$0xff]  }
 0x8ec   :  { %24675 = vmatpush3.bf16.msra.mxu0 %v28539_v52  ;;  %20453 = vmatprep.mubr.bf16.mxu0 %v33870_v11  ;;  %v28549_v11 = vld [vmem:[%s38160_s3 + $0xe88] ss:$28 sps:$4 sm:$0xff]   ;;  %v28587_v52 = vld [vmem:[%s38160_s3 + $0x1194] ss:$28 sps:$4 sm:$0xff]  }
 0x8ed   :  { %19906 = vmatprep.subr.bf16.mxu1 %v28542_v13  ;;  %24676 = vmatprep.subr.bf16.mxu0 %v28543_v42  ;;  %v28588_v13 = vld [vmem:[%s38160_s3 + $0x13c8] ss:$28 sps:$4 sm:$0xff]   ;;  %v28585_v42 = vld [vmem:[%s38160_s3 + $0x1190] ss:$28 sps:$4 sm:$0xff]  }
 0x8ef   :  { %19907 = vmatpush1.bf16.msra.mxu1 %v28540_v19  ;;  %v28589_v19 = vld [vmem:[%s38160_s3 + $0x1208] ss:$28 sps:$4 sm:$0xff]  }
 0x8f0   :  { %24677 = vmatpush3.bf16.msra.mxu0 %v28544_v35  ;;  %19908 = vmatprep.subr.bf16.mxu1 %v28547_v44  ;;  %v28592_v35 = vld [vmem:[%s38160_s3 + $0x11cc] ss:$28 sps:$4 sm:$0xff]   ;;  %v28593_v44 = vld [vmem:[%s38160_s3 + $0x1400] ss:$28 sps:$4 sm:$0xff]  }
 0x8f1   :  { %24678 = vmatprep.subr.bf16.mxu0 %v28548_v18  ;;  %v28590_v18 = vld [vmem:[%s38160_s3 + $0x11c8] ss:$28 sps:$4 sm:$0xff]  }
 0x8f3   :  { %19909 = vmatpush1.bf16.msra.mxu1 %v28545_v45  ;;  %v28594_v45 = vld [vmem:[%s38160_s3 + $0x1240] ss:$28 sps:$4 sm:$0xff]  }
 0x8f4   :  { %24679 = vmatpush3.bf16.msra.mxu0 %v28549_v11  ;;  %19910 = vmatprep.subr.bf16.mxu1 %v28552_v17  ;;  %v28597_v11 = vld [vmem:[%s38160_s3 + $0x1204] ss:$28 sps:$4 sm:$0xff]   ;;  %v28599_v17 = vld [vmem:[%s38160_s3 + $0x1278] ss:$28 sps:$4 sm:$0xff]  }
 0x8f5   :  { %24680 = vmatprep.subr.bf16.mxu0 %v28553_v57  ;;  %v28602_v57 = vld [vmem:[%s38160_s3 + $0x123c] ss:$28 sps:$4 sm:$0xff]  }
 0x8f7   :  { %19911 = vmatpush1.bf16.msra.mxu1 %v28550_v23  ;;  %v28603_v23 = vld [vmem:[%s38160_s3 + $0x1470] ss:$28 sps:$4 sm:$0xff]  }
 0x8f8   :  { %24681 = vmatpush3.bf16.msra.mxu0 %v28554_v20  ;;  %19912 = vmatprep.subr.bf16.mxu1 %v28557_v25  ;;  %v28600_v20 = vld [vmem:[%s38160_s3 + $0x1238] ss:$28 sps:$4 sm:$0xff]   ;;  %v28604_v25 = vld [vmem:[%s38160_s3 + $0x12b0] ss:$28 sps:$4 sm:$0xff]  }
 0x8f9   :  { %24682 = vmatprep.subr.bf16.mxu0 %v28558_v14  ;;  %v28607_v14 = vld [vmem:[%s38160_s3 + $0x1274] ss:$28 sps:$4 sm:$0xff]  }
 0x8fb   :  { %19913 = vmatpush1.bf16.msra.mxu1 %v28555_v24  ;;  %v28608_v24 = vld [vmem:[%s38160_s3 + $0x14a8] ss:$28 sps:$4 sm:$0xff]  }
 0x8fc   :  { %24683 = vmatpush3.bf16.msra.mxu0 %v28559_v51  ;;  %19914 = vmatprep.subr.bf16.mxu1 %v28562_v28  ;;  %v28605_v51 = vld [vmem:[%s38160_s3 + $0x1270] ss:$28 sps:$4 sm:$0xff]   ;;  %v28609_v28 = vld [vmem:[%s38160_s3 + $0x12e8] ss:$28 sps:$4 sm:$0xff]  }
 0x8fd   :  { %24684 = vmatprep.subr.bf16.mxu0 %v28563_v55  ;;  %v28612_v55 = vld [vmem:[%s38160_s3 + $0x12ac] ss:$28 sps:$4 sm:$0xff]  }
 0x8ff   :  { %19915 = vmatpush1.bf16.msra.mxu1 %v28560_v2  ;;  %v28613_v2 = vld [vmem:[%s38160_s3 + $0x14e0] ss:$28 sps:$4 sm:$0xff]  }
 0x900   :  { %24685 = vmatpush3.bf16.msra.mxu0 %v28564_v0  ;;  %19916 = vmatprep.subr.bf16.mxu1 %v28567_v9  ;;  %v28610_v0 = vld [vmem:[%s38160_s3 + $0x12a8] ss:$28 sps:$4 sm:$0xff]   ;;  %v28614_v9 = vld [vmem:[%s38160_s3 + $0x1320] ss:$28 sps:$4 sm:$0xff]  }
 0x901   :  { %24686 = vmatprep.subr.bf16.mxu0 %v28568_v43  ;;  %v28617_v43 = vld [vmem:[%s38160_s3 + $0x12e4] ss:$28 sps:$4 sm:$0xff]  }
 0x903   :  { %19917 = vmatpush1.bf16.msra.mxu1 %v28565_v26  ;;  %v28618_v26 = vld [vmem:[%s38160_s3 + $0x16d8] ss:$28 sps:$4 sm:$0xff]  }
 0x904   :  { %24687 = vmatpush3.bf16.msra.mxu0 %v28569_v29  ;;  %19918 = vmatprep.subr.bf16.mxu1 %v28572_v58  ;;  %v28615_v29 = vld [vmem:[%s38160_s3 + $0x12e0] ss:$28 sps:$4 sm:$0xff]   ;;  %v28619_v58 = vld [vmem:[%s38160_s3 + $0x1518] ss:$28 sps:$4 sm:$0xff]  }
 0x905   :  { %24688 = vmatprep.subr.bf16.mxu0 %v28573_v61  ;;  %v28622_v61 = vld [vmem:[%s38160_s3 + $0x131c] ss:$28 sps:$4 sm:$0xff]  }
 0x907   :  { %19919 = vmatpush1.bf16.msra.mxu1 %v28570_v12  ;;  %v28623_v12 = vld [vmem:[%s38160_s3 + $0x1710] ss:$28 sps:$4 sm:$0xff]  }
 0x908   :  { %24689 = vmatpush3.bf16.msra.mxu0 %v28574_v40  ;;  %19920 = vmatprep.subr.bf16.mxu1 %v28577_v5  ;;  %v28620_v40 = vld [vmem:[%s38160_s3 + $0x1318] ss:$28 sps:$4 sm:$0xff]   ;;  %v28624_v5 = vld [vmem:[%s38160_s3 + $0x1550] ss:$28 sps:$4 sm:$0xff]  }
 0x909   :  { %24696 = vmatprep.subr.bf16.mxu0 %v28578_v59  ;;  %v28627_v59 = vld [vmem:[%s38160_s3 + $0x1354] ss:$28 sps:$4 sm:$0xff]  }
 0x90b   :  { %19921 = vmatpush1.bf16.msra.mxu1 %v28575_v15  ;;  %20454 = vmatmul.mubr.bf16.vlgmr.msra.gmra.mrb[56].mxu0 %v34075_v3  ;;  %v28628_v15 = vld [vmem:[%s38160_s3 + $0x1748] ss:$28 sps:$4 sm:$0xff]  }
 0x90c   :  { %24697 = vmatpush3.bf16.msra.mxu0 %v28579_v48  ;;  %20493 = vmatprep.mubr.bf16.mxu0 %v34080_v41  ;;  %v28625_v48 = vld [vmem:[%s38160_s3 + $0x1350] ss:$28 sps:$4 sm:$0xff]  }
 0x90d   :  { %19922 = vmatprep.subr.bf16.mxu1 %v28582_v54  ;;  %24698 = vmatprep.subr.bf16.mxu0 %v28583_v46  ;;  %v28629_v54 = vld [vmem:[%s38160_s3 + $0x1588] ss:$28 sps:$4 sm:$0xff]  }
 0x90e   :  { %v28632_v46 = vld [vmem:[%s38160_s3 + $0x138c] ss:$28 sps:$4 sm:$0xff]  }
 0x90f   :  { %19923 = vmatpush1.bf16.msra.mxu1 %v28580_v31  ;;  %v28633_v31 = vld [vmem:[%s38160_s3 + $0x1780] ss:$28 sps:$4 sm:$0xff]  }
 0x910   :  { %24699 = vmatpush3.bf16.msra.mxu0 %v28584_v62  ;;  %19933 = vmatprep.subr.bf16.mxu1 %v28587_v52  ;;  %v28630_v62 = vld [vmem:[%s38160_s3 + $0x1388] ss:$28 sps:$4 sm:$0xff]   ;;  %v28634_v52 = vld [vmem:[%s38160_s3 + $0x15c0] ss:$28 sps:$4 sm:$0xff]  }
 0x911   :  { %24700 = vmatprep.subr.bf16.mxu0 %v28588_v13  ;;  %v28637_v13 = vld [vmem:[%s38160_s3 + $0x13c4] ss:$28 sps:$4 sm:$0xff]  }
 0x912   :  { %19925 = vmatmul.mubr.bf16.vlgmr.msra.gmra.mrb[36].mxu1 %v34075_v3  ;;  %v28598_v3 = vld [vmem:[%s38160_s3 + $0x1438] ss:$28 sps:$4 sm:$0xff]  }
 0x913   :  { %19934 = vmatpush1.bf16.msra.mxu1 %v28585_v42  ;;  %19965 = vmatprep.mubr.bf16.mxu1 %v34080_v41  ;;  %v28595_v41 = vld [vmem:[%s38160_s3 + $0x1200] ss:$28 sps:$4 sm:$0xff]   ;;  %v28638_v42 = vld [vmem:[%s38160_s3 + $0x17b8] ss:$28 sps:$4 sm:$0xff]  }
 0x914   :  { %24701 = vmatpush3.bf16.msra.mxu0 %v28589_v19  ;;  %19935 = vmatprep.subr.bf16.mxu1 %v28592_v35  ;;  %v28635_v19 = vld [vmem:[%s38160_s3 + $0x13c0] ss:$28 sps:$4 sm:$0xff]   ;;  %v28639_v35 = vld [vmem:[%s38160_s3 + $0x15f8] ss:$28 sps:$4 sm:$0xff]  }
 0x915   :  { %24702 = vmatprep.subr.bf16.mxu0 %v28593_v44  ;;  %v28642_v44 = vld [vmem:[%s38160_s3 + $0x13fc] ss:$28 sps:$4 sm:$0xff]  }
 0x917   :  { %19936 = vmatpush1.bf16.msra.mxu1 %v28590_v18  ;;  %v28643_v18 = vld [vmem:[%s38160_s3 + $0x17f0] ss:$28 sps:$4 sm:$0xff]  }
 0x918   :  { %24703 = vmatpush3.bf16.msra.mxu0 %v28594_v45  ;;  %19937 = vmatprep.subr.bf16.mxu1 %v28597_v11  ;;  %v28640_v45 = vld [vmem:[%s38160_s3 + $0x13f8] ss:$28 sps:$4 sm:$0xff]   ;;  %v28644_v11 = vld [vmem:[%s38160_s3 + $0x1630] ss:$28 sps:$4 sm:$0xff]  }
 0x919   :  { %24704 = vmatprep.subr.bf16.mxu0 %v28598_v3  ;;  %v28647_v3 = vld [vmem:[%s38160_s3 + $0x1434] ss:$28 sps:$4 sm:$0xff]  }
 0x91b   :  { %19938 = vmatpush1.bf16.msra.mxu1 %v28595_v41  ;;  %v28648_v41 = vld [vmem:[%s38160_s3 + $0x1828] ss:$28 sps:$4 sm:$0xff]  }
 0x91c   :  { %24705 = vmatpush3.bf16.msra.mxu0 %v28599_v17  ;;  %19939 = vmatprep.subr.bf16.mxu1 %v28602_v57 }
 0x91d   :  { %24706 = vmatprep.subr.bf16.mxu0 %v28603_v23  ;;  %v28645_v23 = vld [vmem:[%s38160_s3 + $0x1430] ss:$28 sps:$4 sm:$0xff]  }
 0x91f   :  { %19940 = vmatpush1.bf16.msra.mxu1 %v28600_v20 }
 0x920   :  { %24707 = vmatpush3.bf16.msra.mxu0 %v28604_v25  ;;  %19941 = vmatprep.subr.bf16.mxu1 %v28607_v14  ;;  %v28649_v25 = vld [vmem:[%s38160_s3 + $0x1668] ss:$28 sps:$4 sm:$0xff]  }
 0x921   :  { %24708 = vmatprep.subr.bf16.mxu0 %v28608_v24  ;;  %v28652_v14 = vld [vmem:[%s38160_s3 + $0x146c] ss:$28 sps:$4 sm:$0xff]  }
 0x923   :  { %19942 = vmatpush1.bf16.msra.mxu1 %v28605_v51  ;;  %v28653_v51 = vld [vmem:[%s38160_s3 + $0x1860] ss:$28 sps:$4 sm:$0xff]  }
 0x924   :  { %24709 = vmatpush3.bf16.msra.mxu0 %v28609_v28  ;;  %19943 = vmatprep.subr.bf16.mxu1 %v28612_v55  ;;  %v28650_v28 = vld [vmem:[%s38160_s3 + $0x1468] ss:$28 sps:$4 sm:$0xff]   ;;  %v28654_v55 = vld [vmem:[%s38160_s3 + $0x16a0] ss:$28 sps:$4 sm:$0xff]  }
 0x925   :  { %24710 = vmatprep.subr.bf16.mxu0 %v28613_v2  ;;  %v28657_v2 = vld [vmem:[%s38160_s3 + $0x14a4] ss:$28 sps:$4 sm:$0xff]  }
 0x927   :  { %19944 = vmatpush1.bf16.msra.mxu1 %v28610_v0  ;;  %v28658_v0 = vld [vmem:[%s38160_s3 + $0x1a58] ss:$28 sps:$4 sm:$0xff]  }
 0x928   :  { %24711 = vmatpush3.bf16.msra.mxu0 %v28614_v9  ;;  %19945 = vmatprep.subr.bf16.mxu1 %v28617_v43  ;;  %v28655_v9 = vld [vmem:[%s38160_s3 + $0x14a0] ss:$28 sps:$4 sm:$0xff]   ;;  %v28659_v43 = vld [vmem:[%s38160_s3 + $0x1898] ss:$28 sps:$4 sm:$0xff]  }
 0x929   :  { %24718 = vmatprep.subr.bf16.mxu0 %v28618_v26  ;;  %v28662_v26 = vld [vmem:[%s38160_s3 + $0x14dc] ss:$28 sps:$4 sm:$0xff]  }
 0x92b   :  { %19946 = vmatpush1.bf16.msra.mxu1 %v28615_v29  ;;  %20494 = vmatmul.mubr.bf16.vlgmr.msra.gmra.mrb[60].mxu0 %v34293_v22  ;;  %v28663_v29 = vld [vmem:[%s38160_s3 + $0x1a90] ss:$28 sps:$4 sm:$0xff]  }
 0x92c   :  { %24719 = vmatpush3.bf16.msra.mxu0 %v28619_v58  ;;  %20533 = vmatprep.mubr.bf16.mxu0 %v34301_v38  ;;  %v28660_v58 = vld [vmem:[%s38160_s3 + $0x14d8] ss:$28 sps:$4 sm:$0xff]  }
 0x92d   :  { %19947 = vmatprep.subr.bf16.mxu1 %v28622_v61  ;;  %24720 = vmatprep.subr.bf16.mxu0 %v28623_v12  ;;  %v28664_v61 = vld [vmem:[%s38160_s3 + $0x18d0] ss:$28 sps:$4 sm:$0xff]  }
 0x92e   :  { %v28667_v12 = vld [vmem:[%s38160_s3 + $0x1514] ss:$28 sps:$4 sm:$0xff]  }
 0x92f   :  { %19948 = vmatpush1.bf16.msra.mxu1 %v28620_v40  ;;  %v28668_v40 = vld [vmem:[%s38160_s3 + $0x1ac8] ss:$28 sps:$4 sm:$0xff]  }
 0x930   :  { %24721 = vmatpush3.bf16.msra.mxu0 %v28624_v5  ;;  %19949 = vmatprep.subr.bf16.mxu1 %v28627_v59  ;;  %v28665_v5 = vld [vmem:[%s38160_s3 + $0x1510] ss:$28 sps:$4 sm:$0xff]   ;;  %v28669_v59 = vld [vmem:[%s38160_s3 + $0x1908] ss:$28 sps:$4 sm:$0xff]  }
 0x931   :  { %24722 = vmatprep.subr.bf16.mxu0 %v28628_v15  ;;  %v28672_v15 = vld [vmem:[%s38160_s3 + $0x154c] ss:$28 sps:$4 sm:$0xff]  }
 0x933   :  { %19950 = vmatpush1.bf16.msra.mxu1 %v28625_v48  ;;  %v28673_v48 = vld [vmem:[%s38160_s3 + $0x1b00] ss:$28 sps:$4 sm:$0xff]  }
 0x934   :  { %24723 = vmatpush3.bf16.msra.mxu0 %v28629_v54  ;;  %19951 = vmatprep.subr.bf16.mxu1 %v28632_v46  ;;  %v28670_v54 = vld [vmem:[%s38160_s3 + $0x1548] ss:$28 sps:$4 sm:$0xff]   ;;  %v28674_v46 = vld [vmem:[%s38160_s3 + $0x1940] ss:$28 sps:$4 sm:$0xff]  }
 0x935   :  { %24724 = vmatprep.subr.bf16.mxu0 %v28633_v31  ;;  %v28677_v31 = vld [vmem:[%s38160_s3 + $0x1584] ss:$28 sps:$4 sm:$0xff]  }
 0x937   :  { %19952 = vmatpush1.bf16.msra.mxu1 %v28630_v62  ;;  %v28679_v62 = vld [vmem:[%s38160_s3 + $0x1978] ss:$28 sps:$4 sm:$0xff]  }
 0x938   :  { %24725 = vmatpush3.bf16.msra.mxu0 %v28634_v52  ;;  %19953 = vmatprep.subr.bf16.mxu1 %v28637_v13  ;;  %v28682_v52 = vld [vmem:[%s38160_s3 + $0x15bc] ss:$28 sps:$4 sm:$0xff]   ;;  %v28683_v13 = vld [vmem:[%s38160_s3 + $0x1b70] ss:$28 sps:$4 sm:$0xff]  }
 0x939   :  { %24726 = vmatprep.subr.bf16.mxu0 %v28638_v42  ;;  %v28680_v42 = vld [vmem:[%s38160_s3 + $0x15b8] ss:$28 sps:$4 sm:$0xff]  }
 0x93b   :  { %19954 = vmatpush1.bf16.msra.mxu1 %v28635_v19  ;;  %v28684_v19 = vld [vmem:[%s38160_s3 + $0x19b0] ss:$28 sps:$4 sm:$0xff]  }
 0x93c   :  { %24727 = vmatpush3.bf16.msra.mxu0 %v28639_v35  ;;  %19955 = vmatprep.subr.bf16.mxu1 %v28642_v44  ;;  %v28687_v35 = vld [vmem:[%s38160_s3 + $0x15f4] ss:$28 sps:$4 sm:$0xff]   ;;  %v28688_v44 = vld [vmem:[%s38160_s3 + $0x1ba8] ss:$28 sps:$4 sm:$0xff]  }
 0x93d   :  { %24728 = vmatprep.subr.bf16.mxu0 %v28643_v18 }
 0x93e   :  { %v36773_v17 = vpop.f32.mrb[36].mxu0 }
 0x93f   :  { %v36775_v57 = vpop.f32.mrb[37].mxu0  ;;  %19956 = vmatpush1.bf16.msra.mxu1 %v28640_v45 }
 0x940   :  { %v19725_v20 = vpop.f32.mrb[38].mxu0  ;;  %24729 = vmatpush3.bf16.msra.mxu0 %v28644_v11  ;;  %19957 = vmatprep.subr.bf16.mxu1 %v28647_v3  ;;  %v28685_v11 = vld [vmem:[%s38160_s3 + $0x15f0] ss:$28 sps:$4 sm:$0xff]  }
 0x941   :  { %v19726_v24 = vpop.f32.mrb[39].mxu0  ;;  %24730 = vmatprep.subr.bf16.mxu0 %v28648_v41  ;;  %v28692_v20 = vld [vmem:[%s38160_s3 + $0x162c] ss:$28 sps:$4 sm:$0xff]  }
 0x942   :  { %v28690_v24 = vld [vmem:[%s38160_s3 + $0x1628] ss:$28 sps:$4 sm:$0xff]  }
 0x943   :  { %19958 = vmatpush1.bf16.msra.mxu1 %v28645_v23  ;;  %v28689_v23 = vld [vmem:[%s38160_s3 + $0x19e8] ss:$28 sps:$4 sm:$0xff]  }
 0x944   :  { %24731 = vmatpush3.bf16.msra.mxu0 %v28649_v25  ;;  %19959 = vmatprep.subr.bf16.mxu1 %v28652_v14  ;;  %v28693_v14 = vld [vmem:[%s38160_s3 + $0x1be0] ss:$28 sps:$4 sm:$0xff]  }
 0x945   :  { %24732 = vmatprep.subr.bf16.mxu0 %v28653_v51  ;;  %v28694_v51 = vld [vmem:[%s38160_s3 + $0x1a20] ss:$28 sps:$4 sm:$0xff]  }
 0x947   :  { %19960 = vmatpush1.bf16.msra.mxu1 %v28650_v28  ;;  %v28697_v28 = vld [vmem:[%s38160_s3 + $0x1664] ss:$28 sps:$4 sm:$0xff]  }
 0x948   :  { %24733 = vmatpush3.bf16.msra.mxu0 %v28654_v55  ;;  %19961 = vmatprep.subr.bf16.mxu1 %v28657_v2  ;;  %v28698_v55 = vld [vmem:[%s38160_s3 + $0x1dd8] ss:$28 sps:$4 sm:$0xff]   ;;  %v28695_v2 = vld [vmem:[%s38160_s3 + $0x1660] ss:$28 sps:$4 sm:$0xff]  }
 0x949   :  { %24740 = vmatprep.subr.bf16.mxu0 %v28658_v0  ;;  %v28699_v0 = vld [vmem:[%s38160_s3 + $0x1c18] ss:$28 sps:$4 sm:$0xff]  }
 0x94b   :  { %19962 = vmatpush1.bf16.msra.mxu1 %v28655_v9  ;;  %20534 = vmatmul.mubr.bf16.vlgmr.msra.gmra.mrb[64].mxu0 %v34499_v63  ;;  %v28702_v9 = vld [vmem:[%s38160_s3 + $0x169c] ss:$28 sps:$4 sm:$0xff]  }
 0x94c   :  { %24741 = vmatpush3.bf16.msra.mxu0 %v28659_v43  ;;  %20573 = vmatprep.mubr.bf16.mxu0 %v34507_v6  ;;  %v28703_v43 = vld [vmem:[%s38160_s3 + $0x1e10] ss:$28 sps:$4 sm:$0xff]  }
 0x94d   :  { %19963 = vmatprep.subr.bf16.mxu1 %v28662_v26  ;;  %24742 = vmatprep.subr.bf16.mxu0 %v28663_v29  ;;  %v28700_v26 = vld [vmem:[%s38160_s3 + $0x1698] ss:$28 sps:$4 sm:$0xff]   ;;  %v28704_v29 = vld [vmem:[%s38160_s3 + $0x1c50] ss:$28 sps:$4 sm:$0xff]  }
 0x94f   :  { %19964 = vmatpush1.bf16.msra.mxu1 %v28660_v58  ;;  %v28707_v58 = vld [vmem:[%s38160_s3 + $0x16d4] ss:$28 sps:$4 sm:$0xff]  }
 0x950   :  { %24743 = vmatpush3.bf16.msra.mxu0 %v28664_v61  ;;  %19974 = vmatprep.subr.bf16.mxu1 %v28667_v12  ;;  %v28708_v61 = vld [vmem:[%s38160_s3 + $0x1e48] ss:$28 sps:$4 sm:$0xff]   ;;  %v28705_v12 = vld [vmem:[%s38160_s3 + $0x16d0] ss:$28 sps:$4 sm:$0xff]  }
 0x951   :  { %24744 = vmatprep.subr.bf16.mxu0 %v28668_v40  ;;  %v28709_v40 = vld [vmem:[%s38160_s3 + $0x1c88] ss:$28 sps:$4 sm:$0xff]  }
 0x952   :  { %19966 = vmatmul.mubr.bf16.vlgmr.msra.gmra.mrb[36].mxu1 %v34293_v22  ;;  %v28678_v22 = vld [vmem:[%s38160_s3 + $0x1b38] ss:$28 sps:$4 sm:$0xff]  }
 0x953   :  { %19975 = vmatpush1.bf16.msra.mxu1 %v28665_v5  ;;  %20006 = vmatprep.mubr.bf16.mxu1 %v34301_v38  ;;  %v28675_v38 = vld [vmem:[%s38160_s3 + $0x1580] ss:$28 sps:$4 sm:$0xff]   ;;  %v28712_v5 = vld [vmem:[%s38160_s3 + $0x170c] ss:$28 sps:$4 sm:$0xff]  }
 0x954   :  { %24745 = vmatpush3.bf16.msra.mxu0 %v28669_v59  ;;  %19976 = vmatprep.subr.bf16.mxu1 %v28672_v15  ;;  %v28713_v59 = vld [vmem:[%s38160_s3 + $0x1e80] ss:$28 sps:$4 sm:$0xff]   ;;  %v28710_v15 = vld [vmem:[%s38160_s3 + $0x1708] ss:$28 sps:$4 sm:$0xff]  }
 0x955   :  { %24746 = vmatprep.subr.bf16.mxu0 %v28673_v48  ;;  %v28714_v48 = vld [vmem:[%s38160_s3 + $0x1cc0] ss:$28 sps:$4 sm:$0xff]  }
 0x957   :  { %19977 = vmatpush1.bf16.msra.mxu1 %v28670_v54  ;;  %v28717_v54 = vld [vmem:[%s38160_s3 + $0x1744] ss:$28 sps:$4 sm:$0xff]  }
 0x958   :  { %24747 = vmatpush3.bf16.msra.mxu0 %v28674_v46  ;;  %19978 = vmatprep.subr.bf16.mxu1 %v28677_v31  ;;  %v28718_v46 = vld [vmem:[%s38160_s3 + $0x1eb8] ss:$28 sps:$4 sm:$0xff]   ;;  %v28715_v31 = vld [vmem:[%s38160_s3 + $0x1740] ss:$28 sps:$4 sm:$0xff]  }
 0x959   :  { %24748 = vmatprep.subr.bf16.mxu0 %v28678_v22  ;;  %v28719_v22 = vld [vmem:[%s38160_s3 + $0x1cf8] ss:$28 sps:$4 sm:$0xff]  }
 0x95b   :  { %19979 = vmatpush1.bf16.msra.mxu1 %v28675_v38  ;;  %v28722_v38 = vld [vmem:[%s38160_s3 + $0x177c] ss:$28 sps:$4 sm:$0xff]  }
 0x95c   :  { %24749 = vmatpush3.bf16.msra.mxu0 %v28679_v62  ;;  %19980 = vmatprep.subr.bf16.mxu1 %v28682_v52  ;;  %v28723_v62 = vld [vmem:[%s38160_s3 + $0x1ef0] ss:$28 sps:$4 sm:$0xff]   ;;  %v36968_v52 = vld [vmem:[%s38161_s4] sm:$0x7f] }
 0x95d   :  { %24750 = vmatprep.subr.bf16.mxu0 %v28683_v13  ;;  %v28720_v13 = vld [vmem:[%s38160_s3 + $0x1778] ss:$28 sps:$4 sm:$0xff]  }
 0x95e   :  { %v24602_v18 = vpop.f32.mrb[40].mxu0 }
 0x95f   :  { %19981 = vmatpush1.bf16.msra.mxu1 %v28680_v42  ;;  %v24603_v45 = vpop.f32.mrb[41].mxu0  ;;  %v11454_v42 = vrot.slane %v36968_v52, %v33802_v10  ;;  %v28725_v10 = vld [vmem:[%s38160_s3 + $0x17b0] ss:$28 sps:$4 sm:$0xff]  }
 0x960   :  { %v36880_v3 = vadd.f32 %v24603_v45, %v24602_v18  ;;  %v24605_v41 = vpop.f32.mrb[42].mxu0  ;;  %24751 = vmatpush3.bf16.msra.mxu0 %v28684_v19  ;;  %19982 = vmatprep.subr.bf16.mxu1 %v28687_v35  ;;  %v28724_v19 = vld [vmem:[%s38160_s3 + $0x1d30] ss:$28 sps:$4 sm:$0xff]  }
 0x961   :  { %v24606_v25 = vpop.f32.mrb[43].mxu0  ;;  %24752 = vmatprep.subr.bf16.mxu0 %v28688_v44  ;;  %v28727_v35 = vld [vmem:[%s38160_s3 + $0x17b4] ss:$28 sps:$4 sm:$0xff]   ;;  %v28728_v44 = vld [vmem:[%s38160_s3 + $0x1f28] ss:$28 sps:$4 sm:$0xff]  }
 0x962   :  { %v28732_v25 = vld [vmem:[%s38160_s3 + $0x17ec] ss:$28 sps:$4 sm:$0xff]  }
 0x963   :  { %19983 = vmatpush1.bf16.msra.mxu1 %v28685_v11  ;;  %v20296_v11 = vadd.f32 %v36880_v3, %v11454_v42  ;;  %v28730_v3 = vld [vmem:[%s38160_s3 + $0x17e8] ss:$28 sps:$4 sm:$0xff]   ;;  %v28767_v42 = vld [vmem:[%s38160_s3 + $0x1974] ss:$28 sps:$4 sm:$0xff]  }
 0x964   :  { %24753 = vmatpush3.bf16.msra.mxu0 %v28689_v23  ;;  %19984 = vmatprep.subr.bf16.mxu1 %v28692_v20  ;;  %v28729_v20 = vld [vmem:[%s38160_s3 + $0x1d68] ss:$28 sps:$4 sm:$0xff]  }
 0x965   :  { %24754 = vmatprep.subr.bf16.mxu0 %v28693_v14 }
 0x967   :  { %19985 = vmatpush1.bf16.msra.mxu1 %v28690_v24  ;;  %v28733_v24 = vld [vmem:[%s38160_s3 + $0x1f60] ss:$28 sps:$4 sm:$0xff]  }
 0x968   :  { %24755 = vmatpush3.bf16.msra.mxu0 %v28694_v51  ;;  %19986 = vmatprep.subr.bf16.mxu1 %v28697_v28  ;;  %v28734_v28 = vld [vmem:[%s38160_s3 + $0x1da0] ss:$28 sps:$4 sm:$0xff]  }
 0x969   :  { %24762 = vmatprep.subr.bf16.mxu0 %v28698_v55  ;;  %v28737_v55 = vld [vmem:[%s38160_s3 + $0x1824] ss:$28 sps:$4 sm:$0xff]  }
 0x96b   :  { %19987 = vmatpush1.bf16.msra.mxu1 %v28695_v2  ;;  %20574 = vmatmul.mubr.bf16.vlgmr.msra.gmra.mrb[68].mxu0 %v34710_v34  ;;  %v28738_v2 = vld [vmem:[%s38160_s3 + $0x2158] ss:$28 sps:$4 sm:$0xff]  }
 0x96c   :  { %24763 = vmatpush3.bf16.msra.mxu0 %v28699_v0  ;;  %20613 = vmatprep.mubr.bf16.mxu0 %v34718_v37  ;;  %v28735_v0 = vld [vmem:[%s38160_s3 + $0x1820] ss:$28 sps:$4 sm:$0xff]  }
 0x96d   :  { %19988 = vmatprep.subr.bf16.mxu1 %v28702_v9  ;;  %24764 = vmatprep.subr.bf16.mxu0 %v28703_v43  ;;  %v28739_v9 = vld [vmem:[%s38160_s3 + $0x1f98] ss:$28 sps:$4 sm:$0xff]  }
 0x96e   :  { %v28742_v43 = vld [vmem:[%s38160_s3 + $0x185c] ss:$28 sps:$4 sm:$0xff]  }
 0x96f   :  { %19989 = vmatpush1.bf16.msra.mxu1 %v28700_v26  ;;  %v28743_v26 = vld [vmem:[%s38160_s3 + $0x2190] ss:$28 sps:$4 sm:$0xff]  }
 0x970   :  { %24765 = vmatpush3.bf16.msra.mxu0 %v28704_v29  ;;  %19990 = vmatprep.subr.bf16.mxu1 %v28707_v58  ;;  %v28740_v29 = vld [vmem:[%s38160_s3 + $0x1858] ss:$28 sps:$4 sm:$0xff]   ;;  %v28744_v58 = vld [vmem:[%s38160_s3 + $0x1fd0] ss:$28 sps:$4 sm:$0xff]  }
 0x971   :  { %24766 = vmatprep.subr.bf16.mxu0 %v28708_v61  ;;  %v28747_v61 = vld [vmem:[%s38160_s3 + $0x1894] ss:$28 sps:$4 sm:$0xff]  }
 0x973   :  { %19991 = vmatpush1.bf16.msra.mxu1 %v28705_v12  ;;  %v28748_v12 = vld [vmem:[%s38160_s3 + $0x21c8] ss:$28 sps:$4 sm:$0xff]  }
 0x974   :  { %24767 = vmatpush3.bf16.msra.mxu0 %v28709_v40  ;;  %19992 = vmatprep.subr.bf16.mxu1 %v28712_v5  ;;  %v28745_v40 = vld [vmem:[%s38160_s3 + $0x1890] ss:$28 sps:$4 sm:$0xff]   ;;  %v28749_v5 = vld [vmem:[%s38160_s3 + $0x2008] ss:$28 sps:$4 sm:$0xff]  }
 0x975   :  { %24768 = vmatprep.subr.bf16.mxu0 %v28713_v59  ;;  %v28752_v59 = vld [vmem:[%s38160_s3 + $0x18cc] ss:$28 sps:$4 sm:$0xff]  }
 0x977   :  { %19993 = vmatpush1.bf16.msra.mxu1 %v28710_v15  ;;  %v28753_v15 = vld [vmem:[%s38160_s3 + $0x2200] ss:$28 sps:$4 sm:$0xff]  }
 0x978   :  { %24769 = vmatpush3.bf16.msra.mxu0 %v28714_v48  ;;  %19994 = vmatprep.subr.bf16.mxu1 %v28717_v54  ;;  %v28750_v48 = vld [vmem:[%s38160_s3 + $0x18c8] ss:$28 sps:$4 sm:$0xff]   ;;  %v28754_v54 = vld [vmem:[%s38160_s3 + $0x2040] ss:$28 sps:$4 sm:$0xff]  }
 0x979   :  { %24770 = vmatprep.subr.bf16.mxu0 %v28718_v46  ;;  %v28757_v46 = vld [vmem:[%s38160_s3 + $0x1904] ss:$28 sps:$4 sm:$0xff]  }
 0x97b   :  { %19995 = vmatpush1.bf16.msra.mxu1 %v28715_v31  ;;  %v28759_v31 = vld [vmem:[%s38160_s3 + $0x2078] ss:$28 sps:$4 sm:$0xff]  }
 0x97c   :  { %24771 = vmatpush3.bf16.msra.mxu0 %v28719_v22  ;;  %19996 = vmatprep.subr.bf16.mxu1 %v28722_v38  ;;  %v28762_v22 = vld [vmem:[%s38160_s3 + $0x193c] ss:$28 sps:$4 sm:$0xff]   ;;  %v28763_v38 = vld [vmem:[%s38160_s3 + $0x2270] ss:$28 sps:$4 sm:$0xff]  }
 0x97d   :  { %24772 = vmatprep.subr.bf16.mxu0 %v28723_v62  ;;  %v28760_v62 = vld [vmem:[%s38160_s3 + $0x1938] ss:$28 sps:$4 sm:$0xff]  }
 0x97e   :  { %v24624_v18 = vpop.f32.mrb[44].mxu0 }
 0x97f   :  { %19997 = vmatpush1.bf16.msra.mxu1 %v28720_v13  ;;  %v24625_v45 = vpop.f32.mrb[45].mxu0  ;;  %v28764_v13 = vld [vmem:[%s38160_s3 + $0x20b0] ss:$28 sps:$4 sm:$0xff]  }
 0x980   :  { %v24626_v41 = vadd.f32 %v24625_v45, %v24624_v18  ;;  %v24627_v23 = vpop.f32.mrb[46].mxu0  ;;  %24773 = vmatpush3.bf16.msra.mxu0 %v28724_v19  ;;  %19998 = vmatprep.subr.bf16.mxu1 %v28727_v35  ;;  %v28768_v19 = vld [vmem:[%s38160_s3 + $0x22a8] ss:$28 sps:$4 sm:$0xff]   ;;  %v28765_v18 = vld [vmem:[%s38160_s3 + $0x1970] ss:$28 sps:$4 sm:$0xff]  }
 0x981   :  { %v24628_v14 = vpop.f32.mrb[47].mxu0  ;;  %24774 = vmatprep.subr.bf16.mxu0 %v28728_v44 }
 0x982   :  { %v36997_v51 = vadd.f32 %v24626_v41, %v20296_v11  ;;  %v28769_v11 = vld [vmem:[%s38160_s3 + $0x20e8] ss:$28 sps:$4 sm:$0xff]  }
 0x983   :  { %19999 = vmatpush1.bf16.msra.mxu1 %v28725_v10  ;;  %v28772_v41 = vld [vmem:[%s38160_s3 + $0x19ac] ss:$28 sps:$4 sm:$0xff]  }
 0x984   :  { %24775 = vmatpush3.bf16.msra.mxu0 %v28729_v20  ;;  %20000 = vmatprep.subr.bf16.mxu1 %v28732_v25  ;;  %v28773_v20 = vld [vmem:[%s38160_s3 + $0x22e0] ss:$28 sps:$4 sm:$0xff]   ;;  %v28770_v14 = vld [vmem:[%s38160_s3 + $0x19a8] ss:$28 sps:$4 sm:$0xff]  }
 0x985   :  { %24776 = vmatprep.subr.bf16.mxu0 %v28733_v24  ;;  %v28774_v24 = vld [vmem:[%s38160_s3 + $0x2120] ss:$28 sps:$4 sm:$0xff]  }
 0x987   :  { %20001 = vmatpush1.bf16.msra.mxu1 %v28730_v3  ;;  %v28777_v3 = vld [vmem:[%s38160_s3 + $0x19e4] ss:$28 sps:$4 sm:$0xff]  }
 0x988   :  { %24777 = vmatpush3.bf16.msra.mxu0 %v28734_v28  ;;  %20002 = vmatprep.subr.bf16.mxu1 %v28737_v55  ;;  %v28775_v28 = vld [vmem:[%s38160_s3 + $0x19e0] ss:$28 sps:$4 sm:$0xff]   ;;  %v28779_v55 = vld [vmem:[%s38160_s3 + $0x2318] ss:$28 sps:$4 sm:$0xff]  }
 0x989   :  { %24784 = vmatprep.subr.bf16.mxu0 %v28738_v2  ;;  %v28782_v2 = vld [vmem:[%s38160_s3 + $0x1a1c] ss:$28 sps:$4 sm:$0xff]  }
 0x98b   :  { %20003 = vmatpush1.bf16.msra.mxu1 %v28735_v0  ;;  %20614 = vmatmul.mubr.bf16.vlgmr.msra.gmra.mrb[72].mxu0 %v34916_v39  ;;  %v28783_v0 = vld [vmem:[%s38160_s3 + $0x2510] ss:$28 sps:$4 sm:$0xff]  }
 0x98c   :  { %24785 = vmatpush3.bf16.msra.mxu0 %v28739_v9  ;;  %20653 = vmatprep.mubr.bf16.mxu0 %v34924_v7  ;;  %v28780_v9 = vld [vmem:[%s38160_s3 + $0x1a18] ss:$28 sps:$4 sm:$0xff]  }
 0x98d   :  { %20004 = vmatprep.subr.bf16.mxu1 %v28742_v43  ;;  %24786 = vmatprep.subr.bf16.mxu0 %v28743_v26  ;;  %v28784_v43 = vld [vmem:[%s38160_s3 + $0x2350] ss:$28 sps:$4 sm:$0xff]  }
 0x98e   :  { %v28787_v26 = vld [vmem:[%s38160_s3 + $0x1a54] ss:$28 sps:$4 sm:$0xff]  }
 0x98f   :  { %20005 = vmatpush1.bf16.msra.mxu1 %v28740_v29  ;;  %v28788_v29 = vld [vmem:[%s38160_s3 + $0x2548] ss:$28 sps:$4 sm:$0xff]  }
 0x990   :  { %24787 = vmatpush3.bf16.msra.mxu0 %v28744_v58  ;;  %20015 = vmatprep.subr.bf16.mxu1 %v28747_v61  ;;  %v28785_v58 = vld [vmem:[%s38160_s3 + $0x1a50] ss:$28 sps:$4 sm:$0xff]   ;;  %v28789_v61 = vld [vmem:[%s38160_s3 + $0x2388] ss:$28 sps:$4 sm:$0xff]  }
 0x991   :  { %24788 = vmatprep.subr.bf16.mxu0 %v28748_v12  ;;  %v28792_v12 = vld [vmem:[%s38160_s3 + $0x1a8c] ss:$28 sps:$4 sm:$0xff]  }
 0x992   :  { %20007 = vmatmul.mubr.bf16.vlgmr.msra.gmra.mrb[36].mxu1 %v34499_v63  ;;  %v28758_v63 = vld [vmem:[%s38160_s3 + $0x2238] ss:$28 sps:$4 sm:$0xff]  }
 0x993   :  { %20016 = vmatpush1.bf16.msra.mxu1 %v28745_v40  ;;  %20047 = vmatprep.mubr.bf16.mxu1 %v34507_v6  ;;  %v28755_v6 = vld [vmem:[%s38160_s3 + $0x1900] ss:$28 sps:$4 sm:$0xff]  }
 0x994   :  { %24789 = vmatpush3.bf16.msra.mxu0 %v28749_v5  ;;  %20017 = vmatprep.subr.bf16.mxu1 %v28752_v59  ;;  %v28793_v40 = vld [vmem:[%s38160_s3 + $0x2580] ss:$28 sps:$4 sm:$0xff]   ;;  %v28790_v5 = vld [vmem:[%s38160_s3 + $0x1a88] ss:$28 sps:$4 sm:$0xff]  }
 0x995   :  { %24790 = vmatprep.subr.bf16.mxu0 %v28753_v15  ;;  %v28794_v59 = vld [vmem:[%s38160_s3 + $0x23c0] ss:$28 sps:$4 sm:$0xff]  }
 0x996   :  { %v28797_v15 = vld [vmem:[%s38160_s3 + $0x1ac4] ss:$28 sps:$4 sm:$0xff]  }
 0x997   :  { %20018 = vmatpush1.bf16.msra.mxu1 %v28750_v48  ;;  %v28798_v48 = vld [vmem:[%s38160_s3 + $0x25b8] ss:$28 sps:$4 sm:$0xff]  }
 0x998   :  { %24791 = vmatpush3.bf16.msra.mxu0 %v28754_v54  ;;  %20019 = vmatprep.subr.bf16.mxu1 %v28757_v46  ;;  %v28795_v54 = vld [vmem:[%s38160_s3 + $0x1ac0] ss:$28 sps:$4 sm:$0xff]   ;;  %v28799_v46 = vld [vmem:[%s38160_s3 + $0x23f8] ss:$28 sps:$4 sm:$0xff]  }
 0x999   :  { %24792 = vmatprep.subr.bf16.mxu0 %v28758_v63  ;;  %v28802_v63 = vld [vmem:[%s38160_s3 + $0x1afc] ss:$28 sps:$4 sm:$0xff]  }
 0x99b   :  { %20020 = vmatpush1.bf16.msra.mxu1 %v28755_v6  ;;  %v28803_v6 = vld [vmem:[%s38160_s3 + $0x25f0] ss:$28 sps:$4 sm:$0xff]  }
 0x99c   :  { %24793 = vmatpush3.bf16.msra.mxu0 %v28759_v31  ;;  %20021 = vmatprep.subr.bf16.mxu1 %v28762_v22  ;;  %v28800_v31 = vld [vmem:[%s38160_s3 + $0x1af8] ss:$28 sps:$4 sm:$0xff]   ;;  %v28804_v22 = vld [vmem:[%s38160_s3 + $0x2430] ss:$28 sps:$4 sm:$0xff]  }
 0x99d   :  { %24794 = vmatprep.subr.bf16.mxu0 %v28763_v38  ;;  %v28807_v38 = vld [vmem:[%s38160_s3 + $0x1b34] ss:$28 sps:$4 sm:$0xff]  }
 0x99e   :  { %v24646_v35 = vpop.f32.mrb[48].mxu0 }
 0x99f   :  { %20022 = vmatpush1.bf16.msra.mxu1 %v28760_v62  ;;  %v24647_v44 = vpop.f32.mrb[49].mxu0  ;;  %v28808_v62 = vld [vmem:[%s38160_s3 + $0x2628] ss:$28 sps:$4 sm:$0xff]  }
 0x9a0   :  { %v24648_v45 = vadd.f32 %v24647_v44, %v24646_v35  ;;  %v24649_v10 = vpop.f32.mrb[50].mxu0  ;;  %24795 = vmatpush3.bf16.msra.mxu0 %v28764_v13  ;;  %20023 = vmatprep.subr.bf16.mxu1 %v28767_v42 }
 0x9a1   :  { %v24650_v23 = vpop.f32.mrb[51].mxu0  ;;  %24796 = vmatprep.subr.bf16.mxu0 %v28768_v19  ;;  %v28805_v19 = vld [vmem:[%s38160_s3 + $0x1b30] ss:$28 sps:$4 sm:$0xff]  }
 0x9a2   :  { %v37100_v25 = vadd.f32 %v24648_v45, %v36997_v51  ;;  %v28778_v51 = vld [vmem:[%s38160_s3 + $0x24d8] ss:$28 sps:$4 sm:$0xff]   ;;  %v28812_v45 = vld [vmem:[%s38160_s3 + $0x1b6c] ss:$28 sps:$4 sm:$0xff]  }
 0x9a3   :  { %20024 = vmatpush1.bf16.msra.mxu1 %v28765_v18  ;;  %v28809_v18 = vld [vmem:[%s38160_s3 + $0x2468] ss:$28 sps:$4 sm:$0xff]  }
 0x9a4   :  { %24797 = vmatpush3.bf16.msra.mxu0 %v28769_v11  ;;  %20025 = vmatprep.subr.bf16.mxu1 %v28772_v41  ;;  %v28813_v11 = vld [vmem:[%s38160_s3 + $0x2660] ss:$28 sps:$4 sm:$0xff]   ;;  %v28810_v23 = vld [vmem:[%s38160_s3 + $0x1b68] ss:$28 sps:$4 sm:$0xff]  }
 0x9a5   :  { %24798 = vmatprep.subr.bf16.mxu0 %v28773_v20  ;;  %v28814_v20 = vld [vmem:[%s38160_s3 + $0x24a0] ss:$28 sps:$4 sm:$0xff]  }
 0x9a7   :  { %20026 = vmatpush1.bf16.msra.mxu1 %v28770_v14  ;;  %v28817_v14 = vld [vmem:[%s38160_s3 + $0x1ba4] ss:$28 sps:$4 sm:$0xff]  }
 0x9a8   :  { %24799 = vmatpush3.bf16.msra.mxu0 %v28774_v24  ;;  %20027 = vmatprep.subr.bf16.mxu1 %v28777_v3  ;;  %v28815_v24 = vld [vmem:[%s38160_s3 + $0x1ba0] ss:$28 sps:$4 sm:$0xff]   ;;  %v28819_v3 = vld [vmem:[%s38160_s3 + $0x2698] ss:$28 sps:$4 sm:$0xff]  }
 0x9a9   :  { %24806 = vmatprep.subr.bf16.mxu0 %v28778_v51  ;;  %v28822_v51 = vld [vmem:[%s38160_s3 + $0x1bdc] ss:$28 sps:$4 sm:$0xff]  }
 0x9ab   :  { %20028 = vmatpush1.bf16.msra.mxu1 %v28775_v28  ;;  %20654 = vmatmul.mubr.bf16.vlgmr.msra.gmra.mrb[76].mxu0 %v35122_v32  ;;  %v28823_v28 = vld [vmem:[%s38160_s3 + $0x2890] ss:$28 sps:$4 sm:$0xff]  }
 0x9ac   :  { %24807 = vmatpush3.bf16.msra.mxu0 %v28779_v55  ;;  %20693 = vmatprep.mubr.bf16.mxu0 %v35130_v53  ;;  %v28820_v55 = vld [vmem:[%s38160_s3 + $0x1bd8] ss:$28 sps:$4 sm:$0xff]  }
 0x9ad   :  { %20029 = vmatprep.subr.bf16.mxu1 %v28782_v2  ;;  %24808 = vmatprep.subr.bf16.mxu0 %v28783_v0  ;;  %v28824_v2 = vld [vmem:[%s38160_s3 + $0x26d0] ss:$28 sps:$4 sm:$0xff]  }
 0x9ae   :  { %v28827_v0 = vld [vmem:[%s38160_s3 + $0x1c14] ss:$28 sps:$4 sm:$0xff]  }
 0x9af   :  { %20030 = vmatpush1.bf16.msra.mxu1 %v28780_v9  ;;  %v28828_v9 = vld [vmem:[%s38160_s3 + $0x28c8] ss:$28 sps:$4 sm:$0xff]  }
 0x9b0   :  { %24809 = vmatpush3.bf16.msra.mxu0 %v28784_v43  ;;  %20031 = vmatprep.subr.bf16.mxu1 %v28787_v26  ;;  %v28825_v43 = vld [vmem:[%s38160_s3 + $0x1c10] ss:$28 sps:$4 sm:$0xff]   ;;  %v28829_v26 = vld [vmem:[%s38160_s3 + $0x2708] ss:$28 sps:$4 sm:$0xff]  }
 0x9b1   :  { %24810 = vmatprep.subr.bf16.mxu0 %v28788_v29  ;;  %v28832_v29 = vld [vmem:[%s38160_s3 + $0x1c4c] ss:$28 sps:$4 sm:$0xff]  }
 0x9b3   :  { %20032 = vmatpush1.bf16.msra.mxu1 %v28785_v58  ;;  %v28833_v58 = vld [vmem:[%s38160_s3 + $0x2900] ss:$28 sps:$4 sm:$0xff]  }
 0x9b4   :  { %24811 = vmatpush3.bf16.msra.mxu0 %v28789_v61  ;;  %20033 = vmatprep.subr.bf16.mxu1 %v28792_v12  ;;  %v28830_v61 = vld [vmem:[%s38160_s3 + $0x1c48] ss:$28 sps:$4 sm:$0xff]   ;;  %v28834_v12 = vld [vmem:[%s38160_s3 + $0x2740] ss:$28 sps:$4 sm:$0xff]  }
 0x9b5   :  { %24812 = vmatprep.subr.bf16.mxu0 %v28793_v40  ;;  %v28837_v40 = vld [vmem:[%s38160_s3 + $0x1c84] ss:$28 sps:$4 sm:$0xff]  }
 0x9b7   :  { %20034 = vmatpush1.bf16.msra.mxu1 %v28790_v5  ;;  %v28839_v5 = vld [vmem:[%s38160_s3 + $0x2778] ss:$28 sps:$4 sm:$0xff]  }
 0x9b8   :  { %24813 = vmatpush3.bf16.msra.mxu0 %v28794_v59  ;;  %20035 = vmatprep.subr.bf16.mxu1 %v28797_v15  ;;  %v28842_v59 = vld [vmem:[%s38160_s3 + $0x1cbc] ss:$28 sps:$4 sm:$0xff]   ;;  %v28843_v15 = vld [vmem:[%s38160_s3 + $0x2970] ss:$28 sps:$4 sm:$0xff]  }
 0x9b9   :  { %24814 = vmatprep.subr.bf16.mxu0 %v28798_v48  ;;  %v28840_v48 = vld [vmem:[%s38160_s3 + $0x1cb8] ss:$28 sps:$4 sm:$0xff]  }
 0x9bb   :  { %20036 = vmatpush1.bf16.msra.mxu1 %v28795_v54  ;;  %v28844_v54 = vld [vmem:[%s38160_s3 + $0x27b0] ss:$28 sps:$4 sm:$0xff]  }
 0x9bc   :  { %24815 = vmatpush3.bf16.msra.mxu0 %v28799_v46  ;;  %20037 = vmatprep.subr.bf16.mxu1 %v28802_v63  ;;  %v28847_v46 = vld [vmem:[%s38160_s3 + $0x1cf4] ss:$28 sps:$4 sm:$0xff]   ;;  %v28848_v63 = vld [vmem:[%s38160_s3 + $0x29a8] ss:$28 sps:$4 sm:$0xff]  }
 0x9bd   :  { %24816 = vmatprep.subr.bf16.mxu0 %v28803_v6 }
 0x9be   :  { %v24668_v13 = vpop.f32.mrb[52].mxu0 }
 0x9bf   :  { %20038 = vmatpush1.bf16.msra.mxu1 %v28800_v31  ;;  %v24669_v42 = vpop.f32.mrb[53].mxu0 }
 0x9c0   :  { %v24670_v35 = vadd.f32 %v24669_v42, %v24668_v13  ;;  %v24671_v44 = vpop.f32.mrb[54].mxu0  ;;  %24817 = vmatpush3.bf16.msra.mxu0 %v28804_v22  ;;  %20039 = vmatprep.subr.bf16.mxu1 %v28807_v38  ;;  %v28845_v22 = vld [vmem:[%s38160_s3 + $0x1cf0] ss:$28 sps:$4 sm:$0xff]   ;;  %v28849_v13 = vld [vmem:[%s38160_s3 + $0x27e8] ss:$28 sps:$4 sm:$0xff]  }
 0x9c1   :  { %v24672_v10 = vpop.f32.mrb[55].mxu0  ;;  %24818 = vmatprep.subr.bf16.mxu0 %v28808_v62  ;;  %v28852_v42 = vld [vmem:[%s38160_s3 + $0x1d2c] ss:$28 sps:$4 sm:$0xff]  }
 0x9c2   :  { %v37201_v41 = vadd.f32 %v24670_v35, %v37100_v25  ;;  %v28818_v25 = vld [vmem:[%s38160_s3 + $0x2858] ss:$28 sps:$4 sm:$0xff]   ;;  %v28853_v35 = vld [vmem:[%s38160_s3 + $0x29e0] ss:$28 sps:$4 sm:$0xff]  }
 0x9c3   :  { %20040 = vmatpush1.bf16.msra.mxu1 %v28805_v19  ;;  %v28857_v10 = vld [vmem:[%s38160_s3 + $0x1d64] ss:$28 sps:$4 sm:$0xff]  }
 0x9c4   :  { %24819 = vmatpush3.bf16.msra.mxu0 %v28809_v18  ;;  %20041 = vmatprep.subr.bf16.mxu1 %v28812_v45  ;;  %v28850_v18 = vld [vmem:[%s38160_s3 + $0x1d28] ss:$28 sps:$4 sm:$0xff]   ;;  %v28854_v45 = vld [vmem:[%s38160_s3 + $0x2820] ss:$28 sps:$4 sm:$0xff]  }
 0x9c5   :  { %24820 = vmatprep.subr.bf16.mxu0 %v28813_v11  ;;  %v28855_v11 = vld [vmem:[%s38160_s3 + $0x1d60] ss:$28 sps:$4 sm:$0xff]  }
 0x9c7   :  { %20042 = vmatpush1.bf16.msra.mxu1 %v28810_v23  ;;  %v28861_v23 = vld [vmem:[%s38160_s3 + $0x1d9c] ss:$28 sps:$4 sm:$0xff]  }
 0x9c8   :  { %24821 = vmatpush3.bf16.msra.mxu0 %v28814_v20  ;;  %20043 = vmatprep.subr.bf16.mxu1 %v28817_v14  ;;  %v28859_v20 = vld [vmem:[%s38160_s3 + $0x1d98] ss:$28 sps:$4 sm:$0xff]   ;;  %v28862_v14 = vld [vmem:[%s38160_s3 + $0x2a50] ss:$28 sps:$4 sm:$0xff]  }
 0x9c9   :  { %24828 = vmatprep.subr.bf16.mxu0 %v28818_v25  ;;  %v28865_v25 = vld [vmem:[%s38160_s3 + $0x1dd4] ss:$28 sps:$4 sm:$0xff]  }
 0x9cb   :  { %20044 = vmatpush1.bf16.msra.mxu1 %v28815_v24  ;;  %20694 = vmatmul.mubr.bf16.vlgmr.msra.gmra.mrb[80].mxu0 %v35328_v36  ;;  %v28863_v24 = vld [vmem:[%s38160_s3 + $0x1dd0] ss:$28 sps:$4 sm:$0xff]  }
 0x9cc   :  { %24829 = vmatpush3.bf16.msra.mxu0 %v28819_v3  ;;  %20733 = vmatprep.mubr.bf16.mxu0 %v35336_v60  ;;  %v28866_v3 = vld [vmem:[%s38160_s3 + $0x2a88] ss:$28 sps:$4 sm:$0xff]  }
 0x9cd   :  { %20045 = vmatprep.subr.bf16.mxu1 %v28822_v51  ;;  %24830 = vmatprep.subr.bf16.mxu0 %v28823_v28  ;;  %v28869_v51 = vld [vmem:[%s38160_s3 + $0x1e0c] ss:$28 sps:$4 sm:$0xff]  }
 0x9ce   :  { %v28867_v28 = vld [vmem:[%s38160_s3 + $0x1e08] ss:$28 sps:$4 sm:$0xff]  }
 0x9cf   :  { %20046 = vmatpush1.bf16.msra.mxu1 %v28820_v55  ;;  %v28870_v55 = vld [vmem:[%s38160_s3 + $0x2ac0] ss:$28 sps:$4 sm:$0xff]  }
 0x9d0   :  { %24831 = vmatpush3.bf16.msra.mxu0 %v28824_v2  ;;  %20056 = vmatprep.subr.bf16.mxu1 %v28827_v0  ;;  %v28873_v2 = vld [vmem:[%s38160_s3 + $0x1e44] ss:$28 sps:$4 sm:$0xff]  }
 0x9d1   :  { %24832 = vmatprep.subr.bf16.mxu0 %v28828_v9  ;;  %v28871_v0 = vld [vmem:[%s38160_s3 + $0x1e40] ss:$28 sps:$4 sm:$0xff]   ;;  %v28874_v9 = vld [vmem:[%s38160_s3 + $0x2af8] ss:$28 sps:$4 sm:$0xff]  }
 0x9d2   :  { %20048 = vmatmul.mubr.bf16.vlgmr.msra.gmra.mrb[36].mxu1 %v34710_v34  ;;  %v28838_v34 = vld [vmem:[%s38160_s3 + $0x2938] ss:$28 sps:$4 sm:$0xff]  }
 0x9d3   :  { %20057 = vmatpush1.bf16.msra.mxu1 %v28825_v43  ;;  %20088 = vmatprep.mubr.bf16.mxu1 %v34718_v37  ;;  %v28835_v37 = vld [vmem:[%s38160_s3 + $0x1c80] ss:$28 sps:$4 sm:$0xff]  }
 0x9d4   :  { %24833 = vmatpush3.bf16.msra.mxu0 %v28829_v26  ;;  %20058 = vmatprep.subr.bf16.mxu1 %v28832_v29  ;;  %v28877_v43 = vld [vmem:[%s38160_s3 + $0x1e7c] ss:$28 sps:$4 sm:$0xff]   ;;  %v28878_v29 = vld [vmem:[%s38160_s3 + $0x2b30] ss:$28 sps:$4 sm:$0xff]  }
 0x9d5   :  { %24834 = vmatprep.subr.bf16.mxu0 %v28833_v58  ;;  %v28875_v26 = vld [vmem:[%s38160_s3 + $0x1e78] ss:$28 sps:$4 sm:$0xff]  }
 0x9d6   :  { %v28881_v58 = vld [vmem:[%s38160_s3 + $0x1eb4] ss:$28 sps:$4 sm:$0xff]  }
 0x9d7   :  { %20059 = vmatpush1.bf16.msra.mxu1 %v28830_v61  ;;  %v11434_v61 = vrot.slane %v36968_v52, %v32959_v56 }
 0x9d8   :  { %24835 = vmatpush3.bf16.msra.mxu0 %v28834_v12  ;;  %20060 = vmatprep.subr.bf16.mxu1 %v28837_v40 }
 0x9d9   :  { %24836 = vmatprep.subr.bf16.mxu0 %v28838_v34  ;;  %v28879_v34 = vld [vmem:[%s38160_s3 + $0x1eb0] ss:$28 sps:$4 sm:$0xff]  }
 0x9db   :  { %20061 = vmatpush1.bf16.msra.mxu1 %v28835_v37 }
 0x9dc   :  { %24837 = vmatpush3.bf16.msra.mxu0 %v28839_v5  ;;  %20062 = vmatprep.subr.bf16.mxu1 %v28842_v59  ;;  %v28882_v59 = vld [vmem:[%s38160_s3 + $0x2b68] ss:$28 sps:$4 sm:$0xff]  }
 0x9dd   :  { %24838 = vmatprep.subr.bf16.mxu0 %v28843_v15  ;;  %v28885_v15 = vld [vmem:[%s38160_s3 + $0x1eec] ss:$28 sps:$4 sm:$0xff]  }
 0x9de   :  { %v24690_v6 = vpop.f32.mrb[56].mxu0 }
 0x9df   :  { %20063 = vmatpush1.bf16.msra.mxu1 %v28840_v48  ;;  %v24691_v31 = vpop.f32.mrb[57].mxu0 }
 0x9e0   :  { %v24692_v38 = vadd.f32 %v24691_v31, %v24690_v6  ;;  %v24693_v62 = vpop.f32.mrb[58].mxu0  ;;  %24839 = vmatpush3.bf16.msra.mxu0 %v28844_v54  ;;  %20064 = vmatprep.subr.bf16.mxu1 %v28847_v46  ;;  %v24934_v54 = vadd.f32 %v36301_v4, %v11434_v61  ;;  %v28886_v6 = vld [vmem:[%s38160_s3 + $0x2ba0] ss:$28 sps:$4 sm:$0xff]   ;;  %v28892_v4 = vld [vmem:[%s38162_s5 + $0x4] ss:$8 sps:$4 sm:$0xff]  }
 0x9e1   :  { %v24694_v19 = vpop.f32.mrb[59].mxu0  ;;  %24840 = vmatprep.subr.bf16.mxu0 %v28848_v63  ;;  %v28883_v63 = vld [vmem:[%s38160_s3 + $0x1ee8] ss:$28 sps:$4 sm:$0xff]  }
 0x9e2   :  { %v37304_v44 = vadd.f32 %v24692_v38, %v37201_v41  ;;  %v28858_v41 = vld [vmem:[%s38160_s3 + $0x2a18] ss:$28 sps:$4 sm:$0xff]   ;;  %v28889_v31 = vld [vmem:[%s38160_s3 + $0x1f24] ss:$28 sps:$4 sm:$0xff]   ;;  %v28931_v61 = vld [vmem:[%s38160_s3 + $0x20ac] ss:$28 sps:$4 sm:$0xff]  }
 0x9e3   :  { %20065 = vmatpush1.bf16.msra.mxu1 %v28845_v22  ;;  %v20782_v22 = vmax.f32 %v24934_v54, 0.0  ;;  %v28887_v38 = vld [vmem:[%s38160_s3 + $0x1f20] ss:$28 sps:$4 sm:$0xff]   ;;  %v28893_v19 = vld [vmem:[%s38160_s3 + $0x1f58] ss:$28 sps:$4 sm:$0xff]  }
 0x9e4   :  { %24841 = vmatpush3.bf16.msra.mxu0 %v28849_v13  ;;  %20066 = vmatprep.subr.bf16.mxu1 %v28852_v42  ;;  %v28890_v62 = vld [vmem:[%s38162_s5] ss:$8 sps:$4 sm:$0xff]   ;;  %v28898_v13 = vld [vmem:[%s38162_s5 + $0x14] ss:$8 sps:$4 sm:$0xff]  }
 0x9e5   :  { %24842 = vmatprep.subr.bf16.mxu0 %v28853_v35  ;;  %v20789_v42 = vpack.c.bf16 %v20782_v22, %v20782_v22  ;;  %v28896_v35 = vld [vmem:[%s38162_s5 + $0x10] ss:$8 sps:$4 sm:$0xff]   ;;  %v28938_v54 = vld [vmem:[%s38162_s5 + $0x80] ss:$8 sps:$4 sm:$0xff]   ;;  %v28952_v22 = vld [vmem:[%s38162_s5 + $0xa4] ss:$8 sps:$4 sm:$0xff]  }
 0x9e7   :  { %20067 = vmatpush1.bf16.msra.mxu1 %v28850_v18  ;;  %v28904_v18 = vld [vmem:[%s38162_s5 + $0x24] ss:$8 sps:$4 sm:$0xff]  }
 0x9e8   :  { %24843 = vmatpush3.bf16.msra.mxu0 %v28854_v45  ;;  %20068 = vmatprep.subr.bf16.mxu1 %v28857_v10  ;;  %v28899_v45 = vld [vmem:[%s38160_s3 + $0x1f90] ss:$28 sps:$4 sm:$0xff]   ;;  %v28902_v10 = vld [vmem:[%s38162_s5 + $0x20] ss:$8 sps:$4 sm:$0xff]  }
 0x9e9   :  { %24887 = vmatprep.subr.bf16.mxu0 %v29261_v1 }
 0x9eb   :  { %20069 = vmatpush1.bf16.msra.mxu1 %v28855_v11  ;;  %20734 = vmatmul.mubr.bf16.vlgmr.msra.gmra.mrb[84].mxu0 %v35533_v16  ;;  %v28907_v11 = vld [vmem:[%s38160_s3 + $0x1fcc] ss:$28 sps:$4 sm:$0xff]  }
 0x9ec   :  { %24888 = vmatpush3.bf16.msra.mxu0 %v28858_v41  ;;  %20070 = vmatprep.subr.bf16.mxu1 %v28861_v23  ;;  %v28910_v41 = vld [vmem:[%s38162_s5 + $0x34] ss:$8 sps:$4 sm:$0xff]   ;;  %v28905_v23 = vld [vmem:[%s38160_s3 + $0x1fc8] ss:$28 sps:$4 sm:$0xff]  }
 0x9ed   :  { %24889 = vmatprep.subr.bf16.mxu0 %v29261_v1  ;;  %24903 = vmatprep.mubr.msk.bf16.mxu0 %vm29262_vm1, %v29261_v1 }
 0x9ef   :  { %20071 = vmatpush1.bf16.msra.mxu1 %v28859_v20  ;;  %v28908_v20 = vld [vmem:[%s38162_s5 + $0x30] ss:$8 sps:$4 sm:$0xff]  }
 0x9f0   :  { %24890 = vmatpush3.bf16.msra.mxu0 %v28862_v14  ;;  %20072 = vmatprep.subr.bf16.mxu1 %v28865_v25  ;;  %v28913_v14 = vld [vmem:[%s38160_s3 + $0x2004] ss:$28 sps:$4 sm:$0xff]  }
 0x9f1   :  { %24891 = vmatprep.subr.bf16.mxu0 %v29261_v1  ;;  %v28914_v25 = vld [vmem:[%s38162_s5 + $0x40] ss:$8 sps:$4 sm:$0xff]  }
 0x9f3   :  { %20073 = vmatpush1.bf16.msra.mxu1 %v28863_v24  ;;  %v28919_v24 = vld [vmem:[%s38160_s3 + $0x203c] ss:$28 sps:$4 sm:$0xff]  }
 0x9f4   :  { %24892 = vmatpush3.bf16.msra.mxu0 %v28866_v3  ;;  %20074 = vmatprep.subr.bf16.mxu1 %v28869_v51  ;;  %v28922_v3 = vld [vmem:[%s38162_s5 + $0x54] ss:$8 sps:$4 sm:$0xff]  }
 0x9f5   :  { %24893 = vmatprep.subr.bf16.mxu0 %v29261_v1  ;;  %v28917_v51 = vld [vmem:[%s38160_s3 + $0x2038] ss:$28 sps:$4 sm:$0xff]  }
 0x9f7   :  { %20075 = vmatpush1.bf16.msra.mxu1 %v28867_v28  ;;  %v28920_v28 = vld [vmem:[%s38162_s5 + $0x50] ss:$8 sps:$4 sm:$0xff]  }
 0x9f8   :  { %24894 = vmatpush3.bf16.msra.mxu0 %v28870_v55  ;;  %20076 = vmatprep.subr.bf16.mxu1 %v28873_v2  ;;  %v28925_v55 = vld [vmem:[%s38160_s3 + $0x2074] ss:$28 sps:$4 sm:$0xff]   ;;  %v28928_v2 = vld [vmem:[%s38162_s5 + $0x64] ss:$8 sps:$4 sm:$0xff]  }
 0x9f9   :  { %24895 = vmatprep.subr.bf16.mxu0 %v29261_v1 }
 0x9fb   :  { %20077 = vmatpush1.bf16.msra.mxu1 %v28871_v0 }
 0x9fc   :  { %24896 = vmatpush3.bf16.msra.mxu0 %v28874_v9  ;;  %20078 = vmatprep.subr.bf16.mxu1 %v28877_v43  ;;  %v28923_v43 = vld [vmem:[%s38160_s3 + $0x2070] ss:$28 sps:$4 sm:$0xff]  }
 0x9fd   :  { %24897 = vmatprep.subr.bf16.mxu0 %v29261_v1 }
 0x9fe   :  { %v24712_v12 = vpop.f32.mrb[60].mxu0 }
 0x9ff   :  { %20079 = vmatpush1.bf16.msra.mxu1 %v28875_v26  ;;  %v24713_v40 = vpop.f32.mrb[61].mxu0 }
 0xa00   :  { %v24714_v37 = vadd.f32 %v24713_v40, %v24712_v12  ;;  %v24715_v5 = vpop.f32.mrb[62].mxu0  ;;  %24898 = vmatpush3.bf16.msra.mxu0 %v28878_v29  ;;  %20080 = vmatprep.subr.bf16.mxu1 %v28881_v58  ;;  %v28926_v58 = vld [vmem:[%s38162_s5 + $0x60] ss:$8 sps:$4 sm:$0xff]   ;;  %v28934_v40 = vld [vmem:[%s38162_s5 + $0x74] ss:$8 sps:$4 sm:$0xff]  }
 0xa01   :  { %v24716_v48 = vpop.f32.mrb[63].mxu0  ;;  %24899 = vmatprep.subr.bf16.mxu0 %v29261_v1  ;;  %v28932_v5 = vld [vmem:[%s38162_s5 + $0x70] ss:$8 sps:$4 sm:$0xff]  }
 0xa02   :  { %v37392_v46 = vadd.f32 %v24714_v37, %v37304_v44  ;;  %v28901_v44 = vld [vmem:[%s38160_s3 + $0x1f94] ss:$28 sps:$4 sm:$0xff]   ;;  %v28929_v37 = vld [vmem:[%s38160_s3 + $0x20a8] ss:$28 sps:$4 sm:$0xff]   ;;  %v28935_v48 = vld [vmem:[%s38160_s3 + $0x20e0] ss:$28 sps:$4 sm:$0xff]  }
 0xa03   :  { %20081 = vmatpush1.bf16.msra.mxu1 %v28879_v34 }
 0xa04   :  { %24900 = vmatpush3.bf16.msra.mxu0 %v28882_v59  ;;  %20082 = vmatprep.subr.bf16.mxu1 %v28885_v15  ;;  %v28937_v59 = vld [vmem:[%s38160_s3 + $0x20e4] ss:$28 sps:$4 sm:$0xff]  }
 0xa05   :  { %24901 = vmatprep.subr.bf16.mxu0 %v29261_v1  ;;  %v28895_v1 = vld [vmem:[%s38160_s3 + $0x1f5c] ss:$28 sps:$4 sm:$0xff]   ;;  %v28940_v15 = vld [vmem:[%s38162_s5 + $0x84] ss:$8 sps:$4 sm:$0xff]  }
 0xa07   :  { %20083 = vmatpush1.bf16.msra.mxu1 %v28883_v63  ;;  %v28946_v63 = vld [vmem:[%s38162_s5 + $0x94] ss:$8 sps:$4 sm:$0xff]  }
 0xa08   :  { %24902 = vmatpush3.bf16.msra.mxu0 %v28886_v6  ;;  %20084 = vmatprep.subr.bf16.mxu1 %v28889_v31  ;;  %v28941_v6 = vld [vmem:[%s38160_s3 + $0x2118] ss:$28 sps:$4 sm:$0xff]  }
 0xa09   :  { %21398 = vmatprep.subr.bf16.mxu0 %v28892_v4  ;;  %v28944_v31 = vld [vmem:[%s38162_s5 + $0x90] ss:$8 sps:$4 sm:$0xff]  }
 0xa0a   :  { %v28949_v4 = vld [vmem:[%s38160_s3 + $0x2154] ss:$28 sps:$4 sm:$0xff]  }
 0xa0b   :  { %20085 = vmatpush1.bf16.msra.mxu1 %v28887_v38  ;;  %24904 = vmatmul.mubr.bf16.vlgmr.msra.gmra.mrb[88].mxu0 %v35636_v8  ;;  %v28947_v38 = vld [vmem:[%s38160_s3 + $0x2150] ss:$28 sps:$4 sm:$0xff]  }
 0xa0c   :  { %21399 = vmatpush1.bf16.msra.mxu0 %v28890_v62  ;;  %21430 = vmatprep.mubr.bf16.mxu0 %v20789_v42  ;;  %v28950_v62 = vld [vmem:[%s38162_s5 + $0xa0] ss:$8 sps:$4 sm:$0xff]  }
 0xa0d   :  { %20086 = vmatprep.subr.bf16.mxu1 %v28895_v1  ;;  %21400 = vmatprep.subr.bf16.mxu0 %v28898_v13  ;;  %v28955_v1 = vld [vmem:[%s38160_s3 + $0x218c] ss:$28 sps:$4 sm:$0xff]   ;;  %v28958_v13 = vld [vmem:[%s38162_s5 + $0xb4] ss:$8 sps:$4 sm:$0xff]  }
 0xa0e   :  { %v28953_v42 = vld [vmem:[%s38160_s3 + $0x2188] ss:$28 sps:$4 sm:$0xff]  }
 0xa0f   :  { %20087 = vmatpush1.bf16.msra.mxu1 %v28893_v19  ;;  %v28956_v19 = vld [vmem:[%s38162_s5 + $0xb0] ss:$8 sps:$4 sm:$0xff]  }
 0xa10   :  { %21401 = vmatpush1.bf16.msra.mxu0 %v28896_v35  ;;  %20097 = vmatprep.subr.bf16.mxu1 %v28901_v44  ;;  %v28961_v35 = vld [vmem:[%s38160_s3 + $0x21c4] ss:$28 sps:$4 sm:$0xff]  }
 0xa11   :  { %21402 = vmatprep.subr.bf16.mxu0 %v28904_v18  ;;  %v28964_v44 = vld [vmem:[%s38162_s5 + $0xc4] ss:$8 sps:$4 sm:$0xff]   ;;  %v28959_v18 = vld [vmem:[%s38160_s3 + $0x21c0] ss:$28 sps:$4 sm:$0xff]  }
 0xa12   :  { %20089 = vmatmul.mubr.bf16.vlgmr.msra.gmra.mrb[36].mxu1 %v34916_v39  ;;  %v28916_v39 = vld [vmem:[%s38162_s5 + $0x44] ss:$8 sps:$4 sm:$0xff]  }
 0xa13   :  { %20098 = vmatpush1.bf16.msra.mxu1 %v28899_v45  ;;  %20129 = vmatprep.mubr.bf16.mxu1 %v34924_v7  ;;  %v28911_v7 = vld [vmem:[%s38160_s3 + $0x2000] ss:$28 sps:$4 sm:$0xff]  }
 0xa14   :  { %21403 = vmatpush1.bf16.msra.mxu0 %v28902_v10  ;;  %20099 = vmatprep.subr.bf16.mxu1 %v28907_v11  ;;  %v28962_v45 = vld [vmem:[%s38162_s5 + $0xc0] ss:$8 sps:$4 sm:$0xff]   ;;  %v28967_v10 = vld [vmem:[%s38160_s3 + $0x21fc] ss:$28 sps:$4 sm:$0xff]  }
 0xa15   :  { %21404 = vmatprep.subr.bf16.mxu0 %v28910_v41  ;;  %v28970_v11 = vld [vmem:[%s38162_s5 + $0xd4] ss:$8 sps:$4 sm:$0xff]  }
 0xa16   :  { %v28965_v41 = vld [vmem:[%s38160_s3 + $0x21f8] ss:$28 sps:$4 sm:$0xff]  }
 0xa17   :  { %20100 = vmatpush1.bf16.msra.mxu1 %v28905_v23  ;;  %v28968_v23 = vld [vmem:[%s38162_s5 + $0xd0] ss:$8 sps:$4 sm:$0xff]  }
 0xa18   :  { %21405 = vmatpush1.bf16.msra.mxu0 %v28908_v20  ;;  %20101 = vmatprep.subr.bf16.mxu1 %v28913_v14  ;;  %v28973_v20 = vld [vmem:[%s38160_s3 + $0x2234] ss:$28 sps:$4 sm:$0xff]   ;;  %v11430_v14 = vrot.slane %v36968_v52, %v33164_v49 }
 0xa19   :  { %21406 = vmatprep.subr.bf16.mxu0 %v28916_v39  ;;  %v28976_v39 = vld [vmem:[%s38162_s5 + $0xe4] ss:$8 sps:$4 sm:$0xff]  }
 0xa1b   :  { %20102 = vmatpush1.bf16.msra.mxu1 %v28911_v7  ;;  %v11442_v7 = vrot.slane %v36968_v52, %v30802_v30  ;;  %v24933_v30 = vadd.f32 %v36296_v33, %v11430_v14  ;;  %v28980_v33 = vld [vmem:[%s38162_s5 + $0xf0] ss:$8 sps:$4 sm:$0xff]   ;;  %v29027_v14 = vld [vmem:[%s38160_s3 + $0x242c] ss:$28 sps:$4 sm:$0xff]  }
 0xa1c   :  { %21407 = vmatpush1.bf16.msra.mxu0 %v28914_v25  ;;  %20103 = vmatprep.subr.bf16.mxu1 %v28919_v24 }
 0xa1d   :  { %21408 = vmatprep.subr.bf16.mxu0 %v28922_v3  ;;  %v28971_v3 = vld [vmem:[%s38160_s3 + $0x2230] ss:$28 sps:$4 sm:$0xff]  }
 0xa1e   :  { %v24734_v0 = vpop.f32.mrb[64].mxu0 }
 0xa1f   :  { %20104 = vmatpush1.bf16.msra.mxu1 %v28917_v51  ;;  %v24735_v9 = vpop.f32.mrb[65].mxu0 }
 0xa20   :  { %v24736_v26 = vadd.f32 %v24735_v9, %v24734_v0  ;;  %v24737_v29 = vpop.f32.mrb[66].mxu0  ;;  %21409 = vmatpush1.bf16.msra.mxu0 %v28920_v28  ;;  %20105 = vmatprep.subr.bf16.mxu1 %v28925_v55  ;;  %v28974_v55 = vld [vmem:[%s38162_s5 + $0xe0] ss:$8 sps:$4 sm:$0xff]   ;;  %v28982_v0 = vld [vmem:[%s38162_s5 + $0xf4] ss:$8 sps:$4 sm:$0xff]   ;;  %v24936_v9 = vadd.f32 %v36775_v57, %v11442_v7 }
 0xa21   :  { %v24738_v12 = vpop.f32.mrb[67].mxu0  ;;  %21410 = vmatprep.subr.bf16.mxu0 %v28928_v2  ;;  %v28979_v2 = vld [vmem:[%s38160_s3 + $0x226c] ss:$28 sps:$4 sm:$0xff]   ;;  %v28985_v29 = vld [vmem:[%s38160_s3 + $0x22a4] ss:$28 sps:$4 sm:$0xff]  }
 0xa22   :  { %v37495_v34 = vadd.f32 %v24736_v26, %v37392_v46  ;;  %v28943_v46 = vld [vmem:[%s38160_s3 + $0x211c] ss:$28 sps:$4 sm:$0xff]   ;;  %v28977_v26 = vld [vmem:[%s38160_s3 + $0x2268] ss:$28 sps:$4 sm:$0xff]  }
 0xa23   :  { %20106 = vmatpush1.bf16.msra.mxu1 %v28923_v43  ;;  %v28988_v57 = vld [vmem:[%s38162_s5 + $0x104] ss:$8 sps:$4 sm:$0xff]   ;;  %v28983_v12 = vld [vmem:[%s38160_s3 + $0x22a0] ss:$28 sps:$4 sm:$0xff]  }
 0xa24   :  { %21411 = vmatpush1.bf16.msra.mxu0 %v28926_v58  ;;  %20107 = vmatprep.subr.bf16.mxu1 %v28931_v61  ;;  %v20781_v58 = vmax.f32 %v24933_v30, 0.0  ;;  %v20784_v61 = vmax.f32 %v24936_v9, 0.0  ;;  %v29030_v7 = vld [vmem:[%s38162_s5 + $0x174] ss:$8 sps:$4 sm:$0xff]   ;;  %v29040_v9 = vld [vmem:[%s38162_s5 + $0x190] ss:$8 sps:$4 sm:$0xff]  }
 0xa25   :  { %21412 = vmatprep.subr.bf16.mxu0 %v28934_v40  ;;  %v28986_v40 = vld [vmem:[%s38162_s5 + $0x100] ss:$8 sps:$4 sm:$0xff]   ;;  %v29039_v30 = vld [vmem:[%s38160_s3 + $0x249c] ss:$28 sps:$4 sm:$0xff]  }
 0xa27   :  { %20108 = vmatpush1.bf16.msra.mxu1 %v28929_v37  ;;  %v28991_v37 = vld [vmem:[%s38160_s3 + $0x22dc] ss:$28 sps:$4 sm:$0xff]  }
 0xa28   :  { %21413 = vmatpush1.bf16.msra.mxu0 %v28932_v5  ;;  %20109 = vmatprep.subr.bf16.mxu1 %v28937_v59  ;;  %v28994_v5 = vld [vmem:[%s38162_s5 + $0x114] ss:$8 sps:$4 sm:$0xff]   ;;  %v20791_v59 = vpack.c.bf16 %v20784_v61, %v20784_v61  ;;  %v29049_v61 = vld [vmem:[%s38160_s3 + $0x2508] ss:$28 sps:$4 sm:$0xff]  }
 0xa29   :  { %21414 = vmatprep.subr.bf16.mxu0 %v28940_v15  ;;  %v28989_v15 = vld [vmem:[%s38160_s3 + $0x22d8] ss:$28 sps:$4 sm:$0xff]  }
 0xa2b   :  { %20110 = vmatpush1.bf16.msra.mxu1 %v28935_v48  ;;  %v28992_v48 = vld [vmem:[%s38162_s5 + $0x110] ss:$8 sps:$4 sm:$0xff]  }
 0xa2c   :  { %21415 = vmatpush1.bf16.msra.mxu0 %v28938_v54  ;;  %20111 = vmatprep.subr.bf16.mxu1 %v28943_v46  ;;  %v28997_v54 = vld [vmem:[%s38160_s3 + $0x2314] ss:$28 sps:$4 sm:$0xff]   ;;  %v29000_v46 = vld [vmem:[%s38162_s5 + $0x124] ss:$8 sps:$4 sm:$0xff]  }
 0xa2d   :  { %21416 = vmatprep.subr.bf16.mxu0 %v28946_v63  ;;  %v28995_v63 = vld [vmem:[%s38160_s3 + $0x2310] ss:$28 sps:$4 sm:$0xff]  }
 0xa2f   :  { %20112 = vmatpush1.bf16.msra.mxu1 %v28941_v6  ;;  %v28998_v6 = vld [vmem:[%s38162_s5 + $0x120] ss:$8 sps:$4 sm:$0xff]  }
 0xa30   :  { %21417 = vmatpush1.bf16.msra.mxu0 %v28944_v31  ;;  %20113 = vmatprep.subr.bf16.mxu1 %v28949_v4  ;;  %v29003_v31 = vld [vmem:[%s38160_s3 + $0x234c] ss:$28 sps:$4 sm:$0xff]   ;;  %v29006_v4 = vld [vmem:[%s38162_s5 + $0x134] ss:$8 sps:$4 sm:$0xff]  }
 0xa31   :  { %21418 = vmatprep.subr.bf16.mxu0 %v28952_v22  ;;  %v29001_v22 = vld [vmem:[%s38160_s3 + $0x2348] ss:$28 sps:$4 sm:$0xff]  }
 0xa33   :  { %20114 = vmatpush1.bf16.msra.mxu1 %v28947_v38  ;;  %v29004_v38 = vld [vmem:[%s38162_s5 + $0x130] ss:$8 sps:$4 sm:$0xff]  }
 0xa34   :  { %21419 = vmatpush1.bf16.msra.mxu0 %v28950_v62  ;;  %20115 = vmatprep.subr.bf16.mxu1 %v28955_v1  ;;  %v29009_v62 = vld [vmem:[%s38160_s3 + $0x2384] ss:$28 sps:$4 sm:$0xff]  }
 0xa35   :  { %21420 = vmatprep.subr.bf16.mxu0 %v28958_v13  ;;  %v29010_v1 = vld [vmem:[%s38162_s5 + $0x140] ss:$8 sps:$4 sm:$0xff]   ;;  %v29015_v13 = vld [vmem:[%s38160_s3 + $0x23bc] ss:$28 sps:$4 sm:$0xff]  }
 0xa37   :  { %20116 = vmatpush1.bf16.msra.mxu1 %v28953_v42  ;;  %v29018_v42 = vld [vmem:[%s38162_s5 + $0x154] ss:$8 sps:$4 sm:$0xff]  }
 0xa38   :  { %21421 = vmatpush1.bf16.msra.mxu0 %v28956_v19  ;;  %20117 = vmatprep.subr.bf16.mxu1 %v28961_v35  ;;  %v29013_v19 = vld [vmem:[%s38160_s3 + $0x23b8] ss:$28 sps:$4 sm:$0xff]  }
 0xa39   :  { %21422 = vmatprep.subr.bf16.mxu0 %v28964_v44  ;;  %v29016_v35 = vld [vmem:[%s38162_s5 + $0x150] ss:$8 sps:$4 sm:$0xff]  }
 0xa3a   :  { %v29021_v44 = vld [vmem:[%s38160_s3 + $0x23f4] ss:$28 sps:$4 sm:$0xff]  }
 0xa3b   :  { %20118 = vmatpush1.bf16.msra.mxu1 %v28959_v18  ;;  %v29024_v18 = vld [vmem:[%s38162_s5 + $0x164] ss:$8 sps:$4 sm:$0xff]  }
 0xa3c   :  { %21423 = vmatpush1.bf16.msra.mxu0 %v28962_v45  ;;  %20119 = vmatprep.subr.bf16.mxu1 %v28967_v10 }
 0xa3d   :  { %21424 = vmatprep.subr.bf16.mxu0 %v28970_v11  ;;  %v29019_v11 = vld [vmem:[%s38160_s3 + $0x23f0] ss:$28 sps:$4 sm:$0xff]  }
 0xa3e   :  { %v24756_v25 = vpop.f32.mrb[68].mxu0 }
 0xa3f   :  { %20120 = vmatpush1.bf16.msra.mxu1 %v28965_v41  ;;  %v24757_v24 = vpop.f32.mrb[69].mxu0 }
 0xa40   :  { %v24758_v51 = vadd.f32 %v24757_v24, %v24756_v25  ;;  %v24759_v28 = vpop.f32.mrb[70].mxu0  ;;  %21425 = vmatpush1.bf16.msra.mxu0 %v28968_v23  ;;  %20121 = vmatprep.subr.bf16.mxu1 %v28973_v20  ;;  %v29022_v20 = vld [vmem:[%s38162_s5 + $0x160] ss:$8 sps:$4 sm:$0xff]  }
 0xa41   :  { %v24760_v52 = vpop.f32.mrb[71].mxu0  ;;  %21426 = vmatprep.subr.bf16.mxu0 %v28976_v39  ;;  %v29025_v24 = vld [vmem:[%s38160_s3 + $0x2428] ss:$28 sps:$4 sm:$0xff]  }
 0xa42   :  { %v37600_v43 = vadd.f32 %v24758_v51, %v37495_v34  ;;  %v20788_v34 = vpack.c.bf16 %v20781_v58, %v20781_v58  ;;  %v29033_v51 = vld [vmem:[%s38160_s3 + $0x2464] ss:$28 sps:$4 sm:$0xff]   ;;  %v29042_v52 = vld [vmem:[%s38162_s5 + $0x194] ss:$8 sps:$4 sm:$0xff]   ;;  %v29051_v58 = vld [vmem:[%s38160_s3 + $0x250c] ss:$28 sps:$4 sm:$0xff]  }
 0xa43   :  { %20122 = vmatpush1.bf16.msra.mxu1 %v28971_v3  ;;  %v29028_v3 = vld [vmem:[%s38162_s5 + $0x170] ss:$8 sps:$4 sm:$0xff]   ;;  %v29036_v28 = vld [vmem:[%s38162_s5 + $0x184] ss:$8 sps:$4 sm:$0xff]  }
 0xa44   :  { %21427 = vmatpush1.bf16.msra.mxu0 %v28974_v55  ;;  %20123 = vmatprep.subr.bf16.mxu1 %v28979_v2  ;;  %v29031_v55 = vld [vmem:[%s38160_s3 + $0x2460] ss:$28 sps:$4 sm:$0xff]  }
 0xa45   :  { %21428 = vmatprep.subr.bf16.mxu0 %v28982_v0  ;;  %v29034_v2 = vld [vmem:[%s38162_s5 + $0x180] ss:$8 sps:$4 sm:$0xff]   ;;  %v29037_v0 = vld [vmem:[%s38160_s3 + $0x2498] ss:$28 sps:$4 sm:$0xff]  }
 0xa47   :  { %20124 = vmatpush1.bf16.msra.mxu1 %v28977_v26  ;;  %v29048_v26 = vld [vmem:[%s38162_s5 + $0x1a4] ss:$8 sps:$4 sm:$0xff]  }
 0xa48   :  { %21429 = vmatpush1.bf16.msra.mxu0 %v28980_v33  ;;  %20125 = vmatprep.subr.bf16.mxu1 %v28985_v29  ;;  %v29043_v33 = vld [vmem:[%s38160_s3 + $0x24d0] ss:$28 sps:$4 sm:$0xff]   ;;  %v29046_v29 = vld [vmem:[%s38162_s5 + $0x1a0] ss:$8 sps:$4 sm:$0xff]  }
 0xa49   :  { %21439 = vmatprep.subr.bf16.mxu0 %v28988_v57  ;;  %v29054_v57 = vld [vmem:[%s38162_s5 + $0x1b4] ss:$8 sps:$4 sm:$0xff]  }
 0xa4b   :  { %20126 = vmatpush1.bf16.msra.mxu1 %v28983_v12  ;;  %21431 = vmatmul.mubr.bf16.vlgmr.msra.gmra.mrb[92].mxu0 %v20788_v34  ;;  %v29052_v12 = vld [vmem:[%s38162_s5 + $0x1b0] ss:$8 sps:$4 sm:$0xff]   ;;  %v29060_v34 = vld [vmem:[%s38162_s5 + $0x1c4] ss:$8 sps:$4 sm:$0xff]  }
 0xa4c   :  { %21440 = vmatpush1.bf16.msra.mxu0 %v28986_v40  ;;  %21471 = vmatprep.mubr.bf16.mxu0 %v20791_v59  ;;  %v29057_v40 = vld [vmem:[%s38160_s3 + $0x2544] ss:$28 sps:$4 sm:$0xff]   ;;  %v29063_v59 = vld [vmem:[%s38160_s3 + $0x257c] ss:$28 sps:$4 sm:$0xff]  }
 0xa4d   :  { %20127 = vmatprep.subr.bf16.mxu1 %v28991_v37  ;;  %21441 = vmatprep.subr.bf16.mxu0 %v28994_v5  ;;  %v29055_v37 = vld [vmem:[%s38160_s3 + $0x2540] ss:$28 sps:$4 sm:$0xff]  }
 0xa4e   :  { %v29058_v5 = vld [vmem:[%s38162_s5 + $0x1c0] ss:$8 sps:$4 sm:$0xff]  }
 0xa4f   :  { %20128 = vmatpush1.bf16.msra.mxu1 %v28989_v15  ;;  %v29066_v15 = vld [vmem:[%s38162_s5 + $0x1d4] ss:$8 sps:$4 sm:$0xff]  }
 0xa50   :  { %21442 = vmatpush1.bf16.msra.mxu0 %v28992_v48  ;;  %20138 = vmatprep.subr.bf16.mxu1 %v28997_v54  ;;  %v29061_v48 = vld [vmem:[%s38160_s3 + $0x2578] ss:$28 sps:$4 sm:$0xff]  }
 0xa51   :  { %21443 = vmatprep.subr.bf16.mxu0 %v29000_v46  ;;  %v29064_v54 = vld [vmem:[%s38162_s5 + $0x1d0] ss:$8 sps:$4 sm:$0xff]  }
 0xa52   :  { %20130 = vmatmul.mubr.bf16.vlgmr.msra.gmra.mrb[36].mxu1 %v35122_v32  ;;  %v29012_v32 = vld [vmem:[%s38162_s5 + $0x144] ss:$8 sps:$4 sm:$0xff]   ;;  %v29069_v46 = vld [vmem:[%s38160_s3 + $0x25b4] ss:$28 sps:$4 sm:$0xff]  }
 0xa53   :  { %20139 = vmatpush1.bf16.msra.mxu1 %v28995_v63  ;;  %20170 = vmatprep.mubr.bf16.mxu1 %v35130_v53  ;;  %v29007_v53 = vld [vmem:[%s38160_s3 + $0x2380] ss:$28 sps:$4 sm:$0xff]  }
 0xa54   :  { %21444 = vmatpush1.bf16.msra.mxu0 %v28998_v6  ;;  %20140 = vmatprep.subr.bf16.mxu1 %v29003_v31  ;;  %v37787_v63 = vld [vmem:[%s38161_s4] sm:$0x7f] }
 0xa55   :  { %21445 = vmatprep.subr.bf16.mxu0 %v29006_v4  ;;  %v11438_v6 = vrot.slane %v37787_v63, %v30793_v27  ;;  %v29072_v31 = vld [vmem:[%s38162_s5 + $0x1e4] ss:$8 sps:$4 sm:$0xff]   ;;  %v29070_v27 = vld [vmem:[%s38162_s5 + $0x1e0] ss:$8 sps:$4 sm:$0xff]  }
 0xa57   :  { %20141 = vmatpush1.bf16.msra.mxu1 %v29001_v22 }
 0xa58   :  { %21446 = vmatpush1.bf16.msra.mxu0 %v29004_v38  ;;  %20142 = vmatprep.subr.bf16.mxu1 %v29009_v62  ;;  %v29067_v38 = vld [vmem:[%s38160_s3 + $0x25b0] ss:$28 sps:$4 sm:$0xff]  }
 0xa59   :  { %21447 = vmatprep.subr.bf16.mxu0 %v29012_v32 }
 0xa5b   :  { %20143 = vmatpush1.bf16.msra.mxu1 %v29007_v53  ;;  %v29075_v53 = vld [vmem:[%s38160_s3 + $0x25ec] ss:$28 sps:$4 sm:$0xff]  }
 0xa5c   :  { %21448 = vmatpush1.bf16.msra.mxu0 %v29010_v1  ;;  %20144 = vmatprep.subr.bf16.mxu1 %v29015_v13  ;;  %v24935_v1 = vadd.f32 %v36773_v17, %v11438_v6  ;;  %v29076_v17 = vld [vmem:[%s38162_s5 + $0x1f0] ss:$8 sps:$4 sm:$0xff]   ;;  %v29183_v6 = vld [vmem:[%s38162_s5 + $0x284] ss:$8 sps:$4 sm:$0xff]  }
 0xa5d   :  { %21449 = vmatprep.subr.bf16.mxu0 %v29018_v42  ;;  %v29078_v42 = vld [vmem:[%s38162_s5 + $0x1f4] ss:$8 sps:$4 sm:$0xff]  }
 0xa5e   :  { %v24778_v45 = vpop.f32.mrb[72].mxu0 }
 0xa5f   :  { %20145 = vmatpush1.bf16.msra.mxu1 %v29013_v19  ;;  %v24779_v10 = vpop.f32.mrb[73].mxu0 }
 0xa60   :  { %v24780_v41 = vadd.f32 %v24779_v10, %v24778_v45  ;;  %v24781_v23 = vpop.f32.mrb[74].mxu0  ;;  %21450 = vmatpush1.bf16.msra.mxu0 %v29016_v35  ;;  %20146 = vmatprep.subr.bf16.mxu1 %v29021_v44  ;;  %v29073_v35 = vld [vmem:[%s38160_s3 + $0x25e8] ss:$28 sps:$4 sm:$0xff]   ;;  %v29079_v10 = vld [vmem:[%s38160_s3 + $0x2620] ss:$28 sps:$4 sm:$0xff]  }
 0xa61   :  { %v24782_v39 = vpop.f32.mrb[75].mxu0  ;;  %21451 = vmatprep.subr.bf16.mxu0 %v29024_v18  ;;  %v29081_v44 = vld [vmem:[%s38160_s3 + $0x2624] ss:$28 sps:$4 sm:$0xff]   ;;  %v20783_v18 = vmax.f32 %v24935_v1, 0.0  ;;  %v29109_v1 = vld [vmem:[%s38160_s3 + $0x2850] ss:$28 sps:$4 sm:$0xff]  }
 0xa62   :  { %v37701_v25 = vadd.f32 %v24780_v41, %v37600_v43  ;;  %v29045_v43 = vld [vmem:[%s38160_s3 + $0x24d4] ss:$28 sps:$4 sm:$0xff]   ;;  %v29159_v45 = vld [vmem:[%s38162_s5 + $0x204] ss:$8 sps:$4 sm:$0xff]   ;;  %v29157_v41 = vld [vmem:[%s38162_s5 + $0x200] ss:$8 sps:$4 sm:$0xff]  }
 0xa63   :  { %20147 = vmatpush1.bf16.msra.mxu1 %v29019_v11  ;;  %v29084_v11 = vld [vmem:[%s38160_s3 + $0x265c] ss:$28 sps:$4 sm:$0xff]   ;;  %v20790_v23 = vpack.c.bf16 %v20783_v18, %v20783_v18  ;;  %v29087_v39 = vld [vmem:[%s38160_s3 + $0x2694] ss:$28 sps:$4 sm:$0xff]   ;;  %v29195_v18 = vld [vmem:[%s38162_s5 + $0x2c4] ss:$8 sps:$4 sm:$0xff]  }
 0xa64   :  { %21452 = vmatpush1.bf16.msra.mxu0 %v29022_v20  ;;  %20148 = vmatprep.subr.bf16.mxu1 %v29027_v14  ;;  %v29162_v20 = vld [vmem:[%s38162_s5 + $0x214] ss:$8 sps:$4 sm:$0xff]  }
 0xa65   :  { %21453 = vmatprep.subr.bf16.mxu0 %v29030_v7  ;;  %v29082_v14 = vld [vmem:[%s38160_s3 + $0x2658] ss:$28 sps:$4 sm:$0xff]  }
 0xa66   :  { %v29160_v7 = vld [vmem:[%s38162_s5 + $0x210] ss:$8 sps:$4 sm:$0xff]  }
 0xa67   :  { %20149 = vmatpush1.bf16.msra.mxu1 %v29025_v24  ;;  %v29085_v24 = vld [vmem:[%s38160_s3 + $0x2690] ss:$28 sps:$4 sm:$0xff]  }
 0xa68   :  { %21454 = vmatpush1.bf16.msra.mxu0 %v29028_v3  ;;  %20150 = vmatprep.subr.bf16.mxu1 %v29033_v51  ;;  %v29090_v3 = vld [vmem:[%s38160_s3 + $0x26cc] ss:$28 sps:$4 sm:$0xff]  }
 0xa69   :  { %21455 = vmatprep.subr.bf16.mxu0 %v29036_v28  ;;  %v29163_v51 = vld [vmem:[%s38162_s5 + $0x220] ss:$8 sps:$4 sm:$0xff]   ;;  %v29168_v28 = vld [vmem:[%s38162_s5 + $0x234] ss:$8 sps:$4 sm:$0xff]  }
 0xa6b   :  { %20151 = vmatpush1.bf16.msra.mxu1 %v29031_v55  ;;  %v29088_v55 = vld [vmem:[%s38160_s3 + $0x26c8] ss:$28 sps:$4 sm:$0xff]  }
 0xa6c   :  { %21456 = vmatpush1.bf16.msra.mxu0 %v29034_v2  ;;  %20152 = vmatprep.subr.bf16.mxu1 %v29039_v30  ;;  %v29093_v2 = vld [vmem:[%s38160_s3 + $0x2704] ss:$28 sps:$4 sm:$0xff]   ;;  %v29166_v30 = vld [vmem:[%s38162_s5 + $0x230] ss:$8 sps:$4 sm:$0xff]  }
 0xa6d   :  { %21457 = vmatprep.subr.bf16.mxu0 %v29042_v52  ;;  %v29096_v52 = vld [vmem:[%s38160_s3 + $0x273c] ss:$28 sps:$4 sm:$0xff]  }
 0xa6f   :  { %20153 = vmatpush1.bf16.msra.mxu1 %v29037_v0  ;;  %v29169_v0 = vld [vmem:[%s38162_s5 + $0x240] ss:$8 sps:$4 sm:$0xff]  }
 0xa70   :  { %21458 = vmatpush1.bf16.msra.mxu0 %v29040_v9  ;;  %20154 = vmatprep.subr.bf16.mxu1 %v29045_v43  ;;  %v29174_v9 = vld [vmem:[%s38162_s5 + $0x254] ss:$8 sps:$4 sm:$0xff]  }
 0xa71   :  { %21459 = vmatprep.subr.bf16.mxu0 %v29048_v26  ;;  %v29094_v43 = vld [vmem:[%s38160_s3 + $0x2738] ss:$28 sps:$4 sm:$0xff]  }
 0xa72   :  { %v29099_v26 = vld [vmem:[%s38160_s3 + $0x2774] ss:$28 sps:$4 sm:$0xff]  }
 0xa73   :  { %20155 = vmatpush1.bf16.msra.mxu1 %v29043_v33  ;;  %v29172_v33 = vld [vmem:[%s38162_s5 + $0x250] ss:$8 sps:$4 sm:$0xff]  }
 0xa74   :  { %21460 = vmatpush1.bf16.msra.mxu0 %v29046_v29  ;;  %20156 = vmatprep.subr.bf16.mxu1 %v29051_v58  ;;  %v29177_v29 = vld [vmem:[%s38162_s5 + $0x264] ss:$8 sps:$4 sm:$0xff]  }
 0xa75   :  { %21461 = vmatprep.subr.bf16.mxu0 %v29054_v57 }
 0xa77   :  { %20157 = vmatpush1.bf16.msra.mxu1 %v29049_v61  ;;  %v29097_v61 = vld [vmem:[%s38160_s3 + $0x2770] ss:$28 sps:$4 sm:$0xff]  }
 0xa78   :  { %21462 = vmatpush1.bf16.msra.mxu0 %v29052_v12  ;;  %20158 = vmatprep.subr.bf16.mxu1 %v29057_v40 }
 0xa79   :  { %21463 = vmatprep.subr.bf16.mxu0 %v29060_v34  ;;  %v29102_v34 = vld [vmem:[%s38160_s3 + $0x27ac] ss:$28 sps:$4 sm:$0xff]  }
 0xa7b   :  { %20159 = vmatpush1.bf16.msra.mxu1 %v29055_v37  ;;  %v29175_v37 = vld [vmem:[%s38162_s5 + $0x260] ss:$8 sps:$4 sm:$0xff]  }
 0xa7c   :  { %21464 = vmatpush1.bf16.msra.mxu0 %v29058_v5  ;;  %20160 = vmatprep.subr.bf16.mxu1 %v29063_v59  ;;  %v29180_v59 = vld [vmem:[%s38162_s5 + $0x274] ss:$8 sps:$4 sm:$0xff]  }
 0xa7d   :  { %21465 = vmatprep.subr.bf16.mxu0 %v29066_v15 }
 0xa7e   :  { %v24800_v4 = vpop.f32.mrb[76].mxu0 }
 0xa7f   :  { %20161 = vmatpush1.bf16.msra.mxu1 %v29061_v48  ;;  %v24801_v22 = vpop.f32.mrb[77].mxu0  ;;  %v29100_v48 = vld [vmem:[%s38160_s3 + $0x27a8] ss:$28 sps:$4 sm:$0xff]  }
 0xa80   :  { %v24802_v62 = vadd.f32 %v24801_v22, %v24800_v4  ;;  %v24803_v32 = vpop.f32.mrb[78].mxu0  ;;  %21466 = vmatpush1.bf16.msra.mxu0 %v29064_v54  ;;  %20162 = vmatprep.subr.bf16.mxu1 %v29069_v46  ;;  %v29105_v54 = vld [vmem:[%s38160_s3 + $0x27e4] ss:$28 sps:$4 sm:$0xff]   ;;  %v29178_v46 = vld [vmem:[%s38162_s5 + $0x270] ss:$8 sps:$4 sm:$0xff]  }
 0xa81   :  { %v24804_v13 = vpop.f32.mrb[79].mxu0  ;;  %21467 = vmatprep.subr.bf16.mxu0 %v29072_v31  ;;  %v29103_v31 = vld [vmem:[%s38160_s3 + $0x27e0] ss:$28 sps:$4 sm:$0xff]   ;;  %v29111_v32 = vld [vmem:[%s38160_s3 + $0x2854] ss:$28 sps:$4 sm:$0xff]  }
 0xa82   :  { %v37808_v19 = vadd.f32 %v24802_v62, %v37701_v25  ;;  %v29165_v25 = vld [vmem:[%s38162_s5 + $0x224] ss:$8 sps:$4 sm:$0xff]   ;;  %v29108_v4 = vld [vmem:[%s38160_s3 + $0x281c] ss:$28 sps:$4 sm:$0xff]   ;;  %v29181_v22 = vld [vmem:[%s38162_s5 + $0x280] ss:$8 sps:$4 sm:$0xff]  }
 0xa83   :  { %20163 = vmatpush1.bf16.msra.mxu1 %v29067_v38  ;;  %v29186_v38 = vld [vmem:[%s38162_s5 + $0x294] ss:$8 sps:$4 sm:$0xff]   ;;  %v29114_v13 = vld [vmem:[%s38160_s3 + $0x288c] ss:$28 sps:$4 sm:$0xff]  }
 0xa84   :  { %21468 = vmatpush1.bf16.msra.mxu0 %v29070_v27  ;;  %20164 = vmatprep.subr.bf16.mxu1 %v29075_v53  ;;  %v29106_v62 = vld [vmem:[%s38160_s3 + $0x2818] ss:$28 sps:$4 sm:$0xff]   ;;  %v29189_v53 = vld [vmem:[%s38162_s5 + $0x2a4] ss:$8 sps:$4 sm:$0xff]  }
 0xa85   :  { %21469 = vmatprep.subr.bf16.mxu0 %v29078_v42  ;;  %v29184_v27 = vld [vmem:[%s38162_s5 + $0x290] ss:$8 sps:$4 sm:$0xff]   ;;  %v29187_v42 = vld [vmem:[%s38162_s5 + $0x2a0] ss:$8 sps:$4 sm:$0xff]  }
 0xa87   :  { %20165 = vmatpush1.bf16.msra.mxu1 %v29073_v35  ;;  %v29112_v35 = vld [vmem:[%s38160_s3 + $0x2888] ss:$28 sps:$4 sm:$0xff]  }
 0xa88   :  { %21470 = vmatpush1.bf16.msra.mxu0 %v29076_v17  ;;  %20166 = vmatprep.subr.bf16.mxu1 %v29081_v44  ;;  %v29117_v17 = vld [vmem:[%s38160_s3 + $0x28c4] ss:$28 sps:$4 sm:$0xff]   ;;  %v29190_v44 = vld [vmem:[%s38162_s5 + $0x2b0] ss:$8 sps:$4 sm:$0xff]  }
 0xa89   :  { %21480 = vmatprep.subr.bf16.mxu0 %v29159_v45  ;;  %v29115_v45 = vld [vmem:[%s38160_s3 + $0x28c0] ss:$28 sps:$4 sm:$0xff]  }
 0xa8b   :  { %20167 = vmatpush1.bf16.msra.mxu1 %v29079_v10  ;;  %21472 = vmatmul.mubr.bf16.vlgmr.msra.gmra.mrb[92].mxu0 %v20790_v23  ;;  %v29120_v10 = vld [vmem:[%s38160_s3 + $0x28fc] ss:$28 sps:$4 sm:$0xff]  }
 0xa8c   :  { %20168 = vmatprep.subr.bf16.mxu1 %v29084_v11  ;;  %21481 = vmatpush1.bf16.msra.mxu0 %v29157_v41  ;;  %v29193_v11 = vld [vmem:[%s38162_s5 + $0x2c0] ss:$8 sps:$4 sm:$0xff]   ;;  %v29198_v41 = vld [vmem:[%s38162_s5 + $0x2d4] ss:$8 sps:$4 sm:$0xff]  }
 0xa8d   :  { %21482 = vmatprep.subr.bf16.mxu0 %v29162_v20  ;;  %v29118_v23 = vld [vmem:[%s38160_s3 + $0x28f8] ss:$28 sps:$4 sm:$0xff]  }
 0xa8e   :  { %v29123_v20 = vld [vmem:[%s38160_s3 + $0x2934] ss:$28 sps:$4 sm:$0xff]  }
 0xa8f   :  { %20169 = vmatpush1.bf16.msra.mxu1 %v29082_v14  ;;  %v29196_v14 = vld [vmem:[%s38162_s5 + $0x2d0] ss:$8 sps:$4 sm:$0xff]  }
 0xa90   :  { %20179 = vmatprep.subr.bf16.mxu1 %v29087_v39  ;;  %21483 = vmatpush1.bf16.msra.mxu0 %v29160_v7 }
 0xa91   :  { %21484 = vmatprep.subr.bf16.mxu0 %v29165_v25  ;;  %v29121_v25 = vld [vmem:[%s38160_s3 + $0x2930] ss:$28 sps:$4 sm:$0xff]  }
 0xa92   :  { %20171 = vmatmul.mubr.bf16.vlgmr.msra.gmra.mrb[36].mxu1 %v35328_v36  ;;  %v29171_v36 = vld [vmem:[%s38162_s5 + $0x244] ss:$8 sps:$4 sm:$0xff]  }
 0xa93   :  { %20180 = vmatpush1.bf16.msra.mxu1 %v29085_v24  ;;  %20211 = vmatprep.mubr.bf16.mxu1 %v35336_v60  ;;  %v29091_v60 = vld [vmem:[%s38160_s3 + $0x2700] ss:$28 sps:$4 sm:$0xff]  }
 0xa94   :  { %20181 = vmatprep.subr.bf16.mxu1 %v29090_v3  ;;  %21485 = vmatpush1.bf16.msra.mxu0 %v29163_v51  ;;  %v29126_v51 = vld [vmem:[%s38160_s3 + $0x296c] ss:$28 sps:$4 sm:$0xff]  }
 0xa95   :  { %21486 = vmatprep.subr.bf16.mxu0 %v29168_v28 }
 0xa97   :  { %20182 = vmatpush1.bf16.msra.mxu1 %v29088_v55 }
 0xa98   :  { %20183 = vmatprep.subr.bf16.mxu1 %v29093_v2  ;;  %21487 = vmatpush1.bf16.msra.mxu0 %v29166_v30  ;;  %v29124_v2 = vld [vmem:[%s38160_s3 + $0x2968] ss:$28 sps:$4 sm:$0xff]  }
 0xa99   :  { %21488 = vmatprep.subr.bf16.mxu0 %v29171_v36  ;;  %v29129_v30 = vld [vmem:[%s38160_s3 + $0x29a4] ss:$28 sps:$4 sm:$0xff]  }
 0xa9a   :  { %v29127_v36 = vld [vmem:[%s38160_s3 + $0x29a0] ss:$28 sps:$4 sm:$0xff]  }
 0xa9b   :  { %20184 = vmatpush1.bf16.msra.mxu1 %v29091_v60  ;;  %v29132_v60 = vld [vmem:[%s38160_s3 + $0x29dc] ss:$28 sps:$4 sm:$0xff]  }
 0xa9c   :  { %20185 = vmatprep.subr.bf16.mxu1 %v29096_v52  ;;  %21489 = vmatpush1.bf16.msra.mxu0 %v29169_v0  ;;  %v29130_v52 = vld [vmem:[%s38160_s3 + $0x29d8] ss:$28 sps:$4 sm:$0xff]  }
 0xa9d   :  { %21490 = vmatprep.subr.bf16.mxu0 %v29174_v9  ;;  %v29135_v0 = vld [vmem:[%s38160_s3 + $0x2a14] ss:$28 sps:$4 sm:$0xff]  }
 0xa9e   :  { %v24822_v58 = vpop.f32.mrb[80].mxu0  ;;  %v29133_v9 = vld [vmem:[%s38160_s3 + $0x2a10] ss:$28 sps:$4 sm:$0xff]  }
 0xa9f   :  { %20186 = vmatpush1.bf16.msra.mxu1 %v29094_v43  ;;  %v24823_v57 = vpop.f32.mrb[81].mxu0  ;;  %v29138_v43 = vld [vmem:[%s38160_s3 + $0x2a4c] ss:$28 sps:$4 sm:$0xff]  }
 0xaa0   :  { %v24824_v12 = vadd.f32 %v24823_v57, %v24822_v58  ;;  %v24825_v40 = vpop.f32.mrb[82].mxu0  ;;  %20187 = vmatprep.subr.bf16.mxu1 %v29099_v26  ;;  %21491 = vmatpush1.bf16.msra.mxu0 %v29172_v33  ;;  %v29136_v26 = vld [vmem:[%s38160_s3 + $0x2a48] ss:$28 sps:$4 sm:$0xff]   ;;  %v29142_v58 = vld [vmem:[%s38160_s3 + $0x2ab8] ss:$28 sps:$4 sm:$0xff]  }
 0xaa1   :  { %v24826_v5 = vpop.f32.mrb[83].mxu0  ;;  %21492 = vmatprep.subr.bf16.mxu0 %v29177_v29  ;;  %v29141_v33 = vld [vmem:[%s38160_s3 + $0x2a84] ss:$28 sps:$4 sm:$0xff]   ;;  %v29147_v57 = vld [vmem:[%s38160_s3 + $0x2af4] ss:$28 sps:$4 sm:$0xff]  }
 0xaa2   :  { %v37909_v15 = vadd.f32 %v24824_v12, %v37808_v19  ;;  %v29192_v19 = vld [vmem:[%s38162_s5 + $0x2b4] ss:$8 sps:$4 sm:$0xff]   ;;  %v29150_v5 = vld [vmem:[%s38160_s3 + $0x2b2c] ss:$28 sps:$4 sm:$0xff]  }
 0xaa3   :  { %20188 = vmatpush1.bf16.msra.mxu1 %v29097_v61  ;;  %v29139_v29 = vld [vmem:[%s38160_s3 + $0x2a80] ss:$28 sps:$4 sm:$0xff]  }
 0xaa4   :  { %20189 = vmatprep.subr.bf16.mxu1 %v29102_v34  ;;  %21493 = vmatpush1.bf16.msra.mxu0 %v29175_v37  ;;  %v29145_v34 = vld [vmem:[%s38160_s3 + $0x2af0] ss:$28 sps:$4 sm:$0xff]  }
 0xaa5   :  { %21494 = vmatprep.subr.bf16.mxu0 %v29180_v59 }
 0xaa7   :  { %20190 = vmatpush1.bf16.msra.mxu1 %v29100_v48  ;;  %v29153_v48 = vld [vmem:[%s38160_s3 + $0x2b64] ss:$28 sps:$4 sm:$0xff]  }
 0xaa8   :  { %20191 = vmatprep.subr.bf16.mxu1 %v29105_v54  ;;  %21495 = vmatpush1.bf16.msra.mxu0 %v29178_v46  ;;  %v29151_v54 = vld [vmem:[%s38160_s3 + $0x2b60] ss:$28 sps:$4 sm:$0xff]  }
 0xaa9   :  { %21496 = vmatprep.subr.bf16.mxu0 %v29183_v6  ;;  %v29156_v46 = vld [vmem:[%s38160_s3 + $0x2b9c] ss:$28 sps:$4 sm:$0xff]  }
 0xaaa   :  { %v29154_v6 = vld [vmem:[%s38160_s3 + $0x2b98] ss:$28 sps:$4 sm:$0xff]  }
 0xaab   :  { %20192 = vmatpush1.bf16.msra.mxu1 %v29103_v31  ;;  %v29201_v31 = vld [vmem:[%s38162_s5 + $0x2e4] ss:$8 sps:$4 sm:$0xff]  }
 0xaac   :  { %20193 = vmatprep.subr.bf16.mxu1 %v29108_v4  ;;  %21497 = vmatpush1.bf16.msra.mxu0 %v29181_v22  ;;  %v29199_v4 = vld [vmem:[%s38162_s5 + $0x2e0] ss:$8 sps:$4 sm:$0xff]   ;;  %v29204_v22 = vld [vmem:[%s38162_s5 + $0x2f4] ss:$8 sps:$4 sm:$0xff]  }
 0xaad   :  { %21498 = vmatprep.subr.bf16.mxu0 %v29186_v38  ;;  %v29202_v38 = vld [vmem:[%s38162_s5 + $0x2f0] ss:$8 sps:$4 sm:$0xff]  }
 0xaaf   :  { %20194 = vmatpush1.bf16.msra.mxu1 %v29106_v62  ;;  %v11446_v62 = vrot.slane %v37787_v63, %v33583_v50  ;;  %v29208_v50 = vld [vmem:[%s38164_s7 + $0x40] sm:$0xff]  }
 0xab0   :  { %20195 = vmatprep.subr.bf16.mxu1 %v29111_v32  ;;  %21499 = vmatpush1.bf16.msra.mxu0 %v29184_v27  ;;  %v11450_v32 = vrot.slane %v37787_v63, %v33371_v47  ;;  %v29209_v63 = vld [vmem:[%s38164_s7] sm:$0xff]  }
 0xab1   :  { %21500 = vmatprep.subr.bf16.mxu0 %v29189_v53 }
 0xab3   :  { %20196 = vmatpush1.bf16.msra.mxu1 %v29109_v1 }
 0xab4   :  { %20197 = vmatprep.subr.bf16.mxu1 %v29114_v13  ;;  %21501 = vmatpush1.bf16.msra.mxu0 %v29187_v42 }
 0xab5   :  { %21502 = vmatprep.subr.bf16.mxu0 %v29192_v19 }
 0xab7   :  { %20198 = vmatpush1.bf16.msra.mxu1 %v29112_v35 }
 0xab8   :  { %20199 = vmatprep.subr.bf16.mxu1 %v29117_v17  ;;  %21503 = vmatpush1.bf16.msra.mxu0 %v29190_v44 }
 0xab9   :  { %21504 = vmatprep.subr.bf16.mxu0 %v29195_v18  ;;  %v29205_v18 = vld [vmem:[%s38162_s5 + $0x300] ss:$8 sps:$4 sm:$0xff]  }
 0xabb   :  { %20200 = vmatpush1.bf16.msra.mxu1 %v29115_v45 }
 0xabc   :  { %20201 = vmatprep.subr.bf16.mxu1 %v29120_v10  ;;  %21505 = vmatpush1.bf16.msra.mxu0 %v29193_v11  ;;  %v29210_v11 = vld [vmem:[%s38164_s7 + $0x48] sm:$0xff]  }
 0xabd   :  { %21506 = vmatprep.subr.bf16.mxu0 %v29198_v41  ;;  %v29211_v41 = vld [vmem:[%s38164_s7 + $0x8] sm:$0xff]  }
 0xabe   :  { %v24844_v39 = vpop.f32.mrb[84].mxu0 }
 0xabf   :  { %20202 = vmatpush1.bf16.msra.mxu1 %v29118_v23  ;;  %v24845_v7 = vpop.f32.mrb[85].mxu0  ;;  %v29213_v23 = vld [vmem:[%s38164_s7 + $0x10] sm:$0xff]  }
 0xac0   :  { %v24846_v24 = vadd.f32 %v24845_v7, %v24844_v39  ;;  %v24847_v3 = vpop.f32.mrb[86].mxu0  ;;  %20203 = vmatprep.subr.bf16.mxu1 %v29123_v20  ;;  %21507 = vmatpush1.bf16.msra.mxu0 %v29196_v14  ;;  %v29214_v20 = vld [vmem:[%s38164_s7 + $0x58] sm:$0xff]   ;;  %v29216_v39 = vld [vmem:[%s38164_s7 + $0x60] sm:$0xff]  }
 0xac1   :  { %v24848_v28 = vpop.f32.mrb[87].mxu0  ;;  %21508 = vmatprep.subr.bf16.mxu0 %v29201_v31  ;;  %v29215_v14 = vld [vmem:[%s38164_s7 + $0x18] sm:$0xff]   ;;  %v29217_v7 = vld [vmem:[%s38164_s7 + $0x20] sm:$0xff]   ;;  %v29220_v3 = vld [vmem:[%s38164_s7 + $0x70] sm:$0xff]  }
 0xac2   :  { %v20736_v55 = vadd.f32 %v24846_v24, %v37909_v15  ;;  %v29148_v15 = vld [vmem:[%s38160_s3 + $0x2b28] ss:$28 sps:$4 sm:$0xff]   ;;  %v29222_v28 = vld [vmem:[%s38164_s7 + $0x78] sm:$0xff]  }
 0xac3   :  { %20204 = vmatpush1.bf16.msra.mxu1 %v29121_v25  ;;  %v29218_v25 = vld [vmem:[%s38164_s7 + $0x68] sm:$0xff]  }
 0xac4   :  { %20205 = vmatprep.subr.bf16.mxu1 %v29126_v51  ;;  %21509 = vmatpush1.bf16.msra.mxu0 %v29199_v4  ;;  %v29219_v24 = vld [vmem:[%s38164_s7 + $0x28] sm:$0xff]   ;;  %v29221_v51 = vld [vmem:[%s38164_s7 + $0x30] sm:$0xff]  }
 0xac5   :  { %21510 = vmatprep.subr.bf16.mxu0 %v29204_v22 }
 0xac7   :  { %20206 = vmatpush1.bf16.msra.mxu1 %v29124_v2  ;;  %v20893_v2 = vld [vmem:[%s38163_s6] sm:$0x3] }
 0xac8   :  { %20207 = vmatprep.subr.bf16.mxu1 %v29129_v30  ;;  %21511 = vmatpush1.bf16.msra.mxu0 %v29202_v38  ;;  %v20898_v30 = vrot.slane %v20893_v2, %v33164_v49  ;;  %v24501_v49 = vld [vmem:[%s38165_s8] ss:$0 sm:$0xff] }
 0xacb   :  { %20208 = vmatpush1.bf16.msra.mxu1 %v29127_v36  ;;  %v20902_v36 = vrot.slane %v20893_v2, %v32959_v56 }
 0xacc   :  { %20209 = vmatprep.subr.bf16.mxu1 %v29132_v60 }
 0xacf   :  { %20210 = vmatpush1.bf16.msra.mxu1 %v29130_v52 }
 0xad0   :  { %20220 = vmatprep.subr.bf16.mxu1 %v29135_v0 }
 0xad2   :  { %20212 = vmatmul.mubr.bf16.vlgmr.msra.gmra.mrb[36].mxu1 %v35533_v16  ;;  %v29144_v16 = vld [vmem:[%s38160_s3 + $0x2abc] ss:$28 sps:$4 sm:$0xff]  }
 0xad3   :  { %20221 = vmatpush1.bf16.msra.mxu1 %v29133_v9  ;;  %20252 = vmatprep.mubr.bf16.mxu1 %v29260_v21 }
 0xad4   :  { %20222 = vmatprep.subr.bf16.mxu1 %v29138_v43 }
 0xad7   :  { %20223 = vmatpush1.bf16.msra.mxu1 %v29136_v26 }
 0xad8   :  { %20224 = vmatprep.subr.bf16.mxu1 %v29141_v33 }
 0xadb   :  { %20225 = vmatpush1.bf16.msra.mxu1 %v29139_v29 }
 0xadc   :  { %20226 = vmatprep.subr.bf16.mxu1 %v29144_v16 }
 0xade   :  { %v20775_v61 = vpop.f32.mrb[88].mxu0 }
 0xadf   :  { %v20776_v12 = vadd.f32 %v20775_v61, %v20736_v55  ;;  %20227 = vmatpush1.bf16.msra.mxu1 %v29142_v58  ;;  %v24905_v40 = vpop.f32.mrb[89].mxu0  ;;  %v29223_v55 = vld [vmem:[%s38164_s7 + $0x38] sm:$0xff]  }
 0xae0   :  { %v20778_v37 = vpop.f32.mrb[90].mxu0  ;;  %20228 = vmatprep.subr.bf16.mxu1 %v29147_v57 }
 0xae1   :  { %v24906_v59 = vpop.f32.mrb[91].mxu0  ;;  %v20787_v47 = vmax.f32 %v20776_v12, 0.0 }
 0xae3   :  { %20229 = vmatpush1.bf16.msra.mxu1 %v29145_v34  ;;  %v20794_v10 = vpack.c.bf16 %v20787_v47, %v20787_v47 }
 0xae4   :  { %20230 = vmatprep.subr.bf16.mxu1 %v29150_v5 }
 0xae7   :  { %20231 = vmatpush1.bf16.msra.mxu1 %v29148_v15 }
 0xae8   :  { %20232 = vmatprep.subr.bf16.mxu1 %v29153_v48 }
 0xaeb   :  { %20233 = vmatpush1.bf16.msra.mxu1 %v29151_v54 }
 0xaec   :  { %20234 = vmatprep.subr.bf16.mxu1 %v29156_v46 }
 0xaef   :  { %20235 = vmatpush1.bf16.msra.mxu1 %v29154_v6 }
 0xaf2   :  { %20253 = vmatmul.mubr.bf16.vlgmr.msra.gmra.mrb[36].mxu1 %v35636_v8  ;;  %v29207_v8 = vld [vmem:[%s38162_s5 + $0x304] ss:$8 sps:$4 sm:$0xff]  }
 0xaf3   :  { %21521 = vmatprep.subr.bf16.mxu0 %v29207_v8 }
 0xbc5   :  { %v20254_v27 = vpop.f32.mrb[36].mxu1 }
 0xbc6   :  { %v24937_v53 = vadd.f32 %v20254_v27, %v11446_v62  ;;  %v20256_v1 = vpop.f32.mrb[37].mxu1 }
 0xbc7   :  { %v24938_v13 = vadd.f32 %v20256_v1, %v11450_v32  ;;  %v20258_v42 = vpop.f32.mrb[38].mxu1 }
 0xbc8   :  { %v20785_v19 = vmax.f32 %v24937_v53, 0.0  ;;  %v20259_v35 = vpop.f32.mrb[39].mxu1 }
 0xbc9   :  { %v20786_v17 = vmax.f32 %v24938_v13, 0.0 }
 0xbca   :  { %v20792_v45 = vpack.c.bf16 %v20785_v19, %v20785_v19 }
 0xbcb   :  { %v20793_v44 = vpack.c.bf16 %v20786_v17, %v20786_v17 }
 0xbcd   :  { %21512 = vmatprep.mubr.bf16.mxu0 %v20793_v44 }
 0xbce   :  { %21513 = vmatmul.mubr.bf16.vlgmr.msra.gmra.mrb[92].mxu0 %v20792_v45 }
 0xbcf   :  { %21522 = vmatpush1.bf16.msra.mxu0 %v29205_v18  ;;  %21553 = vmatprep.mubr.bf16.mxu0 %v29260_v21  ;;  %v29212_v21 = vld [vmem:[%s38164_s7 + $0x50] sm:$0xff]  }
 0xbd0   :  { %24859 = vmatprep.subr.bf16.mxu0 %v29208_v50 }
 0xbda   :  { %24500 = vmatmul.mubr.msk.bf16.vlgmr.msra.gmra.mrb[92].mxu0 %vm7643_vm0, %v20794_v10 }
 0xbdb   :  { %24860 = vmatpush3.bf16.msra.mxu0 %v29209_v63 }
 0xbdc   :  { %24861 = vmatprep.subr.bf16.mxu0 %v29210_v11 }
 0xbdf   :  { %24862 = vmatpush3.bf16.msra.mxu0 %v29211_v41 }
 0xbe0   :  { %24863 = vmatprep.subr.bf16.mxu0 %v29212_v21 }
 0xbe3   :  { %24864 = vmatpush3.bf16.msra.mxu0 %v29213_v23 }
 0xbe4   :  { %24865 = vmatprep.subr.bf16.mxu0 %v29214_v20 }
 0xbe7   :  { %24866 = vmatpush3.bf16.msra.mxu0 %v29215_v14 }
 0xbe8   :  { %24867 = vmatprep.subr.bf16.mxu0 %v29216_v39 }
 0xbeb   :  { %24868 = vmatpush3.bf16.msra.mxu0 %v29217_v7 }
 0xbec   :  { %24869 = vmatprep.subr.bf16.mxu0 %v29218_v25 }
 0xbef   :  { %24870 = vmatpush3.bf16.msra.mxu0 %v29219_v24 }
 0xbf0   :  { %24871 = vmatprep.subr.bf16.mxu0 %v29220_v3 }
 0xbf3   :  { %24872 = vmatpush3.bf16.msra.mxu0 %v29221_v51 }
 0xbf4   :  { %24873 = vmatprep.subr.bf16.mxu0 %v29222_v28 }
 0xbf7   :  { %24874 = vmatpush3.bf16.msra.mxu0 %v29223_v55 }
 0xcad   :  { %v21555_v60 = vpop.f32.mrb[92].mxu0 }
 0xcae   :  { %v24939_v52 = vadd.f32 %v21555_v60, %v20898_v30  ;;  %v21557_v0 = vpop.f32.mrb[93].mxu0 }
 0xcaf   :  { %v24940_v9 = vadd.f32 %v21557_v0, %v20902_v36  ;;  %v21559_v43 = vpop.f32.mrb[94].mxu0 }
 0xcb0   :  { %v21562_v26 = vmax.f32 %v24939_v52, 0.0  ;;  %v21560_v33 = vpop.f32.mrb[95].mxu0 }
 0xcb1   :  { %v21563_v29 = vmax.f32 %v24940_v9, 0.0 }
 0xcb2   :  { %v21564_v58 = vpack.c.bf16 %v21562_v26, %v21562_v26 }
 0xcb3   :  { %v21565_v16 = vpack.c.bf16 %v21563_v29, %v21563_v29 }
 0xcb5   :  { %21733 = vmatprep.mubr.bf16.mxu0 %v21565_v16 }
 0xcb6   :  { %21734 = vmatmul.mubr.bf16.vlgmr.msra.gmra.mrb[96].mxu0 %v21564_v58 }
 0xd89   :  { %v24875_v57 = vpop.f32.mrb[96].mxu0 }
 0xd8a   :  { %v24876_v61 = vpop.f32.mrb[97].mxu0 }
 0xd8b   :  { %v24877_v56 = vadd.f32 %v24876_v61, %v24875_v57  ;;  %v24878_v12 = vpop.f32.mrb[98].mxu0 }
 0xd8c   :  { %v24879_v40 = vpop.f32.mrb[99].mxu0 }
 0xd8d   :  { %v21736_v34 = vadd.f32 %v24877_v56, %v24501_v49 }
 0xd8f   :  { %21741 = vst [vmem:[#allocation2] sm:$0xff] %v21736_v34 }
 0xd90   :  { %29247 = shalt.err (!%p29244_p4)
}
 0xd91   :  { %s29248_s16 = scalar_lea.hbm %s38166_s9, 128 }
 0xd92   :  { %p29249_p5 = scmp.ne.s32.totalorder %s38166_s9, %s29248_s16  ;;  %p29252_p6 = scmp.lt.u32.totalorder %s29248_s16, %s38166_s9 }
 0xd94   :  { %p29254_p7 = pnand %p29252_p6, %p29249_p5 }
 0xd96   :  { %29257 = shalt.err (!%p29254_p7)
}
 0xd97   :  { %21751 = dma.vmem_to_hbm [thread:$0]  %s21749_s13, 128, %s38166_s9, [#allocation3]  }
 0xd98   :  { %29258 = dma.done.wait [#allocation3], 128  }
 0xd99   :  { %29259 = vsyncadd [#allocation3], 4294967168 }
 0xd9a   :  { %21755 = vsyncpa [#allocation3], 1 }

</bundles_post_ra>
